<compile_context>
chip_gen: v5e
topology: v5e:2x2
jax: 0.10.0
libtpu: 0.0.40
codegen_flags: <defaults>
</compile_context>

<pallas_src>
import functools

import jax
import jax.numpy as jnp
from jax.experimental import pallas as pl
from jax.experimental.pallas import tpu as pltpu

LANES = 128      # MXU / lane width
CP = 8           # input channels padded 3 -> 8 (sublane-friendly tap K)
HIDDEN = 8       # hidden width of the stand-in FC4 head


# ----------------------------------------------------------------------------
# Fused FC4-head kernel: conv3x3 -> conv3x3 -> 1x1 conv -> sum-pool -> L2 norm
# One grid step == one image; everything stays in VMEM.
# ----------------------------------------------------------------------------
def _fc4_head_kernel(x_ref, scale_ref, w1_ref, b1_ref, w2_ref, b2_ref,
                     w3_ref, b3_ref, wp_ref, h_scr, *, H, W, CPk):
    # x_ref:     (1, H+2, W+2, CPk) f32  halo-padded image (channels zero-padded)
    # scale_ref: (1, 1, 1, CPk)     f32  fused AWB per-channel scale
    # w1_ref:    (9, CPk, 128)      bf16 per-tap conv1 weights (padded)
    # w2_ref:    (9, 128, 128)      bf16 per-tap conv2 weights (padded)
    # w3_ref:    (128, 128)         bf16 1x1 conv weights (padded)
    # b*_ref:    (1, 128)           f32  padded biases
    # wp_ref:    (1, 1, 128)        f32  output; lanes [0,3) hold the white point
    # h_scr:     VMEM (H+2, W+2, 128) f32 spatially re-padded hidden activations
    M = H * W
    x = x_ref[0] * scale_ref[0]                     # (H+2, W+2, CPk), AWB fused

    # ---- conv1: 3x3 SAME, CPk -> hidden, as 9 accumulated MXU matmuls ----
    acc = jnp.zeros((M, LANES), jnp.float32)
    for t in range(9):
        dy, dx = divmod(t, 3)
        patch = x[dy:dy + H, dx:dx + W, :].reshape(M, CPk).astype(jnp.bfloat16)
        acc = acc + jnp.dot(patch, w1_ref[t], preferred_element_type=jnp.float32)
    h1 = jnp.maximum(acc + b1_ref[...], 0.0)        # (M, 128); lanes >= hidden are 0

    # ---- spatially re-pad h1 inside VMEM for the second SAME conv ----
    h_scr[...] = jnp.zeros_like(h_scr)
    h_scr[1:1 + H, 1:1 + W, :] = h1.reshape(H, W, LANES)

    # ---- conv2: 3x3 SAME, hidden -> hidden ----
    acc = jnp.zeros((M, LANES), jnp.float32)
    for t in range(9):
        dy, dx = divmod(t, 3)
        patch = h_scr[dy:dy + H, dx:dx + W, :].reshape(M, LANES)
        acc = acc + jnp.dot(patch.astype(jnp.bfloat16), w2_ref[t],
                            preferred_element_type=jnp.float32)
    h2 = jnp.maximum(acc + b2_ref[...], 0.0)        # (M, 128); lanes >= hidden are 0

    # ---- 1x1 conv (hidden -> 3) + sum-pool over space + L2 normalize ----
    h3 = jnp.dot(h2.astype(jnp.bfloat16), w3_ref[...],
                 preferred_element_type=jnp.float32)
    h3 = jnp.maximum(h3 + b3_ref[...], 0.0)         # (M, 128); lanes >= 3 are 0
    s = jnp.sum(h3, axis=0, keepdims=True)          # (1, 128) sum-pool
    nrm = jnp.sqrt(jnp.sum(s * s, axis=1, keepdims=True))   # (1, 1)
    wp_ref[0] = s / (nrm + 1e-8)


def fc4_head_fused(x_pad, scale_pad, pp, *, H, W):
    """One fused pallas_call per FC4 head. Returns wp of shape (B, 3)."""
    B = x_pad.shape[0]
    HP, WPd = H + 2, W + 2
    kernel = functools.partial(_fc4_head_kernel, H=H, W=W, CPk=CP)
    wp_pad = pl.pallas_call(
        kernel,
        out_shape=jax.ShapeDtypeStruct((B, 1, LANES), jnp.float32),
        grid=(B,),
        in_specs=[
            pl.BlockSpec((1, HP, WPd, CP), lambda b: (b, 0, 0, 0)),
            pl.BlockSpec((1, 1, 1, CP), lambda b: (b, 0, 0, 0)),
            pl.BlockSpec((9, CP, LANES), lambda b: (0, 0, 0)),
            pl.BlockSpec((1, LANES), lambda b: (0, 0)),
            pl.BlockSpec((9, LANES, LANES), lambda b: (0, 0, 0)),
            pl.BlockSpec((1, LANES), lambda b: (0, 0)),
            pl.BlockSpec((LANES, LANES), lambda b: (0, 0)),
            pl.BlockSpec((1, LANES), lambda b: (0, 0)),
        ],
        out_specs=pl.BlockSpec((1, 1, LANES), lambda b: (b, 0, 0)),
        scratch_shapes=[pltpu.VMEM((HP, WPd, LANES), jnp.float32)],
        compiler_params=pltpu.CompilerParams(
            dimension_semantics=("parallel",)),
    )(x_pad, scale_pad, pp["w1t"], pp["b1p"], pp["w2t"], pp["b2p"],
      pp["w3p"], pp["b3p"])
    return wp_pad[:, 0, :3]


# ----------------------------------------------------------------------------
# Parameter init / one-time padding (lane-dense, per-tap, bf16 for the MXU)
# ----------------------------------------------------------------------------
def init_fc4_params(key, cin=3, hidden=HIDDEN):
    k1, k2, k3 = jax.random.split(key, 3)
    return {
        "w1": 0.05 * jax.random.normal(k1, (3, 3, cin, hidden), jnp.float32),
        "b1": jnp.full((hidden,), 0.1, jnp.float32),
        "w2": 0.05 * jax.random.normal(k2, (3, 3, hidden, hidden), jnp.float32),
        "b2": jnp.full((hidden,), 0.1, jnp.float32),
        "w3": 0.05 * jax.random.normal(k3, (hidden, 3), jnp.float32),
        "b3": jnp.full((3,), 0.1, jnp.float32),
    }


def prepare_fc4_params(p):
    """Pad / reorder weights once (not per forward)."""
    kh, kw, cin, hid = p["w1"].shape
    w1t = jnp.zeros((kh * kw, CP, LANES), jnp.float32)
    w1t = w1t.at[:, :cin, :hid].set(p["w1"].reshape(kh * kw, cin, hid))
    w2t = jnp.zeros((kh * kw, LANES, LANES), jnp.float32)
    w2t = w2t.at[:, :hid, :hid].set(p["w2"].reshape(kh * kw, hid, hid))
    w3p = jnp.zeros((LANES, LANES), jnp.float32).at[:hid, :3].set(p["w3"])
    return {
        "w1t": w1t.astype(jnp.bfloat16),
        "b1p": jnp.zeros((1, LANES), jnp.float32).at[0, :hid].set(p["b1"]),
        "w2t": w2t.astype(jnp.bfloat16),
        "b2p": jnp.zeros((1, LANES), jnp.float32).at[0, :hid].set(p["b2"]),
        "w3p": w3p.astype(jnp.bfloat16),
        "b3p": jnp.zeros((1, LANES), jnp.float32).at[0, :3].set(p["b3"]),
    }


# ----------------------------------------------------------------------------
# C4 cascade. apply_awb is folded into a per-(image,channel) scale that is
# applied inside the next head's kernel:
#   awb(x, wp) = (x / (wp+eps)) / max(x / (wp+eps))   [max over the WHOLE batch,
#   matching the PyTorch `out.max()`], and since x_i = x_0 * scale_i with
#   scale_i > 0, the max is recovered exactly from the per-channel spatial max
#   of x_0. No intermediate image is ever written back to HBM.
# ----------------------------------------------------------------------------
def c4_forward(cascade_prepped, x_nchw):
    B, C, H, W = x_nchw.shape
    assert C == 3, "C4 operates on RGB images"
    x_nhwc = jnp.transpose(x_nchw, (0, 2, 3, 1)).astype(jnp.float32)
    # one-time spatial halo (+1) and channel pad (3 -> CP) for the fused kernels
    x_pad = jnp.pad(x_nhwc, ((0, 0), (1, 1), (1, 1), (0, CP - C)))
    x_cmax = jnp.max(x_nhwc, axis=(1, 2))                    # (B, 3)

    scale = jnp.ones((B, C), jnp.float32)
    preds = []
    n = len(cascade_prepped)
    for i, pp in enumerate(cascade_prepped):
        scale_pad = jnp.ones((B, 1, 1, CP), jnp.float32).at[:, 0, 0, :C].set(scale)
        wp = fc4_head_fused(x_pad, scale_pad, pp, H=H, W=W)  # (B, 3)
        preds.append(wp)
        if i != n - 1:
            denom = wp + 1e-8
            m = jnp.max((x_cmax * scale) / denom)            # == out.max() (global)
            scale = scale / (denom * m)
    return preds


# ----------------------------------------------------------------------------
# Pure-JAX reference (same stand-in head), used for a correctness check.
# ----------------------------------------------------------------------------
def _conv3x3_relu_ref(x, w, b):
    B, H, W, _ = x.shape
    xp = jnp.pad(x, ((0, 0), (1, 1), (1, 1), (0, 0)))
    out = b
    for dy in range(3):
        for dx in range(3):
            out = out + jnp.einsum("bhwc,cd->bhwd",
                                   xp[:, dy:dy + H, dx:dx + W, :], w[dy, dx])
    return jnp.maximum(out, 0.0)


def fc4_head_ref(p, x_nchw):
    x = jnp.transpose(x_nchw, (0, 2, 3, 1)).astype(jnp.float32)
    h1 = _conv3x3_relu_ref(x, p["w1"], p["b1"])
    h2 = _conv3x3_relu_ref(h1, p["w2"], p["b2"])
    h3 = jnp.maximum(jnp.einsum("bhwc,cd->bhwd", h2, p["w3"]) + p["b3"], 0.0)
    s = jnp.sum(h3, axis=(1, 2))
    return s / (jnp.linalg.norm(s, axis=1, keepdims=True) + 1e-8)


def c4_forward_ref(cascade_params, x):
    preds = []
    n = len(cascade_params)
    for i, p in enumerate(cascade_params):
        wp = fc4_head_ref(p, x)
        preds.append(wp)
        if i != n - 1:
            out = x / (wp[:, :, None, None] + 1e-8)
            x = out / jnp.max(out)
    return preds


def _round_weights_like_kernel(p):
    q = dict(p)
    for k in ("w1", "w2", "w3"):
        q[k] = p[k].astype(jnp.bfloat16).astype(jnp.float32)
    return q


# ----------------------------------------------------------------------------
if __name__ == "__main__":
    cascade_num = 3
    B, C, H, W = 2, 3, 16, 16

    key = jax.random.PRNGKey(0)
    key_x, *key_models = jax.random.split(key, 1 + cascade_num)
    x = jax.random.uniform(key_x, (B, C, H, W), jnp.float32,
                           minval=0.05, maxval=1.0)
    raw_params = [init_fc4_params(k, cin=C, hidden=HIDDEN) for k in key_models]
    prepped = [prepare_fc4_params(p) for p in raw_params]

    c4 = jax.jit(c4_forward)
    preds = jax.block_until_ready(c4(prepped, x))

    # Reference with the same bf16-rounded weights (kernel accumulates in f32).
    refs = c4_forward_ref([_round_weights_like_kernel(p) for p in raw_params], x)

    assert len(preds) == cascade_num
    for p_out, r_out in zip(preds, refs):
        assert p_out.shape == (B, 3)
        assert bool(jnp.all(jnp.isfinite(p_out)))
        assert bool(jnp.max(jnp.abs(p_out - r_out)) < 5e-2)
    print("KERNEL_OK")
</pallas_src>

<mosaic_0001>
module attributes {stable_mosaic.version = 11 : i64} {
  func.func @_fc4_head_kernel(%arg0: i32, %arg1: memref<1x18x18x8xf32, #tpu.memory_space<vmem>>, %arg2: memref<1x1x1x8xf32, #tpu.memory_space<vmem>>, %arg3: memref<9x8x128xbf16, #tpu.memory_space<vmem>>, %arg4: memref<1x128xf32, #tpu.memory_space<vmem>>, %arg5: memref<9x128x128xbf16, #tpu.memory_space<vmem>>, %arg6: memref<1x128xf32, #tpu.memory_space<vmem>>, %arg7: memref<128x128xbf16, #tpu.memory_space<vmem>>, %arg8: memref<1x128xf32, #tpu.memory_space<vmem>>, %arg9: memref<1x1x128xf32, #tpu.memory_space<vmem>>, %arg10: memref<18x18x128xf32, #tpu.memory_space<vmem>>) attributes {dimension_semantics = [#tpu.dimension_semantics<parallel>], iteration_bounds = array<i64: 2>, scalar_prefetch = 0 : i64, scratch_operands = 1 : i64, tpu.core_type = #tpu.core_type<tc>, window_params = [{transform_indices = @transform_0, window_bounds = array<i64: 1, 18, 18, 8>}, {transform_indices = @transform_1, window_bounds = array<i64: 1, 1, 1, 8>}, {pipeline_mode = #tpu.pipeline_mode<synchronous>, transform_indices = @transform_2, window_bounds = array<i64: 9, 8, 128>}, {pipeline_mode = #tpu.pipeline_mode<synchronous>, transform_indices = @transform_3, window_bounds = array<i64: 1, 128>}, {pipeline_mode = #tpu.pipeline_mode<synchronous>, transform_indices = @transform_4, window_bounds = array<i64: 9, 128, 128>}, {pipeline_mode = #tpu.pipeline_mode<synchronous>, transform_indices = @transform_5, window_bounds = array<i64: 1, 128>}, {pipeline_mode = #tpu.pipeline_mode<synchronous>, transform_indices = @transform_6, window_bounds = array<i64: 128, 128>}, {pipeline_mode = #tpu.pipeline_mode<synchronous>, transform_indices = @transform_7, window_bounds = array<i64: 1, 128>}, {transform_indices = @transform_8, window_bounds = array<i64: 1, 1, 128>}]} {
    %c0 = arith.constant 0 : index
    %c0_0 = arith.constant 0 : index
    %c0_1 = arith.constant 0 : index
    %c0_2 = arith.constant 0 : index
    %0 = vector.load %arg1[%c0, %c0_0, %c0_1, %c0_2] : memref<1x18x18x8xf32, #tpu.memory_space<vmem>>, vector<1x18x18x8xf32>
    %1 = vector.shape_cast %0 : vector<1x18x18x8xf32> to vector<18x18x8xf32>
    %c0_3 = arith.constant 0 : index
    %c0_4 = arith.constant 0 : index
    %c0_5 = arith.constant 0 : index
    %c0_6 = arith.constant 0 : index
    %2 = vector.load %arg2[%c0_3, %c0_4, %c0_5, %c0_6] : memref<1x1x1x8xf32, #tpu.memory_space<vmem>>, vector<1x1x1x8xf32>
    %3 = vector.shape_cast %2 : vector<1x1x1x8xf32> to vector<1x1x8xf32>
    %4 = vector.broadcast %3 : vector<1x1x8xf32> to vector<18x18x8xf32>
    %5 = arith.mulf %1, %4 : vector<18x18x8xf32>
    %cst = arith.constant 0.000000e+00 : f32
    %6 = vector.broadcast %cst : f32 to vector<256x128xf32>
    %7 = vector.extract_strided_slice %5 {offsets = [0, 0, 0], sizes = [16, 16, 8], strides = [1, 1, 1]} : vector<18x18x8xf32> to vector<16x16x8xf32>
    %8 = vector.shape_cast %7 : vector<16x16x8xf32> to vector<256x8xf32>
    %9 = arith.truncf %8 : vector<256x8xf32> to vector<256x8xbf16>
    %c0_7 = arith.constant 0 : index
    %c0_8 = arith.constant 0 : index
    %c0_9 = arith.constant 0 : index
    %10 = vector.load %arg3[%c0_7, %c0_8, %c0_9] : memref<9x8x128xbf16, #tpu.memory_space<vmem>>, vector<1x8x128xbf16>
    %11 = vector.shape_cast %10 : vector<1x8x128xbf16> to vector<8x128xbf16>
    %cst_10 = arith.constant dense<0.000000e+00> : vector<256x128xf32>
    %12 = tpu.matmul %9, %11, %cst_10 {dimension_numbers = #tpu.dot_dimension_numbers<[1], [0], [0], [1], [0, 0, 1, 1], [], []>} : vector<256x8xbf16>, vector<8x128xbf16>, vector<256x128xf32> -> vector<256x128xf32>
    %13 = arith.addf %6, %12 : vector<256x128xf32>
    %14 = vector.extract_strided_slice %5 {offsets = [0, 1, 0], sizes = [16, 16, 8], strides = [1, 1, 1]} : vector<18x18x8xf32> to vector<16x16x8xf32>
    %15 = vector.shape_cast %14 : vector<16x16x8xf32> to vector<256x8xf32>
    %16 = arith.truncf %15 : vector<256x8xf32> to vector<256x8xbf16>
    %c1 = arith.constant 1 : index
    %c0_11 = arith.constant 0 : index
    %c0_12 = arith.constant 0 : index
    %17 = vector.load %arg3[%c1, %c0_11, %c0_12] : memref<9x8x128xbf16, #tpu.memory_space<vmem>>, vector<1x8x128xbf16>
    %18 = vector.shape_cast %17 : vector<1x8x128xbf16> to vector<8x128xbf16>
    %cst_13 = arith.constant dense<0.000000e+00> : vector<256x128xf32>
    %19 = tpu.matmul %16, %18, %cst_13 {dimension_numbers = #tpu.dot_dimension_numbers<[1], [0], [0], [1], [0, 0, 1, 1], [], []>} : vector<256x8xbf16>, vector<8x128xbf16>, vector<256x128xf32> -> vector<256x128xf32>
    %20 = arith.addf %13, %19 : vector<256x128xf32>
    %21 = vector.extract_strided_slice %5 {offsets = [0, 2, 0], sizes = [16, 16, 8], strides = [1, 1, 1]} : vector<18x18x8xf32> to vector<16x16x8xf32>
    %22 = vector.shape_cast %21 : vector<16x16x8xf32> to vector<256x8xf32>
    %23 = arith.truncf %22 : vector<256x8xf32> to vector<256x8xbf16>
    %c2 = arith.constant 2 : index
    %c0_14 = arith.constant 0 : index
    %c0_15 = arith.constant 0 : index
    %24 = vector.load %arg3[%c2, %c0_14, %c0_15] : memref<9x8x128xbf16, #tpu.memory_space<vmem>>, vector<1x8x128xbf16>
    %25 = vector.shape_cast %24 : vector<1x8x128xbf16> to vector<8x128xbf16>
    %cst_16 = arith.constant dense<0.000000e+00> : vector<256x128xf32>
    %26 = tpu.matmul %23, %25, %cst_16 {dimension_numbers = #tpu.dot_dimension_numbers<[1], [0], [0], [1], [0, 0, 1, 1], [], []>} : vector<256x8xbf16>, vector<8x128xbf16>, vector<256x128xf32> -> vector<256x128xf32>
    %27 = arith.addf %20, %26 : vector<256x128xf32>
    %28 = vector.extract_strided_slice %5 {offsets = [1, 0, 0], sizes = [16, 16, 8], strides = [1, 1, 1]} : vector<18x18x8xf32> to vector<16x16x8xf32>
    %29 = vector.shape_cast %28 : vector<16x16x8xf32> to vector<256x8xf32>
    %30 = arith.truncf %29 : vector<256x8xf32> to vector<256x8xbf16>
    %c3 = arith.constant 3 : index
    %c0_17 = arith.constant 0 : index
    %c0_18 = arith.constant 0 : index
    %31 = vector.load %arg3[%c3, %c0_17, %c0_18] : memref<9x8x128xbf16, #tpu.memory_space<vmem>>, vector<1x8x128xbf16>
    %32 = vector.shape_cast %31 : vector<1x8x128xbf16> to vector<8x128xbf16>
    %cst_19 = arith.constant dense<0.000000e+00> : vector<256x128xf32>
    %33 = tpu.matmul %30, %32, %cst_19 {dimension_numbers = #tpu.dot_dimension_numbers<[1], [0], [0], [1], [0, 0, 1, 1], [], []>} : vector<256x8xbf16>, vector<8x128xbf16>, vector<256x128xf32> -> vector<256x128xf32>
    %34 = arith.addf %27, %33 : vector<256x128xf32>
    %35 = vector.extract_strided_slice %5 {offsets = [1, 1, 0], sizes = [16, 16, 8], strides = [1, 1, 1]} : vector<18x18x8xf32> to vector<16x16x8xf32>
    %36 = vector.shape_cast %35 : vector<16x16x8xf32> to vector<256x8xf32>
    %37 = arith.truncf %36 : vector<256x8xf32> to vector<256x8xbf16>
    %c4 = arith.constant 4 : index
    %c0_20 = arith.constant 0 : index
    %c0_21 = arith.constant 0 : index
    %38 = vector.load %arg3[%c4, %c0_20, %c0_21] : memref<9x8x128xbf16, #tpu.memory_space<vmem>>, vector<1x8x128xbf16>
    %39 = vector.shape_cast %38 : vector<1x8x128xbf16> to vector<8x128xbf16>
    %cst_22 = arith.constant dense<0.000000e+00> : vector<256x128xf32>
    %40 = tpu.matmul %37, %39, %cst_22 {dimension_numbers = #tpu.dot_dimension_numbers<[1], [0], [0], [1], [0, 0, 1, 1], [], []>} : vector<256x8xbf16>, vector<8x128xbf16>, vector<256x128xf32> -> vector<256x128xf32>
    %41 = arith.addf %34, %40 : vector<256x128xf32>
    %42 = vector.extract_strided_slice %5 {offsets = [1, 2, 0], sizes = [16, 16, 8], strides = [1, 1, 1]} : vector<18x18x8xf32> to vector<16x16x8xf32>
    %43 = vector.shape_cast %42 : vector<16x16x8xf32> to vector<256x8xf32>
    %44 = arith.truncf %43 : vector<256x8xf32> to vector<256x8xbf16>
    %c5 = arith.constant 5 : index
    %c0_23 = arith.constant 0 : index
    %c0_24 = arith.constant 0 : index
    %45 = vector.load %arg3[%c5, %c0_23, %c0_24] : memref<9x8x128xbf16, #tpu.memory_space<vmem>>, vector<1x8x128xbf16>
    %46 = vector.shape_cast %45 : vector<1x8x128xbf16> to vector<8x128xbf16>
    %cst_25 = arith.constant dense<0.000000e+00> : vector<256x128xf32>
    %47 = tpu.matmul %44, %46, %cst_25 {dimension_numbers = #tpu.dot_dimension_numbers<[1], [0], [0], [1], [0, 0, 1, 1], [], []>} : vector<256x8xbf16>, vector<8x128xbf16>, vector<256x128xf32> -> vector<256x128xf32>
    %48 = arith.addf %41, %47 : vector<256x128xf32>
    %49 = vector.extract_strided_slice %5 {offsets = [2, 0, 0], sizes = [16, 16, 8], strides = [1, 1, 1]} : vector<18x18x8xf32> to vector<16x16x8xf32>
    %50 = vector.shape_cast %49 : vector<16x16x8xf32> to vector<256x8xf32>
    %51 = arith.truncf %50 : vector<256x8xf32> to vector<256x8xbf16>
    %c6 = arith.constant 6 : index
    %c0_26 = arith.constant 0 : index
    %c0_27 = arith.constant 0 : index
    %52 = vector.load %arg3[%c6, %c0_26, %c0_27] : memref<9x8x128xbf16, #tpu.memory_space<vmem>>, vector<1x8x128xbf16>
    %53 = vector.shape_cast %52 : vector<1x8x128xbf16> to vector<8x128xbf16>
    %cst_28 = arith.constant dense<0.000000e+00> : vector<256x128xf32>
    %54 = tpu.matmul %51, %53, %cst_28 {dimension_numbers = #tpu.dot_dimension_numbers<[1], [0], [0], [1], [0, 0, 1, 1], [], []>} : vector<256x8xbf16>, vector<8x128xbf16>, vector<256x128xf32> -> vector<256x128xf32>
    %55 = arith.addf %48, %54 : vector<256x128xf32>
    %56 = vector.extract_strided_slice %5 {offsets = [2, 1, 0], sizes = [16, 16, 8], strides = [1, 1, 1]} : vector<18x18x8xf32> to vector<16x16x8xf32>
    %57 = vector.shape_cast %56 : vector<16x16x8xf32> to vector<256x8xf32>
    %58 = arith.truncf %57 : vector<256x8xf32> to vector<256x8xbf16>
    %c7 = arith.constant 7 : index
    %c0_29 = arith.constant 0 : index
    %c0_30 = arith.constant 0 : index
    %59 = vector.load %arg3[%c7, %c0_29, %c0_30] : memref<9x8x128xbf16, #tpu.memory_space<vmem>>, vector<1x8x128xbf16>
    %60 = vector.shape_cast %59 : vector<1x8x128xbf16> to vector<8x128xbf16>
    %cst_31 = arith.constant dense<0.000000e+00> : vector<256x128xf32>
    %61 = tpu.matmul %58, %60, %cst_31 {dimension_numbers = #tpu.dot_dimension_numbers<[1], [0], [0], [1], [0, 0, 1, 1], [], []>} : vector<256x8xbf16>, vector<8x128xbf16>, vector<256x128xf32> -> vector<256x128xf32>
    %62 = arith.addf %55, %61 : vector<256x128xf32>
    %63 = vector.extract_strided_slice %5 {offsets = [2, 2, 0], sizes = [16, 16, 8], strides = [1, 1, 1]} : vector<18x18x8xf32> to vector<16x16x8xf32>
    %64 = vector.shape_cast %63 : vector<16x16x8xf32> to vector<256x8xf32>
    %65 = arith.truncf %64 : vector<256x8xf32> to vector<256x8xbf16>
    %c8 = arith.constant 8 : index
    %c0_32 = arith.constant 0 : index
    %c0_33 = arith.constant 0 : index
    %66 = vector.load %arg3[%c8, %c0_32, %c0_33] : memref<9x8x128xbf16, #tpu.memory_space<vmem>>, vector<1x8x128xbf16>
    %67 = vector.shape_cast %66 : vector<1x8x128xbf16> to vector<8x128xbf16>
    %cst_34 = arith.constant dense<0.000000e+00> : vector<256x128xf32>
    %68 = tpu.matmul %65, %67, %cst_34 {dimension_numbers = #tpu.dot_dimension_numbers<[1], [0], [0], [1], [0, 0, 1, 1], [], []>} : vector<256x8xbf16>, vector<8x128xbf16>, vector<256x128xf32> -> vector<256x128xf32>
    %69 = arith.addf %62, %68 : vector<256x128xf32>
    %c0_35 = arith.constant 0 : index
    %c0_36 = arith.constant 0 : index
    %70 = vector.load %arg4[%c0_35, %c0_36] : memref<1x128xf32, #tpu.memory_space<vmem>>, vector<1x128xf32>
    %71 = vector.broadcast %70 : vector<1x128xf32> to vector<256x128xf32>
    %72 = arith.addf %69, %71 : vector<256x128xf32>
    %cst_37 = arith.constant 0.000000e+00 : f32
    %73 = vector.broadcast %cst_37 : f32 to vector<256x128xf32>
    %74 = arith.maximumf %72, %73 : vector<256x128xf32>
    %cst_38 = arith.constant 0.000000e+00 : f32
    %75 = vector.broadcast %cst_38 : f32 to vector<18x18x128xf32>
    %c0_39 = arith.constant 0 : index
    %c0_40 = arith.constant 0 : index
    %c0_41 = arith.constant 0 : index
    %76 = vector.load %arg10[%c0_39, %c0_40, %c0_41] : memref<18x18x128xf32, #tpu.memory_space<vmem>>, vector<18x18x128xf32>
    tpu.vector_store %arg10[%c0_39, %c0_40, %c0_41], %75 {strides = array<i32>} : memref<18x18x128xf32, #tpu.memory_space<vmem>>, vector<18x18x128xf32>,
    %77 = vector.shape_cast %74 : vector<256x128xf32> to vector<16x16x128xf32>
    %c1_42 = arith.constant 1 : index
    %c1_43 = arith.constant 1 : index
    %c0_44 = arith.constant 0 : index
    %78 = vector.load %arg10[%c1_42, %c1_43, %c0_44] : memref<18x18x128xf32, #tpu.memory_space<vmem>>, vector<16x16x128xf32>
    tpu.vector_store %arg10[%c1_42, %c1_43, %c0_44], %77 {strides = array<i32>} : memref<18x18x128xf32, #tpu.memory_space<vmem>>, vector<16x16x128xf32>,
    %cst_45 = arith.constant 0.000000e+00 : f32
    %79 = vector.broadcast %cst_45 : f32 to vector<256x128xf32>
    %c0_46 = arith.constant 0 : index
    %c0_47 = arith.constant 0 : index
    %c0_48 = arith.constant 0 : index
    %80 = vector.load %arg10[%c0_46, %c0_47, %c0_48] : memref<18x18x128xf32, #tpu.memory_space<vmem>>, vector<16x16x128xf32>
    %81 = vector.shape_cast %80 : vector<16x16x128xf32> to vector<256x128xf32>
    %82 = arith.truncf %81 : vector<256x128xf32> to vector<256x128xbf16>
    %c0_49 = arith.constant 0 : index
    %c0_50 = arith.constant 0 : index
    %c0_51 = arith.constant 0 : index
    %83 = vector.load %arg5[%c0_49, %c0_50, %c0_51] : memref<9x128x128xbf16, #tpu.memory_space<vmem>>, vector<1x128x128xbf16>
    %84 = vector.shape_cast %83 : vector<1x128x128xbf16> to vector<128x128xbf16>
    %cst_52 = arith.constant dense<0.000000e+00> : vector<256x128xf32>
    %85 = tpu.matmul %82, %84, %cst_52 {dimension_numbers = #tpu.dot_dimension_numbers<[1], [0], [0], [1], [0, 0, 1, 1], [], []>} : vector<256x128xbf16>, vector<128x128xbf16>, vector<256x128xf32> -> vector<256x128xf32>
    %86 = arith.addf %79, %85 : vector<256x128xf32>
    %c0_53 = arith.constant 0 : index
    %c1_54 = arith.constant 1 : index
    %c0_55 = arith.constant 0 : index
    %87 = vector.load %arg10[%c0_53, %c1_54, %c0_55] : memref<18x18x128xf32, #tpu.memory_space<vmem>>, vector<16x16x128xf32>
    %88 = vector.shape_cast %87 : vector<16x16x128xf32> to vector<256x128xf32>
    %89 = arith.truncf %88 : vector<256x128xf32> to vector<256x128xbf16>
    %c1_56 = arith.constant 1 : index
    %c0_57 = arith.constant 0 : index
    %c0_58 = arith.constant 0 : index
    %90 = vector.load %arg5[%c1_56, %c0_57, %c0_58] : memref<9x128x128xbf16, #tpu.memory_space<vmem>>, vector<1x128x128xbf16>
    %91 = vector.shape_cast %90 : vector<1x128x128xbf16> to vector<128x128xbf16>
    %cst_59 = arith.constant dense<0.000000e+00> : vector<256x128xf32>
    %92 = tpu.matmul %89, %91, %cst_59 {dimension_numbers = #tpu.dot_dimension_numbers<[1], [0], [0], [1], [0, 0, 1, 1], [], []>} : vector<256x128xbf16>, vector<128x128xbf16>, vector<256x128xf32> -> vector<256x128xf32>
    %93 = arith.addf %86, %92 : vector<256x128xf32>
    %c0_60 = arith.constant 0 : index
    %c2_61 = arith.constant 2 : index
    %c0_62 = arith.constant 0 : index
    %94 = vector.load %arg10[%c0_60, %c2_61, %c0_62] : memref<18x18x128xf32, #tpu.memory_space<vmem>>, vector<16x16x128xf32>
    %95 = vector.shape_cast %94 : vector<16x16x128xf32> to vector<256x128xf32>
    %96 = arith.truncf %95 : vector<256x128xf32> to vector<256x128xbf16>
    %c2_63 = arith.constant 2 : index
    %c0_64 = arith.constant 0 : index
    %c0_65 = arith.constant 0 : index
    %97 = vector.load %arg5[%c2_63, %c0_64, %c0_65] : memref<9x128x128xbf16, #tpu.memory_space<vmem>>, vector<1x128x128xbf16>
    %98 = vector.shape_cast %97 : vector<1x128x128xbf16> to vector<128x128xbf16>
    %cst_66 = arith.constant dense<0.000000e+00> : vector<256x128xf32>
    %99 = tpu.matmul %96, %98, %cst_66 {dimension_numbers = #tpu.dot_dimension_numbers<[1], [0], [0], [1], [0, 0, 1, 1], [], []>} : vector<256x128xbf16>, vector<128x128xbf16>, vector<256x128xf32> -> vector<256x128xf32>
    %100 = arith.addf %93, %99 : vector<256x128xf32>
    %c1_67 = arith.constant 1 : index
    %c0_68 = arith.constant 0 : index
    %c0_69 = arith.constant 0 : index
    %101 = vector.load %arg10[%c1_67, %c0_68, %c0_69] : memref<18x18x128xf32, #tpu.memory_space<vmem>>, vector<16x16x128xf32>
    %102 = vector.shape_cast %101 : vector<16x16x128xf32> to vector<256x128xf32>
    %103 = arith.truncf %102 : vector<256x128xf32> to vector<256x128xbf16>
    %c3_70 = arith.constant 3 : index
    %c0_71 = arith.constant 0 : index
    %c0_72 = arith.constant 0 : index
    %104 = vector.load %arg5[%c3_70, %c0_71, %c0_72] : memref<9x128x128xbf16, #tpu.memory_space<vmem>>, vector<1x128x128xbf16>
    %105 = vector.shape_cast %104 : vector<1x128x128xbf16> to vector<128x128xbf16>
    %cst_73 = arith.constant dense<0.000000e+00> : vector<256x128xf32>
    %106 = tpu.matmul %103, %105, %cst_73 {dimension_numbers = #tpu.dot_dimension_numbers<[1], [0], [0], [1], [0, 0, 1, 1], [], []>} : vector<256x128xbf16>, vector<128x128xbf16>, vector<256x128xf32> -> vector<256x128xf32>
    %107 = arith.addf %100, %106 : vector<256x128xf32>
    %c1_74 = arith.constant 1 : index
    %c1_75 = arith.constant 1 : index
    %c0_76 = arith.constant 0 : index
    %108 = vector.load %arg10[%c1_74, %c1_75, %c0_76] : memref<18x18x128xf32, #tpu.memory_space<vmem>>, vector<16x16x128xf32>
    %109 = vector.shape_cast %108 : vector<16x16x128xf32> to vector<256x128xf32>
    %110 = arith.truncf %109 : vector<256x128xf32> to vector<256x128xbf16>
    %c4_77 = arith.constant 4 : index
    %c0_78 = arith.constant 0 : index
    %c0_79 = arith.constant 0 : index
    %111 = vector.load %arg5[%c4_77, %c0_78, %c0_79] : memref<9x128x128xbf16, #tpu.memory_space<vmem>>, vector<1x128x128xbf16>
    %112 = vector.shape_cast %111 : vector<1x128x128xbf16> to vector<128x128xbf16>
    %cst_80 = arith.constant dense<0.000000e+00> : vector<256x128xf32>
    %113 = tpu.matmul %110, %112, %cst_80 {dimension_numbers = #tpu.dot_dimension_numbers<[1], [0], [0], [1], [0, 0, 1, 1], [], []>} : vector<256x128xbf16>, vector<128x128xbf16>, vector<256x128xf32> -> vector<256x128xf32>
    %114 = arith.addf %107, %113 : vector<256x128xf32>
    %c1_81 = arith.constant 1 : index
    %c2_82 = arith.constant 2 : index
    %c0_83 = arith.constant 0 : index
    %115 = vector.load %arg10[%c1_81, %c2_82, %c0_83] : memref<18x18x128xf32, #tpu.memory_space<vmem>>, vector<16x16x128xf32>
    %116 = vector.shape_cast %115 : vector<16x16x128xf32> to vector<256x128xf32>
    %117 = arith.truncf %116 : vector<256x128xf32> to vector<256x128xbf16>
    %c5_84 = arith.constant 5 : index
    %c0_85 = arith.constant 0 : index
    %c0_86 = arith.constant 0 : index
    %118 = vector.load %arg5[%c5_84, %c0_85, %c0_86] : memref<9x128x128xbf16, #tpu.memory_space<vmem>>, vector<1x128x128xbf16>
    %119 = vector.shape_cast %118 : vector<1x128x128xbf16> to vector<128x128xbf16>
    %cst_87 = arith.constant dense<0.000000e+00> : vector<256x128xf32>
    %120 = tpu.matmul %117, %119, %cst_87 {dimension_numbers = #tpu.dot_dimension_numbers<[1], [0], [0], [1], [0, 0, 1, 1], [], []>} : vector<256x128xbf16>, vector<128x128xbf16>, vector<256x128xf32> -> vector<256x128xf32>
    %121 = arith.addf %114, %120 : vector<256x128xf32>
    %c2_88 = arith.constant 2 : index
    %c0_89 = arith.constant 0 : index
    %c0_90 = arith.constant 0 : index
    %122 = vector.load %arg10[%c2_88, %c0_89, %c0_90] : memref<18x18x128xf32, #tpu.memory_space<vmem>>, vector<16x16x128xf32>
    %123 = vector.shape_cast %122 : vector<16x16x128xf32> to vector<256x128xf32>
    %124 = arith.truncf %123 : vector<256x128xf32> to vector<256x128xbf16>
    %c6_91 = arith.constant 6 : index
    %c0_92 = arith.constant 0 : index
    %c0_93 = arith.constant 0 : index
    %125 = vector.load %arg5[%c6_91, %c0_92, %c0_93] : memref<9x128x128xbf16, #tpu.memory_space<vmem>>, vector<1x128x128xbf16>
    %126 = vector.shape_cast %125 : vector<1x128x128xbf16> to vector<128x128xbf16>
    %cst_94 = arith.constant dense<0.000000e+00> : vector<256x128xf32>
    %127 = tpu.matmul %124, %126, %cst_94 {dimension_numbers = #tpu.dot_dimension_numbers<[1], [0], [0], [1], [0, 0, 1, 1], [], []>} : vector<256x128xbf16>, vector<128x128xbf16>, vector<256x128xf32> -> vector<256x128xf32>
    %128 = arith.addf %121, %127 : vector<256x128xf32>
    %c2_95 = arith.constant 2 : index
    %c1_96 = arith.constant 1 : index
    %c0_97 = arith.constant 0 : index
    %129 = vector.load %arg10[%c2_95, %c1_96, %c0_97] : memref<18x18x128xf32, #tpu.memory_space<vmem>>, vector<16x16x128xf32>
    %130 = vector.shape_cast %129 : vector<16x16x128xf32> to vector<256x128xf32>
    %131 = arith.truncf %130 : vector<256x128xf32> to vector<256x128xbf16>
    %c7_98 = arith.constant 7 : index
    %c0_99 = arith.constant 0 : index
    %c0_100 = arith.constant 0 : index
    %132 = vector.load %arg5[%c7_98, %c0_99, %c0_100] : memref<9x128x128xbf16, #tpu.memory_space<vmem>>, vector<1x128x128xbf16>
    %133 = vector.shape_cast %132 : vector<1x128x128xbf16> to vector<128x128xbf16>
    %cst_101 = arith.constant dense<0.000000e+00> : vector<256x128xf32>
    %134 = tpu.matmul %131, %133, %cst_101 {dimension_numbers = #tpu.dot_dimension_numbers<[1], [0], [0], [1], [0, 0, 1, 1], [], []>} : vector<256x128xbf16>, vector<128x128xbf16>, vector<256x128xf32> -> vector<256x128xf32>
    %135 = arith.addf %128, %134 : vector<256x128xf32>
    %c2_102 = arith.constant 2 : index
    %c2_103 = arith.constant 2 : index
    %c0_104 = arith.constant 0 : index
    %136 = vector.load %arg10[%c2_102, %c2_103, %c0_104] : memref<18x18x128xf32, #tpu.memory_space<vmem>>, vector<16x16x128xf32>
    %137 = vector.shape_cast %136 : vector<16x16x128xf32> to vector<256x128xf32>
    %138 = arith.truncf %137 : vector<256x128xf32> to vector<256x128xbf16>
    %c8_105 = arith.constant 8 : index
    %c0_106 = arith.constant 0 : index
    %c0_107 = arith.constant 0 : index
    %139 = vector.load %arg5[%c8_105, %c0_106, %c0_107] : memref<9x128x128xbf16, #tpu.memory_space<vmem>>, vector<1x128x128xbf16>
    %140 = vector.shape_cast %139 : vector<1x128x128xbf16> to vector<128x128xbf16>
    %cst_108 = arith.constant dense<0.000000e+00> : vector<256x128xf32>
    %141 = tpu.matmul %138, %140, %cst_108 {dimension_numbers = #tpu.dot_dimension_numbers<[1], [0], [0], [1], [0, 0, 1, 1], [], []>} : vector<256x128xbf16>, vector<128x128xbf16>, vector<256x128xf32> -> vector<256x128xf32>
    %142 = arith.addf %135, %141 : vector<256x128xf32>
    %c0_109 = arith.constant 0 : index
    %c0_110 = arith.constant 0 : index
    %143 = vector.load %arg6[%c0_109, %c0_110] : memref<1x128xf32, #tpu.memory_space<vmem>>, vector<1x128xf32>
    %144 = vector.broadcast %143 : vector<1x128xf32> to vector<256x128xf32>
    %145 = arith.addf %142, %144 : vector<256x128xf32>
    %cst_111 = arith.constant 0.000000e+00 : f32
    %146 = vector.broadcast %cst_111 : f32 to vector<256x128xf32>
    %147 = arith.maximumf %145, %146 : vector<256x128xf32>
    %148 = arith.truncf %147 : vector<256x128xf32> to vector<256x128xbf16>
    %c0_112 = arith.constant 0 : index
    %c0_113 = arith.constant 0 : index
    %149 = vector.load %arg7[%c0_112, %c0_113] : memref<128x128xbf16, #tpu.memory_space<vmem>>, vector<128x128xbf16>
    %cst_114 = arith.constant dense<0.000000e+00> : vector<256x128xf32>
    %150 = tpu.matmul %148, %149, %cst_114 {dimension_numbers = #tpu.dot_dimension_numbers<[1], [0], [0], [1], [0, 0, 1, 1], [], []>} : vector<256x128xbf16>, vector<128x128xbf16>, vector<256x128xf32> -> vector<256x128xf32>
    %c0_115 = arith.constant 0 : index
    %c0_116 = arith.constant 0 : index
    %151 = vector.load %arg8[%c0_115, %c0_116] : memref<1x128xf32, #tpu.memory_space<vmem>>, vector<1x128xf32>
    %152 = vector.broadcast %151 : vector<1x128xf32> to vector<256x128xf32>
    %153 = arith.addf %150, %152 : vector<256x128xf32>
    %cst_117 = arith.constant 0.000000e+00 : f32
    %154 = vector.broadcast %cst_117 : f32 to vector<256x128xf32>
    %155 = arith.maximumf %153, %154 : vector<256x128xf32>
    %cst_118 = arith.constant dense<0.000000e+00> : vector<128xf32>
    %156 = vector.multi_reduction <add>, %155, %cst_118 [0] : vector<256x128xf32> to vector<128xf32>
    %157 = vector.shape_cast %156 : vector<128xf32> to vector<1x128xf32>
    %158 = arith.mulf %157, %157 : vector<1x128xf32>
    %cst_119 = arith.constant dense<0.000000e+00> : vector<1xf32>
    %159 = vector.multi_reduction <add>, %158, %cst_119 [1] : vector<1x128xf32> to vector<1xf32>
    %160 = vector.shape_cast %159 : vector<1xf32> to vector<1x1xf32>
    %161 = math.sqrt %160 : vector<1x1xf32>
    %cst_120 = arith.constant 9.99999993E-9 : f32
    %162 = vector.broadcast %cst_120 : f32 to vector<1x1xf32>
    %163 = arith.addf %161, %162 : vector<1x1xf32>
    %164 = vector.broadcast %163 : vector<1x1xf32> to vector<1x128xf32>
    %165 = arith.divf %157, %164 : vector<1x128xf32>
    %c0_121 = arith.constant 0 : index
    %c0_122 = arith.constant 0 : index
    %c0_123 = arith.constant 0 : index
    %166 = vector.load %arg9[%c0_121, %c0_122, %c0_123] : memref<1x1x128xf32, #tpu.memory_space<vmem>>, vector<1x1x128xf32>
    %167 = vector.shape_cast %166 : vector<1x1x128xf32> to vector<1x128xf32>
    %168 = vector.shape_cast %165 : vector<1x128xf32> to vector<1x1x128xf32>
    tpu.vector_store %arg9[%c0_121, %c0_122, %c0_123], %168 {strides = array<i32>} : memref<1x1x128xf32, #tpu.memory_space<vmem>>, vector<1x1x128xf32>,
    return
  }
  func.func @transform_0(%arg0: i32) -> (i32, i32, i32, i32) {
    %c0_i32 = arith.constant 0 : i32
    %c0_i32_0 = arith.constant 0 : i32
    %c0_i32_1 = arith.constant 0 : i32
    %c0_i32_2 = arith.constant 0 : i32
    return %arg0, %c0_i32, %c0_i32_0, %c0_i32_1 : i32, i32, i32, i32
  }
  func.func @transform_1(%arg0: i32) -> (i32, i32, i32, i32) {
    %c0_i32 = arith.constant 0 : i32
    %c0_i32_0 = arith.constant 0 : i32
    %c0_i32_1 = arith.constant 0 : i32
    %c0_i32_2 = arith.constant 0 : i32
    return %arg0, %c0_i32, %c0_i32_0, %c0_i32_1 : i32, i32, i32, i32
  }
  func.func @transform_2(%arg0: i32) -> (i32, i32, i32) {
    %c0_i32 = arith.constant 0 : i32
    %c0_i32_0 = arith.constant 0 : i32
    %c0_i32_1 = arith.constant 0 : i32
    %c0_i32_2 = arith.constant 0 : i32
    return %c0_i32, %c0_i32_0, %c0_i32_1 : i32, i32, i32
  }
  func.func @transform_3(%arg0: i32) -> (i32, i32) {
    %c0_i32 = arith.constant 0 : i32
    %c0_i32_0 = arith.constant 0 : i32
    %c0_i32_1 = arith.constant 0 : i32
    return %c0_i32, %c0_i32_0 : i32, i32
  }
  func.func @transform_4(%arg0: i32) -> (i32, i32, i32) {
    %c0_i32 = arith.constant 0 : i32
    %c0_i32_0 = arith.constant 0 : i32
    %c0_i32_1 = arith.constant 0 : i32
    %c0_i32_2 = arith.constant 0 : i32
    return %c0_i32, %c0_i32_0, %c0_i32_1 : i32, i32, i32
  }
  func.func @transform_5(%arg0: i32) -> (i32, i32) {
    %c0_i32 = arith.constant 0 : i32
    %c0_i32_0 = arith.constant 0 : i32
    %c0_i32_1 = arith.constant 0 : i32
    return %c0_i32, %c0_i32_0 : i32, i32
  }
  func.func @transform_6(%arg0: i32) -> (i32, i32) {
    %c0_i32 = arith.constant 0 : i32
    %c0_i32_0 = arith.constant 0 : i32
    %c0_i32_1 = arith.constant 0 : i32
    return %c0_i32, %c0_i32_0 : i32, i32
  }
  func.func @transform_7(%arg0: i32) -> (i32, i32) {
    %c0_i32 = arith.constant 0 : i32
    %c0_i32_0 = arith.constant 0 : i32
    %c0_i32_1 = arith.constant 0 : i32
    return %c0_i32, %c0_i32_0 : i32, i32
  }
  func.func @transform_8(%arg0: i32) -> (i32, i32, i32) {
    %c0_i32 = arith.constant 0 : i32
    %c0_i32_0 = arith.constant 0 : i32
    %c0_i32_1 = arith.constant 0 : i32
    return %arg0, %c0_i32, %c0_i32_0 : i32, i32, i32
  }
}

module attributes {stable_mosaic.version = 11 : i64} {
  func.func @_fc4_head_kernel(%arg0: i32, %arg1: memref<1x18x18x8xf32, #tpu.memory_space<vmem>>, %arg2: memref<1x1x1x8xf32, #tpu.memory_space<vmem>>, %arg3: memref<9x8x128xbf16, #tpu.memory_space<vmem>>, %arg4: memref<1x128xf32, #tpu.memory_space<vmem>>, %arg5: memref<9x128x128xbf16, #tpu.memory_space<vmem>>, %arg6: memref<1x128xf32, #tpu.memory_space<vmem>>, %arg7: memref<128x128xbf16, #tpu.memory_space<vmem>>, %arg8: memref<1x128xf32, #tpu.memory_space<vmem>>, %arg9: memref<1x1x128xf32, #tpu.memory_space<vmem>>, %arg10: memref<18x18x128xf32, #tpu.memory_space<vmem>>) attributes {dimension_semantics = [#tpu.dimension_semantics<parallel>], iteration_bounds = array<i64: 2>, scalar_prefetch = 0 : i64, scratch_operands = 1 : i64, tpu.core_type = #tpu.core_type<tc>, window_params = [{transform_indices = @transform_0, window_bounds = array<i64: 1, 18, 18, 8>}, {transform_indices = @transform_1, window_bounds = array<i64: 1, 1, 1, 8>}, {pipeline_mode = #tpu.pipeline_mode<synchronous>, transform_indices = @transform_2, window_bounds = array<i64: 9, 8, 128>}, {pipeline_mode = #tpu.pipeline_mode<synchronous>, transform_indices = @transform_3, window_bounds = array<i64: 1, 128>}, {pipeline_mode = #tpu.pipeline_mode<synchronous>, transform_indices = @transform_4, window_bounds = array<i64: 9, 128, 128>}, {pipeline_mode = #tpu.pipeline_mode<synchronous>, transform_indices = @transform_5, window_bounds = array<i64: 1, 128>}, {pipeline_mode = #tpu.pipeline_mode<synchronous>, transform_indices = @transform_6, window_bounds = array<i64: 128, 128>}, {pipeline_mode = #tpu.pipeline_mode<synchronous>, transform_indices = @transform_7, window_bounds = array<i64: 1, 128>}, {transform_indices = @transform_8, window_bounds = array<i64: 1, 1, 128>}]} {
    %c0 = arith.constant 0 : index
    %c0_0 = arith.constant 0 : index
    %c0_1 = arith.constant 0 : index
    %c0_2 = arith.constant 0 : index
    %0 = vector.load %arg1[%c0, %c0_0, %c0_1, %c0_2] : memref<1x18x18x8xf32, #tpu.memory_space<vmem>>, vector<1x18x18x8xf32>
    %1 = vector.shape_cast %0 : vector<1x18x18x8xf32> to vector<18x18x8xf32>
    %c0_3 = arith.constant 0 : index
    %c0_4 = arith.constant 0 : index
    %c0_5 = arith.constant 0 : index
    %c0_6 = arith.constant 0 : index
    %2 = vector.load %arg2[%c0_3, %c0_4, %c0_5, %c0_6] : memref<1x1x1x8xf32, #tpu.memory_space<vmem>>, vector<1x1x1x8xf32>
    %3 = vector.shape_cast %2 : vector<1x1x1x8xf32> to vector<1x1x8xf32>
    %4 = vector.broadcast %3 : vector<1x1x8xf32> to vector<18x18x8xf32>
    %5 = arith.mulf %1, %4 : vector<18x18x8xf32>
    %cst = arith.constant 0.000000e+00 : f32
    %6 = vector.broadcast %cst : f32 to vector<256x128xf32>
    %7 = vector.extract_strided_slice %5 {offsets = [0, 0, 0], sizes = [16, 16, 8], strides = [1, 1, 1]} : vector<18x18x8xf32> to vector<16x16x8xf32>
    %8 = vector.shape_cast %7 : vector<16x16x8xf32> to vector<256x8xf32>
    %9 = arith.truncf %8 : vector<256x8xf32> to vector<256x8xbf16>
    %c0_7 = arith.constant 0 : index
    %c0_8 = arith.constant 0 : index
    %c0_9 = arith.constant 0 : index
    %10 = vector.load %arg3[%c0_7, %c0_8, %c0_9] : memref<9x8x128xbf16, #tpu.memory_space<vmem>>, vector<1x8x128xbf16>
    %11 = vector.shape_cast %10 : vector<1x8x128xbf16> to vector<8x128xbf16>
    %cst_10 = arith.constant dense<0.000000e+00> : vector<256x128xf32>
    %12 = tpu.matmul %9, %11, %cst_10 {dimension_numbers = #tpu.dot_dimension_numbers<[1], [0], [0], [1], [0, 0, 1, 1], [], []>} : vector<256x8xbf16>, vector<8x128xbf16>, vector<256x128xf32> -> vector<256x128xf32>
    %13 = arith.addf %6, %12 : vector<256x128xf32>
    %14 = vector.extract_strided_slice %5 {offsets = [0, 1, 0], sizes = [16, 16, 8], strides = [1, 1, 1]} : vector<18x18x8xf32> to vector<16x16x8xf32>
    %15 = vector.shape_cast %14 : vector<16x16x8xf32> to vector<256x8xf32>
    %16 = arith.truncf %15 : vector<256x8xf32> to vector<256x8xbf16>
    %c1 = arith.constant 1 : index
    %c0_11 = arith.constant 0 : index
    %c0_12 = arith.constant 0 : index
    %17 = vector.load %arg3[%c1, %c0_11, %c0_12] : memref<9x8x128xbf16, #tpu.memory_space<vmem>>, vector<1x8x128xbf16>
    %18 = vector.shape_cast %17 : vector<1x8x128xbf16> to vector<8x128xbf16>
    %cst_13 = arith.constant dense<0.000000e+00> : vector<256x128xf32>
    %19 = tpu.matmul %16, %18, %cst_13 {dimension_numbers = #tpu.dot_dimension_numbers<[1], [0], [0], [1], [0, 0, 1, 1], [], []>} : vector<256x8xbf16>, vector<8x128xbf16>, vector<256x128xf32> -> vector<256x128xf32>
    %20 = arith.addf %13, %19 : vector<256x128xf32>
    %21 = vector.extract_strided_slice %5 {offsets = [0, 2, 0], sizes = [16, 16, 8], strides = [1, 1, 1]} : vector<18x18x8xf32> to vector<16x16x8xf32>
    %22 = vector.shape_cast %21 : vector<16x16x8xf32> to vector<256x8xf32>
    %23 = arith.truncf %22 : vector<256x8xf32> to vector<256x8xbf16>
    %c2 = arith.constant 2 : index
    %c0_14 = arith.constant 0 : index
    %c0_15 = arith.constant 0 : index
    %24 = vector.load %arg3[%c2, %c0_14, %c0_15] : memref<9x8x128xbf16, #tpu.memory_space<vmem>>, vector<1x8x128xbf16>
    %25 = vector.shape_cast %24 : vector<1x8x128xbf16> to vector<8x128xbf16>
    %cst_16 = arith.constant dense<0.000000e+00> : vector<256x128xf32>
    %26 = tpu.matmul %23, %25, %cst_16 {dimension_numbers = #tpu.dot_dimension_numbers<[1], [0], [0], [1], [0, 0, 1, 1], [], []>} : vector<256x8xbf16>, vector<8x128xbf16>, vector<256x128xf32> -> vector<256x128xf32>
    %27 = arith.addf %20, %26 : vector<256x128xf32>
    %28 = vector.extract_strided_slice %5 {offsets = [1, 0, 0], sizes = [16, 16, 8], strides = [1, 1, 1]} : vector<18x18x8xf32> to vector<16x16x8xf32>
    %29 = vector.shape_cast %28 : vector<16x16x8xf32> to vector<256x8xf32>
    %30 = arith.truncf %29 : vector<256x8xf32> to vector<256x8xbf16>
    %c3 = arith.constant 3 : index
    %c0_17 = arith.constant 0 : index
    %c0_18 = arith.constant 0 : index
    %31 = vector.load %arg3[%c3, %c0_17, %c0_18] : memref<9x8x128xbf16, #tpu.memory_space<vmem>>, vector<1x8x128xbf16>
    %32 = vector.shape_cast %31 : vector<1x8x128xbf16> to vector<8x128xbf16>
    %cst_19 = arith.constant dense<0.000000e+00> : vector<256x128xf32>
    %33 = tpu.matmul %30, %32, %cst_19 {dimension_numbers = #tpu.dot_dimension_numbers<[1], [0], [0], [1], [0, 0, 1, 1], [], []>} : vector<256x8xbf16>, vector<8x128xbf16>, vector<256x128xf32> -> vector<256x128xf32>
    %34 = arith.addf %27, %33 : vector<256x128xf32>
    %35 = vector.extract_strided_slice %5 {offsets = [1, 1, 0], sizes = [16, 16, 8], strides = [1, 1, 1]} : vector<18x18x8xf32> to vector<16x16x8xf32>
    %36 = vector.shape_cast %35 : vector<16x16x8xf32> to vector<256x8xf32>
    %37 = arith.truncf %36 : vector<256x8xf32> to vector<256x8xbf16>
    %c4 = arith.constant 4 : index
    %c0_20 = arith.constant 0 : index
    %c0_21 = arith.constant 0 : index
    %38 = vector.load %arg3[%c4, %c0_20, %c0_21] : memref<9x8x128xbf16, #tpu.memory_space<vmem>>, vector<1x8x128xbf16>
    %39 = vector.shape_cast %38 : vector<1x8x128xbf16> to vector<8x128xbf16>
    %cst_22 = arith.constant dense<0.000000e+00> : vector<256x128xf32>
    %40 = tpu.matmul %37, %39, %cst_22 {dimension_numbers = #tpu.dot_dimension_numbers<[1], [0], [0], [1], [0, 0, 1, 1], [], []>} : vector<256x8xbf16>, vector<8x128xbf16>, vector<256x128xf32> -> vector<256x128xf32>
    %41 = arith.addf %34, %40 : vector<256x128xf32>
    %42 = vector.extract_strided_slice %5 {offsets = [1, 2, 0], sizes = [16, 16, 8], strides = [1, 1, 1]} : vector<18x18x8xf32> to vector<16x16x8xf32>
    %43 = vector.shape_cast %42 : vector<16x16x8xf32> to vector<256x8xf32>
    %44 = arith.truncf %43 : vector<256x8xf32> to vector<256x8xbf16>
    %c5 = arith.constant 5 : index
    %c0_23 = arith.constant 0 : index
    %c0_24 = arith.constant 0 : index
    %45 = vector.load %arg3[%c5, %c0_23, %c0_24] : memref<9x8x128xbf16, #tpu.memory_space<vmem>>, vector<1x8x128xbf16>
    %46 = vector.shape_cast %45 : vector<1x8x128xbf16> to vector<8x128xbf16>
    %cst_25 = arith.constant dense<0.000000e+00> : vector<256x128xf32>
    %47 = tpu.matmul %44, %46, %cst_25 {dimension_numbers = #tpu.dot_dimension_numbers<[1], [0], [0], [1], [0, 0, 1, 1], [], []>} : vector<256x8xbf16>, vector<8x128xbf16>, vector<256x128xf32> -> vector<256x128xf32>
    %48 = arith.addf %41, %47 : vector<256x128xf32>
    %49 = vector.extract_strided_slice %5 {offsets = [2, 0, 0], sizes = [16, 16, 8], strides = [1, 1, 1]} : vector<18x18x8xf32> to vector<16x16x8xf32>
    %50 = vector.shape_cast %49 : vector<16x16x8xf32> to vector<256x8xf32>
    %51 = arith.truncf %50 : vector<256x8xf32> to vector<256x8xbf16>
    %c6 = arith.constant 6 : index
    %c0_26 = arith.constant 0 : index
    %c0_27 = arith.constant 0 : index
    %52 = vector.load %arg3[%c6, %c0_26, %c0_27] : memref<9x8x128xbf16, #tpu.memory_space<vmem>>, vector<1x8x128xbf16>
    %53 = vector.shape_cast %52 : vector<1x8x128xbf16> to vector<8x128xbf16>
    %cst_28 = arith.constant dense<0.000000e+00> : vector<256x128xf32>
    %54 = tpu.matmul %51, %53, %cst_28 {dimension_numbers = #tpu.dot_dimension_numbers<[1], [0], [0], [1], [0, 0, 1, 1], [], []>} : vector<256x8xbf16>, vector<8x128xbf16>, vector<256x128xf32> -> vector<256x128xf32>
    %55 = arith.addf %48, %54 : vector<256x128xf32>
    %56 = vector.extract_strided_slice %5 {offsets = [2, 1, 0], sizes = [16, 16, 8], strides = [1, 1, 1]} : vector<18x18x8xf32> to vector<16x16x8xf32>
    %57 = vector.shape_cast %56 : vector<16x16x8xf32> to vector<256x8xf32>
    %58 = arith.truncf %57 : vector<256x8xf32> to vector<256x8xbf16>
    %c7 = arith.constant 7 : index
    %c0_29 = arith.constant 0 : index
    %c0_30 = arith.constant 0 : index
    %59 = vector.load %arg3[%c7, %c0_29, %c0_30] : memref<9x8x128xbf16, #tpu.memory_space<vmem>>, vector<1x8x128xbf16>
    %60 = vector.shape_cast %59 : vector<1x8x128xbf16> to vector<8x128xbf16>
    %cst_31 = arith.constant dense<0.000000e+00> : vector<256x128xf32>
    %61 = tpu.matmul %58, %60, %cst_31 {dimension_numbers = #tpu.dot_dimension_numbers<[1], [0], [0], [1], [0, 0, 1, 1], [], []>} : vector<256x8xbf16>, vector<8x128xbf16>, vector<256x128xf32> -> vector<256x128xf32>
    %62 = arith.addf %55, %61 : vector<256x128xf32>
    %63 = vector.extract_strided_slice %5 {offsets = [2, 2, 0], sizes = [16, 16, 8], strides = [1, 1, 1]} : vector<18x18x8xf32> to vector<16x16x8xf32>
    %64 = vector.shape_cast %63 : vector<16x16x8xf32> to vector<256x8xf32>
    %65 = arith.truncf %64 : vector<256x8xf32> to vector<256x8xbf16>
    %c8 = arith.constant 8 : index
    %c0_32 = arith.constant 0 : index
    %c0_33 = arith.constant 0 : index
    %66 = vector.load %arg3[%c8, %c0_32, %c0_33] : memref<9x8x128xbf16, #tpu.memory_space<vmem>>, vector<1x8x128xbf16>
    %67 = vector.shape_cast %66 : vector<1x8x128xbf16> to vector<8x128xbf16>
    %cst_34 = arith.constant dense<0.000000e+00> : vector<256x128xf32>
    %68 = tpu.matmul %65, %67, %cst_34 {dimension_numbers = #tpu.dot_dimension_numbers<[1], [0], [0], [1], [0, 0, 1, 1], [], []>} : vector<256x8xbf16>, vector<8x128xbf16>, vector<256x128xf32> -> vector<256x128xf32>
    %69 = arith.addf %62, %68 : vector<256x128xf32>
    %c0_35 = arith.constant 0 : index
    %c0_36 = arith.constant 0 : index
    %70 = vector.load %arg4[%c0_35, %c0_36] : memref<1x128xf32, #tpu.memory_space<vmem>>, vector<1x128xf32>
    %71 = vector.broadcast %70 : vector<1x128xf32> to vector<256x128xf32>
    %72 = arith.addf %69, %71 : vector<256x128xf32>
    %cst_37 = arith.constant 0.000000e+00 : f32
    %73 = vector.broadcast %cst_37 : f32 to vector<256x128xf32>
    %74 = arith.maximumf %72, %73 : vector<256x128xf32>
    %cst_38 = arith.constant 0.000000e+00 : f32
    %75 = vector.broadcast %cst_38 : f32 to vector<18x18x128xf32>
    %c0_39 = arith.constant 0 : index
    %c0_40 = arith.constant 0 : index
    %c0_41 = arith.constant 0 : index
    %76 = vector.load %arg10[%c0_39, %c0_40, %c0_41] : memref<18x18x128xf32, #tpu.memory_space<vmem>>, vector<18x18x128xf32>
    tpu.vector_store %arg10[%c0_39, %c0_40, %c0_41], %75 {strides = array<i32>} : memref<18x18x128xf32, #tpu.memory_space<vmem>>, vector<18x18x128xf32>,
    %77 = vector.shape_cast %74 : vector<256x128xf32> to vector<16x16x128xf32>
    %c1_42 = arith.constant 1 : index
    %c1_43 = arith.constant 1 : index
    %c0_44 = arith.constant 0 : index
    %78 = vector.load %arg10[%c1_42, %c1_43, %c0_44] : memref<18x18x128xf32, #tpu.memory_space<vmem>>, vector<16x16x128xf32>
    tpu.vector_store %arg10[%c1_42, %c1_43, %c0_44], %77 {strides = array<i32>} : memref<18x18x128xf32, #tpu.memory_space<vmem>>, vector<16x16x128xf32>,
    %cst_45 = arith.constant 0.000000e+00 : f32
    %79 = vector.broadcast %cst_45 : f32 to vector<256x128xf32>
    %c0_46 = arith.constant 0 : index
    %c0_47 = arith.constant 0 : index
    %c0_48 = arith.constant 0 : index
    %80 = vector.load %arg10[%c0_46, %c0_47, %c0_48] : memref<18x18x128xf32, #tpu.memory_space<vmem>>, vector<16x16x128xf32>
    %81 = vector.shape_cast %80 : vector<16x16x128xf32> to vector<256x128xf32>
    %82 = arith.truncf %81 : vector<256x128xf32> to vector<256x128xbf16>
    %c0_49 = arith.constant 0 : index
    %c0_50 = arith.constant 0 : index
    %c0_51 = arith.constant 0 : index
    %83 = vector.load %arg5[%c0_49, %c0_50, %c0_51] : memref<9x128x128xbf16, #tpu.memory_space<vmem>>, vector<1x128x128xbf16>
    %84 = vector.shape_cast %83 : vector<1x128x128xbf16> to vector<128x128xbf16>
    %cst_52 = arith.constant dense<0.000000e+00> : vector<256x128xf32>
    %85 = tpu.matmul %82, %84, %cst_52 {dimension_numbers = #tpu.dot_dimension_numbers<[1], [0], [0], [1], [0, 0, 1, 1], [], []>} : vector<256x128xbf16>, vector<128x128xbf16>, vector<256x128xf32> -> vector<256x128xf32>
    %86 = arith.addf %79, %85 : vector<256x128xf32>
    %c0_53 = arith.constant 0 : index
    %c1_54 = arith.constant 1 : index
    %c0_55 = arith.constant 0 : index
    %87 = vector.load %arg10[%c0_53, %c1_54, %c0_55] : memref<18x18x128xf32, #tpu.memory_space<vmem>>, vector<16x16x128xf32>
    %88 = vector.shape_cast %87 : vector<16x16x128xf32> to vector<256x128xf32>
    %89 = arith.truncf %88 : vector<256x128xf32> to vector<256x128xbf16>
    %c1_56 = arith.constant 1 : index
    %c0_57 = arith.constant 0 : index
    %c0_58 = arith.constant 0 : index
    %90 = vector.load %arg5[%c1_56, %c0_57, %c0_58] : memref<9x128x128xbf16, #tpu.memory_space<vmem>>, vector<1x128x128xbf16>
    %91 = vector.shape_cast %90 : vector<1x128x128xbf16> to vector<128x128xbf16>
    %cst_59 = arith.constant dense<0.000000e+00> : vector<256x128xf32>
    %92 = tpu.matmul %89, %91, %cst_59 {dimension_numbers = #tpu.dot_dimension_numbers<[1], [0], [0], [1], [0, 0, 1, 1], [], []>} : vector<256x128xbf16>, vector<128x128xbf16>, vector<256x128xf32> -> vector<256x128xf32>
    %93 = arith.addf %86, %92 : vector<256x128xf32>
    %c0_60 = arith.constant 0 : index
    %c2_61 = arith.constant 2 : index
    %c0_62 = arith.constant 0 : index
    %94 = vector.load %arg10[%c0_60, %c2_61, %c0_62] : memref<18x18x128xf32, #tpu.memory_space<vmem>>, vector<16x16x128xf32>
    %95 = vector.shape_cast %94 : vector<16x16x128xf32> to vector<256x128xf32>
    %96 = arith.truncf %95 : vector<256x128xf32> to vector<256x128xbf16>
    %c2_63 = arith.constant 2 : index
    %c0_64 = arith.constant 0 : index
    %c0_65 = arith.constant 0 : index
    %97 = vector.load %arg5[%c2_63, %c0_64, %c0_65] : memref<9x128x128xbf16, #tpu.memory_space<vmem>>, vector<1x128x128xbf16>
    %98 = vector.shape_cast %97 : vector<1x128x128xbf16> to vector<128x128xbf16>
    %cst_66 = arith.constant dense<0.000000e+00> : vector<256x128xf32>
    %99 = tpu.matmul %96, %98, %cst_66 {dimension_numbers = #tpu.dot_dimension_numbers<[1], [0], [0], [1], [0, 0, 1, 1], [], []>} : vector<256x128xbf16>, vector<128x128xbf16>, vector<256x128xf32> -> vector<256x128xf32>
    %100 = arith.addf %93, %99 : vector<256x128xf32>
    %c1_67 = arith.constant 1 : index
    %c0_68 = arith.constant 0 : index
    %c0_69 = arith.constant 0 : index
    %101 = vector.load %arg10[%c1_67, %c0_68, %c0_69] : memref<18x18x128xf32, #tpu.memory_space<vmem>>, vector<16x16x128xf32>
    %102 = vector.shape_cast %101 : vector<16x16x128xf32> to vector<256x128xf32>
    %103 = arith.truncf %102 : vector<256x128xf32> to vector<256x128xbf16>
    %c3_70 = arith.constant 3 : index
    %c0_71 = arith.constant 0 : index
    %c0_72 = arith.constant 0 : index
    %104 = vector.load %arg5[%c3_70, %c0_71, %c0_72] : memref<9x128x128xbf16, #tpu.memory_space<vmem>>, vector<1x128x128xbf16>
    %105 = vector.shape_cast %104 : vector<1x128x128xbf16> to vector<128x128xbf16>
    %cst_73 = arith.constant dense<0.000000e+00> : vector<256x128xf32>
    %106 = tpu.matmul %103, %105, %cst_73 {dimension_numbers = #tpu.dot_dimension_numbers<[1], [0], [0], [1], [0, 0, 1, 1], [], []>} : vector<256x128xbf16>, vector<128x128xbf16>, vector<256x128xf32> -> vector<256x128xf32>
    %107 = arith.addf %100, %106 : vector<256x128xf32>
    %c1_74 = arith.constant 1 : index
    %c1_75 = arith.constant 1 : index
    %c0_76 = arith.constant 0 : index
    %108 = vector.load %arg10[%c1_74, %c1_75, %c0_76] : memref<18x18x128xf32, #tpu.memory_space<vmem>>, vector<16x16x128xf32>
    %109 = vector.shape_cast %108 : vector<16x16x128xf32> to vector<256x128xf32>
    %110 = arith.truncf %109 : vector<256x128xf32> to vector<256x128xbf16>
    %c4_77 = arith.constant 4 : index
    %c0_78 = arith.constant 0 : index
    %c0_79 = arith.constant 0 : index
    %111 = vector.load %arg5[%c4_77, %c0_78, %c0_79] : memref<9x128x128xbf16, #tpu.memory_space<vmem>>, vector<1x128x128xbf16>
    %112 = vector.shape_cast %111 : vector<1x128x128xbf16> to vector<128x128xbf16>
    %cst_80 = arith.constant dense<0.000000e+00> : vector<256x128xf32>
    %113 = tpu.matmul %110, %112, %cst_80 {dimension_numbers = #tpu.dot_dimension_numbers<[1], [0], [0], [1], [0, 0, 1, 1], [], []>} : vector<256x128xbf16>, vector<128x128xbf16>, vector<256x128xf32> -> vector<256x128xf32>
    %114 = arith.addf %107, %113 : vector<256x128xf32>
    %c1_81 = arith.constant 1 : index
    %c2_82 = arith.constant 2 : index
    %c0_83 = arith.constant 0 : index
    %115 = vector.load %arg10[%c1_81, %c2_82, %c0_83] : memref<18x18x128xf32, #tpu.memory_space<vmem>>, vector<16x16x128xf32>
    %116 = vector.shape_cast %115 : vector<16x16x128xf32> to vector<256x128xf32>
    %117 = arith.truncf %116 : vector<256x128xf32> to vector<256x128xbf16>
    %c5_84 = arith.constant 5 : index
    %c0_85 = arith.constant 0 : index
    %c0_86 = arith.constant 0 : index
    %118 = vector.load %arg5[%c5_84, %c0_85, %c0_86] : memref<9x128x128xbf16, #tpu.memory_space<vmem>>, vector<1x128x128xbf16>
    %119 = vector.shape_cast %118 : vector<1x128x128xbf16> to vector<128x128xbf16>
    %cst_87 = arith.constant dense<0.000000e+00> : vector<256x128xf32>
    %120 = tpu.matmul %117, %119, %cst_87 {dimension_numbers = #tpu.dot_dimension_numbers<[1], [0], [0], [1], [0, 0, 1, 1], [], []>} : vector<256x128xbf16>, vector<128x128xbf16>, vector<256x128xf32> -> vector<256x128xf32>
    %121 = arith.addf %114, %120 : vector<256x128xf32>
    %c2_88 = arith.constant 2 : index
    %c0_89 = arith.constant 0 : index
    %c0_90 = arith.constant 0 : index
    %122 = vector.load %arg10[%c2_88, %c0_89, %c0_90] : memref<18x18x128xf32, #tpu.memory_space<vmem>>, vector<16x16x128xf32>
    %123 = vector.shape_cast %122 : vector<16x16x128xf32> to vector<256x128xf32>
    %124 = arith.truncf %123 : vector<256x128xf32> to vector<256x128xbf16>
    %c6_91 = arith.constant 6 : index
    %c0_92 = arith.constant 0 : index
    %c0_93 = arith.constant 0 : index
    %125 = vector.load %arg5[%c6_91, %c0_92, %c0_93] : memref<9x128x128xbf16, #tpu.memory_space<vmem>>, vector<1x128x128xbf16>
    %126 = vector.shape_cast %125 : vector<1x128x128xbf16> to vector<128x128xbf16>
    %cst_94 = arith.constant dense<0.000000e+00> : vector<256x128xf32>
    %127 = tpu.matmul %124, %126, %cst_94 {dimension_numbers = #tpu.dot_dimension_numbers<[1], [0], [0], [1], [0, 0, 1, 1], [], []>} : vector<256x128xbf16>, vector<128x128xbf16>, vector<256x128xf32> -> vector<256x128xf32>
    %128 = arith.addf %121, %127 : vector<256x128xf32>
    %c2_95 = arith.constant 2 : index
    %c1_96 = arith.constant 1 : index
    %c0_97 = arith.constant 0 : index
    %129 = vector.load %arg10[%c2_95, %c1_96, %c0_97] : memref<18x18x128xf32, #tpu.memory_space<vmem>>, vector<16x16x128xf32>
    %130 = vector.shape_cast %129 : vector<16x16x128xf32> to vector<256x128xf32>
    %131 = arith.truncf %130 : vector<256x128xf32> to vector<256x128xbf16>
    %c7_98 = arith.constant 7 : index
    %c0_99 = arith.constant 0 : index
    %c0_100 = arith.constant 0 : index
    %132 = vector.load %arg5[%c7_98, %c0_99, %c0_100] : memref<9x128x128xbf16, #tpu.memory_space<vmem>>, vector<1x128x128xbf16>
    %133 = vector.shape_cast %132 : vector<1x128x128xbf16> to vector<128x128xbf16>
    %cst_101 = arith.constant dense<0.000000e+00> : vector<256x128xf32>
    %134 = tpu.matmul %131, %133, %cst_101 {dimension_numbers = #tpu.dot_dimension_numbers<[1], [0], [0], [1], [0, 0, 1, 1], [], []>} : vector<256x128xbf16>, vector<128x128xbf16>, vector<256x128xf32> -> vector<256x128xf32>
    %135 = arith.addf %128, %134 : vector<256x128xf32>
    %c2_102 = arith.constant 2 : index
    %c2_103 = arith.constant 2 : index
    %c0_104 = arith.constant 0 : index
    %136 = vector.load %arg10[%c2_102, %c2_103, %c0_104] : memref<18x18x128xf32, #tpu.memory_space<vmem>>, vector<16x16x128xf32>
    %137 = vector.shape_cast %136 : vector<16x16x128xf32> to vector<256x128xf32>
    %138 = arith.truncf %137 : vector<256x128xf32> to vector<256x128xbf16>
    %c8_105 = arith.constant 8 : index
    %c0_106 = arith.constant 0 : index
    %c0_107 = arith.constant 0 : index
    %139 = vector.load %arg5[%c8_105, %c0_106, %c0_107] : memref<9x128x128xbf16, #tpu.memory_space<vmem>>, vector<1x128x128xbf16>
    %140 = vector.shape_cast %139 : vector<1x128x128xbf16> to vector<128x128xbf16>
    %cst_108 = arith.constant dense<0.000000e+00> : vector<256x128xf32>
    %141 = tpu.matmul %138, %140, %cst_108 {dimension_numbers = #tpu.dot_dimension_numbers<[1], [0], [0], [1], [0, 0, 1, 1], [], []>} : vector<256x128xbf16>, vector<128x128xbf16>, vector<256x128xf32> -> vector<256x128xf32>
    %142 = arith.addf %135, %141 : vector<256x128xf32>
    %c0_109 = arith.constant 0 : index
    %c0_110 = arith.constant 0 : index
    %143 = vector.load %arg6[%c0_109, %c0_110] : memref<1x128xf32, #tpu.memory_space<vmem>>, vector<1x128xf32>
    %144 = vector.broadcast %143 : vector<1x128xf32> to vector<256x128xf32>
    %145 = arith.addf %142, %144 : vector<256x128xf32>
    %cst_111 = arith.constant 0.000000e+00 : f32
    %146 = vector.broadcast %cst_111 : f32 to vector<256x128xf32>
    %147 = arith.maximumf %145, %146 : vector<256x128xf32>
    %148 = arith.truncf %147 : vector<256x128xf32> to vector<256x128xbf16>
    %c0_112 = arith.constant 0 : index
    %c0_113 = arith.constant 0 : index
    %149 = vector.load %arg7[%c0_112, %c0_113] : memref<128x128xbf16, #tpu.memory_space<vmem>>, vector<128x128xbf16>
    %cst_114 = arith.constant dense<0.000000e+00> : vector<256x128xf32>
    %150 = tpu.matmul %148, %149, %cst_114 {dimension_numbers = #tpu.dot_dimension_numbers<[1], [0], [0], [1], [0, 0, 1, 1], [], []>} : vector<256x128xbf16>, vector<128x128xbf16>, vector<256x128xf32> -> vector<256x128xf32>
    %c0_115 = arith.constant 0 : index
    %c0_116 = arith.constant 0 : index
    %151 = vector.load %arg8[%c0_115, %c0_116] : memref<1x128xf32, #tpu.memory_space<vmem>>, vector<1x128xf32>
    %152 = vector.broadcast %151 : vector<1x128xf32> to vector<256x128xf32>
    %153 = arith.addf %150, %152 : vector<256x128xf32>
    %cst_117 = arith.constant 0.000000e+00 : f32
    %154 = vector.broadcast %cst_117 : f32 to vector<256x128xf32>
    %155 = arith.maximumf %153, %154 : vector<256x128xf32>
    %cst_118 = arith.constant dense<0.000000e+00> : vector<128xf32>
    %156 = vector.multi_reduction <add>, %155, %cst_118 [0] : vector<256x128xf32> to vector<128xf32>
    %157 = vector.shape_cast %156 : vector<128xf32> to vector<1x128xf32>
    %158 = arith.mulf %157, %157 : vector<1x128xf32>
    %cst_119 = arith.constant dense<0.000000e+00> : vector<1xf32>
    %159 = vector.multi_reduction <add>, %158, %cst_119 [1] : vector<1x128xf32> to vector<1xf32>
    %160 = vector.shape_cast %159 : vector<1xf32> to vector<1x1xf32>
    %161 = math.sqrt %160 : vector<1x1xf32>
    %cst_120 = arith.constant 9.99999993E-9 : f32
    %162 = vector.broadcast %cst_120 : f32 to vector<1x1xf32>
    %163 = arith.addf %161, %162 : vector<1x1xf32>
    %164 = vector.broadcast %163 : vector<1x1xf32> to vector<1x128xf32>
    %165 = arith.divf %157, %164 : vector<1x128xf32>
    %c0_121 = arith.constant 0 : index
    %c0_122 = arith.constant 0 : index
    %c0_123 = arith.constant 0 : index
    %166 = vector.load %arg9[%c0_121, %c0_122, %c0_123] : memref<1x1x128xf32, #tpu.memory_space<vmem>>, vector<1x1x128xf32>
    %167 = vector.shape_cast %166 : vector<1x1x128xf32> to vector<1x128xf32>
    %168 = vector.shape_cast %165 : vector<1x128xf32> to vector<1x1x128xf32>
    tpu.vector_store %arg9[%c0_121, %c0_122, %c0_123], %168 {strides = array<i32>} : memref<1x1x128xf32, #tpu.memory_space<vmem>>, vector<1x1x128xf32>,
    return
  }
  func.func @transform_0(%arg0: i32) -> (i32, i32, i32, i32) {
    %c0_i32 = arith.constant 0 : i32
    %c0_i32_0 = arith.constant 0 : i32
    %c0_i32_1 = arith.constant 0 : i32
    %c0_i32_2 = arith.constant 0 : i32
    return %arg0, %c0_i32, %c0_i32_0, %c0_i32_1 : i32, i32, i32, i32
  }
  func.func @transform_1(%arg0: i32) -> (i32, i32, i32, i32) {
    %c0_i32 = arith.constant 0 : i32
    %c0_i32_0 = arith.constant 0 : i32
    %c0_i32_1 = arith.constant 0 : i32
    %c0_i32_2 = arith.constant 0 : i32
    return %arg0, %c0_i32, %c0_i32_0, %c0_i32_1 : i32, i32, i32, i32
  }
  func.func @transform_2(%arg0: i32) -> (i32, i32, i32) {
    %c0_i32 = arith.constant 0 : i32
    %c0_i32_0 = arith.constant 0 : i32
    %c0_i32_1 = arith.constant 0 : i32
    %c0_i32_2 = arith.constant 0 : i32
    return %c0_i32, %c0_i32_0, %c0_i32_1 : i32, i32, i32
  }
  func.func @transform_3(%arg0: i32) -> (i32, i32) {
    %c0_i32 = arith.constant 0 : i32
    %c0_i32_0 = arith.constant 0 : i32
    %c0_i32_1 = arith.constant 0 : i32
    return %c0_i32, %c0_i32_0 : i32, i32
  }
  func.func @transform_4(%arg0: i32) -> (i32, i32, i32) {
    %c0_i32 = arith.constant 0 : i32
    %c0_i32_0 = arith.constant 0 : i32
    %c0_i32_1 = arith.constant 0 : i32
    %c0_i32_2 = arith.constant 0 : i32
    return %c0_i32, %c0_i32_0, %c0_i32_1 : i32, i32, i32
  }
  func.func @transform_5(%arg0: i32) -> (i32, i32) {
    %c0_i32 = arith.constant 0 : i32
    %c0_i32_0 = arith.constant 0 : i32
    %c0_i32_1 = arith.constant 0 : i32
    return %c0_i32, %c0_i32_0 : i32, i32
  }
  func.func @transform_6(%arg0: i32) -> (i32, i32) {
    %c0_i32 = arith.constant 0 : i32
    %c0_i32_0 = arith.constant 0 : i32
    %c0_i32_1 = arith.constant 0 : i32
    return %c0_i32, %c0_i32_0 : i32, i32
  }
  func.func @transform_7(%arg0: i32) -> (i32, i32) {
    %c0_i32 = arith.constant 0 : i32
    %c0_i32_0 = arith.constant 0 : i32
    %c0_i32_1 = arith.constant 0 : i32
    return %c0_i32, %c0_i32_0 : i32, i32
  }
  func.func @transform_8(%arg0: i32) -> (i32, i32, i32) {
    %c0_i32 = arith.constant 0 : i32
    %c0_i32_0 = arith.constant 0 : i32
    %c0_i32_1 = arith.constant 0 : i32
    return %arg0, %c0_i32, %c0_i32_0 : i32, i32, i32
  }
}

</mosaic_0001>

<bundles_post_ra>
// kernel: c4_forward.5
= control target key start
LH: loop header
LB: loop body
LE: loop exit
PB: predicated region body
PF: predicated region fallthrough
CT: control target
= control target key end

     0   :  { %13 = vsyncpa [#allocation4], 0  ;;  %s7534_s0 = inlined_call_operand.vmem [shape: f32[2,18,18,8], index: 0, kind: input, shape index: {}]   ;;  %s7535_s1 = inlined_call_operand.vmem [shape: f32[2,1,1,8], index: 1, kind: input, shape index: {}]   ;;  %s7536_s2 = inlined_call_operand.vmem [shape: bf16[9,8,128], index: 2, kind: input, shape index: {}]   ;;  %s7537_s3 = inlined_call_operand.vmem [shape: f32[1,128], index: 3, kind: input, shape index: {}]   ;;  %s7538_s4 = inlined_call_operand.vmem [shape: bf16[9,128,128], index: 4, kind: input, shape index: {}]   ;;  %s7539_s5 = inlined_call_operand.vmem [shape: f32[1,128], index: 5, kind: input, shape index: {}]   ;;  %s7540_s6 = inlined_call_operand.vmem [shape: bf16[128,128], index: 6, kind: input, shape index: {}]   ;;  %s7541_s7 = inlined_call_operand.vmem [shape: f32[1,128], index: 7, kind: input, shape index: {}]   ;;  %s7542_s8 = inlined_call_operand.hbm [shape: f32[2,1,128], index: 8, kind: output, shape index: {}]  }
   0x1   :  { %15 = vsyncpa [#allocation4 + $0x1], 0  ;;  %s5494_s27 = smov 0   ;;  %s5496_s28 = smov 0  }
   0x2   :  { %s5498_s29 = smov 0   ;;  %s5500_s30 = smov 0  }
   0x3 LB: > { %s5515_s9 = sadd.s32 4294967295, %s5445_s30   ;;  %s4641_s10 = sadd.s32 4294967294, %s5445_s30   ;;  %s5445_s30 = sphi %s5500_s30, %s7671_s30   ;;  %s5441_s29 = sphi %s5498_s29, %s7670_s29   ;;  %s5437_s28 = sphi %s5496_s28, %s7669_s28   ;;  %s5433_s27 = sphi %s5494_s27, %s7668_s27  }
   0x4   : > { %s5519_s11 = sadd.s32 1, %s5445_s30   ;;  %s206_s12 = sadd.s32 1, %s5441_s29 }
   0x5   : > { %s203_s13 = ssub.s32 %s5445_s30, %s5519_s11  ;;  %p216_p0 = scmp.ne.s32.totalorder %s5441_s29, %s5437_s28 }
   0x6   : > { %p204_p1 = scmp.eq.s32.totalorder %s203_s13, 0  ;;  %p217_p2 = scmp.eq.s32.totalorder %s5515_s9, 1 }
   0x7   : > { %p222_p3 = scmp.ne.s32.totalorder %s5437_s28, %s5433_s27  ;;  %p223_p4 = scmp.eq.s32.totalorder %s4641_s10, 1 }
   0x8   : > { %s5530_s14 = scalar_select %p204_p1, %s5441_s29, %s206_s12  }
   0x9   : > { %p5532_p5 = por %p217_p2, %p216_p0  ;;  %p5536_p6 = por %p223_p4, %p222_p3 }
   0xa   : > { %p4644_p7 = scmp.ge.s32.totalorder %s5445_s30, 1  ;;  %p273_p8 = scmp.lt.s32.totalorder %s5445_s30, 3 }
   0xc   : > { %p274_p9 = pnand %p4644_p7, %p273_p8 }
   0xe   : > { %277 = sbr.rel (%p274_p9) target bundleno = 1832 (0x728), region = 52 }
  0x13   : > { %v4646_v0 = vld [vmem:[%s7536_s2 + $0x4] sm:$0xf]  ;;  %vm675_vm0 = vcmask 1043456   ;;  %v446_v1 = vld [vmem:[%s7536_s2] sm:$0xf]  ;;  %p309_p10 = scmp.lt.s32.totalorder %s5515_s9, 1 }
  0x14   : > { %v677_v2 = vsel %vm675_vm0, %v4646_v0, 0  ;;  %v817_v3 = vsel %vm675_vm0, %v446_v1, 0  ;;  %v4679_v4 = vld [vmem:[%s7536_s2 + $0x8] sm:$0xf]  ;;  %v4713_v6 = vld [vmem:[%s7536_s2 + $0x10] sm:$0xf] }
  0x15   : > { %686 = vmatpush.bf16.msra.mxu0 %v677_v2  ;;  %5328 = vmatpush.bf16.msra.mxu3 %v677_v2  ;;  %v1088_v5 = vsel %vm675_vm0, %v4679_v4, 0  ;;  %s310_s23 = scalar_select %p309_p10, %s5515_s9, 1  ;;  %v1358_v7 = vsel %vm675_vm0, %v4713_v6, 0  ;;  %vm495_vm1 = vcmask 1046528   ;;  %vm626_vm2 = vcmask 64512  }
  0x16   : > { %826 = vmatpush.bf16.msra.mxu1 %v817_v3  ;;  %1097 = vmatpush.bf16.msra.mxu2 %v1088_v5  ;;  %vm908_vm3 = vcmask 1045504   ;;  %s5403_s21 = scalar_lea.hbm %s7542_s8, 2 }
  0x17   : > { %s5331_s26 = smul.u32 432, %s310_s23  ;;  %s5563_s13 = scalar_lea.vmem %s7535_s1, %s310_s23 }
  0x18   : > { %v5566_v8 = vld [vmem:[%s5563_s13] ss:$0 sm:$0xff]  ;;  %s307_s23 = sand.u32 1, %s5437_s28  }
  0x19   : > { %5329 = vmatpush.bf16.msrb.mxu3 %v817_v3  ;;  %1367 = vmatpush.bf16.msrb.mxu0 %v1358_v7  ;;  %s5571_s19 = scalar_lea.vmem %s7534_s0, %s5331_s26  ;;  %s4573_s26 = scalar_lea.hbm %s7542_s8, %s5515_s9 }
  0x1a   : > { %v318_v9 = vld [vmem:[%s5571_s19] sm:$0xff]  ;;  %v319_v10 = vld [vmem:[%s5571_s19 + $0x8] sm:$0xff]  ;;  %v320_v11 = vld [vmem:[%s5571_s19 + $0x10] sm:$0x3]  ;;  %s4577_s12 = sshll.u32 %s4573_s26, 4  ;;  %s4565_s17 = scalar_lea.sflag [#allocation4], %s307_s23  ;;  %s4578_s12 = int_to_ptr.hbm [resolvable:$true] %s4577_s12 }
  0x1b   : > { %v376_v12 = vmul.f32 %v5566_v8, %v318_v9  ;;  %v377_v13 = vmul.f32 %v5566_v8, %v319_v10  ;;  %v378_v14 = vmul.f32 %v5566_v8, %v320_v11  ;;  %v354_v15 = vld [vmem:[%s5571_s19 + $0x120] sm:$0xff]  ;;  %v355_v16 = vld [vmem:[%s5571_s19 + $0x128] sm:$0xff]  ;;  %v356_v17 = vld [vmem:[%s5571_s19 + $0x130] sm:$0x3]  ;;  %s5397_s18 = sshra.s32 %s4578_s12, 4  ;;  %s5398_s18 = int_to_ptr.hbm [resolvable:$true] %s5397_s18 }
  0x1c   : > { %v5583_v18 = vmul.f32 %v5566_v8, %v354_v15  ;;  %v5586_v19 = vmul.f32 %v5566_v8, %v355_v16  ;;  %v5589_v20 = vmul.f32 %v5566_v8, %v356_v17  ;;  %v321_v36 = vld [vmem:[%s5571_s19 + $0x18] sm:$0xff]  ;;  %v322_v37 = vld [vmem:[%s5571_s19 + $0x20] sm:$0xff]  ;;  %v323_v38 = vld [vmem:[%s5571_s19 + $0x28] sm:$0x3]  ;;  %s5399_s20 = scalar_lea.hbm %s5398_s18, 1  ;;  %p5404_p0 = scmp.lt.s32.totalorder %s5398_s18, %s7542_s8 }
  0x1d   : > { %v496_v21 = vrot.slane %v376_v12, 1  ;;  %v497_v22 = vrot.slane %v377_v13, 1  ;;  %v499_v23 = vrot.slane %v378_v14, 1  ;;  %v430_v24 = vpack.c.bf16 %v377_v13, %v376_v12  ;;  %v357_v41 = vld [vmem:[%s5571_s19 + $0x138] sm:$0xff]  ;;  %v358_v42 = vld [vmem:[%s5571_s19 + $0x140] sm:$0xff]  ;;  %v324_v6 = vld [vmem:[%s5571_s19 + $0x30] sm:$0xff]  ;;  %p5400_p11 = scmp.ne.s32.totalorder %s5398_s18, %s5399_s20  ;;  %p5405_p1 = scmp.lt.s32.totalorder %s5403_s21, %s5399_s20 }
  0x1e   : > { %v556_v25 = vrot.slane %v5583_v18, 1  ;;  %v557_v26 = vrot.slane %v5586_v19, 1  ;;  %v559_v27 = vrot.slane %v5589_v20, 1  ;;  %v909_v30 = vrot.slane %v376_v12, 2  ;;  %v359_v43 = vld [vmem:[%s5571_s19 + $0x148] sm:$0x3] }
  0x1f   : > { %v498_v28 = vsel %vm495_vm1, %v496_v21, %v497_v22  ;;  %v500_v29 = vsel %vm495_vm1, %v497_v22, %v499_v23  ;;  %4663 = vmatmul.msk.bf16.vlgmr.msra.gmra.mxu1 %vm626_vm2, %v430_v24  ;;  %v910_v31 = vrot.slane %v377_v13, 2  ;;  %v912_v35 = vrot.slane %v378_v14, 2  ;;  %v325_v7 = vld [vmem:[%s5571_s19 + $0x38] sm:$0xff]  ;;  %v326_v9 = vld [vmem:[%s5571_s19 + $0x40] sm:$0x3]  ;;  %v360_v11 = vld [vmem:[%s5571_s19 + $0x150] sm:$0xff]  ;;  %p5401_p12 = pnand %p5400_p11, %p5532_p5  ;;  %p5406_p2 = por %p5405_p1, %p5404_p0 }
  0x20   : > { %v608_v32 = vpack.c.bf16 %v500_v29, %v498_v28  ;;  %v558_v33 = vsel %vm495_vm1, %v556_v25, %v557_v26  ;;  %v560_v34 = vsel %vm495_vm1, %v557_v26, %v559_v27  ;;  %v379_v46 = vmul.f32 %v5566_v8, %v321_v36  ;;  %v361_v12 = vld [vmem:[%s5571_s19 + $0x158] sm:$0xff]  ;;  %v362_v13 = vld [vmem:[%s5571_s19 + $0x160] sm:$0x3] }
  0x21   : > { %v5602_v39 = vpack.c.bf16 %v560_v34, %v558_v33  ;;  %v911_v40 = vsel %vm908_vm3, %v909_v30, %v910_v31  ;;  %v913_v44 = vsel %vm908_vm3, %v910_v31, %v912_v35  ;;  %v380_v47 = vmul.f32 %v5566_v8, %v322_v37  ;;  %p5402_p13 = pneg %p5401_p12 }
  0x22   : > { %4647 = vmatmul.msk.bf16.vlgmr.msra.gmra.mxu0 %vm626_vm2, %v608_v32  ;;  %v1021_v45 = vpack.c.bf16 %v913_v44, %v911_v40  ;;  %v381_v48 = vmul.f32 %v5566_v8, %v323_v38  ;;  %v5616_v49 = vmul.f32 %v5566_v8, %v357_v41  ;;  %v5619_v50 = vmul.f32 %v5566_v8, %v358_v42  ;;  %v327_v42 = vld [vmem:[%s5571_s19 + $0x48] sm:$0xff]  ;;  %v329_v44 = vld [vmem:[%s5571_s19 + $0x58] sm:$0x3] }
  0x23   : > { %7569 = vst [vmem:[#allocation6_spill] sm:$0xff] %v5602_v39  ;;  %4659 = vmatmul.msk.bf16.vlgmr.msra.gmra.mxu3 %vm626_vm2, %v5602_v39  ;;  %v5622_v51 = vmul.f32 %v5566_v8, %v359_v43  ;;  %v501_v52 = vrot.slane %v379_v46, 1  ;;  %v502_v53 = vrot.slane %v380_v47, 1  ;;  %v914_v58 = vrot.slane %v379_v46, 2  ;;  %v328_v43 = vld [vmem:[%s5571_s19 + $0x50] sm:$0xff]  ;;  %p5407_p3 = pnand %p5406_p2, %p5402_p13 }
  0x24   : > { %5330 = vmatpush.bf16.msra.mxu3 %v1088_v5  ;;  %4680 = vmatmul.msk.bf16.vlgmr.msra.gmra.mxu2 %vm626_vm2, %v1021_v45  ;;  %v504_v54 = vrot.slane %v381_v48, 1  ;;  %v561_v55 = vrot.slane %v5616_v49, 1  ;;  %v562_v56 = vrot.slane %v5619_v50, 1  ;;  %v915_v59 = vrot.slane %v380_v47, 2 }
  0x25   : > { %v564_v57 = vrot.slane %v5622_v51, 1  ;;  %v917_v60 = vrot.slane %v381_v48, 2  ;;  %v503_v61 = vsel %vm495_vm1, %v501_v52, %v502_v53  ;;  %v5630_v63 = vpack.c.bf16 %v380_v47, %v379_v46  ;;  %v363_v46 = vld [vmem:[%s5571_s19 + $0x168] sm:$0xff]  ;;  %v364_v47 = vld [vmem:[%s5571_s19 + $0x170] sm:$0xff]  ;;  %v365_v48 = vld [vmem:[%s5571_s19 + $0x178] sm:$0x3] }
  0x26   : > { %v505_v62 = vsel %vm495_vm1, %v502_v53, %v504_v54  ;;  %v563_v0 = vsel %vm495_vm1, %v561_v55, %v562_v56  ;;  %v916_v3 = vsel %vm908_vm3, %v914_v58, %v915_v59  ;;  %v382_v14 = vmul.f32 %v5566_v8, %v324_v6 }
  0x27   : > { %v565_v1 = vsel %vm495_vm1, %v562_v56, %v564_v57  ;;  %v5634_v2 = vpack.c.bf16 %v505_v62, %v503_v61  ;;  %v918_v4 = vsel %vm908_vm3, %v915_v59, %v917_v60  ;;  %v383_v15 = vmul.f32 %v5566_v8, %v325_v7 }
  0x28   : > { %v5638_v5 = vpack.c.bf16 %v565_v1, %v563_v0  ;;  %v5645_v10 = vpack.c.bf16 %v918_v4, %v916_v3  ;;  %v384_v16 = vmul.f32 %v5566_v8, %v326_v9  ;;  %v5658_v17 = vmul.f32 %v5566_v8, %v360_v11 }
  0x29   : > { %v5661_v21 = vmul.f32 %v5566_v8, %v361_v12  ;;  %v5664_v22 = vmul.f32 %v5566_v8, %v362_v13  ;;  %v506_v23 = vrot.slane %v382_v14, 1  ;;  %v507_v24 = vrot.slane %v383_v15, 1 }
  0x2a   : > { %7570 = vst [vmem:[#allocation7_spill] sm:$0xff] %v5638_v5  ;;  %v509_v25 = vrot.slane %v384_v16, 1  ;;  %v566_v26 = vrot.slane %v5658_v17, 1  ;;  %v919_v29 = vrot.slane %v382_v14, 2  ;;  %v920_v30 = vrot.slane %v383_v15, 2 }
  0x2b   : > { %v567_v27 = vrot.slane %v5661_v21, 1  ;;  %v569_v28 = vrot.slane %v5664_v22, 1  ;;  %v922_v31 = vrot.slane %v384_v16, 2  ;;  %v508_v32 = vsel %vm495_vm1, %v506_v23, %v507_v24  ;;  %v330_v23 = vld [vmem:[%s5571_s19 + $0x60] sm:$0xff] }
  0x2c   : > { %v510_v33 = vsel %vm495_vm1, %v507_v24, %v509_v25  ;;  %v5673_v34 = vpack.c.bf16 %v383_v15, %v382_v14  ;;  %v921_v38 = vsel %vm908_vm3, %v919_v29, %v920_v30  ;;  %v385_v52 = vmul.f32 %v5566_v8, %v327_v42  ;;  %v331_v24 = vld [vmem:[%s5571_s19 + $0x68] sm:$0xff]  ;;  %v332_v25 = vld [vmem:[%s5571_s19 + $0x70] sm:$0x3] }
  0x2d   : > { %v568_v35 = vsel %vm495_vm1, %v566_v26, %v567_v27  ;;  %v570_v36 = vsel %vm495_vm1, %v567_v27, %v569_v28  ;;  %v5677_v37 = vpack.c.bf16 %v510_v33, %v508_v32  ;;  %v923_v40 = vsel %vm908_vm3, %v920_v30, %v922_v31 }
  0x2e   : > { %v5681_v41 = vpack.c.bf16 %v570_v36, %v568_v35  ;;  %v5688_v45 = vpack.c.bf16 %v923_v40, %v921_v38  ;;  %v386_v53 = vmul.f32 %v5566_v8, %v328_v43  ;;  %v387_v54 = vmul.f32 %v5566_v8, %v329_v44 }
  0x2f   : > { %4664 = vmatmul.msk.bf16.gmra.mxu1 %vm626_vm2, %v5630_v63  ;;  %v5701_v55 = vmul.f32 %v5566_v8, %v363_v46  ;;  %v5704_v56 = vmul.f32 %v5566_v8, %v364_v47  ;;  %v5707_v57 = vmul.f32 %v5566_v8, %v365_v48  ;;  %v511_v58 = vrot.slane %v385_v52, 1  ;;  %v333_v48 = vld [vmem:[%s5571_s19 + $0x78] sm:$0xff] }
  0x30   : > { %7571 = vst [vmem:[#allocation8_spill] sm:$0xff] %v5681_v41  ;;  %v512_v59 = vrot.slane %v386_v53, 1  ;;  %v514_v60 = vrot.slane %v387_v54, 1  ;;  %v924_v1 = vrot.slane %v385_v52, 2  ;;  %v925_v3 = vrot.slane %v386_v53, 2 }
  0x31   : > { %v571_v61 = vrot.slane %v5701_v55, 1  ;;  %v572_v62 = vrot.slane %v5704_v56, 1  ;;  %v574_v0 = vrot.slane %v5707_v57, 1  ;;  %v927_v4 = vrot.slane %v387_v54, 2 }
  0x32   : > { %4648 = vmatmul.msk.bf16.gmra.mxu0 %vm626_vm2, %v5634_v2  ;;  %v513_v6 = vsel %vm495_vm1, %v511_v58, %v512_v59  ;;  %v515_v7 = vsel %vm495_vm1, %v512_v59, %v514_v60  ;;  %v5716_v9 = vpack.c.bf16 %v386_v53, %v385_v52  ;;  %v926_v14 = vsel %vm908_vm3, %v924_v1, %v925_v3  ;;  %v334_v52 = vld [vmem:[%s5571_s19 + $0x80] sm:$0xff]  ;;  %v335_v53 = vld [vmem:[%s5571_s19 + $0x88] sm:$0x3] }
  0x33   : > { %4660 = vmatmul.msk.bf16.gmra.mxu3 %vm626_vm2, %v5638_v5  ;;  %v573_v11 = vsel %vm495_vm1, %v571_v61, %v572_v62  ;;  %v575_v12 = vsel %vm495_vm1, %v572_v62, %v574_v0  ;;  %v5720_v13 = vpack.c.bf16 %v515_v7, %v513_v6  ;;  %v928_v15 = vsel %vm908_vm3, %v925_v3, %v927_v4 }
  0x34   : > { %4681 = vmatmul.msk.bf16.gmra.mxu2 %vm626_vm2, %v5645_v10  ;;  %v5724_v16 = vpack.c.bf16 %v575_v12, %v573_v11  ;;  %v5731_v26 = vpack.c.bf16 %v928_v15, %v926_v14  ;;  %v388_v27 = vmul.f32 %v5566_v8, %v330_v23  ;;  %v389_v28 = vmul.f32 %v5566_v8, %v331_v24  ;;  %v336_v24 = vld [vmem:[%s5571_s19 + $0x90] sm:$0xff] }
  0x35   : > { %v390_v29 = vmul.f32 %v5566_v8, %v332_v25  ;;  %v5754_v47 = vpack.c.bf16 %v5586_v19, %v5583_v18  ;;  %v391_v58 = vmul.f32 %v5566_v8, %v333_v48  ;;  %v392_v59 = vmul.f32 %v5566_v8, %v334_v52  ;;  %v337_v25 = vld [vmem:[%s5571_s19 + $0x98] sm:$0xff] }
  0x36   : > { %7572 = vst [vmem:[#allocation9_spill] sm:$0xff] %v5724_v16  ;;  %v516_v30 = vrot.slane %v388_v27, 1  ;;  %v517_v31 = vrot.slane %v389_v28, 1  ;;  %v929_v33 = vrot.slane %v388_v27, 2  ;;  %v930_v35 = vrot.slane %v389_v28, 2 }
  0x37   : > { %v519_v32 = vrot.slane %v390_v29, 1  ;;  %v932_v36 = vrot.slane %v390_v29, 2  ;;  %v5744_v42 = vpack.c.bf16 %v389_v28, %v388_v27  ;;  %v393_v60 = vmul.f32 %v5566_v8, %v335_v53  ;;  %v338_v27 = vld [vmem:[%s5571_s19 + $0xa0] sm:$0x3] }
  0x38   : > { %v518_v38 = vsel %vm495_vm1, %v516_v30, %v517_v31  ;;  %v931_v44 = vsel %vm908_vm3, %v929_v33, %v930_v35  ;;  %v521_v61 = vrot.slane %v391_v58, 1  ;;  %v522_v62 = vrot.slane %v392_v59, 1 }
  0x39   : > { %v520_v40 = vsel %vm495_vm1, %v517_v31, %v519_v32  ;;  %v933_v46 = vsel %vm908_vm3, %v930_v35, %v932_v36  ;;  %v524_v0 = vrot.slane %v393_v60, 1  ;;  %v934_v1 = vrot.slane %v391_v58, 2 }
  0x3a   : > { %v5746_v43 = vpack.c.bf16 %v520_v40, %v518_v38  ;;  %v5759_v54 = vpack.c.bf16 %v933_v46, %v931_v44  ;;  %v935_v3 = vrot.slane %v392_v59, 2  ;;  %v937_v4 = vrot.slane %v393_v60, 2  ;;  %v339_v60 = vld [vmem:[%s5571_s19 + $0xa8] sm:$0xff] }
  0x3b   : > { %v523_v6 = vsel %vm495_vm1, %v521_v61, %v522_v62  ;;  %v525_v7 = vsel %vm495_vm1, %v522_v62, %v524_v0  ;;  %v5772_v11 = vpack.c.bf16 %v392_v59, %v391_v58  ;;  %v5782_v23 = vpack.c.bf16 %v5619_v50, %v5616_v49  ;;  %v340_v61 = vld [vmem:[%s5571_s19 + $0xb0] sm:$0xff]  ;;  %v341_v62 = vld [vmem:[%s5571_s19 + $0xb8] sm:$0x3] }
  0x3c   : > { %7573 = vst [vmem:[#allocation10_spill] sm:$0xff] %v5746_v43  ;;  %v5774_v12 = vpack.c.bf16 %v525_v7, %v523_v6  ;;  %v936_v14 = vsel %vm908_vm3, %v934_v1, %v935_v3  ;;  %v938_v15 = vsel %vm908_vm3, %v935_v3, %v937_v4  ;;  %v394_v29 = vmul.f32 %v5566_v8, %v336_v24  ;;  %v4696_v6 = vld [vmem:[%s7536_s2 + $0xc] sm:$0xf] }
  0x3d   : > { %7575 = vst [vmem:[#allocation12_spill] sm:$0xff] %v5782_v23  ;;  %v5787_v28 = vpack.c.bf16 %v938_v15, %v936_v14  ;;  %v395_v30 = vmul.f32 %v5566_v8, %v337_v25  ;;  %v396_v31 = vmul.f32 %v5566_v8, %v338_v27  ;;  %v5810_v59 = vpack.c.bf16 %v5661_v21, %v5658_v17 }
  0x3e   : > { %7574 = vst [vmem:[#allocation11_spill] sm:$0xff] %v5774_v12  ;;  %v526_v32 = vrot.slane %v394_v29, 1  ;;  %v939_v36 = vrot.slane %v394_v29, 2  ;;  %v397_v1 = vmul.f32 %v5566_v8, %v339_v60  ;;  %v398_v3 = vmul.f32 %v5566_v8, %v340_v61 }
  0x3f   : > { %4665 = vmatmul.msk.bf16.gmra.mxu1 %vm626_vm2, %v5673_v34  ;;  %v527_v33 = vrot.slane %v395_v30, 1  ;;  %v529_v35 = vrot.slane %v396_v31, 1  ;;  %v940_v38 = vrot.slane %v395_v30, 2  ;;  %v942_v40 = vrot.slane %v396_v31, 2  ;;  %7576 = vst [vmem:[#allocation13_spill] sm:$0xff] %v5810_v59 }
  0x40   : > { %v5800_v48 = vpack.c.bf16 %v395_v30, %v394_v29  ;;  %v399_v4 = vmul.f32 %v5566_v8, %v341_v62  ;;  %v1218_v7 = vsel %vm675_vm0, %v4696_v6, 0  ;;  %v531_v14 = vrot.slane %v397_v1, 1 }
  0x41   : > { %v528_v44 = vsel %vm495_vm1, %v526_v32, %v527_v33  ;;  %v530_v46 = vsel %vm495_vm1, %v527_v33, %v529_v35  ;;  %v941_v53 = vsel %vm908_vm3, %v939_v36, %v940_v38  ;;  %v943_v58 = vsel %vm908_vm3, %v940_v38, %v942_v40  ;;  %v342_v40 = vld [vmem:[%s5571_s19 + $0xc0] sm:$0xff] }
  0x42   : > { %4649 = vmatmul.msk.bf16.gmra.mxu0 %vm626_vm2, %v5677_v37  ;;  %v5802_v52 = vpack.c.bf16 %v530_v46, %v528_v44  ;;  %v5815_v0 = vpack.c.bf16 %v943_v58, %v941_v53  ;;  %v532_v15 = vrot.slane %v398_v3, 1  ;;  %v534_v24 = vrot.slane %v399_v4, 1  ;;  %v343_v44 = vld [vmem:[%s5571_s19 + $0xc8] sm:$0xff]  ;;  %v344_v46 = vld [vmem:[%s5571_s19 + $0xd0] sm:$0x3] }
  0x43   : > { %4661 = vmatmul.msk.bf16.gmra.mxu3 %vm626_vm2, %v5681_v41  ;;  %v944_v25 = vrot.slane %v397_v1, 2  ;;  %v945_v27 = vrot.slane %v398_v3, 2  ;;  %v947_v29 = vrot.slane %v399_v4, 2  ;;  %v5832_v32 = vpack.c.bf16 %v398_v3, %v397_v1  ;;  %v4730_v58 = vld [vmem:[%s7536_s2 + $0x14] sm:$0xf] }
  0x44   : > { %4682 = vmatmul.msk.bf16.gmra.mxu2 %vm626_vm2, %v5688_v45  ;;  %v533_v30 = vsel %vm495_vm1, %v531_v14, %v532_v15  ;;  %v535_v31 = vsel %vm495_vm1, %v532_v15, %v534_v24  ;;  %v5842_v38 = vpack.c.bf16 %v5704_v56, %v5701_v55  ;;  %v1495_v60 = vsel %vm675_vm0, %v4730_v58, 0 }
  0x45   : > { %v5834_v33 = vpack.c.bf16 %v535_v31, %v533_v30  ;;  %v946_v35 = vsel %vm908_vm3, %v944_v25, %v945_v27  ;;  %v948_v36 = vsel %vm908_vm3, %v945_v27, %v947_v29  ;;  %v400_v61 = vmul.f32 %v5566_v8, %v342_v40  ;;  %1504 = vmatpush.bf16.msrb.mxu1 %v1495_v60  ;;  %v345_v60 = vld [vmem:[%s5571_s19 + $0xd8] sm:$0xff] }
  0x46   : > { %7577 = vst [vmem:[#allocation14_spill] sm:$0xff] %v5842_v38  ;;  %v5847_v53 = vpack.c.bf16 %v948_v36, %v946_v35  ;;  %v401_v62 = vmul.f32 %v5566_v8, %v343_v44  ;;  %v402_v1 = vmul.f32 %v5566_v8, %v344_v46  ;;  %v969_v14 = vrot.slane %v5583_v18, 2 }
  0x47   : > { %v536_v3 = vrot.slane %v400_v61, 1  ;;  %v970_v15 = vrot.slane %v5586_v19, 2  ;;  %v949_v24 = vrot.slane %v400_v61, 2 }
  0x48   : > { %v537_v4 = vrot.slane %v401_v62, 1  ;;  %v539_v6 = vrot.slane %v402_v1, 1  ;;  %v950_v25 = vrot.slane %v401_v62, 2  ;;  %v952_v27 = vrot.slane %v402_v1, 2 }
  0x49   : > { %v5867_v31 = vpack.c.bf16 %v401_v62, %v400_v61  ;;  %v971_v36 = vsel %vm908_vm3, %v969_v14, %v970_v15  ;;  %v346_v61 = vld [vmem:[%s5571_s19 + $0xe0] sm:$0xff]  ;;  %v347_v62 = vld [vmem:[%s5571_s19 + $0xe8] sm:$0x3] }
  0x4a   : > { %v538_v29 = vsel %vm495_vm1, %v536_v3, %v537_v4  ;;  %v540_v30 = vsel %vm495_vm1, %v537_v4, %v539_v6  ;;  %v951_v19 = vsel %vm908_vm3, %v949_v24, %v950_v25  ;;  %v953_v40 = vsel %vm908_vm3, %v950_v25, %v952_v27 }
  0x4b   : > { %v5871_v18 = vpack.c.bf16 %v540_v30, %v538_v29  ;;  %v5882_v1 = vpack.c.bf16 %v953_v40, %v951_v19  ;;  %v403_v3 = vmul.f32 %v5566_v8, %v345_v60  ;;  %v404_v4 = vmul.f32 %v5566_v8, %v346_v61 }
  0x4c   : > { %v405_v6 = vmul.f32 %v5566_v8, %v347_v62 }
  0x4d   : > { %v541_v24 = vrot.slane %v403_v3, 1  ;;  %v542_v25 = vrot.slane %v404_v4, 1  ;;  %v954_v40 = vrot.slane %v403_v3, 2 }
  0x4e   : > { %v544_v27 = vrot.slane %v405_v6, 1  ;;  %v957_v60 = vrot.slane %v405_v6, 2 }
  0x4f   : > { %4666 = vmatmul.msk.bf16.gmra.mxu1 %vm626_vm2, %v5716_v9  ;;  %v543_v61 = vsel %vm495_vm1, %v541_v24, %v542_v25 }
  0x50   : > { %v545_v62 = vsel %vm495_vm1, %v542_v25, %v544_v27  ;;  %v348_v27 = vld [vmem:[%s5571_s19 + $0xf0] sm:$0xff] }
  0x52   : > { %4650 = vmatmul.msk.bf16.gmra.mxu0 %vm626_vm2, %v5720_v13 }
  0x53   : > { %4662 = vmatmul.msk.bf16.gmra.mxu3 %vm626_vm2, %v5724_v16  ;;  %v5902_v16 = vpack.c.bf16 %v404_v4, %v403_v3 }
  0x54   : > { %4683 = vmatmul.msk.bf16.gmra.mxu2 %vm626_vm2, %v5731_v26 }
  0x5f   : > { %4667 = vmatmul.msk.bf16.gmra.mxu1 %vm626_vm2, %v5744_v42 }
  0x62   : > { %4651 = vmatmul.msk.bf16.gmra.mxu0 %vm626_vm2, %v5746_v43 }
  0x63   : > { %4675 = vmatmul.msk.bf16.vlgmr.msrb.gmra.mxu3 %vm626_vm2, %v5754_v47 }
  0x64   : > { %4684 = vmatmul.msk.bf16.gmra.mxu2 %vm626_vm2, %v5759_v54  ;;  %1227 = vmatpush.bf16.msrb.mxu3 %v1218_v7  ;;  %v972_v7 = vrot.slane %v5589_v20, 2 }
  0x66   : > { %v973_v20 = vsel %vm908_vm3, %v970_v15, %v972_v7 }
  0x67   : > { %v5877_v46 = vpack.c.bf16 %v973_v20, %v971_v36  ;;  %v975_v36 = vrot.slane %v5619_v50, 2  ;;  %v977_v20 = vrot.slane %v5622_v51, 2 }
  0x69   : > { %7578 = vst [vmem:[#allocation15_spill] sm:$0xff] %v5877_v46  ;;  %v978_v50 = vsel %vm908_vm3, %v975_v36, %v977_v20 }
  0x6f   : > { %4668 = vmatmul.msk.bf16.gmra.mxu1 %vm626_vm2, %v5772_v11 }
  0x72   : > { %4652 = vmatmul.msk.bf16.gmra.mxu0 %vm626_vm2, %v5774_v12 }
  0x73   : > { %4676 = vmatmul.msk.bf16.gmra.mxu3 %vm626_vm2, %v5782_v23 }
  0x74   : > { %4685 = vmatmul.msk.bf16.gmra.mxu2 %vm626_vm2, %v5787_v28 }
  0x7f   : > { %4669 = vmatmul.msk.bf16.gmra.mxu1 %vm626_vm2, %v5800_v48 }
  0x82   : > { %4653 = vmatmul.msk.bf16.gmra.mxu0 %vm626_vm2, %v5802_v52 }
  0x83   : > { %4677 = vmatmul.msk.bf16.gmra.mxu3 %vm626_vm2, %v5810_v59 }
  0x84   : > { %4686 = vmatmul.msk.bf16.gmra.mxu2 %vm626_vm2, %v5815_v0 }
  0x8f   : > { %4670 = vmatmul.msk.bf16.gmra.mxu1 %vm626_vm2, %v5832_v32 }
  0x92   : > { %4654 = vmatmul.msk.bf16.gmra.mxu0 %vm626_vm2, %v5834_v33 }
  0x93   : > { %4678 = vmatmul.msk.bf16.gmra.mxu3 %vm626_vm2, %v5842_v38 }
  0x94   : > { %4687 = vmatmul.msk.bf16.gmra.mxu2 %vm626_vm2, %v5847_v53 }
  0x9c   : > { %v828_v35 = vpop.f32.mrf.mxu1 }
  0x9f   : > { %v688_v44 = vpop.f32.mrf.mxu0  ;;  %4671 = vmatmul.msk.bf16.gmra.mxu1 %vm626_vm2, %v5867_v31 }
  0xa0   : > { %v829_v58 = vadd.f32 %v828_v35, %v688_v44  ;;  %v974_v35 = vrot.slane %v5616_v49, 2  ;;  %v955_v44 = vrot.slane %v404_v4, 2 }
  0xa2   : > { %4655 = vmatmul.msk.bf16.gmra.mxu0 %vm626_vm2, %v5871_v18  ;;  %v976_v49 = vsel %vm908_vm3, %v974_v35, %v975_v36  ;;  %v956_v6 = vsel %vm908_vm3, %v954_v40, %v955_v44  ;;  %v350_v35 = vld [vmem:[%s5571_s19 + $0x100] sm:$0x3]  ;;  %v406_v40 = vmul.f32 %v5566_v8, %v348_v27  ;;  %v982_v27 = vrot.slane %v5664_v22, 2 }
  0xa3   : > { %4692 = vmatmul.msk.bf16.vlgmr.msra.gmra.mxu3 %vm626_vm2, %v5877_v46  ;;  %v5914_v25 = vpack.c.bf16 %v978_v50, %v976_v49 }
  0xa4   : > { %v830_v7 = vpop.f32.mrf.mxu1  ;;  %4688 = vmatmul.msk.bf16.gmra.mxu2 %vm626_vm2, %v5882_v1 }
  0xa5   : > { %7580 = vst [vmem:[#allocation17_spill] sm:$0xff] %v5914_v25 }
  0xa6   : > { %v5893_v14 = vpop.f32.mrf.mxu3 }
  0xa7   : > { %v690_v15 = vpop.f32.mrf.mxu0  ;;  %v1099_v29 = vpop.f32.mrf.mxu2 }
  0xa8   : > { %v831_v30 = vadd.f32 %v830_v7, %v690_v15  ;;  %v5898_v19 = vadd.f32 %v1099_v29, %v829_v58  ;;  %v5908_v58 = vpack.c.bf16 %v545_v62, %v543_v61  ;;  %v958_v15 = vsel %vm908_vm3, %v955_v44, %v957_v60  ;;  %v349_v29 = vld [vmem:[%s5571_s19 + $0xf8] sm:$0xff] }
  0xa9   : > { %v5921_v20 = vpack.c.bf16 %v958_v15, %v956_v6  ;;  %v407_v44 = vmul.f32 %v5566_v8, %v349_v29  ;;  %v408_v60 = vmul.f32 %v5566_v8, %v350_v35  ;;  %v959_v35 = vrot.slane %v406_v40, 2 }
  0xaa   : > { %7579 = vst [vmem:[#allocation16_spill] sm:$0xff] %v5908_v58 }
  0xab   : > { %v547_v49 = vrot.slane %v407_v44, 1  ;;  %v549_v50 = vrot.slane %v408_v60, 1  ;;  %v960_v38 = vrot.slane %v407_v44, 2  ;;  %v962_v41 = vrot.slane %v408_v60, 2 }
  0xac   : > { %v833_v7 = vpop.f32.mrf.mxu1 }
  0xad   : > { %v550_v5 = vsel %vm495_vm1, %v547_v49, %v549_v50  ;;  %v961_v60 = vsel %vm908_vm3, %v959_v35, %v960_v38  ;;  %v351_v50 = vld [vmem:[%s5571_s19 + $0x108] sm:$0xff] }
  0xae   : > { %v5906_v51 = vpop.f32.mrf.mxu3 }
  0xaf   : > { %v693_v24 = vpop.f32.mrf.mxu0  ;;  %4672 = vmatmul.msk.bf16.gmra.mxu1 %vm626_vm2, %v5902_v16  ;;  %v1101_v3 = vpop.f32.mrf.mxu2 }
  0xb0   : > { %v834_v4 = vadd.f32 %v833_v7, %v693_v24  ;;  %v5919_v36 = vadd.f32 %v1101_v3, %v831_v30  ;;  %v546_v7 = vrot.slane %v406_v40, 1  ;;  %v979_v24 = vrot.slane %v5658_v17, 2 }
  0xb1   : > { %v980_v3 = vrot.slane %v5661_v21, 2 }
  0xb2   : > { %4656 = vmatmul.msk.bf16.gmra.mxu0 %vm626_vm2, %v5908_v58  ;;  %v548_v59 = vsel %vm495_vm1, %v546_v7, %v547_v49 }
  0xb3   : > { %4693 = vmatmul.msk.bf16.gmra.mxu3 %vm626_vm2, %v5914_v25  ;;  %v5941_v25 = vpack.c.bf16 %v407_v44, %v406_v40  ;;  %v981_v17 = vsel %vm908_vm3, %v979_v24, %v980_v3  ;;  %v983_v21 = vsel %vm908_vm3, %v980_v3, %v982_v27  ;;  %v353_v24 = vld [vmem:[%s5571_s19 + $0x118] sm:$0x3] }
  0xb4   : > { %v835_v61 = vpop.f32.mrf.mxu1  ;;  %4689 = vmatmul.msk.bf16.gmra.mxu2 %vm626_vm2, %v5921_v20  ;;  %v5953_v49 = vpack.c.bf16 %v983_v21, %v981_v17  ;;  %v4747_v17 = vld [vmem:[%s7536_s2 + $0x18] sm:$0xf] }
  0xb6   : > { %v5932_v30 = vpop.f32.mrf.mxu3  ;;  %7581 = vst [vmem:[#allocation18_spill] sm:$0xff] %v5953_v49 }
  0xb7   : > { %v695_v62 = vpop.f32.mrf.mxu0  ;;  %v1104_v6 = vpop.f32.mrf.mxu2 }
  0xb8   : > { %v836_v15 = vadd.f32 %v835_v61, %v695_v62  ;;  %v5937_v29 = vadd.f32 %v1104_v6, %v834_v4  ;;  %v5947_v4 = vpack.c.bf16 %v550_v5, %v548_v59  ;;  %v963_v62 = vsel %vm908_vm3, %v960_v38, %v962_v41  ;;  %v352_v6 = vld [vmem:[%s5571_s19 + $0x110] sm:$0xff]  ;;  %v4764_v38 = vld [vmem:[%s7536_s2 + $0x1c] sm:$0xf] }
  0xb9   : > { %v5960_v27 = vpack.c.bf16 %v963_v62, %v961_v60  ;;  %v409_v5 = vmul.f32 %v5566_v8, %v351_v50  ;;  %v410_v41 = vmul.f32 %v5566_v8, %v352_v6  ;;  %v411_v59 = vmul.f32 %v5566_v8, %v353_v24 }
  0xba   : > { %v1765_v35 = vsel %vm675_vm0, %v4764_v38, 0  ;;  %v984_v6 = vrot.slane %v5701_v55, 2  ;;  %v985_v24 = vrot.slane %v5704_v56, 2  ;;  %v987_v38 = vrot.slane %v5707_v57, 2 }
  0xbb   : > { %1774 = vmatpush.bf16.msra.mxu3 %v1765_v35  ;;  %v551_v60 = vrot.slane %v409_v5, 1  ;;  %v552_v8 = vrot.slane %v410_v41, 1  ;;  %v554_v62 = vrot.slane %v411_v59, 1  ;;  %v964_v23 = vrot.slane %v409_v5, 2 }
  0xbc   : > { %v838_v61 = vpop.f32.mrf.mxu1  ;;  %v965_v39 = vrot.slane %v410_v41, 2  ;;  %v967_v46 = vrot.slane %v411_v59, 2  ;;  %v986_v57 = vsel %vm908_vm3, %v984_v6, %v985_v24 }
  0xbd   : > { %v555_v55 = vsel %vm495_vm1, %v552_v8, %v554_v62 }
  0xbe   : > { %v5945_v22 = vpop.f32.mrf.mxu3  ;;  %v966_v59 = vsel %vm908_vm3, %v964_v23, %v965_v39 }
  0xbf   : > { %v698_v7 = vpop.f32.mrf.mxu0  ;;  %4673 = vmatmul.msk.bf16.gmra.mxu1 %vm626_vm2, %v5941_v25  ;;  %v1106_v40 = vpop.f32.mrf.mxu2 }
  0xc0   : > { %v839_v44 = vadd.f32 %v838_v61, %v698_v7  ;;  %v5958_v3 = vadd.f32 %v1106_v40, %v836_v15  ;;  %v1625_v7 = vsel %vm675_vm0, %v4747_v17, 0 }
  0xc1   : > { %1634 = vmatpush.bf16.msrb.mxu2 %v1625_v7 }
  0xc2   : > { %4657 = vmatmul.msk.bf16.gmra.mxu0 %vm626_vm2, %v5947_v4 }
  0xc3   : > { %4694 = vmatmul.msk.bf16.gmra.mxu3 %vm626_vm2, %v5953_v49  ;;  %v4781_v49 = vld [vmem:[%s7536_s2 + $0x20] sm:$0xf] }
  0xc4   : > { %v840_v15 = vpop.f32.mrf.mxu1  ;;  %4690 = vmatmul.msk.bf16.gmra.mxu2 %vm626_vm2, %v5960_v27  ;;  %v1902_v17 = vsel %vm675_vm0, %v4781_v49, 0  ;;  %v968_v49 = vsel %vm908_vm3, %v965_v39, %v967_v46 }
  0xc5   : > { %1911 = vmatpush.bf16.msra.mxu0 %v1902_v17  ;;  %v6008_v62 = vpack.c.bf16 %v968_v49, %v966_v59 }
  0xc6   : > { %v5975_v61 = vpop.f32.mrf.mxu3 }
  0xc7   : > { %v700_v21 = vpop.f32.mrf.mxu0  ;;  %v1109_v40 = vpop.f32.mrf.mxu2 }
  0xc8   : > { %v841_v50 = vadd.f32 %v840_v15, %v700_v21  ;;  %v5984_v35 = vadd.f32 %v1109_v40, %v839_v44  ;;  %v553_v15 = vsel %vm495_vm1, %v551_v60, %v552_v8  ;;  %v5992_v21 = vpack.c.bf16 %v410_v41, %v409_v5 }
  0xc9   : > { %v988_v44 = vsel %vm908_vm3, %v985_v24, %v987_v38  ;;  %v5998_v40 = vpack.c.bf16 %v555_v55, %v553_v15 }
  0xca   : > { %7582 = vst [vmem:[#allocation19_spill] sm:$0xff] %v5984_v35  ;;  %v6004_v5 = vpack.c.bf16 %v988_v44, %v986_v57 }
  0xcc   : > { %v843_v56 = vpop.f32.mrf.mxu1  ;;  %7583 = vst [vmem:[#allocation20_spill] sm:$0xff] %v6004_v5 }
  0xce   : > { %v5996_v7 = vpop.f32.mrf.mxu3 }
  0xcf   : > { %v703_v35 = vpop.f32.mrf.mxu0  ;;  %4674 = vmatmul.msk.bf16.gmra.mxu1 %vm626_vm2, %v5992_v21  ;;  %v1111_v41 = vpop.f32.mrf.mxu2 }
  0xd0   : > { %v844_v60 = vadd.f32 %v843_v56, %v703_v35  ;;  %v6006_v8 = vadd.f32 %v1111_v41, %v841_v50 }
  0xd2   : > { %4658 = vmatmul.msk.bf16.gmra.mxu0 %vm626_vm2, %v5998_v40 }
  0xd3   : > { %4695 = vmatmul.msk.bf16.gmra.mxu3 %vm626_vm2, %v6004_v5 }
  0xd4   : > { %v845_v23 = vpop.f32.mrf.mxu1  ;;  %4691 = vmatmul.msk.bf16.gmra.mxu2 %vm626_vm2, %v6008_v62 }
  0xd6   : > { %v6016_v39 = vpop.f32.mrf.mxu3 }
  0xd7   : > { %v705_v46 = vpop.f32.mrf.mxu0  ;;  %v1114_v6 = vpop.f32.mrf.mxu2 }
  0xd8   : > { %v846_v24 = vadd.f32 %v845_v23, %v705_v46  ;;  %v6018_v38 = vadd.f32 %v1114_v6, %v844_v60 }
  0xdc   : > { %v848_v50 = vpop.f32.mrf.mxu1 }
  0xde   : > { %v6020_v35 = vpop.f32.mrf.mxu3 }
  0xdf   : > { %v708_v17 = vpop.f32.mrf.mxu0  ;;  %4731 = vmatmul.msk.bf16.vlgmr.msrb.gmra.mxu1 %vm626_vm2, %v5645_v10  ;;  %v1116_v15 = vpop.f32.mrf.mxu2 }
  0xe0   : > { %v849_v55 = vadd.f32 %v848_v50, %v708_v17  ;;  %v6024_v56 = vadd.f32 %v1116_v15, %v846_v24 }
  0xe2   : > { %4714 = vmatmul.msk.bf16.vlgmr.msrb.gmra.mxu0 %vm626_vm2, %v5634_v2 }
  0xe3   : > { %4697 = vmatmul.msk.bf16.vlgmr.msrb.gmra.mxu3 %vm626_vm2, %v5630_v63 }
  0xe4   : > { %v850_v57 = vpop.f32.mrf.mxu1  ;;  %4748 = vmatmul.msk.bf16.vlgmr.msrb.gmra.mxu2 %vm626_vm2, %v5673_v34 }
  0xe6   : > { %v888_v44 = vpop.f32.mrf.mxu3 }
  0xe7   : > { %v6033_v59 = vadd.f32 %v888_v44, %v5893_v14  ;;  %v710_v49 = vpop.f32.mrf.mxu0  ;;  %v1119_v10 = vpop.f32.mrf.mxu2 }
  0xe8   : > { %v851_v41 = vadd.f32 %v850_v57, %v710_v49  ;;  %v6035_v60 = vadd.f32 %v1119_v10, %v849_v55 }
  0xec   : > { %v853_v23 = vpop.f32.mrf.mxu1 }
  0xee   : > { %v890_v46 = vpop.f32.mrf.mxu3 }
  0xef   : > { %v6038_v2 = vadd.f32 %v890_v46, %v5906_v51  ;;  %v713_v6 = vpop.f32.mrf.mxu0  ;;  %4732 = vmatmul.msk.bf16.gmra.mxu1 %vm626_vm2, %v5688_v45  ;;  %v1121_v63 = vpop.f32.mrf.mxu2 }
  0xf0   : > { %v854_v24 = vadd.f32 %v853_v23, %v713_v6  ;;  %v6042_v50 = vadd.f32 %v1121_v63, %v851_v41 }
  0xf2   : > { %4715 = vmatmul.msk.bf16.gmra.mxu0 %vm626_vm2, %v5677_v37 }
  0xf3   : > { %4698 = vmatmul.msk.bf16.gmra.mxu3 %vm626_vm2, %v5673_v34 }
  0xf4   : > { %v855_v14 = vpop.f32.mrf.mxu1  ;;  %4749 = vmatmul.msk.bf16.gmra.mxu2 %vm626_vm2, %v5716_v9 }
  0xf6   : > { %v893_v51 = vpop.f32.mrf.mxu3 }
  0xf7   : > { %v6051_v17 = vadd.f32 %v893_v51, %v5932_v30  ;;  %v715_v15 = vpop.f32.mrf.mxu0  ;;  %v1124_v55 = vpop.f32.mrf.mxu2 }
  0xf8   : > { %v856_v57 = vadd.f32 %v855_v14, %v715_v15  ;;  %v6053_v44 = vadd.f32 %v1124_v55, %v854_v24 }
  0xfc   : > { %v858_v49 = vpop.f32.mrf.mxu1 }
  0xfe   : > { %v895_v10 = vpop.f32.mrf.mxu3 }
  0xff   : > { %v6056_v41 = vadd.f32 %v895_v10, %v5945_v22  ;;  %v718_v23 = vpop.f32.mrf.mxu0  ;;  %4733 = vmatmul.msk.bf16.gmra.mxu1 %vm626_vm2, %v5731_v26  ;;  %v1126_v34 = vpop.f32.mrf.mxu2 }
 0x100   : > { %v859_v46 = vadd.f32 %v858_v49, %v718_v23  ;;  %v6060_v6 = vadd.f32 %v1126_v34, %v856_v57 }
 0x102   : > { %4716 = vmatmul.msk.bf16.gmra.mxu0 %vm626_vm2, %v5720_v13 }
 0x103   : > { %4699 = vmatmul.msk.bf16.gmra.mxu3 %vm626_vm2, %v5716_v9 }
 0x104   : > { %v860_v30 = vpop.f32.mrf.mxu1  ;;  %4750 = vmatmul.msk.bf16.gmra.mxu2 %vm626_vm2, %v5744_v42 }
 0x106   : > { %v898_v22 = vpop.f32.mrf.mxu3 }
 0x107   : > { %v6069_v63 = vadd.f32 %v898_v22, %v5975_v61  ;;  %v720_v24 = vpop.f32.mrf.mxu0  ;;  %v1129_v14 = vpop.f32.mrf.mxu2 }
 0x108   : > { %v861_v51 = vadd.f32 %v860_v30, %v720_v24  ;;  %v6071_v15 = vadd.f32 %v1129_v14, %v859_v46 }
 0x10c   : > { %v863_v55 = vpop.f32.mrf.mxu1 }
 0x10e   : > { %v900_v57 = vpop.f32.mrf.mxu3 }
 0x10f   : > { %v6074_v49 = vadd.f32 %v900_v57, %v5996_v7  ;;  %v723_v10 = vpop.f32.mrf.mxu0  ;;  %4734 = vmatmul.msk.bf16.gmra.mxu1 %vm626_vm2, %v5759_v54  ;;  %v1131_v9 = vpop.f32.mrf.mxu2 }
 0x110   : > { %v864_v23 = vadd.f32 %v863_v55, %v723_v10  ;;  %v6078_v34 = vadd.f32 %v1131_v9, %v861_v51 }
 0x112   : > { %4717 = vmatmul.msk.bf16.gmra.mxu0 %vm626_vm2, %v5746_v43 }
 0x113   : > { %4700 = vmatmul.msk.bf16.gmra.mxu3 %vm626_vm2, %v5744_v42 }
 0x114   : > { %v865_v61 = vpop.f32.mrf.mxu1  ;;  %4751 = vmatmul.msk.bf16.gmra.mxu2 %vm626_vm2, %v5772_v11 }
 0x116   : > { %v903_v7 = vpop.f32.mrf.mxu3 }
 0x117   : > { %v6087_v46 = vadd.f32 %v903_v7, %v6016_v39  ;;  %v725_v30 = vpop.f32.mrf.mxu0  ;;  %v1134_v22 = vpop.f32.mrf.mxu2 }
 0x118   : > { %v866_v24 = vadd.f32 %v865_v61, %v725_v30  ;;  %v6089_v14 = vadd.f32 %v1134_v22, %v864_v23 }
 0x11c   : > { %v868_v51 = vpop.f32.mrf.mxu1 }
 0x11e   : > { %v905_v55 = vpop.f32.mrf.mxu3 }
 0x11f   : > { %v6092_v57 = vadd.f32 %v905_v55, %v6020_v35  ;;  %v728_v10 = vpop.f32.mrf.mxu0  ;;  %4735 = vmatmul.msk.bf16.gmra.mxu1 %vm626_vm2, %v5787_v28  ;;  %v1136_v42 = vpop.f32.mrf.mxu2 }
 0x120   : > { %v869_v9 = vadd.f32 %v868_v51, %v728_v10  ;;  %v6096_v43 = vadd.f32 %v1136_v42, %v866_v24 }
 0x122   : > { %4718 = vmatmul.msk.bf16.gmra.mxu0 %vm626_vm2, %v5774_v12 }
 0x123   : > { %4701 = vmatmul.msk.bf16.gmra.mxu3 %vm626_vm2, %v5772_v11 }
 0x124   : > { %v870_v39 = vpop.f32.mrf.mxu1  ;;  %4752 = vmatmul.msk.bf16.gmra.mxu2 %vm626_vm2, %v5800_v48 }
 0x126   : > { %v1159_v35 = vpop.f32.mrf.mxu3 }
 0x127   : > { %v6105_v23 = vadd.f32 %v1159_v35, %v6033_v59  ;;  %v730_v61 = vpop.f32.mrf.mxu0  ;;  %v1139_v7 = vpop.f32.mrf.mxu2 }
 0x128   : > { %v871_v30 = vadd.f32 %v870_v39, %v730_v61  ;;  %v6107_v22 = vadd.f32 %v1139_v7, %v869_v9 }
 0x12c   : > { %v873_v24 = vpop.f32.mrf.mxu1 }
 0x12e   : > { %v1161_v51 = vpop.f32.mrf.mxu3 }
 0x12f   : > { %v6110_v55 = vadd.f32 %v1161_v51, %v6038_v2  ;;  %v733_v10 = vpop.f32.mrf.mxu0  ;;  %4736 = vmatmul.msk.bf16.gmra.mxu1 %vm626_vm2, %v5815_v0  ;;  %v1141_v11 = vpop.f32.mrf.mxu2 }
 0x130   : > { %v874_v42 = vadd.f32 %v873_v24, %v733_v10  ;;  %v6114_v12 = vadd.f32 %v1141_v11, %v871_v30 }
 0x131   : > { %7584 = vst [vmem:[#allocation21_spill] sm:$0xff] %v6110_v55 }
 0x132   : > { %4719 = vmatmul.msk.bf16.gmra.mxu0 %vm626_vm2, %v5802_v52 }
 0x133   : > { %4702 = vmatmul.msk.bf16.gmra.mxu3 %vm626_vm2, %v5800_v48 }
 0x134   : > { %v875_v59 = vpop.f32.mrf.mxu1  ;;  %4753 = vmatmul.msk.bf16.gmra.mxu2 %vm626_vm2, %v5832_v32 }
 0x136   : > { %v1164_v2 = vpop.f32.mrf.mxu3 }
 0x137   : > { %v6123_v9 = vadd.f32 %v1164_v2, %v6051_v17  ;;  %v735_v39 = vpop.f32.mrf.mxu0  ;;  %v1144_v35 = vpop.f32.mrf.mxu2 }
 0x138   : > { %v876_v61 = vadd.f32 %v875_v59, %v735_v39  ;;  %v6125_v7 = vadd.f32 %v1144_v35, %v874_v42 }
 0x13c   : > { %v878_v30 = vpop.f32.mrf.mxu1 }
 0x13e   : > { %v1166_v24 = vpop.f32.mrf.mxu3 }
 0x13f   : > { %v6128_v51 = vadd.f32 %v1166_v24, %v6056_v41  ;;  %v738_v10 = vpop.f32.mrf.mxu0  ;;  %4737 = vmatmul.msk.bf16.gmra.mxu1 %vm626_vm2, %v5847_v53  ;;  %v1146_v48 = vpop.f32.mrf.mxu2 }
 0x140   : > { %v879_v11 = vadd.f32 %v878_v30, %v738_v10  ;;  %v6132_v55 = vadd.f32 %v1146_v48, %v876_v61 }
 0x142   : > { %4720 = vmatmul.msk.bf16.gmra.mxu0 %vm626_vm2, %v5834_v33 }
 0x143   : > { %4703 = vmatmul.msk.bf16.gmra.mxu3 %vm626_vm2, %v5832_v32  ;;  %v5263_v32 = vld [vmem:[%s7538_s4 + $0x78] sm:$0xff] }
 0x144   : > { %v880_v17 = vpop.f32.mrf.mxu1  ;;  %4754 = vmatmul.msk.bf16.gmra.mxu2 %vm626_vm2, %v5867_v31  ;;  %2357 = vmatpush.bf16.msra.mxu1 %v5263_v32 }
 0x146   : > { %v1169_v41 = vpop.f32.mrf.mxu3 }
 0x147   : > { %v6141_v42 = vadd.f32 %v1169_v41, %v6069_v63  ;;  %v740_v59 = vpop.f32.mrf.mxu0  ;;  %v1149_v2 = vpop.f32.mrf.mxu2 }
 0x148   : > { %v881_v39 = vadd.f32 %v880_v17, %v740_v59  ;;  %v6143_v35 = vadd.f32 %v1149_v2, %v879_v11 }
 0x14c   : > { %v883_v61 = vpop.f32.mrf.mxu1 }
 0x14e   : > { %v1171_v30 = vpop.f32.mrf.mxu3 }
 0x14f   : > { %v6146_v24 = vadd.f32 %v1171_v30, %v6074_v49  ;;  %v743_v10 = vpop.f32.mrf.mxu0  ;;  %4738 = vmatmul.msk.bf16.gmra.mxu1 %vm626_vm2, %v5882_v1  ;;  %v1151_v63 = vpop.f32.mrf.mxu2 }
 0x150   : > { %v884_v48 = vadd.f32 %v883_v61, %v743_v10  ;;  %v6153_v41 = vadd.f32 %v1151_v63, %v881_v39 }
 0x151   : > { %7585 = vst [vmem:[#allocation22_spill] sm:$0xff] %v6146_v24 }
 0x152   : > { %4721 = vmatmul.msk.bf16.gmra.mxu0 %vm626_vm2, %v5871_v18 }
 0x153   : > { %4704 = vmatmul.msk.bf16.gmra.mxu3 %vm626_vm2, %v5867_v31 }
 0x154   : > { %v885_v49 = vpop.f32.mrf.mxu1  ;;  %4755 = vmatmul.msk.bf16.gmra.mxu2 %vm626_vm2, %v5902_v16 }
 0x156   : > { %v1174_v11 = vpop.f32.mrf.mxu3 }
 0x157   : > { %v6162_v17 = vadd.f32 %v1174_v11, %v6087_v46  ;;  %v745_v59 = vpop.f32.mrf.mxu0  ;;  %v1154_v2 = vpop.f32.mrf.mxu2 }
 0x158   : > { %v886_v61 = vadd.f32 %v885_v49, %v745_v59  ;;  %v6164_v39 = vadd.f32 %v1154_v2, %v884_v48 }
 0x159   : > { %7586 = vst [vmem:[#allocation23_spill] sm:$0xff] %v6162_v17 }
 0x15c   : > { %v1506_v30 = vpop.f32.mrf.mxu1 }
 0x15e   : > { %v1176_v10 = vpop.f32.mrf.mxu3 }
 0x15f   : > { %v6167_v32 = vadd.f32 %v1176_v10, %v6092_v57  ;;  %v1369_v63 = vpop.f32.mrf.mxu0  ;;  %4739 = vmatmul.msk.bf16.gmra.mxu1 %vm626_vm2, %v5921_v20  ;;  %v1156_v31 = vpop.f32.mrf.mxu2 }
 0x160   : > { %v6171_v24 = vadd.f32 %v1156_v31, %v886_v61 }
 0x161   : > { %7587 = vst [vmem:[#allocation24_spill] sm:$0xff] %v6167_v32 }
 0x162   : > { %4722 = vmatmul.msk.bf16.gmra.mxu0 %vm626_vm2, %v5908_v58 }
 0x163   : > { %4705 = vmatmul.msk.bf16.gmra.mxu3 %vm626_vm2, %v5902_v16  ;;  %v5262_v16 = vld [vmem:[%s7538_s4 + $0x70] sm:$0xff] }
 0x164   : > { %v1508_v46 = vpop.f32.mrf.mxu1  ;;  %4756 = vmatmul.msk.bf16.gmra.mxu2 %vm626_vm2, %v5941_v25  ;;  %2358 = vmatpush.bf16.msra.mxu1 %v5262_v16 }
 0x166   : > { %v1229_v48 = vpop.f32.mrf.mxu3 }
 0x167   : > { %v1309_v57 = vadd.f32 %v1229_v48, %v5898_v19  ;;  %v1371_v49 = vpop.f32.mrf.mxu0  ;;  %v1636_v11 = vpop.f32.mrf.mxu2 }
 0x169   : > { %v1449_v59 = vadd.f32 %v1369_v63, %v1309_v57 }
 0x16b   : > { %v1586_v2 = vadd.f32 %v1506_v30, %v1449_v59 }
 0x16c   : > { %v1511_v10 = vpop.f32.mrf.mxu1 }
 0x16d   : > { %v6180_v61 = vadd.f32 %v1636_v11, %v1586_v2 }
 0x16e   : > { %v1231_v31 = vpop.f32.mrf.mxu3 }
 0x16f   : > { %v1310_v32 = vadd.f32 %v1231_v31, %v5919_v36  ;;  %v1374_v17 = vpop.f32.mrf.mxu0  ;;  %4740 = vmatmul.msk.bf16.gmra.mxu1 %vm626_vm2, %v5960_v27  ;;  %v1638_v58 = vpop.f32.mrf.mxu2 }
 0x171   : > { %v1450_v19 = vadd.f32 %v1371_v49, %v1310_v32 }
 0x172   : > { %4723 = vmatmul.msk.bf16.gmra.mxu0 %vm626_vm2, %v5947_v4 }
 0x173   : > { %v1587_v30 = vadd.f32 %v1508_v46, %v1450_v19  ;;  %4706 = vmatmul.msk.bf16.gmra.mxu3 %vm626_vm2, %v5941_v25 }
 0x174   : > { %v1513_v63 = vpop.f32.mrf.mxu1  ;;  %4757 = vmatmul.msk.bf16.gmra.mxu2 %vm626_vm2, %v5992_v21 }
 0x175   : > { %v6192_v36 = vadd.f32 %v1638_v58, %v1587_v30  ;;  %v7588_v30 = vld [vmem:[#allocation19_spill] sm:$0xff] }
 0x176   : > { %v1234_v48 = vpop.f32.mrf.mxu3 }
 0x177   : > { %v1311_v57 = vadd.f32 %v1234_v48, %v5937_v29  ;;  %v1376_v11 = vpop.f32.mrf.mxu0  ;;  %v1641_v59 = vpop.f32.mrf.mxu2 }
 0x179   : > { %v1451_v32 = vadd.f32 %v1374_v17, %v1311_v57 }
 0x17b   : > { %v1588_v49 = vadd.f32 %v1511_v10, %v1451_v32 }
 0x17c   : > { %v1516_v2 = vpop.f32.mrf.mxu1 }
 0x17d   : > { %v6197_v31 = vadd.f32 %v1641_v59, %v1588_v49 }
 0x17e   : > { %v1236_v46 = vpop.f32.mrf.mxu3 }
 0x17f   : > { %v1312_v16 = vadd.f32 %v1236_v46, %v5958_v3  ;;  %v1379_v25 = vpop.f32.mrf.mxu0  ;;  %4741 = vmatmul.msk.bf16.gmra.mxu1 %vm626_vm2, %v6008_v62  ;;  %v1643_v58 = vpop.f32.mrf.mxu2 }
 0x181   : > { %v1452_v19 = vadd.f32 %v1376_v11, %v1312_v16 }
 0x182   : > { %4724 = vmatmul.msk.bf16.gmra.mxu0 %vm626_vm2, %v5998_v40 }
 0x183   : > { %v1589_v29 = vadd.f32 %v1513_v63, %v1452_v19  ;;  %4707 = vmatmul.msk.bf16.gmra.mxu3 %vm626_vm2, %v5992_v21  ;;  %v7590_v19 = vld [vmem:[#allocation15_spill] sm:$0xff] }
 0x184   : > { %v1518_v17 = vpop.f32.mrf.mxu1  ;;  %4758 = vmatmul.msk.bf16.gmra.mxu2 %vm626_vm2, %v5754_v47 }
 0x185   : > { %v6206_v10 = vadd.f32 %v1643_v58, %v1589_v29  ;;  %v5261_v58 = vld [vmem:[%s7538_s4 + $0x68] sm:$0xff] }
 0x186   : > { %v1239_v3 = vpop.f32.mrf.mxu3  ;;  %2359 = vmatpush.bf16.msra.mxu1 %v5261_v58 }
 0x187   : > { %v1313_v48 = vadd.f32 %v1239_v3, %v7588_v30  ;;  %v1381_v57 = vpop.f32.mrf.mxu0  ;;  %v1646_v59 = vpop.f32.mrf.mxu2  ;;  %v7591_v30 = vld [vmem:[#allocation6_spill] sm:$0xff] }
 0x189   : > { %v1453_v32 = vadd.f32 %v1379_v25, %v1313_v48  ;;  %v7593_v48 = vld [vmem:[#allocation12_spill] sm:$0xff] }
 0x18b   : > { %v1590_v11 = vadd.f32 %v1516_v2, %v1453_v32 }
 0x18c   : > { %v1521_v49 = vpop.f32.mrf.mxu1 }
 0x18d   : > { %v6211_v46 = vadd.f32 %v1646_v59, %v1590_v11 }
 0x18e   : > { %v1241_v63 = vpop.f32.mrf.mxu3 }
 0x18f   : > { %7589 = vst [vmem:[#allocation19_spill] sm:$0xff] %v6211_v46  ;;  %v1314_v16 = vadd.f32 %v1241_v63, %v6006_v8  ;;  %v1384_v21 = vpop.f32.mrf.mxu0  ;;  %4742 = vmatmul.msk.bf16.gmra.mxu1 %vm626_vm2, %v7590_v19  ;;  %v1648_v29 = vpop.f32.mrf.mxu2 }
 0x191   : > { %v1454_v3 = vadd.f32 %v1381_v57, %v1314_v16 }
 0x192   : > { %4725 = vmatmul.msk.bf16.gmra.mxu0 %vm626_vm2, %v7591_v30  ;;  %v7595_v30 = vld [vmem:[#allocation17_spill] sm:$0xff] }
 0x193   : > { %v1591_v2 = vadd.f32 %v1518_v17, %v1454_v3  ;;  %4708 = vmatmul.msk.bf16.gmra.mxu3 %vm626_vm2, %v5754_v47 }
 0x194   : > { %v1523_v25 = vpop.f32.mrf.mxu1  ;;  %4759 = vmatmul.msk.bf16.gmra.mxu2 %vm626_vm2, %v7593_v48 }
 0x195   : > { %v6223_v8 = vadd.f32 %v1648_v29, %v1591_v2 }
 0x196   : > { %v1244_v59 = vpop.f32.mrf.mxu3 }
 0x197   : > { %7592 = vst [vmem:[#allocation15_spill] sm:$0xff] %v6223_v8  ;;  %v1315_v32 = vadd.f32 %v1244_v59, %v6018_v38  ;;  %v1386_v11 = vpop.f32.mrf.mxu0  ;;  %v1651_v63 = vpop.f32.mrf.mxu2  ;;  %v7596_v8 = vld [vmem:[#allocation7_spill] sm:$0xff]  ;;  %v7599_v59 = vld [vmem:[#allocation13_spill] sm:$0xff] }
 0x199   : > { %v1455_v57 = vadd.f32 %v1384_v21, %v1315_v32 }
 0x19b   : > { %v1592_v16 = vadd.f32 %v1521_v49, %v1455_v57 }
 0x19c   : > { %v1526_v58 = vpop.f32.mrf.mxu1 }
 0x19d   : > { %v6228_v46 = vadd.f32 %v1651_v63, %v1592_v16 }
 0x19e   : > { %v1246_v17 = vpop.f32.mrf.mxu3 }
 0x19f   : > { %7594 = vst [vmem:[#allocation12_spill] sm:$0xff] %v6228_v46  ;;  %v1316_v3 = vadd.f32 %v1246_v17, %v6024_v56  ;;  %v1389_v47 = vpop.f32.mrf.mxu0  ;;  %4743 = vmatmul.msk.bf16.gmra.mxu1 %vm626_vm2, %v7595_v30  ;;  %v1653_v29 = vpop.f32.mrf.mxu2 }
 0x1a1   : > { %v1456_v2 = vadd.f32 %v1386_v11, %v1316_v3 }
 0x1a2   : > { %4726 = vmatmul.msk.bf16.gmra.mxu0 %vm626_vm2, %v7596_v8 }
 0x1a3   : > { %v1593_v38 = vadd.f32 %v1523_v25, %v1456_v2  ;;  %4709 = vmatmul.msk.bf16.gmra.mxu3 %vm626_vm2, %v7593_v48  ;;  %v7601_v2 = vld [vmem:[#allocation18_spill] sm:$0xff] }
 0x1a4   : > { %v6237_v49 = vpop.f32.mrf.mxu1  ;;  %4760 = vmatmul.msk.bf16.gmra.mxu2 %vm626_vm2, %v7599_v59 }
 0x1a5   : > { %7597 = vst [vmem:[#allocation17_spill] sm:$0xff] %v6237_v49  ;;  %v6239_v21 = vadd.f32 %v1653_v29, %v1593_v38 }
 0x1a6   : > { %v1249_v56 = vpop.f32.mrf.mxu3 }
 0x1a7   : > { %7598 = vst [vmem:[#allocation25_spill] sm:$0xff] %v6239_v21  ;;  %v1317_v32 = vadd.f32 %v1249_v56, %v6035_v60  ;;  %v1391_v63 = vpop.f32.mrf.mxu0  ;;  %v1656_v11 = vpop.f32.mrf.mxu2  ;;  %v5260_v60 = vld [vmem:[%s7538_s4 + $0x60] sm:$0xff] }
 0x1a8   : > { %2360 = vmatpush.bf16.msra.mxu1 %v5260_v60  ;;  %v6268_v60 = vld [vmem:[%s5563_s13] ss:$0 sm:$0xff]  ;;  %s308_s13 = scalar_lea.vmem [#allocation3], %s307_s23 }
 0x1a9   : > { %v1457_v57 = vadd.f32 %v1389_v47, %v1317_v32  ;;  %s4575_s10 = sshll.u32 %s308_s13, 4  ;;  %s4576_s10 = int_to_ptr.vmem [resolvable:$true] %s4575_s10 }
 0x1ab   : > { %v1594_v16 = vadd.f32 %v1526_v58, %v1457_v57  ;;  %v7603_v58 = vld [vmem:[#allocation8_spill] sm:$0xff] }
 0x1ac   : > { %v1531_v17 = vpop.f32.mrf.mxu1 }
 0x1ad   : > { %v6244_v3 = vadd.f32 %v1656_v11, %v1594_v16  ;;  %v367_v16 = vld [vmem:[%s5571_s19 + $0x188] sm:$0xff] }
 0x1ae   : > { %v1251_v25 = vpop.f32.mrf.mxu3 }
 0x1af   : > { %7600 = vst [vmem:[#allocation13_spill] sm:$0xff] %v6244_v3  ;;  %v1318_v48 = vadd.f32 %v1251_v25, %v6042_v50  ;;  %v1394_v29 = vpop.f32.mrf.mxu0  ;;  %4744 = vmatmul.msk.bf16.gmra.mxu1 %vm626_vm2, %v7601_v2  ;;  %v7605_v50 = vld [vmem:[#allocation14_spill] sm:$0xff]  ;;  %v370_v2 = vld [vmem:[%s5571_s19 + $0x1a0] sm:$0xff] }
 0x1b1   : > { %v6252_v47 = vadd.f32 %v1391_v63, %v1318_v48  ;;  %v366_v63 = vld [vmem:[%s5571_s19 + $0x180] sm:$0xff] }
 0x1b2   : > { %4727 = vmatmul.msk.bf16.gmra.mxu0 %vm626_vm2, %v7603_v58  ;;  %v369_v58 = vld [vmem:[%s5571_s19 + $0x198] sm:$0xff] }
 0x1b3   : > { %7602 = vst [vmem:[#allocation26_spill] sm:$0xff] %v6252_v47  ;;  %4710 = vmatmul.msk.bf16.gmra.mxu3 %vm626_vm2, %v7599_v59  ;;  %v424_v59 = vmul.f32 %v6268_v60, %v366_v63 }
 0x1b4   : > { %v6258_v38 = vpop.f32.mrf.mxu1  ;;  %4761 = vmatmul.msk.bf16.gmra.mxu2 %vm626_vm2, %v7605_v50 }
 0x1b5   : > { %7604 = vst [vmem:[#allocation27_spill] sm:$0xff] %v6258_v38  ;;  %v425_v38 = vmul.f32 %v6268_v60, %v367_v16 }
 0x1b6   : > { %v1254_v56 = vpop.f32.mrf.mxu3 }
 0x1b7   : > { %v1319_v32 = vadd.f32 %v1254_v56, %v6053_v44  ;;  %v1396_v57 = vpop.f32.mrf.mxu0  ;;  %v368_v44 = vld [vmem:[%s5571_s19 + $0x190] sm:$0x3]  ;;  %v1211_v56 = vpack.c.bf16 %v425_v38, %v424_v59 }
 0x1b9   : > { %v1459_v11 = vadd.f32 %v1394_v29, %v1319_v32  ;;  %v426_v32 = vmul.f32 %v6268_v60, %v368_v44 }
 0x1bb   : > { %v6265_v25 = vadd.f32 %v1531_v17, %v1459_v11  ;;  %v7608_v17 = vld [vmem:[#allocation9_spill] sm:$0xff]  ;;  %v1484_v63 = vrot.slane %v426_v32, 2 }
 0x1bc   : > { %v1536_v48 = vpop.f32.mrf.mxu1 }
 0x1bd   : > { %7606 = vst [vmem:[#allocation14_spill] sm:$0xff] %v6265_v25  ;;  %v1345_v25 = vrot.slane %v425_v38, 1 }
 0x1be   : > { %v1256_v49 = vpop.f32.mrf.mxu3 }
 0x1bf   : > { %v1320_v47 = vadd.f32 %v1256_v49, %v6060_v6  ;;  %v1399_v3 = vpop.f32.mrf.mxu0  ;;  %4745 = vmatmul.msk.bf16.gmra.mxu1 %vm626_vm2, %v6004_v5  ;;  %v1481_v6 = vrot.slane %v424_v59, 2  ;;  %v1482_v49 = vrot.slane %v425_v38, 2  ;;  %v6301_v38 = vmul.f32 %v6268_v60, %v370_v2 }
 0x1c1   : > { %v6276_v29 = vadd.f32 %v1396_v57, %v1320_v47  ;;  %v1483_v44 = vsel %vm908_vm3, %v1481_v6, %v1482_v49  ;;  %v1485_v5 = vsel %vm908_vm3, %v1482_v49, %v1484_v63 }
 0x1c2   : > { %4728 = vmatmul.msk.bf16.gmra.mxu0 %vm626_vm2, %v7608_v17  ;;  %v1347_v17 = vrot.slane %v426_v32, 1  ;;  %v6295_v8 = vpack.c.bf16 %v1485_v5, %v1483_v44  ;;  %v5259_v5 = vld [vmem:[%s7538_s4 + $0x58] sm:$0xff] }
 0x1c3   : > { %7607 = vst [vmem:[#allocation28_spill] sm:$0xff] %v6276_v29  ;;  %4711 = vmatmul.msk.bf16.gmra.mxu3 %vm626_vm2, %v7605_v50  ;;  %v1344_v29 = vrot.slane %v424_v59, 1  ;;  %v6298_v59 = vmul.f32 %v6268_v60, %v369_v58  ;;  %2361 = vmatpush.bf16.msra.mxu1 %v5259_v5 }
 0x1c4   : > { %v6283_v11 = vpop.f32.mrf.mxu1  ;;  %4762 = vmatmul.msk.bf16.gmra.mxu2 %vm626_vm2, %v1211_v56  ;;  %v1348_v46 = vsel %vm495_vm1, %v1345_v25, %v1347_v17 }
 0x1c5   : > { %7609 = vst [vmem:[#allocation29_spill] sm:$0xff] %v6283_v11  ;;  %v1346_v21 = vsel %vm495_vm1, %v1344_v29, %v1345_v25  ;;  %v1618_v58 = vpack.c.bf16 %v6301_v38, %v6298_v59 }
 0x1c6   : > { %v1259_v47 = vpop.f32.mrf.mxu3  ;;  %v6303_v6 = vpack.c.bf16 %v1348_v46, %v1346_v21 }
 0x1c7   : > { %v1321_v57 = vadd.f32 %v1259_v47, %v6071_v15  ;;  %v1401_v16 = vpop.f32.mrf.mxu0 }
 0x1c9   : > { %v1461_v50 = vadd.f32 %v1399_v3, %v1321_v57 }
 0x1cb   : > { %v6291_v11 = vadd.f32 %v1536_v48, %v1461_v50 }
 0x1cc   : > { %v1541_v15 = vpop.f32.mrf.mxu1 }
 0x1ce   : > { %v1261_v32 = vpop.f32.mrf.mxu3 }
 0x1cf   : > { %v1322_v3 = vadd.f32 %v1261_v32, %v6078_v34  ;;  %v1404_v48 = vpop.f32.mrf.mxu0  ;;  %4746 = vmatmul.msk.bf16.gmra.mxu1 %vm626_vm2, %v6295_v8 }
 0x1d1   : > { %v6311_v25 = vadd.f32 %v1401_v16, %v1322_v3 }
 0x1d2   : > { %4729 = vmatmul.msk.bf16.gmra.mxu0 %vm626_vm2, %v6303_v6 }
 0x1d3   : > { %4712 = vmatmul.msk.bf16.gmra.mxu3 %vm626_vm2, %v1211_v56  ;;  %v5255_v56 = vld [vmem:[%s7538_s4 + $0x38] sm:$0xff] }
 0x1d4   : > { %v6318_v34 = vpop.f32.mrf.mxu1  ;;  %4763 = vmatmul.msk.bf16.gmra.mxu2 %vm626_vm2, %v1618_v58 }
 0x1d5   : > { %2494 = vmatpush.bf16.msra.mxu2 %v5255_v56 }
 0x1d6   : > { %v1264_v46 = vpop.f32.mrf.mxu3 }
 0x1d7   : > { %v1323_v21 = vadd.f32 %v1264_v46, %v6089_v14  ;;  %v1406_v2 = vpop.f32.mrf.mxu0  ;;  %v6334_v14 = vpop.f32.mrf.mxu2 }
 0x1d9   : > { %v1463_v29 = vadd.f32 %v1404_v48, %v1323_v21 }
 0x1db   : > { %v6322_v17 = vadd.f32 %v1541_v15, %v1463_v29 }
 0x1dc   : > { %v1546_v49 = vpop.f32.mrf.mxu1 }
 0x1de   : > { %v1266_v63 = vpop.f32.mrf.mxu3 }
 0x1df   : > { %v1324_v47 = vadd.f32 %v1266_v63, %v6096_v43  ;;  %v1409_v57 = vpop.f32.mrf.mxu0  ;;  %v6341_v5 = vpop.f32.mrf.mxu2 }
 0x1e1   : > { %v6328_v16 = vadd.f32 %v1406_v2, %v1324_v47 }
 0x1e2   : > { %4782 = vmatmul.msk.bf16.vlgmr.msra.gmra.mxu0 %vm626_vm2, %v5688_v45 }
 0x1e3   : > { %4765 = vmatmul.msk.bf16.vlgmr.msra.gmra.mxu3 %vm626_vm2, %v5677_v37  ;;  %v5258_v37 = vld [vmem:[%s7538_s4 + $0x50] sm:$0xff] }
 0x1e4   : > { %v6336_v44 = vpop.f32.mrf.mxu1  ;;  %2362 = vmatpush.bf16.msra.mxu1 %v5258_v37 }
 0x1e6   : > { %v1269_v50 = vpop.f32.mrf.mxu3 }
 0x1e7   : > { %v1325_v43 = vadd.f32 %v1269_v50, %v6107_v22  ;;  %v1411_v15 = vpop.f32.mrf.mxu0 }
 0x1e9   : > { %v1465_v32 = vadd.f32 %v1409_v57, %v1325_v43 }
 0x1eb   : > { %v6339_v3 = vadd.f32 %v1546_v49, %v1465_v32  ;;  %v6356_v49 = vpop.f32.mrf.mxu2 }
 0x1ec   : > { %v1551_v48 = vpop.f32.mrf.mxu1 }
 0x1ee   : > { %v1271_v58 = vpop.f32.mrf.mxu3 }
 0x1ef   : > { %v1326_v45 = vadd.f32 %v1271_v58, %v6114_v12  ;;  %v1414_v46 = vpop.f32.mrf.mxu0 }
 0x1f1   : > { %v6347_v21 = vadd.f32 %v1411_v15, %v1326_v45 }
 0x1f2   : > { %4783 = vmatmul.msk.bf16.gmra.mxu0 %vm626_vm2, %v5731_v26 }
 0x1f3   : > { %4766 = vmatmul.msk.bf16.gmra.mxu3 %vm626_vm2, %v5720_v13  ;;  %v5254_v13 = vld [vmem:[%s7538_s4 + $0x30] sm:$0xff]  ;;  %v6366_v15 = vpop.f32.mrf.mxu2 }
 0x1f4   : > { %v6353_v22 = vpop.f32.mrf.mxu1  ;;  %2495 = vmatpush.bf16.msra.mxu2 %v5254_v13 }
 0x1f6   : > { %v1274_v2 = vpop.f32.mrf.mxu3 }
 0x1f7   : > { %v1327_v29 = vadd.f32 %v1274_v2, %v6125_v7  ;;  %v1416_v12 = vpop.f32.mrf.mxu0  ;;  %v7610_v7 = vld [vmem:[#allocation10_spill] sm:$0xff] }
 0x1f9   : > { %v1467_v63 = vadd.f32 %v1414_v46, %v1327_v29 }
 0x1fb   : > { %v6358_v47 = vadd.f32 %v1551_v48, %v1467_v63  ;;  %v6377_v37 = vpop.f32.mrf.mxu2 }
 0x1fc   : > { %v1556_v57 = vpop.f32.mrf.mxu1 }
 0x1fe   : > { %v1276_v56 = vpop.f32.mrf.mxu3 }
 0x1ff   : > { %v1328_v50 = vadd.f32 %v1276_v56, %v6132_v55  ;;  %v1419_v43 = vpop.f32.mrf.mxu0 }
 0x201   : > { %v6364_v26 = vadd.f32 %v1416_v12, %v1328_v50 }
 0x202   : > { %4784 = vmatmul.msk.bf16.gmra.mxu0 %vm626_vm2, %v5759_v54  ;;  %v5257_v54 = vld [vmem:[%s7538_s4 + $0x48] sm:$0xff] }
 0x203   : > { %4767 = vmatmul.msk.bf16.gmra.mxu3 %vm626_vm2, %v7610_v7  ;;  %2363 = vmatpush.bf16.msra.mxu1 %v5257_v54  ;;  %v6391_v50 = vpop.f32.mrf.mxu2 }
 0x204   : > { %v6372_v32 = vpop.f32.mrf.mxu1 }
 0x206   : > { %v1279_v48 = vpop.f32.mrf.mxu3 }
 0x207   : > { %v1329_v55 = vadd.f32 %v1279_v48, %v6143_v35  ;;  %v1421_v58 = vpop.f32.mrf.mxu0  ;;  %v7611_v35 = vld [vmem:[#allocation11_spill] sm:$0xff] }
 0x209   : > { %v1469_v45 = vadd.f32 %v1419_v43, %v1329_v55 }
 0x20b   : > { %v6375_v46 = vadd.f32 %v1556_v57, %v1469_v45 }
 0x20c   : > { %v1561_v2 = vpop.f32.mrf.mxu1 }
 0x20e   : > { %v1281_v29 = vpop.f32.mrf.mxu3 }
 0x20f   : > { %v1330_v12 = vadd.f32 %v1281_v29, %v6153_v41  ;;  %v1424_v63 = vpop.f32.mrf.mxu0 }
 0x211   : > { %v6383_v56 = vadd.f32 %v1421_v58, %v1330_v12  ;;  %v6400_v12 = vpop.f32.mrf.mxu2 }
 0x212   : > { %4785 = vmatmul.msk.bf16.gmra.mxu0 %vm626_vm2, %v5787_v28  ;;  %v5253_v28 = vld [vmem:[%s7538_s4 + $0x28] sm:$0xff] }
 0x213   : > { %4768 = vmatmul.msk.bf16.gmra.mxu3 %vm626_vm2, %v7611_v35  ;;  %2496 = vmatpush.bf16.msra.mxu2 %v5253_v28  ;;  %v5252_v35 = vld [vmem:[%s7538_s4 + $0x20] sm:$0xff] }
 0x214   : > { %v6389_v57 = vpop.f32.mrf.mxu1 }
 0x216   : > { %v1284_v43 = vpop.f32.mrf.mxu3 }
 0x217   : > { %v1331_v41 = vadd.f32 %v1284_v43, %v6164_v39  ;;  %v1426_v13 = vpop.f32.mrf.mxu0  ;;  %2497 = vmatpush.bf16.msra.mxu2 %v5252_v35 }
 0x219   : > { %v1471_v7 = vadd.f32 %v1424_v63, %v1331_v41  ;;  %v6414_v41 = vpop.f32.mrf.mxu2 }
 0x21b   : > { %v6394_v48 = vadd.f32 %v1561_v2, %v1471_v7  ;;  %v7613_v7 = vld [vmem:[#allocation21_spill] sm:$0xff] }
 0x21c   : > { %v1566_v55 = vpop.f32.mrf.mxu1 }
 0x21e   : > { %v1286_v58 = vpop.f32.mrf.mxu3 }
 0x21f   : > { %v1332_v45 = vadd.f32 %v1286_v58, %v6171_v24  ;;  %v1429_v29 = vpop.f32.mrf.mxu0 }
 0x221   : > { %v6402_v54 = vadd.f32 %v1426_v13, %v1332_v45  ;;  %v5256_v45 = vld [vmem:[%s7538_s4 + $0x40] sm:$0xff] }
 0x222   : > { %4786 = vmatmul.msk.bf16.gmra.mxu0 %vm626_vm2, %v5815_v0  ;;  %2364 = vmatpush.bf16.msra.mxu1 %v5256_v45 }
 0x223   : > { %4769 = vmatmul.msk.bf16.gmra.mxu3 %vm626_vm2, %v5802_v52  ;;  %v5251_v52 = vld [vmem:[%s7538_s4 + $0x18] sm:$0xff] }
 0x224   : > { %v6408_v2 = vpop.f32.mrf.mxu1  ;;  %2498 = vmatpush.bf16.msra.mxu2 %v5251_v52  ;;  %v5248_v52 = vld [vmem:[%s7538_s4] sm:$0xff] }
 0x225   : > { %7612 = vst [vmem:[#allocation10_spill] sm:$0xff] %v6408_v2 }
 0x226   : > { %v1289_v39 = vpop.f32.mrf.mxu3 }
 0x227   : > { %v1333_v24 = vadd.f32 %v1289_v39, %v6105_v23  ;;  %v1431_v63 = vpop.f32.mrf.mxu0  ;;  %v6434_v39 = vpop.f32.mrf.mxu2 }
 0x229   : > { %v1473_v43 = vadd.f32 %v1429_v29, %v1333_v24  ;;  %v5250_v29 = vld [vmem:[%s7538_s4 + $0x10] sm:$0xff]  ;;  %v5249_v24 = vld [vmem:[%s7538_s4 + $0x8] sm:$0xff] }
 0x22a   : > { %2499 = vmatpush.bf16.msra.mxu2 %v5250_v29 }
 0x22b   : > { %v6416_v13 = vadd.f32 %v1566_v55, %v1473_v43 }
 0x22c   : > { %v1571_v28 = vpop.f32.mrf.mxu1 }
 0x22e   : > { %v1291_v0 = vpop.f32.mrf.mxu3  ;;  %2500 = vmatpush.bf16.msra.mxu2 %v5249_v24 }
 0x22f   : > { %v1334_v58 = vadd.f32 %v1291_v0, %v7613_v7  ;;  %v1434_v23 = vpop.f32.mrf.mxu0  ;;  %v5447_v0 = vmov 0.0  }
 0x230   : > { %2093 = vst [vmem:[#allocation2] sm:$0xff] %v5447_v0 }
 0x231   : > { %v6428_v55 = vadd.f32 %v1431_v63, %v1334_v58  ;;  %2094 = vst [vmem:[#allocation2 + $0x8] sm:$0xff] %v5447_v0  ;;  %v6452_v58 = vpop.f32.mrf.mxu2 }
 0x232   : > { %4787 = vmatmul.msk.bf16.gmra.mxu0 %vm626_vm2, %v5847_v53  ;;  %2501 = vmatpush.bf16.msra.mxu2 %v5248_v52  ;;  %2095 = vst [vmem:[#allocation2 + $0x10] sm:$0x3] %v5447_v0 }
 0x233   : > { %4770 = vmatmul.msk.bf16.gmra.mxu3 %vm626_vm2, %v5834_v33  ;;  %2096 = vst [vmem:[#allocation2 + $0x18] sm:$0xff] %v5447_v0 }
 0x234   : > { %v6444_v33 = vpop.f32.mrf.mxu1  ;;  %2097 = vst [vmem:[#allocation2 + $0x20] sm:$0xff] %v5447_v0 }
 0x235   : > { %7614 = vst [vmem:[#allocation11_spill] sm:$0xff] %v6444_v33 }
 0x236   : > { %v1294_v35 = vpop.f32.mrf.mxu3  ;;  %2098 = vst [vmem:[#allocation2 + $0x28] sm:$0x3] %v5447_v0 }
 0x237   : > { %v1335_v43 = vadd.f32 %v1294_v35, %v6123_v9  ;;  %v1436_v63 = vpop.f32.mrf.mxu0  ;;  %v5448_v9 = vmov 0.0|0.0   ;;  %2099 = vst [vmem:[#allocation2 + $0x30] sm:$0xff] %v5447_v0 }
 0x238   : > { %2502 = vmatmul.bf16.vlgmr.msra.gmra.mxu2 %v5448_v9  ;;  %2100 = vst [vmem:[#allocation2 + $0x38] sm:$0xff] %v5447_v0  ;;  %v2244_v24 = vld [vmem:[#allocation2 + $0x1] sm:$0xff] }
 0x239   : > { %v1475_v53 = vadd.f32 %v1434_v23, %v1335_v43  ;;  %2101 = vst [vmem:[#allocation2 + $0x40] sm:$0x3] %v5447_v0  ;;  %v2245_v35 = vld [vmem:[#allocation2 + $0x9] sm:$0xff] }
 0x23a   : > { %2102 = vst [vmem:[#allocation2 + $0x48] sm:$0xff] %v5447_v0 }
 0x23b   : > { %v6447_v7 = vadd.f32 %v1571_v28, %v1475_v53  ;;  %2103 = vst [vmem:[#allocation2 + $0x50] sm:$0xff] %v5447_v0  ;;  %v6472_v53 = vpop.f32.mrf.mxu2 }
 0x23c   : > { %v1576_v43 = vpop.f32.mrf.mxu1  ;;  %2104 = vst [vmem:[#allocation2 + $0x58] sm:$0x3] %v5447_v0 }
 0x23d   : > { %7615 = vst [vmem:[#allocation21_spill] sm:$0xff] %v6447_v7 }
 0x23e   : > { %v1296_v23 = vpop.f32.mrf.mxu3  ;;  %2105 = vst [vmem:[#allocation2 + $0x60] sm:$0xff] %v5447_v0 }
 0x23f   : > { %v1336_v45 = vadd.f32 %v1296_v23, %v6128_v51  ;;  %v1439_v29 = vpop.f32.mrf.mxu0  ;;  %v2276_v51 = vpack.c.bf16 %v2245_v35, %v2244_v24  ;;  %2106 = vst [vmem:[#allocation2 + $0x68] sm:$0xff] %v5447_v0  ;;  %v5271_v35 = vld [vmem:[%s7538_s4 + $0xb8] sm:$0xff] }
 0x240   : > { %2107 = vst [vmem:[#allocation2 + $0x70] sm:$0x3] %v5447_v0  ;;  %2696 = vmatpush.bf16.msrb.mxu3 %v5271_v35 }
 0x241   : > { %v6458_v28 = vadd.f32 %v1436_v63, %v1336_v45  ;;  %2365 = vmatmul.bf16.vlgmr.msra.gmra.mxu1 %v2276_v51  ;;  %2108 = vst [vmem:[#allocation2 + $0x78] sm:$0xff] %v5447_v0  ;;  %v7619_v45 = vld [vmem:[#allocation22_spill] sm:$0xff] }
 0x242   : > { %4788 = vmatmul.msk.bf16.gmra.mxu0 %vm626_vm2, %v5882_v1  ;;  %2109 = vst [vmem:[#allocation2 + $0x80] sm:$0xff] %v5447_v0 }
 0x243   : > { %7616 = vst [vmem:[#allocation30_spill] sm:$0xff] %v6458_v28  ;;  %4771 = vmatmul.msk.bf16.gmra.mxu3 %vm626_vm2, %v5871_v18 }
 0x244   : > { %2110 = vst [vmem:[#allocation2 + $0x88] sm:$0x3] %v5447_v0  ;;  %v6482_v23 = vpop.f32.mrf.mxu1 }
 0x245   : > { %2111 = vst [vmem:[#allocation2 + $0x90] sm:$0xff] %v5447_v0 }
 0x246   : > { %v1299_v63 = vpop.f32.mrf.mxu3  ;;  %2112 = vst [vmem:[#allocation2 + $0x98] sm:$0xff] %v5447_v0 }
 0x247   : > { %v1337_v1 = vadd.f32 %v1299_v63, %v6141_v42  ;;  %v1441_v52 = vpop.f32.mrf.mxu0  ;;  %2113 = vst [vmem:[#allocation2 + $0xa0] sm:$0x3] %v5447_v0  ;;  %v7621_v63 = vld [vmem:[#allocation16_spill] sm:$0xff] }
 0x248   : > { %7618 = vst [vmem:[#allocation32_spill] sm:$0xff] %v6482_v23 }
 0x249   : > { %v1477_v18 = vadd.f32 %v1439_v29, %v1337_v1  ;;  %2114 = vst [vmem:[#allocation2 + $0xa8] sm:$0xff] %v5447_v0 }
 0x24a   : > { %2115 = vst [vmem:[#allocation2 + $0xb0] sm:$0xff] %v5447_v0 }
 0x24b   : > { %v6477_v9 = vadd.f32 %v1576_v43, %v1477_v18  ;;  %2116 = vst [vmem:[#allocation2 + $0xb8] sm:$0x3] %v5447_v0  ;;  %v6494_v43 = vpop.f32.mrf.mxu2 }
 0x24c   : > { %2117 = vst [vmem:[#allocation2 + $0xc0] sm:$0xff] %v5447_v0 }
 0x24d   : > { %7617 = vst [vmem:[#allocation31_spill] sm:$0xff] %v6477_v9 }
 0x24e   : > { %v1301_v42 = vpop.f32.mrf.mxu3  ;;  %2118 = vst [vmem:[#allocation2 + $0xc8] sm:$0xff] %v5447_v0 }
 0x24f   : > { %v1338_v24 = vadd.f32 %v1301_v42, %v7619_v45  ;;  %v1444_v29 = vpop.f32.mrf.mxu0  ;;  %2119 = vst [vmem:[#allocation2 + $0xd0] sm:$0x3] %v5447_v0  ;;  %v5287_v45 = vld [vmem:[%s7538_s4 + $0x138] sm:$0xff] }
 0x250   : > { %2120 = vst [vmem:[#allocation2 + $0xd8] sm:$0xff] %v5447_v0  ;;  %3164 = vmatpush.bf16.msrb.mxu1 %v5287_v45 }
 0x251   : > { %v6491_v51 = vadd.f32 %v1441_v52, %v1338_v24  ;;  %2121 = vst [vmem:[#allocation2 + $0xe0] sm:$0xff] %v5447_v0  ;;  %v7622_v52 = vld [vmem:[#allocation23_spill] sm:$0xff]  ;;  %v1581_v24 = vpop.f32.mrf.mxu1 }
 0x252   : > { %4789 = vmatmul.msk.bf16.gmra.mxu0 %vm626_vm2, %v5921_v20  ;;  %2122 = vst [vmem:[#allocation2 + $0xe8] sm:$0x3] %v5447_v0  ;;  %v5279_v20 = vld [vmem:[%s7538_s4 + $0xf8] sm:$0xff] }
 0x253   : > { %7620 = vst [vmem:[#allocation22_spill] sm:$0xff] %v6491_v51  ;;  %4772 = vmatmul.msk.bf16.gmra.mxu3 %vm626_vm2, %v7621_v63  ;;  %2930 = vmatpush.bf16.msrb.mxu0 %v5279_v20 }
 0x254   : > { %2123 = vst [vmem:[#allocation2 + $0xf0] sm:$0xff] %v5447_v0 }
 0x255   : > { %2124 = vst [vmem:[#allocation2 + $0xf8] sm:$0xff] %v5447_v0 }
 0x256   : > { %v1304_v1 = vpop.f32.mrf.mxu3  ;;  %2125 = vst [vmem:[#allocation2 + $0x100] sm:$0x3] %v5447_v0 }
 0x257   : > { %v1339_v18 = vadd.f32 %v1304_v1, %v7622_v52  ;;  %v1446_v42 = vpop.f32.mrf.mxu0  ;;  %2126 = vst [vmem:[#allocation2 + $0x108] sm:$0xff] %v5447_v0  ;;  %v6519_v1 = vpop.f32.mrf.mxu2 }
 0x258   : > { %2127 = vst [vmem:[#allocation2 + $0x110] sm:$0xff] %v5447_v0 }
 0x259   : > { %v1479_v35 = vadd.f32 %v1444_v29, %v1339_v18  ;;  %2128 = vst [vmem:[#allocation2 + $0x118] sm:$0x3] %v5447_v0  ;;  %v7624_v29 = vld [vmem:[#allocation24_spill] sm:$0xff] }
 0x25a   : > { %2129 = vst [vmem:[#allocation2 + $0x120] sm:$0xff] %v5447_v0 }
 0x25b   : > { %v6516_v63 = vadd.f32 %v1581_v24, %v1479_v35  ;;  %2130 = vst [vmem:[#allocation2 + $0x128] sm:$0xff] %v5447_v0  ;;  %v6546_v24 = vld [vmem:[%s7537_s3] ss:$0 sm:$0xff] }
 0x25c   : > { %2131 = vst [vmem:[#allocation2 + $0x130] sm:$0x3] %v5447_v0 }
 0x25d   : > { %7623 = vst [vmem:[#allocation16_spill] sm:$0xff] %v6516_v63 }
 0x25e   : > { %v1306_v52 = vpop.f32.mrf.mxu3  ;;  %2132 = vst [vmem:[#allocation2 + $0x138] sm:$0xff] %v5447_v0 }
 0x25f   : > { %v1340_v18 = vadd.f32 %v1306_v52, %v7624_v29  ;;  %v1913_v23 = vpop.f32.mrf.mxu0  ;;  %2133 = vst [vmem:[#allocation2 + $0x140] sm:$0xff] %v5447_v0  ;;  %v6538_v45 = vpop.f32.mrf.mxu2 }
 0x260   : > { %2134 = vst [vmem:[#allocation2 + $0x148] sm:$0x3] %v5447_v0 }
 0x261   : > { %v6527_v20 = vadd.f32 %v1446_v42, %v1340_v18  ;;  %2135 = vst [vmem:[#allocation2 + $0x150] sm:$0xff] %v5447_v0 }
 0x262   : > { %4790 = vmatmul.msk.bf16.gmra.mxu0 %vm626_vm2, %v5960_v27  ;;  %2136 = vst [vmem:[#allocation2 + $0x158] sm:$0xff] %v5447_v0 }
 0x263   : > { %7625 = vst [vmem:[#allocation23_spill] sm:$0xff] %v6527_v20  ;;  %4773 = vmatmul.msk.bf16.gmra.mxu3 %vm626_vm2, %v5947_v4 }
 0x264   : > { %2137 = vst [vmem:[#allocation2 + $0x160] sm:$0x3] %v5447_v0 }
 0x265   : > { %2138 = vst [vmem:[#allocation2 + $0x168] sm:$0xff] %v5447_v0 }
 0x266   : > { %v1776_v42 = vpop.f32.mrf.mxu3  ;;  %2139 = vst [vmem:[#allocation2 + $0x170] sm:$0xff] %v5447_v0 }
 0x267   : > { %v1856_v27 = vadd.f32 %v1776_v42, %v6180_v61  ;;  %v1915_v4 = vpop.f32.mrf.mxu0  ;;  %2140 = vst [vmem:[#allocation2 + $0x178] sm:$0x3] %v5447_v0 }
 0x268   : > { %2141 = vst [vmem:[#allocation2 + $0x180] sm:$0xff] %v5447_v0 }
 0x269   : > { %v1993_v35 = vadd.f32 %v1913_v23, %v1856_v27  ;;  %2142 = vst [vmem:[#allocation2 + $0x188] sm:$0xff] %v5447_v0  ;;  %v5270_v23 = vld [vmem:[%s7538_s4 + $0xb0] sm:$0xff]  ;;  %v6560_v27 = vpop.f32.mrf.mxu2 }
 0x26a   : > { %2143 = vst [vmem:[#allocation2 + $0x190] sm:$0x3] %v5447_v0  ;;  %2697 = vmatpush.bf16.msrb.mxu3 %v5270_v23 }
 0x26b   : > { %v2029_v52 = vadd.f32 %v6546_v24, %v1993_v35  ;;  %2144 = vst [vmem:[#allocation2 + $0x198] sm:$0xff] %v5447_v0 }
 0x26c   : > { %2145 = vst [vmem:[#allocation2 + $0x1a0] sm:$0xff] %v5447_v0 }
 0x26d   : > { %v2061_v61 = vmax.f32 %v2029_v52, 0.0  ;;  %2146 = vst [vmem:[#allocation2 + $0x1a8] sm:$0x3] %v5447_v0 }
 0x26e   : > { %v1778_v29 = vpop.f32.mrf.mxu3 }
 0x26f   : > { %2148 = vst [vmem:[#allocation2 + $0x19] sm:$0xff] %v2061_v61  ;;  %v1857_v18 = vadd.f32 %v1778_v29, %v6192_v36  ;;  %v1918_v42 = vpop.f32.mrf.mxu0 }
 0x271   : > { %v1994_v20 = vadd.f32 %v1915_v4, %v1857_v18  ;;  %v5278_v4 = vld [vmem:[%s7538_s4 + $0xf0] sm:$0xff] }
 0x272   : > { %4791 = vmatmul.msk.bf16.gmra.mxu0 %vm626_vm2, %v6008_v62  ;;  %v5286_v62 = vld [vmem:[%s7538_s4 + $0x130] sm:$0xff] }
 0x273   : > { %v2030_v35 = vadd.f32 %v6546_v24, %v1994_v20  ;;  %4774 = vmatmul.msk.bf16.gmra.mxu3 %vm626_vm2, %v5998_v40  ;;  %2931 = vmatpush.bf16.msrb.mxu0 %v5278_v4  ;;  %v6574_v20 = vpop.f32.mrf.mxu2 }
 0x274   : > { %3165 = vmatpush.bf16.msrb.mxu1 %v5286_v62 }
 0x275   : > { %v2062_v0 = vmax.f32 %v2030_v35, 0.0 }
 0x276   : > { %v1781_v52 = vpop.f32.mrf.mxu3  ;;  %v2182_v35 = vld [vmem:[#allocation2 + $0x18] sm:$0xff] }
 0x277   : > { %2149 = vst [vmem:[#allocation2 + $0x21] sm:$0xff] %v2062_v0  ;;  %v1858_v36 = vadd.f32 %v1781_v52, %v6197_v31  ;;  %v1920_v29 = vpop.f32.mrf.mxu0  ;;  %v2277_v63 = vpack.c.bf16 %v2062_v0, %v2061_v61 }
 0x279   : > { %v1995_v18 = vadd.f32 %v1918_v42, %v1858_v36  ;;  %2370 = vmatmul.bf16.gmra.mxu1 %v2277_v63  ;;  %v7626_v42 = vld [vmem:[#allocation6_spill] sm:$0xff] }
 0x27b   : > { %v2031_v40 = vadd.f32 %v6546_v24, %v1995_v18  ;;  %v6586_v36 = vpop.f32.mrf.mxu2 }
 0x27c   : > { %7627 = vst [vmem:[#allocation24_spill] sm:$0xff] %v6586_v36 }
 0x27d   : > { %v2063_v23 = vmax.f32 %v2031_v40, 0.0 }
 0x27e   : > { %v1783_v31 = vpop.f32.mrf.mxu3  ;;  %v2183_v61 = vld [vmem:[#allocation2 + $0x20] sm:$0xff] }
 0x27f   : > { %2150 = vst [vmem:[#allocation2 + $0x31] sm:$0xff] %v2063_v23  ;;  %v1859_v0 = vadd.f32 %v1783_v31, %v6206_v10  ;;  %v1923_v52 = vpop.f32.mrf.mxu0  ;;  %v6578_v51 = vpack.c.bf16 %v2183_v61, %v2182_v35  ;;  %v7628_v10 = vld [vmem:[#allocation19_spill] sm:$0xff] }
 0x281   : > { %v1996_v9 = vadd.f32 %v1920_v29, %v1859_v0  ;;  %2507 = vmatmul.bf16.gmra.mxu2 %v6578_v51 }
 0x282   : > { %4792 = vmatmul.msk.bf16.gmra.mxu0 %vm626_vm2, %v7590_v19 }
 0x283   : > { %v2032_v63 = vadd.f32 %v6546_v24, %v1996_v9  ;;  %4775 = vmatmul.msk.bf16.gmra.mxu3 %vm626_vm2, %v7626_v42  ;;  %v6590_v19 = vpop.f32.mrf.mxu2  ;;  %v7630_v42 = vld [vmem:[#allocation15_spill] sm:$0xff] }
 0x284   : > { %7629 = vst [vmem:[#allocation6_spill] sm:$0xff] %v6590_v19 }
 0x285   : > { %v2064_v4 = vmax.f32 %v2032_v63, 0.0 }
 0x286   : > { %v1786_v62 = vpop.f32.mrf.mxu3  ;;  %v2184_v0 = vld [vmem:[#allocation2 + $0x30] sm:$0xff] }
 0x287   : > { %2151 = vst [vmem:[#allocation2 + $0x39] sm:$0xff] %v2064_v4  ;;  %v1860_v18 = vadd.f32 %v1786_v62, %v7628_v10  ;;  %v1925_v40 = vpop.f32.mrf.mxu0  ;;  %v2278_v31 = vpack.c.bf16 %v2064_v4, %v2063_v23  ;;  %v5269_v23 = vld [vmem:[%s7538_s4 + $0xa8] sm:$0xff]  ;;  %v7631_v62 = vld [vmem:[#allocation7_spill] sm:$0xff] }
 0x288   : > { %2698 = vmatpush.bf16.msrb.mxu3 %v5269_v23 }
 0x289   : > { %v1997_v29 = vadd.f32 %v1923_v52, %v1860_v18  ;;  %2375 = vmatmul.bf16.gmra.mxu1 %v2278_v31 }
 0x28b   : > { %v2033_v35 = vadd.f32 %v6546_v24, %v1997_v29 }
 0x28d   : > { %v2065_v61 = vmax.f32 %v2033_v35, 0.0 }
 0x28e   : > { %v1788_v9 = vpop.f32.mrf.mxu3  ;;  %v2185_v33 = vld [vmem:[#allocation2 + $0x38] sm:$0xff] }
 0x28f   : > { %2152 = vst [vmem:[#allocation2 + $0x49] sm:$0xff] %v2065_v61  ;;  %v1861_v28 = vadd.f32 %v1788_v9, %v7630_v42  ;;  %v1928_v63 = vpop.f32.mrf.mxu0  ;;  %v6593_v7 = vpack.c.bf16 %v2185_v33, %v2184_v0  ;;  %v7632_v33 = vld [vmem:[#allocation12_spill] sm:$0xff] }
 0x291   : > { %v1998_v52 = vadd.f32 %v1925_v40, %v1861_v28  ;;  %2512 = vmatmul.bf16.gmra.mxu2 %v6593_v7  ;;  %v5277_v28 = vld [vmem:[%s7538_s4 + $0xe8] sm:$0xff]  ;;  %v6611_v40 = vpop.f32.mrf.mxu2 }
 0x292   : > { %4793 = vmatmul.msk.bf16.gmra.mxu0 %vm626_vm2, %v7595_v30  ;;  %v5285_v30 = vld [vmem:[%s7538_s4 + $0x128] sm:$0xff]  ;;  %7633 = vst [vmem:[#allocation19_spill] sm:$0xff] %v6611_v40 }
 0x293   : > { %v2034_v4 = vadd.f32 %v6546_v24, %v1998_v52  ;;  %4776 = vmatmul.msk.bf16.gmra.mxu3 %vm626_vm2, %v7631_v62  ;;  %2932 = vmatpush.bf16.msrb.mxu0 %v5277_v28 }
 0x294   : > { %3166 = vmatpush.bf16.msrb.mxu1 %v5285_v30 }
 0x295   : > { %v2066_v10 = vmax.f32 %v2034_v4, 0.0  ;;  %v7634_v4 = vld [vmem:[#allocation25_spill] sm:$0xff] }
 0x296   : > { %v1791_v18 = vpop.f32.mrf.mxu3  ;;  %v2186_v52 = vld [vmem:[#allocation2 + $0x48] sm:$0xff] }
 0x297   : > { %2153 = vst [vmem:[#allocation2 + $0x51] sm:$0xff] %v2066_v10  ;;  %v1862_v31 = vadd.f32 %v1791_v18, %v7632_v33  ;;  %v1930_v29 = vpop.f32.mrf.mxu0  ;;  %v2279_v35 = vpack.c.bf16 %v2066_v10, %v2065_v61 }
 0x299   : > { %v1999_v9 = vadd.f32 %v1928_v63, %v1862_v31  ;;  %2380 = vmatmul.bf16.gmra.mxu1 %v2279_v35  ;;  %v6618_v40 = vpop.f32.mrf.mxu2  ;;  %v7636_v63 = vld [vmem:[#allocation18_spill] sm:$0xff]  ;;  %v7637_v35 = vld [vmem:[#allocation8_spill] sm:$0xff] }
 0x29a   : > { %7635 = vst [vmem:[#allocation15_spill] sm:$0xff] %v6618_v40 }
 0x29b   : > { %v2035_v0 = vadd.f32 %v6546_v24, %v1999_v9  ;;  %v7638_v9 = vld [vmem:[#allocation13_spill] sm:$0xff] }
 0x29d   : > { %v2067_v42 = vmax.f32 %v2035_v0, 0.0 }
 0x29e   : > { %v1793_v23 = vpop.f32.mrf.mxu3  ;;  %v2187_v61 = vld [vmem:[#allocation2 + $0x50] sm:$0xff] }
 0x29f   : > { %2154 = vst [vmem:[#allocation2 + $0x61] sm:$0xff] %v2067_v42  ;;  %v1863_v62 = vadd.f32 %v1793_v23, %v7634_v4  ;;  %v1933_v10 = vpop.f32.mrf.mxu0  ;;  %v6615_v18 = vpack.c.bf16 %v2187_v61, %v2186_v52  ;;  %v7640_v61 = vld [vmem:[#allocation17_spill] sm:$0xff] }
 0x2a1   : > { %v2000_v33 = vadd.f32 %v1930_v29, %v1863_v62  ;;  %2517 = vmatmul.bf16.gmra.mxu2 %v6615_v18  ;;  %v7639_v29 = vld [vmem:[#allocation26_spill] sm:$0xff] }
 0x2a2   : > { %4794 = vmatmul.msk.bf16.gmra.mxu0 %vm626_vm2, %v7636_v63  ;;  %v1595_v4 = vadd.f32 %v7640_v61, %v7639_v29  ;;  %v6629_v63 = vpop.f32.mrf.mxu2 }
 0x2a3   : > { %v2036_v31 = vadd.f32 %v6546_v24, %v2000_v33  ;;  %4777 = vmatmul.msk.bf16.gmra.mxu3 %vm626_vm2, %v7637_v35 }
 0x2a4   : > { %v1725_v33 = vadd.f32 %v6334_v14, %v1595_v4  ;;  %v7641_v14 = vld [vmem:[#allocation20_spill] sm:$0xff] }
 0x2a5   : > { %v2068_v28 = vmax.f32 %v2036_v31, 0.0 }
 0x2a6   : > { %v1796_v30 = vpop.f32.mrf.mxu3  ;;  %v2188_v31 = vld [vmem:[#allocation2 + $0x60] sm:$0xff] }
 0x2a7   : > { %2155 = vst [vmem:[#allocation2 + $0x69] sm:$0xff] %v2068_v28  ;;  %v1864_v0 = vadd.f32 %v1796_v30, %v7638_v9  ;;  %v1935_v23 = vpop.f32.mrf.mxu0  ;;  %v2280_v52 = vpack.c.bf16 %v2068_v28, %v2067_v42  ;;  %v5268_v42 = vld [vmem:[%s7538_s4 + $0xa0] sm:$0xff] }
 0x2a8   : > { %2699 = vmatpush.bf16.msrb.mxu3 %v5268_v42  ;;  %v5266_v42 = vld [vmem:[%s7538_s4 + $0x90] sm:$0xff] }
 0x2a9   : > { %v2001_v62 = vadd.f32 %v1933_v10, %v1864_v0  ;;  %2385 = vmatmul.bf16.gmra.mxu1 %v2280_v52  ;;  %v5276_v10 = vld [vmem:[%s7538_s4 + $0xe0] sm:$0xff]  ;;  %v7642_v0 = vld [vmem:[#allocation9_spill] sm:$0xff] }
 0x2aa   : > { %2933 = vmatpush.bf16.msrb.mxu0 %v5276_v10  ;;  %v6654_v61 = vpop.f32.mrf.mxu2  ;;  %v7644_v10 = vld [vmem:[#allocation28_spill] sm:$0xff] }
 0x2ab   : > { %v2037_v40 = vadd.f32 %v6546_v24, %v2001_v62 }
 0x2ad   : > { %v2069_v19 = vmax.f32 %v2037_v40, 0.0 }
 0x2ae   : > { %v1798_v35 = vpop.f32.mrf.mxu3  ;;  %v2189_v36 = vld [vmem:[#allocation2 + $0x68] sm:$0xff] }
 0x2af   : > { %2156 = vst [vmem:[#allocation2 + $0x79] sm:$0xff] %v2069_v19  ;;  %v1865_v2 = vadd.f32 %v1798_v35, %v1725_v33  ;;  %v1938_v30 = vpop.f32.mrf.mxu0  ;;  %v6632_v9 = vpack.c.bf16 %v2189_v36, %v2188_v31  ;;  %v5267_v36 = vld [vmem:[%s7538_s4 + $0x98] sm:$0xff]  ;;  %v5284_v31 = vld [vmem:[%s7538_s4 + $0x120] sm:$0xff] }
 0x2b0   : > { %2700 = vmatpush.bf16.msrb.mxu3 %v5267_v36  ;;  %3167 = vmatpush.bf16.msrb.mxu1 %v5284_v31  ;;  %v5273_v36 = vld [vmem:[%s7538_s4 + $0xc8] sm:$0xff]  ;;  %v6677_v31 = vpop.f32.mrf.mxu1 }
 0x2b1   : > { %v2002_v28 = vadd.f32 %v1935_v23, %v1865_v2  ;;  %2522 = vmatmul.bf16.gmra.mxu2 %v6632_v9  ;;  %v5275_v2 = vld [vmem:[%s7538_s4 + $0xd8] sm:$0xff] }
 0x2b2   : > { %4795 = vmatmul.msk.bf16.gmra.mxu0 %vm626_vm2, %v7641_v14  ;;  %v7643_v23 = vld [vmem:[#allocation14_spill] sm:$0xff] }
 0x2b3   : > { %v2038_v40 = vadd.f32 %v6546_v24, %v2002_v28  ;;  %4778 = vmatmul.msk.bf16.gmra.mxu3 %vm626_vm2, %v7642_v0  ;;  %v1726_v52 = vadd.f32 %v6341_v5, %v7643_v23  ;;  %2934 = vmatpush.bf16.msrb.mxu0 %v5275_v2  ;;  %v5274_v5 = vld [vmem:[%s7538_s4 + $0xd0] sm:$0xff]  ;;  %v7645_v28 = vld [vmem:[#allocation27_spill] sm:$0xff]  ;;  %v5265_v0 = vld [vmem:[%s7538_s4 + $0x88] sm:$0xff] }
 0x2b4   : > { %v1597_v14 = vadd.f32 %v7645_v28, %v7644_v10  ;;  %2701 = vmatpush.bf16.msrb.mxu3 %v5266_v42  ;;  %v6679_v42 = vpop.f32.mrf.mxu2  ;;  %v5272_v10 = vld [vmem:[%s7538_s4 + $0xc0] sm:$0xff] }
 0x2b5   : > { %v2070_v29 = vmax.f32 %v2038_v40, 0.0  ;;  %7646 = vst [vmem:[#allocation7_spill] sm:$0xff] %v6679_v42 }
 0x2b6   : > { %v1801_v4 = vpop.f32.mrf.mxu3  ;;  %v1727_v2 = vadd.f32 %v6356_v49, %v1597_v14  ;;  %v5264_v49 = vld [vmem:[%s7538_s4 + $0x80] sm:$0xff] }
 0x2b7   : > { %2157 = vst [vmem:[#allocation2 + $0x81] sm:$0xff] %v2070_v29  ;;  %v1866_v62 = vadd.f32 %v1801_v4, %v1726_v52  ;;  %v1940_v33 = vpop.f32.mrf.mxu0  ;;  %v2281_v35 = vpack.c.bf16 %v2070_v29, %v2069_v19  ;;  %2935 = vmatpush.bf16.msrb.mxu0 %v5274_v5  ;;  %v371_v5 = vld [vmem:[%s5571_s19 + $0x1a8] sm:$0x3] }
 0x2b8   : > { %2702 = vmatpush.bf16.msrb.mxu3 %v5265_v0 }
 0x2b9   : > { %v2003_v40 = vadd.f32 %v1938_v30, %v1866_v62  ;;  %2390 = vmatmul.bf16.gmra.mxu1 %v2281_v35  ;;  %v2190_v30 = vld [vmem:[#allocation2 + $0x78] sm:$0xff] }
 0x2bb   : > { %v2039_v19 = vadd.f32 %v6546_v24, %v2003_v40  ;;  %2936 = vmatpush.bf16.msrb.mxu0 %v5273_v36  ;;  %v429_v40 = vmul.f32 %v6268_v60, %v371_v5 }
 0x2bc   : > { %2703 = vmatpush.bf16.msrb.mxu3 %v5264_v49  ;;  %v2503_v49 = vpop.f32.mrf.mxu2 }
 0x2bd   : > { %v2071_v23 = vmax.f32 %v2039_v19, 0.0  ;;  %v1728_v19 = vadd.f32 %v6366_v15, %v6291_v11  ;;  %v1754_v60 = vrot.slane %v429_v40, 1  ;;  %v7647_v11 = vld [vmem:[#allocation29_spill] sm:$0xff] }
 0x2be   : > { %v1803_v52 = vpop.f32.mrf.mxu3  ;;  %v2191_v29 = vld [vmem:[#allocation2 + $0x80] sm:$0xff]  ;;  %v2366_v5 = vpop.f32.mrf.mxu1  ;;  %v1599_v15 = vadd.f32 %v7647_v11, %v6311_v25  ;;  %v1601_v11 = vadd.f32 %v6318_v34, %v6328_v16 }
 0x2bf   : > { %2158 = vst [vmem:[#allocation2 + $0x91] sm:$0xff] %v2071_v23  ;;  %v1867_v4 = vadd.f32 %v1803_v52, %v1727_v2  ;;  %v1943_v62 = vpop.f32.mrf.mxu0  ;;  %v6675_v35 = vpack.c.bf16 %v2191_v29, %v2190_v30  ;;  %2937 = vmatpush.bf16.msrb.mxu0 %v5272_v10  ;;  %v1889_v30 = vrot.slane %v6301_v38, 2  ;;  %v1891_v29 = vrot.slane %v429_v40, 2 }
 0x2c0   : > { %v1729_v40 = vadd.f32 %v6377_v37, %v1599_v15  ;;  %v1730_v37 = vadd.f32 %v6391_v50, %v6322_v17  ;;  %v2584_v17 = vld [vmem:[#allocation2 + $0xa] sm:$0xff]  ;;  %v1731_v50 = vadd.f32 %v6400_v12, %v1601_v11  ;;  %v1732_v12 = vadd.f32 %v6414_v41, %v6339_v3  ;;  %v2586_v11 = vld [vmem:[#allocation2 + $0x22] sm:$0xff] }
 0x2c1   : > { %v2004_v28 = vadd.f32 %v1940_v33, %v1867_v4  ;;  %2527 = vmatmul.bf16.gmra.mxu2 %v6675_v35  ;;  %v1888_v33 = vrot.slane %v6298_v59, 2  ;;  %v1751_v4 = vrot.slane %v6298_v59, 1 }
 0x2c2   : > { %4796 = vmatmul.msk.bf16.gmra.mxu0 %vm626_vm2, %v6295_v8 }
 0x2c3   : > { %v2040_v14 = vadd.f32 %v6546_v24, %v2004_v28  ;;  %4779 = vmatmul.msk.bf16.gmra.mxu3 %vm626_vm2, %v6303_v6  ;;  %v1752_v6 = vrot.slane %v6301_v38, 1  ;;  %v6703_v28 = vadd.f32 %v2503_v49, %v2366_v5 }
 0x2c5   : > { %v2072_v0 = vmax.f32 %v2040_v14, 0.0  ;;  %v1753_v59 = vsel %vm495_vm1, %v1751_v4, %v1752_v6  ;;  %v1755_v38 = vsel %vm495_vm1, %v1752_v6, %v1754_v60 }
 0x2c6   : > { %v1806_v36 = vpop.f32.mrf.mxu3  ;;  %v2192_v42 = vld [vmem:[#allocation2 + $0x90] sm:$0xff]  ;;  %v1758_v49 = vpack.c.bf16 %v1755_v38, %v1753_v59 }
 0x2c7   : > { %2159 = vst [vmem:[#allocation2 + $0x99] sm:$0xff] %v2072_v0  ;;  %v1868_v2 = vadd.f32 %v1806_v36, %v1728_v19  ;;  %v1945_v52 = vpop.f32.mrf.mxu0  ;;  %v2282_v8 = vpack.c.bf16 %v2072_v0, %v2071_v23  ;;  %v1890_v23 = vsel %vm908_vm3, %v1888_v33, %v1889_v30  ;;  %v1892_v19 = vsel %vm908_vm3, %v1889_v30, %v1891_v29 }
 0x2c9   : > { %v2005_v10 = vadd.f32 %v1943_v62, %v1868_v2  ;;  %2395 = vmatmul.bf16.gmra.mxu1 %v2282_v8  ;;  %v1895_v62 = vpack.c.bf16 %v1892_v19, %v1890_v23 }
 0x2cb   : > { %v2041_v14 = vadd.f32 %v6546_v24, %v2005_v10 }
 0x2cd   : > { %v2073_v0 = vmax.f32 %v2041_v14, 0.0  ;;  %v2583_v14 = vld [vmem:[#allocation2 + $0x2] sm:$0xff] }
 0x2ce   : > { %v1808_v36 = vpop.f32.mrf.mxu3  ;;  %v2193_v25 = vld [vmem:[#allocation2 + $0x98] sm:$0xff] }
 0x2cf   : > { %2160 = vst [vmem:[#allocation2 + $0xa9] sm:$0xff] %v2073_v0  ;;  %v1869_v2 = vadd.f32 %v1808_v36, %v1729_v40  ;;  %v1948_v8 = vpop.f32.mrf.mxu0  ;;  %v6711_v5 = vpack.c.bf16 %v2193_v25, %v2192_v42  ;;  %v2615_v25 = vpack.c.bf16 %v2584_v17, %v2583_v14  ;;  %v1734_v17 = vadd.f32 %v6452_v58, %v6358_v47  ;;  %v6758_v47 = vpop.f32.mrf.mxu2 }
 0x2d1   : > { %v2006_v33 = vadd.f32 %v1945_v52, %v1869_v2  ;;  %2532 = vmatmul.bf16.gmra.mxu2 %v6711_v5  ;;  %v5283_v52 = vld [vmem:[%s7538_s4 + $0x118] sm:$0xff] }
 0x2d2   : > { %4797 = vmatmul.msk.bf16.gmra.mxu0 %vm626_vm2, %v1895_v62  ;;  %3168 = vmatpush.bf16.msrb.mxu1 %v5283_v52 }
 0x2d3   : > { %v2042_v30 = vadd.f32 %v6546_v24, %v2006_v33  ;;  %4780 = vmatmul.msk.bf16.gmra.mxu3 %vm626_vm2, %v1758_v49 }
 0x2d5   : > { %v2074_v29 = vmax.f32 %v2042_v30, 0.0  ;;  %v5295_v30 = vld [vmem:[%s7538_s4 + $0x178] sm:$0xff] }
 0x2d6   : > { %v1811_v4 = vpop.f32.mrf.mxu3  ;;  %v2194_v59 = vld [vmem:[#allocation2 + $0xa8] sm:$0xff]  ;;  %3398 = vmatpush.bf16.msrb.mxu2 %v5295_v30 }
 0x2d7   : > { %2161 = vst [vmem:[#allocation2 + $0xb1] sm:$0xff] %v2074_v29  ;;  %v1870_v6 = vadd.f32 %v1811_v4, %v1730_v37  ;;  %v1950_v60 = vpop.f32.mrf.mxu0  ;;  %v2283_v42 = vpack.c.bf16 %v2074_v29, %v2073_v0  ;;  %v1603_v37 = vadd.f32 %v6336_v44, %v6347_v21  ;;  %v2585_v4 = vld [vmem:[#allocation2 + $0x1a] sm:$0xff] }
 0x2d8   : > { %v6745_v21 = vpack.c.bf16 %v2586_v11, %v2585_v4 }
 0x2d9   : > { %v2007_v15 = vadd.f32 %v1948_v8, %v1870_v6  ;;  %2400 = vmatmul.bf16.gmra.mxu1 %v2283_v42  ;;  %v1733_v3 = vadd.f32 %v6434_v39, %v1603_v37 }
 0x2db   : > { %v2043_v10 = vadd.f32 %v6546_v24, %v2007_v15 }
 0x2dd   : > { %v2075_v23 = vmax.f32 %v2043_v10, 0.0 }
 0x2de   : > { %v1813_v19 = vpop.f32.mrf.mxu3  ;;  %v2195_v38 = vld [vmem:[#allocation2 + $0xb0] sm:$0xff] }
 0x2df   : > { %2162 = vst [vmem:[#allocation2 + $0xc1] sm:$0xff] %v2075_v23  ;;  %v1871_v40 = vadd.f32 %v1813_v19, %v1731_v50  ;;  %v1953_v0 = vpop.f32.mrf.mxu0  ;;  %v6726_v36 = vpack.c.bf16 %v2195_v38, %v2194_v59 }
 0x2e1   : > { %v2008_v34 = vadd.f32 %v1950_v60, %v1871_v40  ;;  %2537 = vmatmul.bf16.gmra.mxu2 %v6726_v36  ;;  %v6740_v60 = vpop.f32.mrf.mxu1 }
 0x2e2   : > { %2938 = vmatmul.bf16.vlgmr.msrb.gmra.mxu0 %v6578_v51 }
 0x2e3   : > { %v2044_v16 = vadd.f32 %v6546_v24, %v2008_v34  ;;  %2704 = vmatmul.bf16.vlgmr.msrb.gmra.mxu3 %v2615_v25 }
 0x2e5   : > { %v2076_v62 = vmax.f32 %v2044_v16, 0.0 }
 0x2e6   : > { %v1816_v2 = vpop.f32.mrf.mxu3  ;;  %v2196_v42 = vld [vmem:[#allocation2 + $0xc0] sm:$0xff] }
 0x2e7   : > { %2163 = vst [vmem:[#allocation2 + $0xc9] sm:$0xff] %v2076_v62  ;;  %v1872_v8 = vadd.f32 %v1816_v2, %v1732_v12  ;;  %v1955_v49 = vpop.f32.mrf.mxu0  ;;  %v2284_v33 = vpack.c.bf16 %v2076_v62, %v2075_v23  ;;  %v2587_v12 = vld [vmem:[#allocation2 + $0x32] sm:$0xff] }
 0x2e9   : > { %v2009_v51 = vadd.f32 %v1953_v0, %v1872_v8  ;;  %2405 = vmatmul.bf16.gmra.mxu1 %v2284_v33  ;;  %v5282_v0 = vld [vmem:[%s7538_s4 + $0x110] sm:$0xff] }
 0x2ea   : > { %3169 = vmatpush.bf16.msrb.mxu1 %v5282_v0 }
 0x2eb   : > { %v2045_v29 = vadd.f32 %v6546_v24, %v2009_v51 }
 0x2ed   : > { %v2077_v41 = vmax.f32 %v2045_v29, 0.0 }
 0x2ee   : > { %v1818_v6 = vpop.f32.mrf.mxu3  ;;  %v2197_v52 = vld [vmem:[#allocation2 + $0xc8] sm:$0xff] }
 0x2ef   : > { %2164 = vst [vmem:[#allocation2 + $0xd9] sm:$0xff] %v2077_v41  ;;  %v1873_v15 = vadd.f32 %v1818_v6, %v1733_v3  ;;  %v1958_v10 = vpop.f32.mrf.mxu0  ;;  %v6742_v14 = vpack.c.bf16 %v2197_v52, %v2196_v42  ;;  %v1736_v3 = vadd.f32 %v6494_v43, %v6375_v46 }
 0x2f1   : > { %v2010_v44 = vadd.f32 %v1955_v49, %v1873_v15  ;;  %2542 = vmatmul.bf16.gmra.mxu2 %v6742_v14  ;;  %v2588_v49 = vld [vmem:[#allocation2 + $0x3a] sm:$0xff] }
 0x2f2   : > { %2943 = vmatmul.bf16.gmra.mxu0 %v6593_v7  ;;  %v1605_v7 = vadd.f32 %v6353_v22, %v6364_v26  ;;  %v6764_v51 = vpack.c.bf16 %v2588_v49, %v2587_v12 }
 0x2f3   : > { %v2046_v39 = vadd.f32 %v6546_v24, %v2010_v44  ;;  %2709 = vmatmul.bf16.gmra.mxu3 %v6745_v21 }
 0x2f4   : > { %v1735_v58 = vadd.f32 %v6472_v53, %v1605_v7 }
 0x2f5   : > { %v2078_v50 = vmax.f32 %v2046_v39, 0.0 }
 0x2f6   : > { %v1821_v23 = vpop.f32.mrf.mxu3  ;;  %v2371_v19 = vpop.f32.mrf.mxu1  ;;  %v2198_v2 = vld [vmem:[#allocation2 + $0xd8] sm:$0xff] }
 0x2f7   : > { %2165 = vst [vmem:[#allocation2 + $0xe1] sm:$0xff] %v2078_v50  ;;  %v1874_v59 = vadd.f32 %v1821_v23, %v1734_v17  ;;  %v1960_v38 = vpop.f32.mrf.mxu0  ;;  %v2285_v40 = vpack.c.bf16 %v2078_v50, %v2077_v41  ;;  %v2589_v23 = vld [vmem:[#allocation2 + $0x4a] sm:$0xff] }
 0x2f9   : > { %v2011_v25 = vadd.f32 %v1958_v10, %v1874_v59  ;;  %2410 = vmatmul.bf16.gmra.mxu1 %v2285_v40  ;;  %v1607_v10 = vadd.f32 %v6372_v32, %v6383_v56  ;;  %v2590_v40 = vld [vmem:[#allocation2 + $0x52] sm:$0xff] }
 0x2fb   : > { %v2047_v34 = vadd.f32 %v6546_v24, %v2011_v25  ;;  %v1737_v39 = vadd.f32 %v6519_v1, %v1607_v10 }
 0x2fd   : > { %v2079_v16 = vmax.f32 %v2047_v34, 0.0  ;;  %v6785_v34 = vpack.c.bf16 %v2590_v40, %v2589_v23 }
 0x2fe   : > { %v1823_v62 = vpop.f32.mrf.mxu3  ;;  %v2199_v8 = vld [vmem:[#allocation2 + $0xe0] sm:$0xff]  ;;  %v2373_v33 = vpop.f32.mrf.mxu1 }
 0x2ff   : > { %2166 = vst [vmem:[#allocation2 + $0xf1] sm:$0xff] %v2079_v16  ;;  %v1875_v30 = vadd.f32 %v1823_v62, %v1735_v58  ;;  %v1963_v37 = vpop.f32.mrf.mxu0  ;;  %v6761_v22 = vpack.c.bf16 %v2199_v8, %v2198_v2 }
 0x301   : > { %v2012_v26 = vadd.f32 %v1960_v38, %v1875_v30  ;;  %2547 = vmatmul.bf16.gmra.mxu2 %v6761_v22 }
 0x302   : > { %2948 = vmatmul.bf16.gmra.mxu0 %v6615_v18  ;;  %v5294_v18 = vld [vmem:[%s7538_s4 + $0x170] sm:$0xff] }
 0x303   : > { %v2048_v53 = vadd.f32 %v6546_v24, %v2012_v26  ;;  %2714 = vmatmul.bf16.gmra.mxu3 %v6764_v51  ;;  %3399 = vmatpush.bf16.msrb.mxu2 %v5294_v18 }
 0x304   : > { %v2508_v29 = vpop.f32.mrf.mxu2 }
 0x305   : > { %v2080_v41 = vmax.f32 %v2048_v53, 0.0  ;;  %v6771_v4 = vadd.f32 %v2508_v29, %v2371_v19 }
 0x306   : > { %v1826_v6 = vpop.f32.mrf.mxu3  ;;  %v2376_v42 = vpop.f32.mrf.mxu1  ;;  %v2200_v59 = vld [vmem:[#allocation2 + $0xf0] sm:$0xff] }
 0x307   : > { %2167 = vst [vmem:[#allocation2 + $0xf9] sm:$0xff] %v2080_v41  ;;  %v1876_v52 = vadd.f32 %v1826_v6, %v1736_v3  ;;  %v1965_v11 = vpop.f32.mrf.mxu0  ;;  %v2286_v15 = vpack.c.bf16 %v2080_v41, %v2079_v16  ;;  %v1738_v16 = vadd.f32 %v6538_v45, %v6394_v48  ;;  %v2591_v41 = vld [vmem:[#allocation2 + $0x62] sm:$0xff] }
 0x309   : > { %v2013_v44 = vadd.f32 %v1963_v37, %v1876_v52  ;;  %2415 = vmatmul.bf16.gmra.mxu1 %v2286_v15  ;;  %v1609_v37 = vadd.f32 %v6389_v57, %v6402_v54 }
 0x30b   : > { %v2049_v46 = vadd.f32 %v6546_v24, %v2013_v44  ;;  %v1739_v53 = vadd.f32 %v6560_v27, %v1609_v37 }
 0x30c   : > { %v2510_v43 = vpop.f32.mrf.mxu2 }
 0x30d   : > { %v2081_v17 = vmax.f32 %v2049_v46, 0.0  ;;  %v6780_v50 = vadd.f32 %v2510_v43, %v2373_v33  ;;  %v1740_v43 = vadd.f32 %v6574_v20, %v6416_v13 }
 0x30e   : > { %v1828_v19 = vpop.f32.mrf.mxu3  ;;  %v2201_v38 = vld [vmem:[#allocation2 + $0xf8] sm:$0xff]  ;;  %v2378_v0 = vpop.f32.mrf.mxu1 }
 0x30f   : > { %2168 = vst [vmem:[#allocation2 + $0x109] sm:$0xff] %v2081_v17  ;;  %v1877_v7 = vadd.f32 %v1828_v19, %v1737_v39  ;;  %v1968_v32 = vpop.f32.mrf.mxu0  ;;  %v6782_v56 = vpack.c.bf16 %v2201_v38, %v2200_v59 }
 0x311   : > { %v2014_v25 = vadd.f32 %v1965_v11, %v1877_v7  ;;  %2552 = vmatmul.bf16.gmra.mxu2 %v6782_v56  ;;  %v2592_v11 = vld [vmem:[#allocation2 + $0x6a] sm:$0xff] }
 0x312   : > { %2953 = vmatmul.bf16.gmra.mxu0 %v6632_v9  ;;  %v5281_v9 = vld [vmem:[%s7538_s4 + $0x108] sm:$0xff]  ;;  %v6806_v44 = vpack.c.bf16 %v2592_v11, %v2591_v41  ;;  %v7651_v41 = vld [vmem:[#allocation6_spill] sm:$0xff] }
 0x313   : > { %v2050_v1 = vadd.f32 %v6546_v24, %v2014_v25  ;;  %2719 = vmatmul.bf16.gmra.mxu3 %v6785_v34  ;;  %3170 = vmatpush.bf16.msrb.mxu1 %v5281_v9  ;;  %v7649_v25 = vld [vmem:[#allocation24_spill] sm:$0xff] }
 0x314   : > { %v2513_v58 = vpop.f32.mrf.mxu2 }
 0x315   : > { %v2082_v12 = vmax.f32 %v2050_v1, 0.0  ;;  %v6792_v62 = vadd.f32 %v2513_v58, %v2376_v42 }
 0x316   : > { %v1831_v2 = vpop.f32.mrf.mxu3  ;;  %v2381_v8 = vpop.f32.mrf.mxu1  ;;  %v2202_v42 = vld [vmem:[#allocation2 + $0x108] sm:$0xff] }
 0x317   : > { %2169 = vst [vmem:[#allocation2 + $0x111] sm:$0xff] %v2082_v12  ;;  %v1878_v49 = vadd.f32 %v1831_v2, %v1738_v16  ;;  %v1970_v33 = vpop.f32.mrf.mxu0  ;;  %v2287_v30 = vpack.c.bf16 %v2082_v12, %v2081_v17  ;;  %v2593_v12 = vld [vmem:[#allocation2 + $0x7a] sm:$0xff] }
 0x319   : > { %v2015_v26 = vadd.f32 %v1968_v32, %v1878_v49  ;;  %2420 = vmatmul.bf16.gmra.mxu1 %v2287_v30 }
 0x31b   : > { %v2051_v48 = vadd.f32 %v6546_v24, %v2015_v26 }
 0x31c   : > { %v2515_v45 = vpop.f32.mrf.mxu2 }
 0x31d   : > { %v2083_v29 = vmax.f32 %v2051_v48, 0.0  ;;  %v6801_v3 = vadd.f32 %v2515_v45, %v2378_v0  ;;  %v7648_v0 = vld [vmem:[#allocation10_spill] sm:$0xff] }
 0x31e   : > { %v1833_v6 = vpop.f32.mrf.mxu3  ;;  %v2203_v52 = vld [vmem:[#allocation2 + $0x110] sm:$0xff]  ;;  %v2383_v15 = vpop.f32.mrf.mxu1  ;;  %v1611_v7 = vadd.f32 %v7648_v0, %v6428_v55 }
 0x31f   : > { %2170 = vst [vmem:[#allocation2 + $0x121] sm:$0xff] %v2083_v29  ;;  %v1879_v18 = vadd.f32 %v1833_v6, %v1739_v53  ;;  %v1973_v57 = vpop.f32.mrf.mxu0  ;;  %v6803_v54 = vpack.c.bf16 %v2203_v52, %v2202_v42  ;;  %v2595_v0 = vld [vmem:[#allocation2 + $0x92] sm:$0xff] }
 0x320   : > { %v1741_v1 = vadd.f32 %v7649_v25, %v1611_v7  ;;  %v2596_v7 = vld [vmem:[#allocation2 + $0x9a] sm:$0xff] }
 0x321   : > { %v2016_v10 = vadd.f32 %v1970_v33, %v1879_v18  ;;  %2557 = vmatmul.bf16.gmra.mxu2 %v6803_v54  ;;  %v2594_v33 = vld [vmem:[#allocation2 + $0x82] sm:$0xff] }
 0x322   : > { %2958 = vmatmul.bf16.gmra.mxu0 %v6675_v35  ;;  %v5293_v35 = vld [vmem:[%s7538_s4 + $0x168] sm:$0xff]  ;;  %v6827_v48 = vpack.c.bf16 %v2594_v33, %v2593_v12  ;;  %v5291_v33 = vld [vmem:[%s7538_s4 + $0x158] sm:$0xff] }
 0x323   : > { %v2052_v27 = vadd.f32 %v6546_v24, %v2016_v10  ;;  %2724 = vmatmul.bf16.gmra.mxu3 %v6806_v44  ;;  %3400 = vmatpush.bf16.msrb.mxu2 %v5293_v35 }
 0x324   : > { %v2518_v46 = vpop.f32.mrf.mxu2 }
 0x325   : > { %v2084_v39 = vmax.f32 %v2052_v27, 0.0  ;;  %v6813_v17 = vadd.f32 %v2518_v46, %v2381_v8  ;;  %v7652_v27 = vld [vmem:[#allocation30_spill] sm:$0xff]  ;;  %v7653_v46 = vld [vmem:[#allocation11_spill] sm:$0xff] }
 0x326   : > { %v1836_v23 = vpop.f32.mrf.mxu3  ;;  %v2386_v19 = vpop.f32.mrf.mxu1  ;;  %v2204_v8 = vld [vmem:[#allocation2 + $0x120] sm:$0xff] }
 0x327   : > { %2171 = vst [vmem:[#allocation2 + $0x129] sm:$0xff] %v2084_v39  ;;  %v1880_v59 = vadd.f32 %v1836_v23, %v1740_v43  ;;  %v1975_v38 = vpop.f32.mrf.mxu0  ;;  %v2288_v40 = vpack.c.bf16 %v2084_v39, %v2083_v29  ;;  %v7650_v29 = vld [vmem:[#allocation21_spill] sm:$0xff]  ;;  %v1613_v43 = vadd.f32 %v7653_v46, %v7652_v27 }
 0x328   : > { %v1742_v6 = vadd.f32 %v7651_v41, %v7650_v29 }
 0x329   : > { %v2017_v32 = vadd.f32 %v1973_v57, %v1880_v59  ;;  %2425 = vmatmul.bf16.gmra.mxu1 %v2288_v40  ;;  %v7654_v59 = vld [vmem:[#allocation19_spill] sm:$0xff] }
 0x32b   : > { %v2053_v13 = vadd.f32 %v6546_v24, %v2017_v32 }
 0x32c   : > { %v2520_v20 = vpop.f32.mrf.mxu2 }
 0x32d   : > { %v2085_v58 = vmax.f32 %v2053_v13, 0.0  ;;  %v6822_v16 = vadd.f32 %v2520_v20, %v2383_v15 }
 0x32e   : > { %v1838_v2 = vpop.f32.mrf.mxu3  ;;  %v2205_v49 = vld [vmem:[#allocation2 + $0x128] sm:$0xff]  ;;  %v2388_v30 = vpop.f32.mrf.mxu1 }
 0x32f   : > { %2172 = vst [vmem:[#allocation2 + $0x139] sm:$0xff] %v2085_v58  ;;  %v1881_v9 = vadd.f32 %v1838_v2, %v1741_v1  ;;  %v1978_v55 = vpop.f32.mrf.mxu0  ;;  %v6824_v37 = vpack.c.bf16 %v2205_v49, %v2204_v8  ;;  %v5292_v1 = vld [vmem:[%s7538_s4 + $0x160] sm:$0xff]  ;;  %v6851_v49 = vpack.c.bf16 %v2596_v7, %v2595_v0 }
 0x330   : > { %3401 = vmatpush.bf16.msrb.mxu2 %v5292_v1 }
 0x331   : > { %v2018_v26 = vadd.f32 %v1975_v38, %v1881_v9  ;;  %2562 = vmatmul.bf16.gmra.mxu2 %v6824_v37  ;;  %v1743_v38 = vadd.f32 %v7654_v59, %v1613_v43 }
 0x332   : > { %2963 = vmatmul.bf16.gmra.mxu0 %v6711_v5  ;;  %v5280_v5 = vld [vmem:[%s7538_s4 + $0x100] sm:$0xff] }
 0x333   : > { %v2054_v45 = vadd.f32 %v6546_v24, %v2018_v26  ;;  %2729 = vmatmul.bf16.gmra.mxu3 %v6827_v48  ;;  %3171 = vmatpush.bf16.msrb.mxu1 %v5280_v5  ;;  %v7656_v26 = vld [vmem:[#allocation15_spill] sm:$0xff]  ;;  %v7658_v5 = vld [vmem:[#allocation32_spill] sm:$0xff] }
 0x334   : > { %v2523_v53 = vpop.f32.mrf.mxu2  ;;  %3402 = vmatpush.bf16.msrb.mxu2 %v5291_v33  ;;  %v5319_v33 = vld [vmem:[%s7538_s4 + $0x238] sm:$0xff] }
 0x335   : > { %v2086_v42 = vmax.f32 %v2054_v45, 0.0  ;;  %v6834_v52 = vadd.f32 %v2523_v53, %v2386_v19 }
 0x336   : > { %v1841_v11 = vpop.f32.mrf.mxu3  ;;  %v2391_v15 = vpop.f32.mrf.mxu1  ;;  %v2206_v13 = vld [vmem:[#allocation2 + $0x138] sm:$0xff] }
 0x337   : > { %2173 = vst [vmem:[#allocation2 + $0x141] sm:$0xff] %v2086_v42  ;;  %v1882_v18 = vadd.f32 %v1841_v11, %v1742_v6  ;;  %v1980_v57 = vpop.f32.mrf.mxu0  ;;  %v2289_v10 = vpack.c.bf16 %v2086_v42, %v2085_v58  ;;  %4101 = vmatpush.bf16.msra.mxu1 %v5319_v33 }
 0x339   : > { %v2019_v39 = vadd.f32 %v1978_v55, %v1882_v18  ;;  %2430 = vmatmul.bf16.gmra.mxu1 %v2289_v10  ;;  %v7655_v55 = vld [vmem:[#allocation31_spill] sm:$0xff]  ;;  %v7657_v10 = vld [vmem:[#allocation22_spill] sm:$0xff] }
 0x33a   : > { %v1744_v45 = vadd.f32 %v7656_v26, %v7655_v55  ;;  %v1615_v27 = vadd.f32 %v7658_v5, %v7657_v10  ;;  %v7659_v55 = vld [vmem:[#allocation16_spill] sm:$0xff]  ;;  %v7661_v5 = vld [vmem:[#allocation7_spill] sm:$0xff] }
 0x33b   : > { %v2055_v23 = vadd.f32 %v6546_v24, %v2019_v39  ;;  %v1746_v26 = vadd.f32 %v6654_v61, %v7659_v55 }
 0x33c   : > { %v2525_v19 = vpop.f32.mrf.mxu2 }
 0x33d   : > { %v2087_v40 = vmax.f32 %v2055_v23, 0.0  ;;  %v6843_v35 = vadd.f32 %v2525_v19, %v2388_v30  ;;  %v1745_v23 = vadd.f32 %v6629_v63, %v1615_v27  ;;  %v5311_v63 = vld [vmem:[%s7538_s4 + $0x1f8] sm:$0xff] }
 0x33e   : > { %v1843_v32 = vpop.f32.mrf.mxu3  ;;  %v2207_v20 = vld [vmem:[#allocation2 + $0x140] sm:$0xff]  ;;  %v2393_v25 = vpop.f32.mrf.mxu1  ;;  %3867 = vmatpush.bf16.msra.mxu0 %v5311_v63 }
 0x33f   : > { %2174 = vst [vmem:[#allocation2 + $0x151] sm:$0xff] %v2087_v40  ;;  %v1883_v58 = vadd.f32 %v1843_v32, %v1743_v38  ;;  %v1983_v12 = vpop.f32.mrf.mxu0  ;;  %v6848_v2 = vpack.c.bf16 %v2207_v20, %v2206_v13  ;;  %v2597_v38 = vld [vmem:[#allocation2 + $0xaa] sm:$0xff]  ;;  %v5288_v20 = vld [vmem:[%s7538_s4 + $0x140] sm:$0xff] }
 0x341   : > { %v2020_v8 = vadd.f32 %v1980_v57, %v1883_v58  ;;  %2567 = vmatmul.bf16.gmra.mxu2 %v6848_v2  ;;  %v5303_v57 = vld [vmem:[%s7538_s4 + $0x1b8] sm:$0xff] }
 0x342   : > { %2968 = vmatmul.bf16.gmra.mxu0 %v6726_v36  ;;  %v5290_v36 = vld [vmem:[%s7538_s4 + $0x150] sm:$0xff]  ;;  %3633 = vmatpush.bf16.msra.mxu3 %v5303_v57  ;;  %v7660_v57 = vld [vmem:[#allocation23_spill] sm:$0xff] }
 0x343   : > { %v2056_v30 = vadd.f32 %v6546_v24, %v2020_v8  ;;  %2734 = vmatmul.bf16.gmra.mxu3 %v6851_v49  ;;  %3403 = vmatpush.bf16.msrb.mxu2 %v5290_v36 }
 0x344   : > { %v2528_v9 = vpop.f32.mrf.mxu2 }
 0x345   : > { %v2088_v53 = vmax.f32 %v2056_v30, 0.0  ;;  %v6861_v29 = vadd.f32 %v2528_v9, %v2391_v15  ;;  %v5289_v15 = vld [vmem:[%s7538_s4 + $0x148] sm:$0xff] }
 0x346   : > { %v1846_v41 = vpop.f32.mrf.mxu3  ;;  %v2396_v6 = vpop.f32.mrf.mxu1  ;;  %v2208_v7 = vld [vmem:[#allocation2 + $0x150] sm:$0xff] }
 0x347   : > { %2175 = vst [vmem:[#allocation2 + $0x159] sm:$0xff] %v2088_v53  ;;  %v1884_v42 = vadd.f32 %v1846_v41, %v1744_v45  ;;  %v1985_v11 = vpop.f32.mrf.mxu0  ;;  %v2290_v18 = vpack.c.bf16 %v2088_v53, %v2087_v40  ;;  %3404 = vmatpush.bf16.msrb.mxu2 %v5289_v15  ;;  %v2598_v40 = vld [vmem:[#allocation2 + $0xb2] sm:$0xff]  ;;  %v5381_v15 = vld [vmem:[%s7537_s3] ss:$0 sm:$0xff] }
 0x348   : > { %v6887_v8 = vpack.c.bf16 %v2598_v40, %v2597_v38  ;;  %v2600_v38 = vld [vmem:[#allocation2 + $0xca] sm:$0xff] }
 0x349   : > { %v2021_v46 = vadd.f32 %v1983_v12, %v1884_v42  ;;  %2435 = vmatmul.bf16.gmra.mxu1 %v2290_v18 }
 0x34b   : > { %v2057_v43 = vadd.f32 %v6546_v24, %v2021_v46  ;;  %3405 = vmatpush.bf16.msrb.mxu2 %v5288_v20 }
 0x34c   : > { %v2530_v39 = vpop.f32.mrf.mxu2 }
 0x34d   : > { %v2089_v19 = vmax.f32 %v2057_v43, 0.0  ;;  %v6876_v59 = vadd.f32 %v2530_v39, %v2393_v25  ;;  %v2599_v43 = vld [vmem:[#allocation2 + $0xc2] sm:$0xff] }
 0x34e   : > { %v1848_v0 = vpop.f32.mrf.mxu3  ;;  %v2209_v32 = vld [vmem:[#allocation2 + $0x158] sm:$0xff]  ;;  %v2398_v13 = vpop.f32.mrf.mxu1  ;;  %v6910_v20 = vpack.c.bf16 %v2600_v38, %v2599_v43 }
 0x34f   : > { %2176 = vst [vmem:[#allocation2 + $0x169] sm:$0xff] %v2089_v19  ;;  %v1885_v1 = vadd.f32 %v1848_v0, %v1745_v23  ;;  %v1988_v58 = vpop.f32.mrf.mxu0  ;;  %v6881_v12 = vpack.c.bf16 %v2209_v32, %v2208_v7 }
 0x351   : > { %v2022_v25 = vadd.f32 %v1985_v11, %v1885_v1  ;;  %2572 = vmatmul.bf16.gmra.mxu2 %v6881_v12 }
 0x352   : > { %2973 = vmatmul.bf16.gmra.mxu0 %v6742_v14  ;;  %v1617_v14 = vadd.f32 %v6677_v31, %v7660_v57  ;;  %v2601_v57 = vld [vmem:[#allocation2 + $0xda] sm:$0xff] }
 0x353   : > { %v2058_v30 = vadd.f32 %v6546_v24, %v2022_v25  ;;  %2739 = vmatmul.bf16.gmra.mxu3 %v6887_v8 }
 0x354   : > { %v2533_v9 = vpop.f32.mrf.mxu2 }
 0x355   : > { %v2090_v45 = vmax.f32 %v2058_v30, 0.0  ;;  %v6897_v53 = vadd.f32 %v2533_v9, %v2396_v6  ;;  %v1747_v6 = vadd.f32 %v7661_v5, %v1617_v14  ;;  %v3051_v9 = vld [vmem:[#allocation2 + $0x19] sm:$0xff]  ;;  %v2602_v14 = vld [vmem:[#allocation2 + $0xe2] sm:$0xff] }
 0x356   : > { %v1851_v41 = vpop.f32.mrf.mxu3  ;;  %v2401_v36 = vpop.f32.mrf.mxu1  ;;  %v2210_v23 = vld [vmem:[#allocation2 + $0x168] sm:$0xff] }
 0x357   : > { %2177 = vst [vmem:[#allocation2 + $0x171] sm:$0xff] %v2090_v45  ;;  %v1886_v42 = vadd.f32 %v1851_v41, %v1746_v26  ;;  %v1990_v11 = vpop.f32.mrf.mxu0  ;;  %v2291_v18 = vpack.c.bf16 %v2090_v45, %v2089_v19 }
 0x359   : > { %v2023_v24 = vadd.f32 %v1988_v58, %v1886_v42  ;;  %2440 = vmatmul.bf16.gmra.mxu1 %v2291_v18  ;;  %v3052_v58 = vld [vmem:[#allocation2 + $0x21] sm:$0xff] }
 0x35a   : > { %v3083_v45 = vpack.c.bf16 %v3052_v58, %v3051_v9  ;;  %v3056_v9 = vld [vmem:[#allocation2 + $0x51] sm:$0xff] }
 0x35b   : > { %v2059_v10 = vadd.f32 %v5381_v15, %v2023_v24 }
 0x35c   : > { %v2535_v61 = vpop.f32.mrf.mxu2 }
 0x35d   : > { %v2091_v27 = vmax.f32 %v2059_v10, 0.0  ;;  %v6905_v46 = vadd.f32 %v2535_v61, %v2398_v13  ;;  %v5310_v10 = vld [vmem:[%s7538_s4 + $0x1f0] sm:$0xff]  ;;  %v6930_v61 = vpack.c.bf16 %v2602_v14, %v2601_v57 }
 0x35e   : > { %v1853_v39 = vpop.f32.mrf.mxu3  ;;  %v2211_v19 = vld [vmem:[#allocation2 + $0x170] sm:$0xff]  ;;  %v2403_v40 = vpop.f32.mrf.mxu1  ;;  %3868 = vmatpush.bf16.msra.mxu0 %v5310_v10 }
 0x35f   : > { %2178 = vst [vmem:[#allocation2 + $0x181] sm:$0xff] %v2091_v27  ;;  %v1887_v31 = vadd.f32 %v1853_v39, %v1747_v6  ;;  %v2939_v0 = vpop.f32.mrf.mxu0  ;;  %v6907_v7 = vpack.c.bf16 %v2211_v19, %v2210_v23  ;;  %v3054_v6 = vld [vmem:[#allocation2 + $0x39] sm:$0xff]  ;;  %v3053_v39 = vld [vmem:[#allocation2 + $0x31] sm:$0xff] }
 0x360   : > { %v6942_v38 = vpack.c.bf16 %v3054_v6, %v3053_v39  ;;  %v5317_v6 = vld [vmem:[%s7538_s4 + $0x228] sm:$0xff] }
 0x361   : > { %v2024_v32 = vadd.f32 %v1990_v11, %v1887_v31  ;;  %2577 = vmatmul.bf16.gmra.mxu2 %v6907_v7 }
 0x362   : > { %2978 = vmatmul.bf16.gmra.mxu0 %v6761_v22  ;;  %v5302_v22 = vld [vmem:[%s7538_s4 + $0x1b0] sm:$0xff] }
 0x363   : > { %v2060_v13 = vadd.f32 %v5381_v15, %v2024_v32  ;;  %2744 = vmatmul.bf16.gmra.mxu3 %v6910_v20  ;;  %v2603_v32 = vld [vmem:[#allocation2 + $0xf2] sm:$0xff] }
 0x364   : > { %v2538_v1 = vpop.f32.mrf.mxu2  ;;  %3634 = vmatpush.bf16.msra.mxu3 %v5302_v22  ;;  %v3055_v22 = vld [vmem:[#allocation2 + $0x49] sm:$0xff] }
 0x365   : > { %v2092_v63 = vmax.f32 %v2060_v13, 0.0  ;;  %v6914_v25 = vadd.f32 %v2538_v1, %v2401_v36  ;;  %v2506_v36 = vadd.f32 %v6758_v47, %v6740_v60  ;;  %v5318_v60 = vld [vmem:[%s7538_s4 + $0x230] sm:$0xff]  ;;  %v2604_v13 = vld [vmem:[#allocation2 + $0xfa] sm:$0xff] }
 0x366   : > { %v2705_v33 = vpop.f32.mrf.mxu3  ;;  %v2406_v30 = vpop.f32.mrf.mxu1  ;;  %4102 = vmatpush.bf16.msra.mxu1 %v5318_v60  ;;  %v5309_v60 = vld [vmem:[%s7538_s4 + $0x1e8] sm:$0xff] }
 0x367   : > { %2179 = vst [vmem:[#allocation2 + $0x189] sm:$0xff] %v2092_v63  ;;  %v2785_v55 = vadd.f32 %v2705_v33, %v6703_v28  ;;  %v2941_v26 = vpop.f32.mrf.mxu0  ;;  %3869 = vmatpush.bf16.msra.mxu0 %v5309_v60 }
 0x369   : > { %3172 = vmatmul.bf16.vlgmr.msrb.gmra.mxu1 %v3083_v45  ;;  %v6920_v41 = vadd.f32 %v2939_v0, %v2785_v55 }
 0x36a   : > { %4103 = vmatpush.bf16.msra.mxu1 %v5317_v6  ;;  %v2609_v6 = vld [vmem:[#allocation2 + $0x13a] sm:$0xff] }
 0x36c   : > { %v2540_v42 = vpop.f32.mrf.mxu2 }
 0x36d   : > { %v6924_v11 = vadd.f32 %v2540_v42, %v2403_v40 }
 0x36e   : > { %v2707_v18 = vpop.f32.mrf.mxu3  ;;  %v2408_v28 = vpop.f32.mrf.mxu1 }
 0x36f   : > { %v2786_v24 = vadd.f32 %v2707_v18, %v2506_v36  ;;  %v2944_v15 = vpop.f32.mrf.mxu0  ;;  %v6960_v36 = vpack.c.bf16 %v3056_v9, %v3055_v22 }
 0x371   : > { %3406 = vmatmul.bf16.vlgmr.msrb.gmra.mxu2 %v6745_v21  ;;  %v6935_v47 = vadd.f32 %v2941_v26, %v2786_v24  ;;  %v2606_v24 = vld [vmem:[#allocation2 + $0x112] sm:$0xff] }
 0x372   : > { %2983 = vmatmul.bf16.gmra.mxu0 %v6782_v56 }
 0x373   : > { %2749 = vmatmul.bf16.gmra.mxu3 %v6930_v61 }
 0x374   : > { %v2543_v5 = vpop.f32.mrf.mxu2 }
 0x375   : > { %v6939_v27 = vadd.f32 %v2543_v5, %v2406_v30 }
 0x376   : > { %v2710_v43 = vpop.f32.mrf.mxu3  ;;  %v2411_v21 = vpop.f32.mrf.mxu1 }
 0x377   : > { %v2787_v23 = vadd.f32 %v2710_v43, %v6771_v4  ;;  %v2946_v19 = vpop.f32.mrf.mxu0  ;;  %v6951_v4 = vpack.c.bf16 %v2604_v13, %v2603_v32 }
 0x379   : > { %3177 = vmatmul.bf16.gmra.mxu1 %v6942_v38  ;;  %v6945_v40 = vadd.f32 %v2944_v15, %v2787_v23 }
 0x37c   : > { %v2545_v56 = vpop.f32.mrf.mxu2 }
 0x37d   : > { %v6947_v31 = vadd.f32 %v2545_v56, %v2408_v28  ;;  %v2605_v28 = vld [vmem:[#allocation2 + $0x10a] sm:$0xff] }
 0x37e   : > { %v2712_v0 = vpop.f32.mrf.mxu3  ;;  %v2413_v1 = vpop.f32.mrf.mxu1  ;;  %v6975_v5 = vpack.c.bf16 %v2606_v24, %v2605_v28  ;;  %v3059_v28 = vld [vmem:[#allocation2 + $0x79] sm:$0xff] }
 0x37f   : > { %v2788_v58 = vadd.f32 %v2712_v0, %v6780_v50  ;;  %v2949_v63 = vpop.f32.mrf.mxu0 }
 0x381   : > { %3411 = vmatmul.bf16.gmra.mxu2 %v6764_v51  ;;  %v6953_v33 = vadd.f32 %v2946_v19, %v2788_v58  ;;  %v5301_v51 = vld [vmem:[%s7538_s4 + $0x1a8] sm:$0xff] }
 0x382   : > { %2988 = vmatmul.bf16.gmra.mxu0 %v6803_v54  ;;  %3635 = vmatpush.bf16.msra.mxu3 %v5301_v51  ;;  %v3057_v19 = vld [vmem:[#allocation2 + $0x61] sm:$0xff] }
 0x383   : > { %2754 = vmatmul.bf16.gmra.mxu3 %v6951_v4 }
 0x384   : > { %v2548_v30 = vpop.f32.mrf.mxu2 }
 0x385   : > { %v6957_v55 = vadd.f32 %v2548_v30, %v2411_v21  ;;  %v3058_v21 = vld [vmem:[#allocation2 + $0x69] sm:$0xff] }
 0x386   : > { %v2715_v26 = vpop.f32.mrf.mxu3  ;;  %v2416_v45 = vpop.f32.mrf.mxu1  ;;  %v6987_v32 = vpack.c.bf16 %v3058_v21, %v3057_v19  ;;  %v2608_v30 = vld [vmem:[#allocation2 + $0x12a] sm:$0xff] }
 0x387   : > { %v2789_v50 = vadd.f32 %v2715_v26, %v6792_v62  ;;  %v2951_v42 = vpop.f32.mrf.mxu0 }
 0x389   : > { %3182 = vmatmul.bf16.gmra.mxu1 %v6960_v36  ;;  %v6966_v54 = vadd.f32 %v2949_v63, %v2789_v50  ;;  %v2607_v63 = vld [vmem:[#allocation2 + $0x122] sm:$0xff] }
 0x38c   : > { %v2550_v18 = vpop.f32.mrf.mxu2 }
 0x38d   : > { %v6968_v57 = vadd.f32 %v2550_v18, %v2413_v1 }
 0x38e   : > { %v2717_v14 = vpop.f32.mrf.mxu3  ;;  %v2418_v15 = vpop.f32.mrf.mxu1 }
 0x38f   : > { %v2790_v62 = vadd.f32 %v2717_v14, %v6801_v3  ;;  %v2954_v10 = vpop.f32.mrf.mxu0 }
 0x391   : > { %3416 = vmatmul.bf16.gmra.mxu2 %v6785_v34  ;;  %v6980_v43 = vadd.f32 %v2951_v42, %v2790_v62  ;;  %v3060_v42 = vld [vmem:[#allocation2 + $0x81] sm:$0xff] }
 0x392   : > { %2993 = vmatmul.bf16.gmra.mxu0 %v6824_v37 }
 0x393   : > { %2759 = vmatmul.bf16.gmra.mxu3 %v6975_v5 }
 0x394   : > { %v2553_v3 = vpop.f32.mrf.mxu2 }
 0x395   : > { %v6984_v39 = vadd.f32 %v2553_v3, %v2416_v45  ;;  %v2610_v3 = vld [vmem:[#allocation2 + $0x142] sm:$0xff] }
 0x396   : > { %v2720_v23 = vpop.f32.mrf.mxu3  ;;  %v2421_v34 = vpop.f32.mrf.mxu1  ;;  %v7020_v19 = vpack.c.bf16 %v2610_v3, %v2609_v6 }
 0x397   : > { %v2791_v56 = vadd.f32 %v2720_v23, %v6813_v17  ;;  %v2956_v0 = vpop.f32.mrf.mxu0  ;;  %v6996_v17 = vpack.c.bf16 %v2608_v30, %v2607_v63 }
 0x399   : > { %3187 = vmatmul.bf16.gmra.mxu1 %v6987_v32  ;;  %v6990_v13 = vadd.f32 %v2954_v10, %v2791_v56  ;;  %v5316_v56 = vld [vmem:[%s7538_s4 + $0x220] sm:$0xff] }
 0x39a   : > { %4104 = vmatpush.bf16.msra.mxu1 %v5316_v56 }
 0x39c   : > { %v2555_v37 = vpop.f32.mrf.mxu2 }
 0x39d   : > { %v6992_v1 = vadd.f32 %v2555_v37, %v2418_v15  ;;  %v7005_v15 = vpack.c.bf16 %v3060_v42, %v3059_v28  ;;  %v3062_v37 = vld [vmem:[#allocation2 + $0x99] sm:$0xff]  ;;  %v5298_v42 = vld [vmem:[%s7538_s4 + $0x190] sm:$0xff] }
 0x39e   : > { %v2722_v58 = vpop.f32.mrf.mxu3  ;;  %v2423_v9 = vpop.f32.mrf.mxu1 }
 0x39f   : > { %v2792_v26 = vadd.f32 %v2722_v58, %v6822_v16  ;;  %v2959_v45 = vpop.f32.mrf.mxu0  ;;  %v5307_v58 = vld [vmem:[%s7538_s4 + $0x1d8] sm:$0xff] }
 0x3a1   : > { %3421 = vmatmul.bf16.gmra.mxu2 %v6806_v44  ;;  %v6998_v22 = vadd.f32 %v2956_v0, %v2792_v26  ;;  %v5300_v44 = vld [vmem:[%s7538_s4 + $0x1a0] sm:$0xff]  ;;  %v3061_v26 = vld [vmem:[#allocation2 + $0x91] sm:$0xff] }
 0x3a2   : > { %2998 = vmatmul.bf16.gmra.mxu0 %v6848_v2  ;;  %3636 = vmatpush.bf16.msra.mxu3 %v5300_v44 }
 0x3a3   : > { %2764 = vmatmul.bf16.gmra.mxu3 %v6996_v17 }
 0x3a4   : > { %v2558_v50 = vpop.f32.mrf.mxu2 }
 0x3a5   : > { %v7002_v51 = vadd.f32 %v2558_v50, %v2421_v34  ;;  %v5308_v34 = vld [vmem:[%s7538_s4 + $0x1e0] sm:$0xff]  ;;  %v7038_v50 = vpack.c.bf16 %v3062_v37, %v3061_v26 }
 0x3a6   : > { %v2725_v18 = vpop.f32.mrf.mxu3  ;;  %v2426_v14 = vpop.f32.mrf.mxu1  ;;  %3870 = vmatpush.bf16.msra.mxu0 %v5308_v34  ;;  %v5304_v34 = vld [vmem:[%s7538_s4 + $0x1c0] sm:$0xff] }
 0x3a7   : > { %v2793_v16 = vadd.f32 %v2725_v18, %v6834_v52  ;;  %v2961_v24 = vpop.f32.mrf.mxu0  ;;  %v5306_v18 = vld [vmem:[%s7538_s4 + $0x1d0] sm:$0xff] }
 0x3a9   : > { %3192 = vmatmul.bf16.gmra.mxu1 %v7005_v15  ;;  %v7011_v2 = vadd.f32 %v2959_v45, %v2793_v16  ;;  %v5305_v16 = vld [vmem:[%s7538_s4 + $0x1c8] sm:$0xff] }
 0x3aa   : > { %3871 = vmatpush.bf16.msra.mxu0 %v5307_v58 }
 0x3ac   : > { %v2560_v62 = vpop.f32.mrf.mxu2 }
 0x3ad   : > { %v7013_v10 = vadd.f32 %v2560_v62, %v2423_v9  ;;  %v2611_v62 = vld [vmem:[#allocation2 + $0x152] sm:$0xff] }
 0x3ae   : > { %v2727_v60 = vpop.f32.mrf.mxu3  ;;  %v2428_v21 = vpop.f32.mrf.mxu1  ;;  %3872 = vmatpush.bf16.msra.mxu0 %v5306_v18  ;;  %v2848_v18 = vld [vmem:[#allocation2 + $0x188] sm:$0xff] }
 0x3af   : > { %v2794_v52 = vadd.f32 %v2727_v60, %v6843_v35  ;;  %v2964_v23 = vpop.f32.mrf.mxu0  ;;  %v2612_v60 = vld [vmem:[#allocation2 + $0x15a] sm:$0xff] }
 0x3b1   : > { %3426 = vmatmul.bf16.gmra.mxu2 %v6827_v48  ;;  %v7025_v0 = vadd.f32 %v2961_v24, %v2794_v52  ;;  %v5299_v48 = vld [vmem:[%s7538_s4 + $0x198] sm:$0xff] }
 0x3b2   : > { %3003 = vmatmul.bf16.gmra.mxu0 %v6881_v12  ;;  %3637 = vmatpush.bf16.msra.mxu3 %v5299_v48 }
 0x3b3   : > { %2769 = vmatmul.bf16.gmra.mxu3 %v7020_v19  ;;  %3873 = vmatpush.bf16.msra.mxu0 %v5305_v16 }
 0x3b4   : > { %v2563_v35 = vpop.f32.mrf.mxu2 }
 0x3b5   : > { %v7035_v63 = vadd.f32 %v2563_v35, %v2426_v14  ;;  %v3064_v35 = vld [vmem:[#allocation2 + $0xb1] sm:$0xff] }
 0x3b6   : > { %v2730_v30 = vpop.f32.mrf.mxu3  ;;  %v2431_v9 = vpop.f32.mrf.mxu1  ;;  %3638 = vmatpush.bf16.msra.mxu3 %v5298_v42 }
 0x3b7   : > { %v2795_v12 = vadd.f32 %v2730_v30, %v6861_v29  ;;  %v2966_v45 = vpop.f32.mrf.mxu0  ;;  %v5297_v29 = vld [vmem:[%s7538_s4 + $0x188] sm:$0xff]  ;;  %3874 = vmatpush.bf16.msra.mxu0 %v5304_v34 }
 0x3b8   : > { %v3063_v30 = vld [vmem:[#allocation2 + $0xa9] sm:$0xff] }
 0x3b9   : > { %3197 = vmatmul.bf16.gmra.mxu1 %v7038_v50  ;;  %v7047_v14 = vadd.f32 %v2964_v23, %v2795_v12  ;;  %v5296_v23 = vld [vmem:[%s7538_s4 + $0x180] sm:$0xff]  ;;  %v7074_v12 = vpack.c.bf16 %v3064_v35, %v3063_v30  ;;  %v3066_v34 = vld [vmem:[#allocation2 + $0xc9] sm:$0xff] }
 0x3ba   : > { %3639 = vmatpush.bf16.msra.mxu3 %v5297_v29  ;;  %v2613_v29 = vld [vmem:[#allocation2 + $0x16a] sm:$0xff] }
 0x3bc   : > { %v2565_v28 = vpop.f32.mrf.mxu2 }
 0x3bd   : > { %v7055_v24 = vadd.f32 %v2565_v28, %v2428_v21  ;;  %v7065_v21 = vpack.c.bf16 %v2612_v60, %v2611_v62  ;;  %v2847_v60 = vld [vmem:[#allocation2 + $0x180] sm:$0xff] }
 0x3be   : > { %v2732_v44 = vpop.f32.mrf.mxu3  ;;  %v2433_v6 = vpop.f32.mrf.mxu1  ;;  %3640 = vmatpush.bf16.msra.mxu3 %v5296_v23 }
 0x3bf   : > { %v2796_v3 = vadd.f32 %v2732_v44, %v6876_v59  ;;  %v2969_v52 = vpop.f32.mrf.mxu0 }
 0x3c1   : > { %3431 = vmatmul.bf16.gmra.mxu2 %v6851_v49  ;;  %v7067_v56 = vadd.f32 %v2966_v45, %v2796_v3 }
 0x3c2   : > { %3008 = vmatmul.bf16.gmra.mxu0 %v6907_v7 }
 0x3c3   : > { %2774 = vmatmul.bf16.gmra.mxu3 %v7065_v21 }
 0x3c4   : > { %v2568_v59 = vpop.f32.mrf.mxu2 }
 0x3c5   : > { %v7071_v37 = vadd.f32 %v2568_v59, %v2431_v9  ;;  %v2614_v9 = vld [vmem:[#allocation2 + $0x172] sm:$0xff] }
 0x3c6   : > { %v2735_v48 = vpop.f32.mrf.mxu3  ;;  %v2436_v58 = vpop.f32.mrf.mxu1  ;;  %v7083_v3 = vpack.c.bf16 %v2614_v9, %v2613_v29  ;;  %v3521_v29 = vld [vmem:[#allocation2 + $0x38] sm:$0xff] }
 0x3c7   : > { %v2797_v26 = vadd.f32 %v2735_v48, %v6897_v53  ;;  %v2971_v49 = vpop.f32.mrf.mxu0  ;;  %v2864_v53 = vpack.c.bf16 %v2848_v18, %v2847_v60  ;;  %v3065_v48 = vld [vmem:[#allocation2 + $0xc1] sm:$0xff]  ;;  %v3520_v60 = vld [vmem:[#allocation2 + $0x30] sm:$0xff] }
 0x3c9   : > { %3202 = vmatmul.bf16.gmra.mxu1 %v7074_v12  ;;  %v7077_v45 = vadd.f32 %v2969_v52, %v2797_v26  ;;  %v5315_v52 = vld [vmem:[%s7538_s4 + $0x218] sm:$0xff]  ;;  %v7094_v26 = vpack.c.bf16 %v3066_v34, %v3065_v48 }
 0x3ca   : > { %4105 = vmatpush.bf16.msra.mxu1 %v5315_v52 }
 0x3cc   : > { %v2570_v7 = vpop.f32.mrf.mxu2 }
 0x3cd   : > { %v7079_v42 = vadd.f32 %v2570_v7, %v2433_v6 }
 0x3ce   : > { %v2737_v28 = vpop.f32.mrf.mxu3  ;;  %v2438_v16 = vpop.f32.mrf.mxu1 }
 0x3cf   : > { %v2798_v44 = vadd.f32 %v2737_v28, %v6905_v46  ;;  %v2974_v62 = vpop.f32.mrf.mxu0 }
 0x3d1   : > { %3436 = vmatmul.bf16.gmra.mxu2 %v6887_v8  ;;  %v7088_v6 = vadd.f32 %v2971_v49, %v2798_v44 }
 0x3d2   : > { %3013 = vmatmul.bf16.gmra.mxu0 %v2864_v53  ;;  %v3552_v53 = vpack.c.bf16 %v3521_v29, %v3520_v60 }
 0x3d3   : > { %2779 = vmatmul.bf16.gmra.mxu3 %v7083_v3 }
 0x3d4   : > { %v2573_v23 = vpop.f32.mrf.mxu2 }
 0x3d5   : > { %v7091_v46 = vadd.f32 %v2573_v23, %v2436_v58 }
 0x3d6   : > { %v2740_v59 = vpop.f32.mrf.mxu3  ;;  %v2441_v35 = vpop.f32.mrf.mxu1 }
 0x3d7   : > { %v2799_v8 = vadd.f32 %v2740_v59, %v6914_v25  ;;  %v2976_v30 = vpop.f32.mrf.mxu0  ;;  %v5327_v25 = vld [vmem:[%s7540_s6 + $0x38] sm:$0xff] }
 0x3d8   : > { %4374 = vmatpush.bf16.msra.mxu2 %v5327_v25  ;;  %v3067_v59 = vld [vmem:[#allocation2 + $0xd9] sm:$0xff] }
 0x3d9   : > { %3207 = vmatmul.bf16.gmra.mxu1 %v7094_v26  ;;  %v7097_v49 = vadd.f32 %v2974_v62, %v2799_v8  ;;  %v3068_v62 = vld [vmem:[#allocation2 + $0xe1] sm:$0xff] }
 0x3dc   : > { %v2575_v7 = vpop.f32.mrf.mxu2 }
 0x3dd   : > { %v7099_v18 = vadd.f32 %v2575_v7, %v2438_v16 }
 0x3de   : > { %v2742_v28 = vpop.f32.mrf.mxu3  ;;  %v2443_v9 = vpop.f32.mrf.mxu1 }
 0x3df   : > { %v2800_v58 = vadd.f32 %v2742_v28, %v6924_v11  ;;  %v2979_v44 = vpop.f32.mrf.mxu0 }
 0x3e1   : > { %3441 = vmatmul.bf16.gmra.mxu2 %v6910_v20  ;;  %v7106_v52 = vadd.f32 %v2976_v30, %v2800_v58  ;;  %v7113_v20 = vpack.c.bf16 %v3068_v62, %v3067_v59  ;;  %v3070_v62 = vld [vmem:[#allocation2 + $0xf9] sm:$0xff] }
 0x3e2   : > { %3875 = vmatmul.bf16.vlgmr.msra.gmra.mxu0 %v6942_v38 }
 0x3e3   : > { %3641 = vmatmul.bf16.vlgmr.msra.gmra.mxu3 %v3552_v53  ;;  %v3522_v53 = vld [vmem:[#allocation2 + $0x48] sm:$0xff] }
 0x3e4   : > { %v2578_v16 = vpop.f32.mrf.mxu2 }
 0x3e5   : > { %v7109_v23 = vadd.f32 %v2578_v16, %v2441_v35  ;;  %v3523_v35 = vld [vmem:[#allocation2 + $0x50] sm:$0xff] }
 0x3e6   : > { %v2745_v11 = vpop.f32.mrf.mxu3  ;;  %v3173_v34 = vpop.f32.mrf.mxu1 }
 0x3e7   : > { %v2801_v48 = vadd.f32 %v2745_v11, %v6939_v27  ;;  %v2981_v8 = vpop.f32.mrf.mxu0  ;;  %v3253_v7 = vadd.f32 %v3173_v34, %v6920_v41  ;;  %v3553_v41 = vpack.c.bf16 %v3523_v35, %v3522_v53  ;;  %v3069_v34 = vld [vmem:[#allocation2 + $0xf1] sm:$0xff] }
 0x3e9   : > { %3212 = vmatmul.bf16.gmra.mxu1 %v7113_v20  ;;  %v7116_v30 = vadd.f32 %v2979_v44, %v2801_v48  ;;  %v5314_v44 = vld [vmem:[%s7538_s4 + $0x210] sm:$0xff] }
 0x3ea   : > { %4106 = vmatpush.bf16.msra.mxu1 %v5314_v44 }
 0x3ec   : > { %v2580_v38 = vpop.f32.mrf.mxu2 }
 0x3ed   : > { %v7118_v28 = vadd.f32 %v2580_v38, %v2443_v9  ;;  %v7133_v38 = vpack.c.bf16 %v3070_v62, %v3069_v34 }
 0x3ee   : > { %v2747_v29 = vpop.f32.mrf.mxu3  ;;  %v3175_v58 = vpop.f32.mrf.mxu1 }
 0x3ef   : > { %v2802_v25 = vadd.f32 %v2747_v29, %v6947_v31  ;;  %v2984_v60 = vpop.f32.mrf.mxu0  ;;  %v3254_v27 = vadd.f32 %v3175_v58, %v6935_v47 }
 0x3f1   : > { %3446 = vmatmul.bf16.gmra.mxu2 %v6930_v61  ;;  %v7126_v16 = vadd.f32 %v2981_v8, %v2802_v25 }
 0x3f2   : > { %3880 = vmatmul.bf16.gmra.mxu0 %v6960_v36 }
 0x3f3   : > { %3646 = vmatmul.bf16.gmra.mxu3 %v3553_v41  ;;  %v3524_v41 = vld [vmem:[#allocation2 + $0x60] sm:$0xff] }
 0x3f4   : > { %v3407_v9 = vpop.f32.mrf.mxu2 }
 0x3f5   : > { %v7129_v31 = vadd.f32 %v3407_v9, %v3253_v7  ;;  %v3525_v7 = vld [vmem:[#allocation2 + $0x68] sm:$0xff]  ;;  %v3072_v9 = vld [vmem:[#allocation2 + $0x111] sm:$0xff] }
 0x3f6   : > { %v2750_v11 = vpop.f32.mrf.mxu3  ;;  %v3178_v47 = vpop.f32.mrf.mxu1 }
 0x3f7   : > { %v2803_v61 = vadd.f32 %v2750_v11, %v6957_v55  ;;  %v2986_v59 = vpop.f32.mrf.mxu0  ;;  %v3255_v48 = vadd.f32 %v3178_v47, %v6945_v40  ;;  %v5326_v40 = vld [vmem:[%s7540_s6 + $0x30] sm:$0xff] }
 0x3f8   : > { %4375 = vmatpush.bf16.msra.mxu2 %v5326_v40  ;;  %v3071_v11 = vld [vmem:[#allocation2 + $0x109] sm:$0xff]  ;;  %v3526_v40 = vld [vmem:[#allocation2 + $0x78] sm:$0xff] }
 0x3f9   : > { %3217 = vmatmul.bf16.gmra.mxu1 %v7133_v38  ;;  %v7136_v8 = vadd.f32 %v2984_v60, %v2803_v61  ;;  %v3554_v60 = vpack.c.bf16 %v3525_v7, %v3524_v41 }
 0x3fc   : > { %v3409_v36 = vpop.f32.mrf.mxu2 }
 0x3fd   : > { %v7138_v29 = vadd.f32 %v3409_v36, %v3254_v27 }
 0x3fe   : > { %v2752_v35 = vpop.f32.mrf.mxu3  ;;  %v3180_v58 = vpop.f32.mrf.mxu1 }
 0x3ff   : > { %v2804_v25 = vadd.f32 %v2752_v35, %v6968_v57  ;;  %v2989_v53 = vpop.f32.mrf.mxu0  ;;  %v3256_v55 = vadd.f32 %v3180_v58, %v6953_v33 }
 0x401   : > { %3451 = vmatmul.bf16.gmra.mxu2 %v6951_v4  ;;  %v7146_v44 = vadd.f32 %v2986_v59, %v2804_v25  ;;  %v7153_v4 = vpack.c.bf16 %v3072_v9, %v3071_v11  ;;  %v3073_v9 = vld [vmem:[#allocation2 + $0x121] sm:$0xff] }
 0x402   : > { %3885 = vmatmul.bf16.gmra.mxu0 %v6987_v32 }
 0x403   : > { %3651 = vmatmul.bf16.gmra.mxu3 %v3554_v60  ;;  %v3074_v60 = vld [vmem:[#allocation2 + $0x129] sm:$0xff] }
 0x404   : > { %v3412_v27 = vpop.f32.mrf.mxu2  ;;  %v7173_v11 = vpack.c.bf16 %v3074_v60, %v3073_v9 }
 0x405   : > { %v7149_v57 = vadd.f32 %v3412_v27, %v3255_v48  ;;  %v3527_v48 = vld [vmem:[#allocation2 + $0x80] sm:$0xff] }
 0x406   : > { %v2755_v62 = vpop.f32.mrf.mxu3  ;;  %v3183_v33 = vpop.f32.mrf.mxu1 }
 0x407   : > { %v2805_v47 = vadd.f32 %v2755_v62, %v6984_v39  ;;  %v2991_v34 = vpop.f32.mrf.mxu0  ;;  %v3257_v61 = vadd.f32 %v3183_v33, %v6966_v54  ;;  %v3555_v54 = vpack.c.bf16 %v3527_v48, %v3526_v40 }
 0x409   : > { %3222 = vmatmul.bf16.gmra.mxu1 %v7153_v4  ;;  %v7156_v59 = vadd.f32 %v2989_v53, %v2805_v47  ;;  %v5313_v53 = vld [vmem:[%s7538_s4 + $0x208] sm:$0xff] }
 0x40a   : > { %4107 = vmatpush.bf16.msra.mxu1 %v5313_v53 }
 0x40c   : > { %v3414_v32 = vpop.f32.mrf.mxu2 }
 0x40d   : > { %v7158_v36 = vadd.f32 %v3414_v32, %v3256_v55 }
 0x40e   : > { %v2757_v35 = vpop.f32.mrf.mxu3  ;;  %v3185_v7 = vpop.f32.mrf.mxu1 }
 0x40f   : > { %v2806_v58 = vadd.f32 %v2757_v35, %v6992_v1  ;;  %v2994_v25 = vpop.f32.mrf.mxu0  ;;  %v3258_v39 = vadd.f32 %v3185_v7, %v6980_v43 }
 0x411   : > { %3456 = vmatmul.bf16.gmra.mxu2 %v6975_v5  ;;  %v7166_v41 = vadd.f32 %v2991_v34, %v2806_v58  ;;  %v3528_v58 = vld [vmem:[#allocation2 + $0x90] sm:$0xff] }
 0x412   : > { %3890 = vmatmul.bf16.gmra.mxu0 %v7005_v15 }
 0x413   : > { %3656 = vmatmul.bf16.gmra.mxu3 %v3555_v54  ;;  %v3076_v54 = vld [vmem:[#allocation2 + $0x141] sm:$0xff] }
 0x414   : > { %v3417_v55 = vpop.f32.mrf.mxu2 }
 0x415   : > { %v7169_v1 = vadd.f32 %v3417_v55, %v3257_v61  ;;  %v3529_v61 = vld [vmem:[#allocation2 + $0x98] sm:$0xff] }
 0x416   : > { %v2760_v27 = vpop.f32.mrf.mxu3  ;;  %v3188_v43 = vpop.f32.mrf.mxu1  ;;  %v3075_v55 = vld [vmem:[#allocation2 + $0x139] sm:$0xff] }
 0x417   : > { %v2807_v5 = vadd.f32 %v2760_v27, %v7002_v51  ;;  %v2996_v62 = vpop.f32.mrf.mxu0  ;;  %v3259_v33 = vadd.f32 %v3188_v43, %v6990_v13  ;;  %v5325_v13 = vld [vmem:[%s7540_s6 + $0x28] sm:$0xff] }
 0x418   : > { %4376 = vmatpush.bf16.msra.mxu2 %v5325_v13 }
 0x419   : > { %3227 = vmatmul.bf16.gmra.mxu1 %v7173_v11  ;;  %v7176_v47 = vadd.f32 %v2994_v25, %v2807_v5  ;;  %v3556_v25 = vpack.c.bf16 %v3529_v61, %v3528_v58 }
 0x41c   : > { %v3419_v15 = vpop.f32.mrf.mxu2 }
 0x41d   : > { %v7178_v34 = vadd.f32 %v3419_v15, %v3258_v39 }
 0x41e   : > { %v2762_v32 = vpop.f32.mrf.mxu3  ;;  %v3190_v35 = vpop.f32.mrf.mxu1 }
 0x41f   : > { %v2808_v48 = vadd.f32 %v2762_v32, %v7013_v10  ;;  %v2999_v7 = vpop.f32.mrf.mxu0  ;;  %v3260_v51 = vadd.f32 %v3190_v35, %v6998_v22  ;;  %v3530_v35 = vld [vmem:[#allocation2 + $0xa8] sm:$0xff] }
 0x421   : > { %3461 = vmatmul.bf16.gmra.mxu2 %v6996_v17  ;;  %v7186_v40 = vadd.f32 %v2996_v62, %v2808_v48  ;;  %v7193_v17 = vpack.c.bf16 %v3076_v54, %v3075_v55  ;;  %v5312_v48 = vld [vmem:[%s7538_s4 + $0x200] sm:$0xff] }
 0x422   : > { %3895 = vmatmul.bf16.gmra.mxu0 %v7038_v50  ;;  %4108 = vmatpush.bf16.msra.mxu1 %v5312_v48 }
 0x423   : > { %3661 = vmatmul.bf16.gmra.mxu3 %v3556_v25  ;;  %v3077_v25 = vld [vmem:[#allocation2 + $0x151] sm:$0xff] }
 0x424   : > { %v3422_v39 = vpop.f32.mrf.mxu2 }
 0x425   : > { %v7189_v10 = vadd.f32 %v3422_v39, %v3259_v33  ;;  %v3531_v33 = vld [vmem:[#allocation2 + $0xb0] sm:$0xff] }
 0x426   : > { %v2765_v53 = vpop.f32.mrf.mxu3  ;;  %v3193_v22 = vpop.f32.mrf.mxu1 }
 0x427   : > { %v2809_v60 = vadd.f32 %v2765_v53, %v7035_v63  ;;  %v3001_v27 = vpop.f32.mrf.mxu0  ;;  %v3261_v43 = vadd.f32 %v3193_v22, %v7011_v2  ;;  %v3557_v2 = vpack.c.bf16 %v3531_v33, %v3530_v35 }
 0x429   : > { %3232 = vmatmul.bf16.gmra.mxu1 %v7193_v17  ;;  %v7196_v9 = vadd.f32 %v2999_v7, %v2809_v60  ;;  %v3533_v60 = vld [vmem:[#allocation2 + $0xc8] sm:$0xff] }
 0x42c   : > { %v3424_v50 = vpop.f32.mrf.mxu2 }
 0x42d   : > { %v7198_v5 = vadd.f32 %v3424_v50, %v3260_v51 }
 0x42e   : > { %v2767_v62 = vpop.f32.mrf.mxu3  ;;  %v3195_v15 = vpop.f32.mrf.mxu1 }
 0x42f   : > { %v2810_v32 = vadd.f32 %v2767_v62, %v7055_v24  ;;  %v3004_v61 = vpop.f32.mrf.mxu0  ;;  %v7202_v63 = vadd.f32 %v3195_v15, %v7025_v0  ;;  %v3078_v24 = vld [vmem:[#allocation2 + $0x159] sm:$0xff] }
 0x430   : > { %v7215_v53 = vpack.c.bf16 %v3078_v24, %v3077_v25  ;;  %v3535_v25 = vld [vmem:[#allocation2 + $0xe0] sm:$0xff] }
 0x431   : > { %3466 = vmatmul.bf16.gmra.mxu2 %v7020_v19  ;;  %v7208_v7 = vadd.f32 %v3001_v27, %v2810_v32 }
 0x432   : > { %3900 = vmatmul.bf16.gmra.mxu0 %v7074_v12 }
 0x433   : > { %3666 = vmatmul.bf16.gmra.mxu3 %v3557_v2  ;;  %v3079_v2 = vld [vmem:[#allocation2 + $0x169] sm:$0xff] }
 0x434   : > { %v3427_v51 = vpop.f32.mrf.mxu2 }
 0x435   : > { %v7211_v13 = vadd.f32 %v3427_v51, %v3261_v43 }
 0x436   : > { %v2770_v0 = vpop.f32.mrf.mxu3  ;;  %v3198_v58 = vpop.f32.mrf.mxu1 }
 0x437   : > { %v2811_v19 = vadd.f32 %v2770_v0, %v7071_v37  ;;  %v3006_v39 = vpop.f32.mrf.mxu0  ;;  %v3263_v54 = vadd.f32 %v3198_v58, %v7047_v14  ;;  %v5324_v14 = vld [vmem:[%s7540_s6 + $0x20] sm:$0xff] }
 0x438   : > { %v3532_v37 = vld [vmem:[#allocation2 + $0xc0] sm:$0xff]  ;;  %4377 = vmatpush.bf16.msra.mxu2 %v5324_v14 }
 0x439   : > { %3237 = vmatmul.bf16.gmra.mxu1 %v7215_v53  ;;  %v7218_v22 = vadd.f32 %v3004_v61, %v2811_v19  ;;  %v3558_v33 = vpack.c.bf16 %v3533_v60, %v3532_v37 }
 0x43c   : > { %v7220_v12 = vpop.f32.mrf.mxu2 }
 0x43e   : > { %v2772_v55 = vpop.f32.mrf.mxu3  ;;  %v3200_v27 = vpop.f32.mrf.mxu1 }
 0x43f   : > { %v2812_v43 = vadd.f32 %v2772_v55, %v7079_v42  ;;  %v3009_v50 = vpop.f32.mrf.mxu0  ;;  %v7224_v62 = vadd.f32 %v3200_v27, %v7067_v56  ;;  %v3080_v42 = vld [vmem:[#allocation2 + $0x171] sm:$0xff] }
 0x441   : > { %3471 = vmatmul.bf16.gmra.mxu2 %v7065_v21  ;;  %v7230_v15 = vadd.f32 %v3006_v39, %v2812_v43  ;;  %v7237_v21 = vpack.c.bf16 %v3080_v42, %v3079_v2  ;;  %v3082_v43 = vld [vmem:[#allocation2 + $0x189] sm:$0xff] }
 0x442   : > { %3905 = vmatmul.bf16.gmra.mxu0 %v7094_v26 }
 0x443   : > { %3671 = vmatmul.bf16.gmra.mxu3 %v3558_v33 }
 0x444   : > { %v3432_v32 = vpop.f32.mrf.mxu2 }
 0x445   : > { %v7233_v61 = vadd.f32 %v3432_v32, %v3263_v54 }
 0x446   : > { %v2775_v56 = vpop.f32.mrf.mxu3  ;;  %v3203_v35 = vpop.f32.mrf.mxu1 }
 0x447   : > { %v2813_v48 = vadd.f32 %v2775_v56, %v7091_v46  ;;  %v3011_v51 = vpop.f32.mrf.mxu0  ;;  %v3265_v24 = vadd.f32 %v3203_v35, %v7077_v45  ;;  %v3534_v46 = vld [vmem:[#allocation2 + $0xd8] sm:$0xff]  ;;  %v3315_v56 = vld [vmem:[#allocation2 + $0x182] sm:$0xff]  ;;  %v3316_v35 = vld [vmem:[#allocation2 + $0x18a] sm:$0xff] }
 0x448   : > { %v3559_v45 = vpack.c.bf16 %v3535_v25, %v3534_v46  ;;  %v5323_v25 = vld [vmem:[%s7540_s6 + $0x18] sm:$0xff] }
 0x449   : > { %3242 = vmatmul.bf16.gmra.mxu1 %v7237_v21  ;;  %v7240_v0 = vadd.f32 %v3009_v50, %v2813_v48  ;;  %v3537_v48 = vld [vmem:[#allocation2 + $0xf8] sm:$0xff]  ;;  %4378 = vmatpush.bf16.msra.mxu2 %v5323_v25 }
 0x44a   : > { %v3988_v46 = vld [vmem:[#allocation2 + $0x32] sm:$0xff] }
 0x44c   : > { %v7242_v26 = vpop.f32.mrf.mxu2 }
 0x44e   : > { %v2777_v58 = vpop.f32.mrf.mxu3  ;;  %v3205_v19 = vpop.f32.mrf.mxu1 }
 0x44f   : > { %v2814_v39 = vadd.f32 %v2777_v58, %v7099_v18  ;;  %v3014_v54 = vpop.f32.mrf.mxu0  ;;  %v7246_v55 = vadd.f32 %v3205_v19, %v7088_v6  ;;  %v3081_v18 = vld [vmem:[#allocation2 + $0x181] sm:$0xff]  ;;  %v3536_v19 = vld [vmem:[#allocation2 + $0xf0] sm:$0xff] }
 0x450   : > { %v7256_v42 = vpack.c.bf16 %v3082_v43, %v3081_v18 }
 0x451   : > { %3476 = vmatmul.bf16.gmra.mxu2 %v7083_v3  ;;  %v7249_v60 = vadd.f32 %v3011_v51, %v2814_v39  ;;  %v3560_v39 = vpack.c.bf16 %v3537_v48, %v3536_v19  ;;  %v3991_v19 = vld [vmem:[#allocation2 + $0x52] sm:$0xff] }
 0x452   : > { %3910 = vmatmul.bf16.gmra.mxu0 %v7113_v20 }
 0x453   : > { %3676 = vmatmul.bf16.gmra.mxu3 %v3559_v45  ;;  %v3989_v45 = vld [vmem:[#allocation2 + $0x3a] sm:$0xff] }
 0x454   : > { %v3437_v27 = vpop.f32.mrf.mxu2 }
 0x455   : > { %v7252_v50 = vadd.f32 %v3437_v27, %v3265_v24 }
 0x456   : > { %v2780_v14 = vpop.f32.mrf.mxu3  ;;  %v3208_v37 = vpop.f32.mrf.mxu1 }
 0x457   : > { %v2815_v33 = vadd.f32 %v2780_v14, %v7109_v23  ;;  %v3016_v6 = vpop.f32.mrf.mxu0  ;;  %v3267_v32 = vadd.f32 %v3208_v37, %v7097_v49  ;;  %v7264_v23 = vpack.c.bf16 %v3316_v35, %v3315_v56  ;;  %v3539_v35 = vld [vmem:[#allocation2 + $0x110] sm:$0xff] }
 0x459   : > { %3247 = vmatmul.bf16.gmra.mxu1 %v7256_v42  ;;  %v7259_v3 = vadd.f32 %v3014_v54, %v2815_v33  ;;  %v4020_v33 = vpack.c.bf16 %v3989_v45, %v3988_v46 }
 0x45c   : > { %v7261_v20 = vpop.f32.mrf.mxu2 }
 0x45e   : > { %v2782_v2 = vpop.f32.mrf.mxu3  ;;  %v3210_v51 = vpop.f32.mrf.mxu1 }
 0x45f   : > { %v2816_v24 = vadd.f32 %v2782_v2, %v7118_v28  ;;  %v3876_v58 = vpop.f32.mrf.mxu0  ;;  %v7267_v49 = vadd.f32 %v3210_v51, %v7106_v52 }
 0x461   : > { %3481 = vmatmul.bf16.gmra.mxu2 %v7264_v23  ;;  %v7273_v54 = vadd.f32 %v3016_v6, %v2816_v24  ;;  %v3538_v24 = vld [vmem:[#allocation2 + $0x108] sm:$0xff] }
 0x462   : > { %3915 = vmatmul.bf16.gmra.mxu0 %v7133_v38 }
 0x463   : > { %3681 = vmatmul.bf16.gmra.mxu3 %v3560_v39 }
 0x464   : > { %v3442_v28 = vpop.f32.mrf.mxu2 }
 0x465   : > { %v7276_v27 = vadd.f32 %v3442_v28, %v3267_v32 }
 0x466   : > { %v3642_v52 = vpop.f32.mrf.mxu3  ;;  %v3213_v43 = vpop.f32.mrf.mxu1 }
 0x467   : > { %v3722_v14 = vadd.f32 %v3642_v52, %v7129_v31  ;;  %v3878_v37 = vpop.f32.mrf.mxu0  ;;  %v3269_v18 = vadd.f32 %v3213_v43, %v7116_v30  ;;  %v3561_v31 = vpack.c.bf16 %v3539_v35, %v3538_v24  ;;  %v3540_v35 = vld [vmem:[#allocation2 + $0x120] sm:$0xff] }
 0x468   : > { %v3992_v24 = vld [vmem:[#allocation2 + $0x62] sm:$0xff] }
 0x469   : > { %4109 = vmatmul.bf16.vlgmr.msra.gmra.mxu1 %v4020_v33  ;;  %v7280_v6 = vadd.f32 %v3876_v58, %v3722_v14  ;;  %v3990_v58 = vld [vmem:[#allocation2 + $0x4a] sm:$0xff] }
 0x46a   : > { %v4021_v52 = vpack.c.bf16 %v3991_v19, %v3990_v58 }
 0x46c   : > { %v7282_v56 = vpop.f32.mrf.mxu2 }
 0x46e   : > { %v3644_v38 = vpop.f32.mrf.mxu3  ;;  %v3215_v2 = vpop.f32.mrf.mxu1 }
 0x46f   : > { %v3723_v48 = vadd.f32 %v3644_v38, %v7138_v29  ;;  %v3881_v32 = vpop.f32.mrf.mxu0  ;;  %v7286_v51 = vadd.f32 %v3215_v2, %v7126_v16 }
 0x471   : > { %v7288_v25 = vadd.f32 %v3878_v37, %v3723_v48  ;;  %v3541_v37 = vld [vmem:[#allocation2 + $0x128] sm:$0xff] }
 0x472   : > { %3920 = vmatmul.bf16.gmra.mxu0 %v7153_v4  ;;  %v3562_v2 = vpack.c.bf16 %v3541_v37, %v3540_v35  ;;  %v3995_v35 = vld [vmem:[#allocation2 + $0x82] sm:$0xff] }
 0x473   : > { %3686 = vmatmul.bf16.gmra.mxu3 %v3561_v31  ;;  %v3993_v31 = vld [vmem:[#allocation2 + $0x6a] sm:$0xff] }
 0x474   : > { %v3447_v30 = vpop.f32.mrf.mxu2 }
 0x475   : > { %v7291_v39 = vadd.f32 %v3447_v30, %v3269_v18 }
 0x476   : > { %v3647_v28 = vpop.f32.mrf.mxu3  ;;  %v3218_v46 = vpop.f32.mrf.mxu1 }
 0x477   : > { %v3724_v29 = vadd.f32 %v3647_v28, %v7149_v57  ;;  %v3883_v45 = vpop.f32.mrf.mxu0  ;;  %v3271_v16 = vadd.f32 %v3218_v46, %v7136_v8  ;;  %v5322_v57 = vld [vmem:[%s7540_s6 + $0x10] sm:$0xff]  ;;  %v4022_v28 = vpack.c.bf16 %v3993_v31, %v3992_v24 }
 0x478   : > { %4379 = vmatpush.bf16.msra.mxu2 %v5322_v57  ;;  %v3994_v57 = vld [vmem:[#allocation2 + $0x7a] sm:$0xff] }
 0x479   : > { %4114 = vmatmul.bf16.gmra.mxu1 %v4021_v52  ;;  %v7295_v43 = vadd.f32 %v3881_v32, %v3724_v29  ;;  %v3543_v52 = vld [vmem:[#allocation2 + $0x140] sm:$0xff]  ;;  %v4023_v31 = vpack.c.bf16 %v3995_v35, %v3994_v57 }
 0x47c   : > { %v7297_v14 = vpop.f32.mrf.mxu2 }
 0x47e   : > { %v3649_v4 = vpop.f32.mrf.mxu3  ;;  %v3220_v33 = vpop.f32.mrf.mxu1 }
 0x47f   : > { %v3725_v38 = vadd.f32 %v3649_v4, %v7158_v36  ;;  %v7301_v18 = vadd.f32 %v3220_v33, %v7146_v44  ;;  %v3886_v8 = vpop.f32.mrf.mxu0  ;;  %v3542_v33 = vld [vmem:[#allocation2 + $0x138] sm:$0xff] }
 0x481   : > { %v7306_v48 = vadd.f32 %v3883_v45, %v3725_v38  ;;  %v3563_v38 = vpack.c.bf16 %v3543_v52, %v3542_v33  ;;  %v3996_v33 = vld [vmem:[#allocation2 + $0x92] sm:$0xff] }
 0x482   : > { %3925 = vmatmul.bf16.gmra.mxu0 %v7173_v11 }
 0x483   : > { %3691 = vmatmul.bf16.gmra.mxu3 %v3562_v2 }
 0x484   : > { %v3452_v32 = vpop.f32.mrf.mxu2 }
 0x485   : > { %v7309_v36 = vadd.f32 %v3452_v32, %v3271_v16 }
 0x486   : > { %v3652_v44 = vpop.f32.mrf.mxu3  ;;  %v3223_v30 = vpop.f32.mrf.mxu1 }
 0x487   : > { %v3726_v58 = vadd.f32 %v3652_v44, %v7169_v1  ;;  %v3273_v19 = vadd.f32 %v3223_v30, %v7156_v59  ;;  %v3888_v29 = vpop.f32.mrf.mxu0 }
 0x489   : > { %4119 = vmatmul.bf16.gmra.mxu1 %v4022_v28  ;;  %v7313_v46 = vadd.f32 %v3886_v8, %v3726_v58  ;;  %v3545_v58 = vld [vmem:[#allocation2 + $0x158] sm:$0xff] }
 0x48c   : > { %v7315_v45 = vpop.f32.mrf.mxu2 }
 0x48e   : > { %v3654_v11 = vpop.f32.mrf.mxu3  ;;  %v3225_v4 = vpop.f32.mrf.mxu1 }
 0x48f   : > { %v3727_v37 = vadd.f32 %v3654_v11, %v7178_v34  ;;  %v7319_v16 = vadd.f32 %v3225_v4, %v7166_v41  ;;  %v3891_v8 = vpop.f32.mrf.mxu0 }
 0x491   : > { %v7321_v1 = vadd.f32 %v3888_v29, %v3727_v37 }
 0x492   : > { %3930 = vmatmul.bf16.gmra.mxu0 %v7193_v17 }
 0x493   : > { %3696 = vmatmul.bf16.gmra.mxu3 %v3563_v38  ;;  %v3997_v38 = vld [vmem:[#allocation2 + $0x9a] sm:$0xff] }
 0x494   : > { %v3457_v59 = vpop.f32.mrf.mxu2  ;;  %v4024_v57 = vpack.c.bf16 %v3997_v38, %v3996_v33  ;;  %v4000_v33 = vld [vmem:[#allocation2 + $0xc2] sm:$0xff]  ;;  %v4001_v38 = vld [vmem:[#allocation2 + $0xca] sm:$0xff] }
 0x495   : > { %v7324_v2 = vadd.f32 %v3457_v59, %v3273_v19 }
 0x496   : > { %v3657_v32 = vpop.f32.mrf.mxu3  ;;  %v3228_v24 = vpop.f32.mrf.mxu1 }
 0x497   : > { %v3728_v34 = vadd.f32 %v3657_v32, %v7189_v10  ;;  %v3275_v41 = vadd.f32 %v3228_v24, %v7176_v47  ;;  %v5321_v10 = vld [vmem:[%s7540_s6 + $0x8] sm:$0xff]  ;;  %v3893_v11 = vpop.f32.mrf.mxu0  ;;  %v3544_v47 = vld [vmem:[#allocation2 + $0x150] sm:$0xff] }
 0x498   : > { %v3564_v52 = vpack.c.bf16 %v3545_v58, %v3544_v47  ;;  %4380 = vmatpush.bf16.msra.mxu2 %v5321_v10 }
 0x499   : > { %4124 = vmatmul.bf16.gmra.mxu1 %v4023_v31  ;;  %v7328_v44 = vadd.f32 %v3891_v8, %v3728_v34  ;;  %v3547_v8 = vld [vmem:[#allocation2 + $0x170] sm:$0xff]  ;;  %v3546_v34 = vld [vmem:[#allocation2 + $0x168] sm:$0xff] }
 0x49c   : > { %v7330_v30 = vpop.f32.mrf.mxu2 }
 0x49e   : > { %v3659_v17 = vpop.f32.mrf.mxu3  ;;  %v3230_v28 = vpop.f32.mrf.mxu1 }
 0x49f   : > { %v3729_v29 = vadd.f32 %v3659_v17, %v7198_v5  ;;  %v7334_v19 = vadd.f32 %v3230_v28, %v7186_v40  ;;  %v3999_v17 = vld [vmem:[#allocation2 + $0xb2] sm:$0xff] }
 0x4a1   : > { %v7339_v4 = vadd.f32 %v3893_v11, %v3729_v29  ;;  %v3549_v11 = vld [vmem:[#allocation2 + $0x188] sm:$0xff] }
 0x4a2   : > { %3935 = vmatmul.bf16.gmra.mxu0 %v7215_v53  ;;  %v3565_v53 = vpack.c.bf16 %v3547_v8, %v3546_v34  ;;  %v3784_v8 = vld [vmem:[#allocation2 + $0x199] sm:$0xff] }
 0x4a3   : > { %3701 = vmatmul.bf16.gmra.mxu3 %v3564_v52  ;;  %v3548_v52 = vld [vmem:[#allocation2 + $0x180] sm:$0xff] }
 0x4a4   : > { %v3462_v37 = vpop.f32.mrf.mxu2 }
 0x4a5   : > { %v7342_v5 = vadd.f32 %v3462_v37, %v3275_v41  ;;  %v3998_v41 = vld [vmem:[#allocation2 + $0xaa] sm:$0xff]  ;;  %v3566_v37 = vpack.c.bf16 %v3549_v11, %v3548_v52 }
 0x4a6   : > { %v3233_v40 = vpop.f32.mrf.mxu1  ;;  %v4025_v29 = vpack.c.bf16 %v3999_v17, %v3998_v41  ;;  %v5382_v41 = vld [vmem:[#allocation2] sm:$0xff] }
 0x4a7   : > { %v3277_v59 = vadd.f32 %v3233_v40, %v7196_v9  ;;  %v3567_v17 = vpack.c.bf16 %v5382_v41, %v5382_v41 }
 0x4a9   : > { %4129 = vmatmul.bf16.gmra.mxu1 %v4024_v57 }
 0x4ac   : > { %v7345_v35 = vpop.f32.mrf.mxu2 }
 0x4ae   : > { %v3235_v32 = vpop.f32.mrf.mxu1 }
 0x4af   : > { %v7348_v24 = vadd.f32 %v3235_v32, %v7208_v7  ;;  %v3785_v32 = vld [vmem:[#allocation2 + $0x1a1] sm:$0xff] }
 0x4b2   : > { %3940 = vmatmul.bf16.gmra.mxu0 %v7237_v21  ;;  %v5320_v21 = vld [vmem:[%s7540_s6] sm:$0xff] }
 0x4b3   : > { %3706 = vmatmul.bf16.gmra.mxu3 %v3565_v53  ;;  %4381 = vmatpush.bf16.msra.mxu2 %v5320_v21 }
 0x4b4   : > { %v3467_v31 = vpop.f32.mrf.mxu2 }
 0x4b5   : > { %v7351_v58 = vadd.f32 %v3467_v31, %v3277_v59  ;;  %v3801_v31 = vpack.c.bf16 %v3785_v32, %v3784_v8 }
 0x4b6   : > { %v3238_v9 = vpop.f32.mrf.mxu1 }
 0x4b7   : > { %v3279_v28 = vadd.f32 %v3238_v9, %v7218_v22 }
 0x4b9   : > { %4134 = vmatmul.bf16.gmra.mxu1 %v4025_v29  ;;  %v4003_v29 = vld [vmem:[#allocation2 + $0xe2] sm:$0xff] }
 0x4bc   : > { %v7354_v10 = vpop.f32.mrf.mxu2 }
 0x4be   : > { %v3240_v7 = vpop.f32.mrf.mxu1 }
 0x4bf   : > { %v7357_v47 = vadd.f32 %v3240_v7, %v7230_v15  ;;  %v4026_v15 = vpack.c.bf16 %v4001_v38, %v4000_v33  ;;  %v4004_v33 = vld [vmem:[#allocation2 + $0xf2] sm:$0xff]  ;;  %v4005_v38 = vld [vmem:[#allocation2 + $0xfa] sm:$0xff] }
 0x4c0   : > { %v4028_v8 = vpack.c.bf16 %v4005_v38, %v4004_v33 }
 0x4c2   : > { %3945 = vmatmul.bf16.gmra.mxu0 %v7256_v42 }
 0x4c3   : > { %3711 = vmatmul.bf16.gmra.mxu3 %v3566_v37 }
 0x4c4   : > { %v3472_v22 = vpop.f32.mrf.mxu2 }
 0x4c5   : > { %v7363_v40 = vadd.f32 %v3472_v22, %v3279_v28  ;;  %v4002_v28 = vld [vmem:[#allocation2 + $0xda] sm:$0xff] }
 0x4c6   : > { %v3243_v59 = vpop.f32.mrf.mxu1  ;;  %v4027_v21 = vpack.c.bf16 %v4003_v29, %v4002_v28  ;;  %v4006_v28 = vld [vmem:[#allocation2 + $0x10a] sm:$0xff]  ;;  %v4007_v29 = vld [vmem:[#allocation2 + $0x112] sm:$0xff] }
 0x4c7   : > { %v3281_v57 = vadd.f32 %v3243_v59, %v7240_v0 }
 0x4c9   : > { %4139 = vmatmul.bf16.gmra.mxu1 %v4026_v15 }
 0x4cc   : > { %v7366_v34 = vpop.f32.mrf.mxu2 }
 0x4ce   : > { %v3245_v53 = vpop.f32.mrf.mxu1 }
 0x4cf   : > { %v7369_v42 = vadd.f32 %v3245_v53, %v7249_v60 }
 0x4d2   : > { %3950 = vmatmul.bf16.gmra.mxu0 %v3801_v31  ;;  %v3662_v31 = vpop.f32.mrf.mxu3 }
 0x4d3   : > { %3716 = vmatmul.bf16.gmra.mxu3 %v3567_v17 }
 0x4d4   : > { %v3477_v9 = vpop.f32.mrf.mxu2 }
 0x4d5   : > { %v7371_v11 = vadd.f32 %v3477_v9, %v3281_v57 }
 0x4d6   : > { %v3248_v0 = vpop.f32.mrf.mxu1 }
 0x4d7   : > { %v3283_v7 = vadd.f32 %v3248_v0, %v7259_v3  ;;  %v7385_v3 = vld [vmem:[%s7539_s5] ss:$0 sm:$0xff] }
 0x4d9   : > { %4144 = vmatmul.bf16.gmra.mxu1 %v4027_v21  ;;  %v4029_v21 = vpack.c.bf16 %v4007_v29, %v4006_v28 }
 0x4dc   : > { %v7374_v52 = vpop.f32.mrf.mxu2 }
 0x4dd   : > { %7662 = vst [vmem:[#allocation12_spill] sm:$0xff] %v7374_v52  ;;  %v4014_v52 = vld [vmem:[#allocation2 + $0x16a] sm:$0xff] }
 0x4de   : > { %v3250_v37 = vpop.f32.mrf.mxu1 }
 0x4df   : > { %v7377_v22 = vadd.f32 %v3250_v37, %v7273_v54  ;;  %v3664_v37 = vpop.f32.mrf.mxu3 }
 0x4e1   : > { %7663 = vst [vmem:[#allocation25_spill] sm:$0xff] %v7377_v22  ;;  %v4012_v22 = vld [vmem:[#allocation2 + $0x152] sm:$0xff] }
 0x4e4   : > { %v3482_v60 = vpop.f32.mrf.mxu2 }
 0x4e5   : > { %v7379_v59 = vadd.f32 %v3482_v60, %v3283_v7  ;;  %v3896_v7 = vpop.f32.mrf.mxu0 }
 0x4e6   : > { %v4110_v15 = vpop.f32.mrf.mxu1 }
 0x4e7   : > { %7664 = vst [vmem:[#allocation18_spill] sm:$0xff] %v7379_v59  ;;  %v4190_v57 = vadd.f32 %v4110_v15, %v7280_v6 }
 0x4e9   : > { %4149 = vmatmul.bf16.gmra.mxu1 %v4028_v8  ;;  %v4226_v53 = vadd.f32 %v7385_v3, %v4190_v57 }
 0x4eb   : > { %v4258_v17 = vmax.f32 %v4226_v53, 0.0  ;;  %v3667_v53 = vpop.f32.mrf.mxu3 }
 0x4ed   : > { %v3898_v15 = vpop.f32.mrf.mxu0 }
 0x4ee   : > { %v4112_v32 = vpop.f32.mrf.mxu1 }
 0x4ef   : > { %v4191_v54 = vadd.f32 %v4112_v32, %v7288_v25 }
 0x4f1   : > { %v4227_v41 = vadd.f32 %v7385_v3, %v4191_v54  ;;  %v4008_v54 = vld [vmem:[#allocation2 + $0x122] sm:$0xff] }
 0x4f3   : > { %v4259_v9 = vmax.f32 %v4227_v41, 0.0  ;;  %v4009_v41 = vld [vmem:[#allocation2 + $0x12a] sm:$0xff] }
 0x4f4   : > { %v4030_v28 = vpack.c.bf16 %v4009_v41, %v4008_v54 }
 0x4f5   : > { %v4290_v0 = vpack.c.bf16 %v4259_v9, %v4258_v17  ;;  %v3901_v29 = vpop.f32.mrf.mxu0 }
 0x4f6   : > { %v4115_v6 = vpop.f32.mrf.mxu1 }
 0x4f7   : > { %4382 = vmatmul.bf16.vlgmr.msra.gmra.mxu2 %v4290_v0  ;;  %v4192_v60 = vadd.f32 %v4115_v6, %v7295_v43  ;;  %v3669_v0 = vpop.f32.mrf.mxu3 }
 0x4f9   : > { %4154 = vmatmul.bf16.gmra.mxu1 %v4029_v21  ;;  %v4228_v38 = vadd.f32 %v7385_v3, %v4192_v60 }
 0x4fb   : > { %v4260_v57 = vmax.f32 %v4228_v38, 0.0 }
 0x4fe   : > { %v4117_v33 = vpop.f32.mrf.mxu1 }
 0x4ff   : > { %v4193_v25 = vadd.f32 %v4117_v33, %v7306_v48  ;;  %v3672_v41 = vpop.f32.mrf.mxu3 }
 0x501   : > { %v4229_v8 = vadd.f32 %v7385_v3, %v4193_v25  ;;  %v3903_v25 = vpop.f32.mrf.mxu0 }
 0x503   : > { %v4261_v32 = vmax.f32 %v4229_v8, 0.0  ;;  %v4010_v8 = vld [vmem:[#allocation2 + $0x13a] sm:$0xff] }
 0x505   : > { %v4291_v17 = vpack.c.bf16 %v4261_v32, %v4260_v57  ;;  %v4011_v57 = vld [vmem:[#allocation2 + $0x142] sm:$0xff] }
 0x506   : > { %v4120_v9 = vpop.f32.mrf.mxu1  ;;  %v4031_v54 = vpack.c.bf16 %v4011_v57, %v4010_v8 }
 0x507   : > { %4387 = vmatmul.bf16.gmra.mxu2 %v4291_v17  ;;  %v4194_v43 = vadd.f32 %v4120_v9, %v7313_v46 }
 0x509   : > { %4159 = vmatmul.bf16.gmra.mxu1 %v4030_v28  ;;  %v4230_v48 = vadd.f32 %v7385_v3, %v4194_v43  ;;  %v3906_v9 = vpop.f32.mrf.mxu0 }
 0x50b   : > { %v4262_v33 = vmax.f32 %v4230_v48, 0.0  ;;  %v3674_v48 = vpop.f32.mrf.mxu3 }
 0x50e   : > { %v4122_v6 = vpop.f32.mrf.mxu1 }
 0x50f   : > { %v4195_v21 = vadd.f32 %v4122_v6, %v7321_v1 }
 0x511   : > { %v4231_v60 = vadd.f32 %v7385_v3, %v4195_v21 }
 0x513   : > { %v4263_v38 = vmax.f32 %v4231_v60, 0.0 }
 0x515   : > { %v4292_v32 = vpack.c.bf16 %v4263_v38, %v4262_v33  ;;  %v4013_v33 = vld [vmem:[#allocation2 + $0x15a] sm:$0xff]  ;;  %v3730_v38 = vadd.f32 %v3662_v31, %v7211_v13 }
 0x516   : > { %v4125_v17 = vpop.f32.mrf.mxu1 }
 0x517   : > { %4392 = vmatmul.bf16.gmra.mxu2 %v4292_v32  ;;  %v4196_v46 = vadd.f32 %v4125_v17, %v7328_v44  ;;  %v3496_v44 = vadd.f32 %v7220_v12, %v7202_v63  ;;  %v4032_v32 = vpack.c.bf16 %v4013_v33, %v4012_v22  ;;  %v3908_v17 = vpop.f32.mrf.mxu0  ;;  %v4015_v63 = vld [vmem:[#allocation2 + $0x172] sm:$0xff]  ;;  %v3732_v12 = vadd.f32 %v3667_v53, %v7233_v61 }
 0x518   : > { %v3498_v33 = vadd.f32 %v7242_v26, %v7224_v62 }
 0x519   : > { %4164 = vmatmul.bf16.gmra.mxu1 %v4031_v54  ;;  %v4232_v43 = vadd.f32 %v7385_v3, %v4196_v46  ;;  %v3731_v54 = vadd.f32 %v3664_v37, %v3496_v44  ;;  %v3964_v46 = vadd.f32 %v3896_v7, %v3730_v38 }
 0x51a   : > { %v3733_v38 = vadd.f32 %v3669_v0, %v3498_v33 }
 0x51b   : > { %v4264_v21 = vmax.f32 %v4232_v43, 0.0 }
 0x51c   : > { %v3967_v44 = vadd.f32 %v3903_v25, %v3733_v38 }
 0x51e   : > { %v4127_v28 = vpop.f32.mrf.mxu1 }
 0x51f   : > { %v4197_v1 = vadd.f32 %v4127_v28, %v7339_v4  ;;  %v3677_v28 = vpop.f32.mrf.mxu3  ;;  %v3911_v31 = vpop.f32.mrf.mxu0 }
 0x521   : > { %v4233_v6 = vadd.f32 %v7385_v3, %v4197_v1  ;;  %v3965_v1 = vadd.f32 %v3898_v15, %v3731_v54  ;;  %v4033_v15 = vpack.c.bf16 %v4015_v63, %v4014_v52 }
 0x523   : > { %v4265_v60 = vmax.f32 %v4233_v6, 0.0 }
 0x525   : > { %v4293_v8 = vpack.c.bf16 %v4265_v60, %v4264_v21 }
 0x526   : > { %v4130_v57 = vpop.f32.mrf.mxu1 }
 0x527   : > { %4397 = vmatmul.bf16.gmra.mxu2 %v4293_v8  ;;  %v4198_v4 = vadd.f32 %v4130_v57, %v3964_v46  ;;  %v3679_v37 = vpop.f32.mrf.mxu3  ;;  %v3966_v8 = vadd.f32 %v3901_v29, %v3732_v12  ;;  %v3500_v29 = vadd.f32 %v7261_v20, %v7246_v55  ;;  %v3736_v20 = vadd.f32 %v3677_v28, %v7276_v27 }
 0x529   : > { %4169 = vmatmul.bf16.gmra.mxu1 %v4032_v32  ;;  %v4234_v6 = vadd.f32 %v7385_v3, %v4198_v4  ;;  %v3735_v0 = vadd.f32 %v3674_v48, %v3500_v29 }
 0x52b   : > { %v4266_v21 = vmax.f32 %v4234_v6, 0.0 }
 0x52e   : > { %v4132_v43 = vpop.f32.mrf.mxu1 }
 0x52f   : > { %v4199_v59 = vadd.f32 %v4132_v43, %v3965_v1  ;;  %v3682_v4 = vpop.f32.mrf.mxu3  ;;  %v3734_v43 = vadd.f32 %v3672_v41, %v7252_v50  ;;  %v4018_v41 = vld [vmem:[#allocation2 + $0x19a] sm:$0xff] }
 0x531   : > { %v4235_v13 = vadd.f32 %v7385_v3, %v4199_v59  ;;  %v3913_v59 = vpop.f32.mrf.mxu0  ;;  %v3968_v25 = vadd.f32 %v3906_v9, %v3734_v43 }
 0x533   : > { %v4267_v60 = vmax.f32 %v4235_v13, 0.0 }
 0x535   : > { %v4294_v22 = vpack.c.bf16 %v4267_v60, %v4266_v21  ;;  %v3969_v21 = vadd.f32 %v3908_v17, %v3735_v0  ;;  %v3502_v17 = vadd.f32 %v7282_v56, %v7267_v49 }
 0x536   : > { %v4135_v7 = vpop.f32.mrf.mxu1 }
 0x537   : > { %4402 = vmatmul.bf16.gmra.mxu2 %v4294_v22  ;;  %v4200_v57 = vadd.f32 %v4135_v7, %v3966_v8  ;;  %v3684_v6 = vpop.f32.mrf.mxu3  ;;  %v4019_v7 = vld [vmem:[#allocation2 + $0x1a2] sm:$0xff]  ;;  %v3737_v38 = vadd.f32 %v3679_v37, %v3502_v17  ;;  %v3970_v8 = vadd.f32 %v3911_v31, %v3736_v20  ;;  %v3504_v31 = vadd.f32 %v7297_v14, %v7286_v51 }
 0x538   : > { %v4035_v48 = vpack.c.bf16 %v4019_v7, %v4018_v41 }
 0x539   : > { %4174 = vmatmul.bf16.gmra.mxu1 %v4033_v15  ;;  %v4236_v54 = vadd.f32 %v7385_v3, %v4200_v57  ;;  %v3916_v26 = vpop.f32.mrf.mxu0 }
 0x53b   : > { %v4268_v53 = vmax.f32 %v4236_v54, 0.0 }
 0x53e   : > { %v4137_v32 = vpop.f32.mrf.mxu1 }
 0x53f   : > { %v4201_v46 = vadd.f32 %v4137_v32, %v3967_v44  ;;  %v3687_v55 = vpop.f32.mrf.mxu3  ;;  %v3971_v32 = vadd.f32 %v3913_v59, %v3737_v38  ;;  %v3739_v59 = vadd.f32 %v3684_v6, %v3504_v31 }
 0x540   : > { %v3740_v51 = vadd.f32 %v3687_v55, %v7309_v36 }
 0x541   : > { %v4237_v61 = vadd.f32 %v7385_v3, %v4201_v46  ;;  %v3918_v22 = vpop.f32.mrf.mxu0 }
 0x542   : > { %v3973_v0 = vadd.f32 %v3918_v22, %v3739_v59 }
 0x543   : > { %v4269_v1 = vmax.f32 %v4237_v61, 0.0 }
 0x545   : > { %v4295_v62 = vpack.c.bf16 %v4269_v1, %v4268_v53 }
 0x546   : > { %v4140_v52 = vpop.f32.mrf.mxu1 }
 0x547   : > { %4407 = vmatmul.bf16.gmra.mxu2 %v4295_v62  ;;  %v4202_v13 = vadd.f32 %v4140_v52, %v3968_v25  ;;  %v3689_v54 = vpop.f32.mrf.mxu3  ;;  %v3738_v62 = vadd.f32 %v3682_v4, %v7291_v39 }
 0x549   : > { %4179 = vmatmul.bf16.gmra.mxu1 %v7264_v23  ;;  %v4238_v63 = vadd.f32 %v7385_v3, %v4202_v13  ;;  %v3921_v57 = vpop.f32.mrf.mxu0  ;;  %v3972_v52 = vadd.f32 %v3916_v26, %v3738_v62  ;;  %v3506_v26 = vadd.f32 %v7315_v45, %v7301_v18 }
 0x54a   : > { %v3974_v7 = vadd.f32 %v3921_v57, %v3740_v51 }
 0x54b   : > { %v4270_v33 = vmax.f32 %v4238_v63, 0.0  ;;  %v3741_v22 = vadd.f32 %v3689_v54, %v3506_v26 }
 0x54e   : > { %v4142_v60 = vpop.f32.mrf.mxu1 }
 0x54f   : > { %v4203_v12 = vadd.f32 %v4142_v60, %v3969_v21  ;;  %v3692_v37 = vpop.f32.mrf.mxu3 }
 0x551   : > { %v4239_v50 = vadd.f32 %v7385_v3, %v4203_v12  ;;  %v3923_v43 = vpop.f32.mrf.mxu0  ;;  %v7428_v12 = vpop.f32.mrf.mxu2 }
 0x553   : > { %v4271_v15 = vmax.f32 %v4239_v50, 0.0 }
 0x555   : > { %v4296_v9 = vpack.c.bf16 %v4271_v15, %v4270_v33 }
 0x556   : > { %v4145_v23 = vpop.f32.mrf.mxu1 }
 0x557   : > { %4412 = vmatmul.bf16.gmra.mxu2 %v4296_v9  ;;  %v4204_v44 = vadd.f32 %v4145_v23, %v3970_v8  ;;  %v3694_v39 = vpop.f32.mrf.mxu3  ;;  %v7436_v9 = vld [vmem:[%s7541_s7] ss:$0 sm:$0xff] }
 0x559   : > { %4184 = vmatmul.bf16.gmra.mxu1 %v4035_v48  ;;  %v4240_v61 = vadd.f32 %v7385_v3, %v4204_v44  ;;  %v3926_v25 = vpop.f32.mrf.mxu0  ;;  %v3975_v48 = vadd.f32 %v3923_v43, %v3741_v22 }
 0x55b   : > { %v4272_v28 = vmax.f32 %v4240_v61, 0.0 }
 0x55e   : > { %v4147_v46 = vpop.f32.mrf.mxu1 }
 0x55f   : > { %v4205_v53 = vadd.f32 %v4147_v46, %v3971_v32  ;;  %v3697_v20 = vpop.f32.mrf.mxu3  ;;  %v3742_v32 = vadd.f32 %v3692_v37, %v7324_v2 }
 0x561   : > { %v4241_v27 = vadd.f32 %v7385_v3, %v4205_v53  ;;  %v3928_v6 = vpop.f32.mrf.mxu0  ;;  %v3976_v62 = vadd.f32 %v3926_v25, %v3742_v32 }
 0x563   : > { %v4273_v1 = vmax.f32 %v4241_v27, 0.0 }
 0x565   : > { %v4297_v49 = vpack.c.bf16 %v4273_v1, %v4272_v28  ;;  %v3508_v28 = vadd.f32 %v7330_v30, %v7319_v16 }
 0x566   : > { %v4150_v56 = vpop.f32.mrf.mxu1 }
 0x567   : > { %4417 = vmatmul.bf16.gmra.mxu2 %v4297_v49  ;;  %v4206_v29 = vadd.f32 %v4150_v56, %v3972_v52  ;;  %v3699_v53 = vpop.f32.mrf.mxu3  ;;  %v3743_v43 = vadd.f32 %v3694_v39, %v3508_v28  ;;  %v3744_v39 = vadd.f32 %v3697_v20, %v7342_v5 }
 0x569   : > { %v4242_v21 = vadd.f32 %v7385_v3, %v4206_v29  ;;  %v3931_v45 = vpop.f32.mrf.mxu0  ;;  %v3977_v29 = vadd.f32 %v3928_v6, %v3743_v43 }
 0x56a   : > { %v3978_v22 = vadd.f32 %v3931_v45, %v3744_v39 }
 0x56b   : > { %v4274_v4 = vmax.f32 %v4242_v21, 0.0 }
 0x56e   : > { %v4152_v13 = vpop.f32.mrf.mxu1 }
 0x56f   : > { %v4207_v60 = vadd.f32 %v4152_v13, %v3973_v0  ;;  %v3702_v21 = vpop.f32.mrf.mxu3 }
 0x571   : > { %v4243_v63 = vadd.f32 %v7385_v3, %v4207_v60  ;;  %v3933_v59 = vpop.f32.mrf.mxu0 }
 0x573   : > { %v4275_v50 = vmax.f32 %v4243_v63, 0.0 }
 0x575   : > { %v4298_v14 = vpack.c.bf16 %v4275_v50, %v4274_v4 }
 0x576   : > { %v4155_v41 = vpop.f32.mrf.mxu1 }
 0x577   : > { %4422 = vmatmul.bf16.gmra.mxu2 %v4298_v14  ;;  %v4208_v15 = vadd.f32 %v4155_v41, %v3974_v7  ;;  %v3510_v41 = vadd.f32 %v7345_v35, %v7334_v19  ;;  %v3704_v7 = vpop.f32.mrf.mxu3 }
 0x579   : > { %v4244_v36 = vadd.f32 %v7385_v3, %v4208_v15  ;;  %v3936_v51 = vpop.f32.mrf.mxu0  ;;  %v3745_v6 = vadd.f32 %v3699_v53, %v3510_v41 }
 0x57a   : > { %v4383_v33 = vpop.f32.mrf.mxu2 }
 0x57b   : > { %v4384_v17 = vadd.f32 %v7436_v9, %v4383_v33  ;;  %v4276_v8 = vmax.f32 %v4244_v36, 0.0  ;;  %v3979_v36 = vadd.f32 %v3933_v59, %v3745_v6 }
 0x57d   : > { %v4463_v54 = vmax.f32 %v4384_v17, 0.0 }
 0x57e   : > { %v4157_v23 = vpop.f32.mrf.mxu1 }
 0x57f   : > { %v4209_v55 = vadd.f32 %v4157_v23, %v3975_v48 }
 0x581   : > { %v4245_v18 = vadd.f32 %v7385_v3, %v4209_v55 }
 0x582   : > { %v4385_v38 = vpop.f32.mrf.mxu2 }
 0x583   : > { %v4277_v57 = vmax.f32 %v4245_v18, 0.0  ;;  %v4386_v44 = vadd.f32 %v7436_v9, %v4385_v38  ;;  %v3938_v18 = vpop.f32.mrf.mxu0 }
 0x585   : > { %v4464_v46 = vmax.f32 %v4386_v44, 0.0  ;;  %v4299_v61 = vpack.c.bf16 %v4277_v57, %v4276_v8  ;;  %v3707_v57 = vpop.f32.mrf.mxu3  ;;  %v3746_v44 = vadd.f32 %v3702_v21, %v7351_v58 }
 0x586   : > { %v4160_v27 = vpop.f32.mrf.mxu1 }
 0x587   : > { %v4495_v1 = vadd.f32 %v4464_v46, %v4463_v54  ;;  %4427 = vmatmul.bf16.gmra.mxu2 %v4299_v61  ;;  %v4210_v56 = vadd.f32 %v4160_v27, %v3976_v62  ;;  %v3512_v61 = vadd.f32 %v7354_v10, %v7348_v24  ;;  %v3980_v28 = vadd.f32 %v3936_v51, %v3746_v44 }
 0x589   : > { %v4246_v37 = vadd.f32 %v7385_v3, %v4210_v56  ;;  %v3747_v27 = vadd.f32 %v3704_v7, %v3512_v61 }
 0x58a   : > { %v4388_v49 = vpop.f32.mrf.mxu2 }
 0x58b   : > { %v4389_v31 = vadd.f32 %v7436_v9, %v4388_v49  ;;  %v4278_v30 = vmax.f32 %v4246_v37, 0.0 }
 0x58d   : > { %v4465_v52 = vmax.f32 %v4389_v31, 0.0  ;;  %v3981_v31 = vadd.f32 %v3938_v18, %v3747_v27  ;;  %v3709_v59 = vpop.f32.mrf.mxu3 }
 0x58e   : > { %v4162_v2 = vpop.f32.mrf.mxu1 }
 0x58f   : > { %v4496_v0 = vadd.f32 %v4495_v1, %v4465_v52  ;;  %v4211_v13 = vadd.f32 %v4162_v2, %v3977_v29  ;;  %v3941_v1 = vpop.f32.mrf.mxu0 }
 0x591   : > { %v4247_v60 = vadd.f32 %v7385_v3, %v4211_v13 }
 0x592   : > { %v4390_v16 = vpop.f32.mrf.mxu2 }
 0x593   : > { %v4279_v63 = vmax.f32 %v4247_v60, 0.0  ;;  %v4391_v25 = vadd.f32 %v7436_v9, %v4390_v16  ;;  %v3748_v60 = vadd.f32 %v3707_v57, %v7363_v40 }
 0x595   : > { %v4466_v4 = vmax.f32 %v4391_v25, 0.0  ;;  %v4300_v50 = vpack.c.bf16 %v4279_v63, %v4278_v30  ;;  %v3514_v25 = vadd.f32 %v7366_v34, %v7357_v47  ;;  %v3982_v51 = vadd.f32 %v3941_v1, %v3748_v60 }
 0x596   : > { %v4165_v14 = vpop.f32.mrf.mxu1 }
 0x597   : > { %v4497_v26 = vadd.f32 %v4496_v0, %v4466_v4  ;;  %4432 = vmatmul.bf16.gmra.mxu2 %v4300_v50  ;;  %v4212_v15 = vadd.f32 %v4165_v14, %v3978_v22  ;;  %v3943_v21 = vpop.f32.mrf.mxu0  ;;  %v3712_v4 = vpop.f32.mrf.mxu3  ;;  %v3749_v50 = vadd.f32 %v3709_v59, %v3514_v25 }
 0x599   : > { %v4248_v5 = vadd.f32 %v7385_v3, %v4212_v15  ;;  %v3983_v22 = vadd.f32 %v3943_v21, %v3749_v50 }
 0x59a   : > { %v4393_v33 = vpop.f32.mrf.mxu2 }
 0x59b   : > { %v4394_v48 = vadd.f32 %v7436_v9, %v4393_v33  ;;  %v4280_v35 = vmax.f32 %v4248_v5, 0.0 }
 0x59d   : > { %v4467_v23 = vmax.f32 %v4394_v48, 0.0 }
 0x59e   : > { %v4167_v55 = vpop.f32.mrf.mxu1 }
 0x59f   : > { %v4498_v20 = vadd.f32 %v4497_v26, %v4467_v23  ;;  %v4213_v17 = vadd.f32 %v4167_v55, %v3979_v36  ;;  %v3946_v7 = vpop.f32.mrf.mxu0  ;;  %v3714_v47 = vpop.f32.mrf.mxu3 }
 0x5a1   : > { %v4249_v38 = vadd.f32 %v7385_v3, %v4213_v17 }
 0x5a2   : > { %v4395_v19 = vpop.f32.mrf.mxu2 }
 0x5a3   : > { %v4281_v8 = vmax.f32 %v4249_v38, 0.0  ;;  %v4396_v45 = vadd.f32 %v7436_v9, %v4395_v19  ;;  %v7665_v19 = vld [vmem:[#allocation12_spill] sm:$0xff] }
 0x5a5   : > { %v4468_v32 = vmax.f32 %v4396_v45, 0.0  ;;  %v4301_v54 = vpack.c.bf16 %v4281_v8, %v4280_v35  ;;  %v3516_v35 = vadd.f32 %v7665_v19, %v7369_v42 }
 0x5a6   : > { %v4170_v46 = vpop.f32.mrf.mxu1 }
 0x5a7   : > { %v4499_v53 = vadd.f32 %v4498_v20, %v4468_v32  ;;  %4437 = vmatmul.bf16.gmra.mxu2 %v4301_v54  ;;  %v4214_v62 = vadd.f32 %v4170_v46, %v3980_v28  ;;  %v3750_v20 = vadd.f32 %v3712_v4, %v7371_v11  ;;  %v3948_v45 = vpop.f32.mrf.mxu0  ;;  %v3751_v57 = vadd.f32 %v3714_v47, %v3516_v35  ;;  %v3717_v61 = vpop.f32.mrf.mxu3 }
 0x5a9   : > { %v4250_v58 = vadd.f32 %v7385_v3, %v4214_v62  ;;  %v3984_v44 = vadd.f32 %v3946_v7, %v3750_v20  ;;  %v3985_v27 = vadd.f32 %v3948_v45, %v3751_v57 }
 0x5aa   : > { %v4398_v43 = vpop.f32.mrf.mxu2 }
 0x5ab   : > { %v4399_v49 = vadd.f32 %v7436_v9, %v4398_v43  ;;  %v4282_v10 = vmax.f32 %v4250_v58, 0.0 }
 0x5ad   : > { %v4469_v56 = vmax.f32 %v4399_v49, 0.0 }
 0x5ae   : > { %v4172_v52 = vpop.f32.mrf.mxu1 }
 0x5af   : > { %v4500_v29 = vadd.f32 %v4499_v53, %v4469_v56  ;;  %v4215_v2 = vadd.f32 %v4172_v52, %v3981_v31  ;;  %v3951_v62 = vpop.f32.mrf.mxu0  ;;  %v7666_v52 = vld [vmem:[#allocation18_spill] sm:$0xff] }
 0x5b0   : > { %v3752_v58 = vadd.f32 %v3717_v61, %v7666_v52 }
 0x5b1   : > { %v4251_v37 = vadd.f32 %v7385_v3, %v4215_v2 }
 0x5b2   : > { %v4400_v24 = vpop.f32.mrf.mxu2  ;;  %v3986_v21 = vadd.f32 %v3951_v62, %v3752_v58 }
 0x5b3   : > { %v4283_v0 = vmax.f32 %v4251_v37, 0.0  ;;  %v4401_v13 = vadd.f32 %v7436_v9, %v4400_v24  ;;  %v3719_v37 = vpop.f32.mrf.mxu3 }
 0x5b5   : > { %v4470_v16 = vmax.f32 %v4401_v13, 0.0  ;;  %v4302_v30 = vpack.c.bf16 %v4283_v0, %v4282_v10  ;;  %v7667_v10 = vld [vmem:[#allocation25_spill] sm:$0xff] }
 0x5b6   : > { %v4175_v63 = vpop.f32.mrf.mxu1  ;;  %v3518_v0 = vadd.f32 %v7428_v12, %v7667_v10 }
 0x5b7   : > { %v4501_v39 = vadd.f32 %v4500_v29, %v4470_v16  ;;  %4442 = vmatmul.bf16.gmra.mxu2 %v4302_v30  ;;  %v4216_v41 = vadd.f32 %v4175_v63, %v3982_v51  ;;  %v3953_v16 = vpop.f32.mrf.mxu0 }
 0x5b8   : > { %v3753_v60 = vadd.f32 %v3719_v37, %v3518_v0 }
 0x5b9   : > { %v4252_v40 = vadd.f32 %v7385_v3, %v4216_v41 }
 0x5ba   : > { %v4403_v14 = vpop.f32.mrf.mxu2 }
 0x5bb   : > { %v4404_v26 = vadd.f32 %v7436_v9, %v4403_v14  ;;  %v4284_v36 = vmax.f32 %v4252_v40, 0.0 }
 0x5bd   : > { %v4471_v6 = vmax.f32 %v4404_v26, 0.0 }
 0x5be   : > { %v4177_v33 = vpop.f32.mrf.mxu1 }
 0x5bf   : > { %v4502_v15 = vadd.f32 %v4501_v39, %v4471_v6  ;;  %v4217_v48 = vadd.f32 %v4177_v33, %v3983_v22  ;;  %v3987_v39 = vadd.f32 %v3953_v16, %v3753_v60 }
 0x5c1   : > { %v4253_v23 = vadd.f32 %v7385_v3, %v4217_v48 }
 0x5c2   : > { %v4405_v34 = vpop.f32.mrf.mxu2 }
 0x5c3   : > { %v4285_v55 = vmax.f32 %v4253_v23, 0.0  ;;  %v4406_v5 = vadd.f32 %v7436_v9, %v4405_v34 }
 0x5c5   : > { %v4472_v17 = vmax.f32 %v4406_v5, 0.0  ;;  %v4303_v18 = vpack.c.bf16 %v4285_v55, %v4284_v36 }
 0x5c6   : > { %v4180_v38 = vpop.f32.mrf.mxu1 }
 0x5c7   : > { %v4503_v8 = vadd.f32 %v4502_v15, %v4472_v17  ;;  %4447 = vmatmul.bf16.gmra.mxu2 %v4303_v18  ;;  %v4218_v54 = vadd.f32 %v4180_v38, %v3984_v44 }
 0x5c9   : > { %v4254_v11 = vadd.f32 %v7385_v3, %v4218_v54 }
 0x5ca   : > { %v4408_v32 = vpop.f32.mrf.mxu2 }
 0x5cb   : > { %v4409_v46 = vadd.f32 %v7436_v9, %v4408_v32  ;;  %v4286_v56 = vmax.f32 %v4254_v11, 0.0 }
 0x5cd   : > { %v4473_v53 = vmax.f32 %v4409_v46, 0.0 }
 0x5ce   : > { %v4182_v28 = vpop.f32.mrf.mxu1 }
 0x5cf   : > { %v4504_v1 = vadd.f32 %v4503_v8, %v4473_v53  ;;  %v4219_v43 = vadd.f32 %v4182_v28, %v3985_v27 }
 0x5d1   : > { %v4255_v42 = vadd.f32 %v7385_v3, %v4219_v43 }
 0x5d2   : > { %v4410_v49 = vpop.f32.mrf.mxu2 }
 0x5d3   : > { %v4287_v31 = vmax.f32 %v4255_v42, 0.0  ;;  %v4411_v59 = vadd.f32 %v7436_v9, %v4410_v49 }
 0x5d5   : > { %v4474_v29 = vmax.f32 %v4411_v59, 0.0  ;;  %v4304_v2 = vpack.c.bf16 %v4287_v31, %v4286_v56 }
 0x5d6   : > { %v4185_v24 = vpop.f32.mrf.mxu1 }
 0x5d7   : > { %v4505_v13 = vadd.f32 %v4504_v1, %v4474_v29  ;;  %4452 = vmatmul.bf16.gmra.mxu2 %v4304_v2  ;;  %v4220_v63 = vadd.f32 %v4185_v24, %v3986_v21 }
 0x5d9   : > { %v4256_v51 = vadd.f32 %v7385_v3, %v4220_v63 }
 0x5da   : > { %v4413_v30 = vpop.f32.mrf.mxu2 }
 0x5db   : > { %v4414_v25 = vadd.f32 %v7436_v9, %v4413_v30  ;;  %v4288_v12 = vmax.f32 %v4256_v51, 0.0 }
 0x5dd   : > { %v4475_v4 = vmax.f32 %v4414_v25, 0.0 }
 0x5de   : > { %v4187_v50 = vpop.f32.mrf.mxu1 }
 0x5df   : > { %v4506_v14 = vadd.f32 %v4505_v13, %v4475_v4  ;;  %v4221_v41 = vadd.f32 %v4187_v50, %v3987_v39 }
 0x5e1   : > { %v4257_v26 = vadd.f32 %v7385_v3, %v4221_v41 }
 0x5e2   : > { %v4415_v6 = vpop.f32.mrf.mxu2 }
 0x5e3   : > { %v4289_v22 = vmax.f32 %v4257_v26, 0.0  ;;  %v4416_v7 = vadd.f32 %v7436_v9, %v4415_v6 }
 0x5e5   : > { %v4476_v33 = vmax.f32 %v4416_v7, 0.0  ;;  %v4305_v40 = vpack.c.bf16 %v4289_v22, %v4288_v12 }
 0x5e7   : > { %v4507_v15 = vadd.f32 %v4506_v14, %v4476_v33  ;;  %4457 = vmatmul.bf16.gmra.mxu2 %v4305_v40 }
 0x5ea   : > { %v4418_v48 = vpop.f32.mrf.mxu2 }
 0x5eb   : > { %v4419_v23 = vadd.f32 %v7436_v9, %v4418_v48 }
 0x5ed   : > { %v4477_v47 = vmax.f32 %v4419_v23, 0.0 }
 0x5ef   : > { %v4508_v34 = vadd.f32 %v4507_v15, %v4477_v47 }
 0x5f2   : > { %v4420_v36 = vpop.f32.mrf.mxu2 }
 0x5f3   : > { %v4421_v55 = vadd.f32 %v7436_v9, %v4420_v36 }
 0x5f5   : > { %v4478_v5 = vmax.f32 %v4421_v55, 0.0 }
 0x5f7   : > { %v4509_v20 = vadd.f32 %v4508_v34, %v4478_v5 }
 0x5fa   : > { %v4423_v3 = vpop.f32.mrf.mxu2 }
 0x5fb   : > { %v4424_v17 = vadd.f32 %v7436_v9, %v4423_v3 }
 0x5fd   : > { %v4479_v18 = vmax.f32 %v4424_v17, 0.0 }
 0x5ff   : > { %v4510_v38 = vadd.f32 %v4509_v20, %v4479_v18 }
 0x602   : > { %v4425_v19 = vpop.f32.mrf.mxu2 }
 0x603   : > { %v4426_v35 = vadd.f32 %v7436_v9, %v4425_v19 }
 0x605   : > { %v4480_v8 = vmax.f32 %v4426_v35, 0.0 }
 0x607   : > { %v4511_v45 = vadd.f32 %v4510_v38, %v4480_v8 }
 0x60a   : > { %v4428_v57 = vpop.f32.mrf.mxu2 }
 0x60b   : > { %v4429_v44 = vadd.f32 %v7436_v9, %v4428_v57 }
 0x60d   : > { %v4481_v32 = vmax.f32 %v4429_v44, 0.0 }
 0x60f   : > { %v4512_v54 = vadd.f32 %v4511_v45, %v4481_v32 }
 0x612   : > { %v4430_v46 = vpop.f32.mrf.mxu2 }
 0x613   : > { %v4431_v61 = vadd.f32 %v7436_v9, %v4430_v46 }
 0x615   : > { %v4482_v53 = vmax.f32 %v4431_v61, 0.0 }
 0x617   : > { %v4513_v27 = vadd.f32 %v4512_v54, %v4482_v53 }
 0x61a   : > { %v4433_v28 = vpop.f32.mrf.mxu2 }
 0x61b   : > { %v4434_v11 = vadd.f32 %v7436_v9, %v4433_v28 }
 0x61d   : > { %v4483_v1 = vmax.f32 %v4434_v11, 0.0 }
 0x61f   : > { %v4514_v43 = vadd.f32 %v4513_v27, %v4483_v1 }
 0x622   : > { %v4435_v62 = vpop.f32.mrf.mxu2 }
 0x623   : > { %v4436_v29 = vadd.f32 %v7436_v9, %v4435_v62 }
 0x625   : > { %v4484_v37 = vmax.f32 %v4436_v29, 0.0 }
 0x627   : > { %v4515_v21 = vadd.f32 %v4514_v43, %v4484_v37 }
 0x62a   : > { %v4438_v42 = vpop.f32.mrf.mxu2 }
 0x62b   : > { %v4439_v2 = vadd.f32 %v7436_v9, %v4438_v42 }
 0x62d   : > { %v4485_v10 = vmax.f32 %v4439_v2, 0.0 }
 0x62f   : > { %v4516_v30 = vadd.f32 %v4515_v21, %v4485_v10 }
 0x632   : > { %v4440_v49 = vpop.f32.mrf.mxu2 }
 0x633   : > { %v4441_v24 = vadd.f32 %v7436_v9, %v4440_v49 }
 0x635   : > { %v4486_v60 = vmax.f32 %v4441_v24, 0.0 }
 0x637   : > { %v4517_v39 = vadd.f32 %v4516_v30, %v4486_v60 }
 0x63a   : > { %v4443_v56 = vpop.f32.mrf.mxu2 }
 0x63b   : > { %v4444_v0 = vadd.f32 %v7436_v9, %v4443_v56 }
 0x63d   : > { %v4487_v63 = vmax.f32 %v4444_v0, 0.0 }
 0x63f   : > { %v4518_v51 = vadd.f32 %v4517_v39, %v4487_v63 }
 0x642   : > { %v4445_v31 = vpop.f32.mrf.mxu2 }
 0x643   : > { %v4446_v16 = vadd.f32 %v7436_v9, %v4445_v31 }
 0x645   : > { %v4488_v4 = vmax.f32 %v4446_v16, 0.0 }
 0x647   : > { %v4519_v6 = vadd.f32 %v4518_v51, %v4488_v4 }
 0x64a   : > { %v4448_v59 = vpop.f32.mrf.mxu2 }
 0x64b   : > { %v4449_v25 = vadd.f32 %v7436_v9, %v4448_v59 }
 0x64d   : > { %v4489_v14 = vmax.f32 %v4449_v25, 0.0 }
 0x64f   : > { %v4520_v7 = vadd.f32 %v4519_v6, %v4489_v14 }
 0x652   : > { %v4450_v52 = vpop.f32.mrf.mxu2 }
 0x653   : > { %v4451_v50 = vadd.f32 %v7436_v9, %v4450_v52 }
 0x655   : > { %v4490_v12 = vmax.f32 %v4451_v50, 0.0 }
 0x657   : > { %v4521_v15 = vadd.f32 %v4520_v7, %v4490_v12 }
 0x65a   : > { %v4453_v58 = vpop.f32.mrf.mxu2 }
 0x65b   : > { %v4454_v41 = vadd.f32 %v7436_v9, %v4453_v58 }
 0x65d   : > { %v4491_v33 = vmax.f32 %v4454_v41, 0.0 }
 0x65f   : > { %v4522_v23 = vadd.f32 %v4521_v15, %v4491_v33 }
 0x662   : > { %v4455_v13 = vpop.f32.mrf.mxu2 }
 0x663   : > { %v4456_v22 = vadd.f32 %v7436_v9, %v4455_v13 }
 0x665   : > { %v4492_v48 = vmax.f32 %v4456_v22, 0.0 }
 0x667   : > { %v4523_v36 = vadd.f32 %v4522_v23, %v4492_v48 }
 0x66a   : > { %v4458_v26 = vpop.f32.mrf.mxu2 }
 0x66b   : > { %v4459_v40 = vadd.f32 %v7436_v9, %v4458_v26 }
 0x66d   : > { %v4493_v47 = vmax.f32 %v4459_v40, 0.0 }
 0x66f   : > { %v4524_v5 = vadd.f32 %v4523_v36, %v4493_v47 }
 0x672   : > { %v4460_v34 = vpop.f32.mrf.mxu2 }
 0x673   : > { %v4461_v55 = vadd.f32 %v7436_v9, %v4460_v34 }
 0x675   : > { %v4494_v20 = vmax.f32 %v4461_v55, 0.0 }
 0x677   : > { %v4525_v3 = vadd.f32 %v4524_v5, %v4494_v20 }
 0x679   : > { %v4526_v17 = vrot.slane %v4525_v3, 4 }
 0x67b   : > { %v4527_v18 = vadd.f32 %v4526_v17, %v4525_v3 }
 0x67d   : > { %v4528_v38 = vrot.slane %v4527_v18, 2 }
 0x67f   : > { %v4529_v19 = vadd.f32 %v4528_v38, %v4527_v18 }
 0x681   : > { %v4530_v35 = vrot.slane %v4529_v19, 1 }
 0x683   : > { %v4531_v8 = vadd.f32 %v4530_v35, %v4529_v19 }
 0x685   : > { %v4532_v45 = vmul.f32 %v4531_v8, %v4531_v8 }
 0x687   : > { %4533 = vadd.xlane.f32.xlu0 %v4532_v45 }
 0x6fa   : > { %v4534_v57 = vpop.xlane.xlu0 %4533 }
 0x6fb   : > { %5376 = vrsqrt.f32 %v4534_v57  ;;  %vm4542_vm4 = vcmp.eq.f32.partialorder %v4534_v57, inf  ;;  %v4545_v27 = vand.u32 2147483648, %v4534_v57  ;;  %vm4544_vm5 = vcmp.eq.f32.partialorder %v4534_v57, 0.0 }
 0x701   : > { %v5377_v44 = vpop.eup %5376 }
 0x702   : > { %v4536_v32 = vmul.f32 %v5377_v44, %v4534_v57 }
 0x704   : > { %v4537_v54 = vmul.f32 %v5377_v44, %v4536_v32 }
 0x706   : > { %v4538_v46 = vmul.f32 0.5, %v4537_v54 }
 0x708   : > { %v4539_v61 = vsub.f32 1.5, %v4538_v46 }
 0x70a   : > { %v4540_v9 = vmul.f32 %v5377_v44, %v4539_v61 }
 0x70c   : > { %v4541_v53 = vmul.f32 %v4540_v9, %v4534_v57 }
 0x70e   : > { %v4543_v28 = vsel %vm4542_vm4, %v4534_v57, %v4541_v53 }
 0x70f   : > { %v4546_v11 = vsel %vm4544_vm5, %v4545_v27, %v4543_v28 }
 0x710   : > { %v4547_v1 = vadd.f32 1e-08, %v4546_v11 }
 0x712   : > { %5378 = vrcp.f32 %v4547_v1  ;;  %v4559_v49 = vand.u32 2147483648, %v4547_v1  ;;  %v4557_v31 = vand.u32 2147483647, %v4547_v1  ;;  %vm4553_vm7 = vweird.f32 %v4547_v1 }
 0x714   : > { %v4560_v52 = vor.u32 1.1754944e-38, %v4559_v49  ;;  %vm4558_vm9 = vcmp.eq.f32.partialorder %v4557_v31, 8.507059e+37 }
 0x718   : > { %v5379_v43 = vpop.eup %5378 }
 0x719   : > { %v4549_v62 = vmul.f32 %v5379_v43, %v4547_v1  ;;  %vm4554_vm6 = vweird.f32 %v5379_v43 }
 0x71a   : > { %vm4555_vm8 = vmor %vm4553_vm7, %vm4554_vm6 }
 0x71b   : > { %v4550_v42 = vsub.f32 1.0, %v4549_v62 }
 0x71d   : > { %v4551_v56 = vmul.f32 %v5379_v43, %v4550_v42 }
 0x71f   : > { %v4552_v59 = vadd.f32 %v5379_v43, %v4551_v56 }
 0x721   : > { %v4556_v58 = vsel %vm4555_vm8, %v5379_v43, %v4552_v59 }
 0x722   : > { %v4561_v29 = vsel %vm4558_vm9, %v4560_v52, %v4556_v58 }
 0x723   : > { %v4562_v2 = vmul.f32 %v4561_v29, %v4531_v8 }
 0x725   : > { %4563 = vst [vmem:[%s308_s13] sm:$0x1] %v4562_v2 }
 0x726   : > { %5410 = shalt.err (!%p5407_p3)
}
 0x727   : > { %5332 = dma.vmem_to_hbm [thread:$0]  (%p5532_p5), %s4576_s10, 16, %s4578_s12, %s4565_s17  }
 0x728 PF: > { %p5338_p4 = scmp.ge.s32.totalorder %s5445_s30, 2  ;;  %s4589_s23 = sand.u32 1, %s5433_s27  }
 0x729   : > { %s4590_s25 = scalar_lea.sflag [#allocation4], %s4589_s23 }
 0x72a   : > { %p5335_p7 = pnand %p5338_p4, %p5536_p6 }
 0x72c   : > { %p5336_p8 = pneg %p5335_p7 }
 0x72e   : > { %5428 = dma.done.wait (%p5336_p8), %s4590_s25, 16  }
 0x72f   : > { %5430 = vsyncadd (%p5336_p8), %s4590_s25, 4294967280  ;;  %p18_p9 = scmp.ge.s32.totalorder %s5519_s11, 4   ;;  %s7668_s27 = smov %s5437_s28 }
 0x730   : > { %s7669_s28 = smov %s5441_s29  ;;  %s7670_s29 = smov %s5530_s14 }
 0x731   : > { %s7671_s30 = smov %s5519_s11  ;;  %20 = sbr.rel (!%p18_p9) target bundleno = 3 (0x3), region = 108 }
 0x736   :  { %4595 = vsyncpa [#allocation4], 1 }
 0x737   :  { %4597 = vsyncpa [#allocation4 + $0x1], 1 }

// kernel: c4_forward.3
= control target key start
LH: loop header
LB: loop body
LE: loop exit
PB: predicated region body
PF: predicated region fallthrough
CT: control target
= control target key end

     0   :  { %s5386_s27 = smov 0   ;;  %s7363_s0 = inlined_call_operand.vmem [shape: f32[2,18,18,8], index: 0, kind: input, shape index: {}]   ;;  %s7364_s1 = inlined_call_operand.vmem [shape: f32[2,1,1,8], index: 1, kind: input, shape index: {}]   ;;  %s7365_s2 = inlined_call_operand.vmem [shape: bf16[9,8,128], index: 2, kind: input, shape index: {}]   ;;  %s7366_s3 = inlined_call_operand.vmem [shape: f32[1,128], index: 3, kind: input, shape index: {}]   ;;  %s7367_s4 = inlined_call_operand.vmem [shape: bf16[9,128,128], index: 4, kind: input, shape index: {}]   ;;  %s7368_s5 = inlined_call_operand.vmem [shape: f32[1,128], index: 5, kind: input, shape index: {}]   ;;  %s7369_s6 = inlined_call_operand.vmem [shape: bf16[128,128], index: 6, kind: input, shape index: {}]   ;;  %s7370_s7 = inlined_call_operand.vmem [shape: f32[1,128], index: 7, kind: input, shape index: {}]   ;;  %s7371_s8 = inlined_call_operand.vmem [shape: f32[2,1,128], index: 8, kind: output, shape index: {}]  }
   0x1 LB: > { %s4619_s28 = sadd.s32 4294967295, %s5337_s27   ;;  %p4623_p0 = scmp.ge.s32.totalorder %s5337_s27, 1  ;;  %s5337_s27 = sphi %s5386_s27, %s18_s27  }
   0x2   : > { %p270_p1 = scmp.lt.s32.totalorder %s5337_s27, 3 }
   0x4   : > { %p271_p2 = pnand %p4623_p0, %p270_p1 }
   0x6   : > { %274 = sbr.rel (%p271_p2) target bundleno = 1821 (0x71d), region = 52 }
   0xb   : > { %v4625_v0 = vld [vmem:[%s7365_s2 + $0x4] sm:$0xf]  ;;  %vm674_vm0 = vcmask 1043456   ;;  %v445_v1 = vld [vmem:[%s7365_s2] sm:$0xf]  ;;  %p305_p3 = scmp.lt.s32.totalorder %s4619_s28, 1 }
   0xc   : > { %v676_v2 = vsel %vm674_vm0, %v4625_v0, 0  ;;  %v816_v3 = vsel %vm674_vm0, %v445_v1, 0  ;;  %v4658_v4 = vld [vmem:[%s7365_s2 + $0x8] sm:$0xf]  ;;  %v4692_v6 = vld [vmem:[%s7365_s2 + $0x10] sm:$0xf] }
   0xd   : > { %685 = vmatpush.bf16.msra.mxu0 %v676_v2  ;;  %5307 = vmatpush.bf16.msra.mxu3 %v676_v2  ;;  %v1087_v5 = vsel %vm674_vm0, %v4658_v4, 0  ;;  %s7496_s28 = smov (!%p305_p3, %s4619_s28), 1  ;;  %v1357_v7 = vsel %vm674_vm0, %v4692_v6, 0  ;;  %vm494_vm1 = vcmask 1046528   ;;  %vm625_vm2 = vcmask 64512  }
   0xe   : > { %825 = vmatpush.bf16.msra.mxu1 %v816_v3  ;;  %1096 = vmatpush.bf16.msra.mxu2 %v1087_v5  ;;  %s5310_s15 = smul.u32 432, %s7496_s28  ;;  %s5417_s18 = scalar_lea.vmem %s7364_s1, %s7496_s28  ;;  %vm907_vm3 = vcmask 1045504  }
   0xf   : > { %v5420_v8 = vld [vmem:[%s5417_s18] ss:$0 sm:$0xff]  ;;  %s315_s26 = scalar_lea.vmem %s7371_s8, %s7496_s28 }
  0x10   : > { %s5425_s21 = scalar_lea.vmem %s7363_s0, %s5310_s15 }
  0x11   : > { %5308 = vmatpush.bf16.msrb.mxu3 %v816_v3  ;;  %1366 = vmatpush.bf16.msrb.mxu0 %v1357_v7  ;;  %v317_v9 = vld [vmem:[%s5425_s21] sm:$0xff]  ;;  %v318_v10 = vld [vmem:[%s5425_s21 + $0x8] sm:$0xff]  ;;  %v319_v11 = vld [vmem:[%s5425_s21 + $0x10] sm:$0x3] }
  0x12   : > { %v375_v12 = vmul.f32 %v5420_v8, %v317_v9  ;;  %v376_v13 = vmul.f32 %v5420_v8, %v318_v10  ;;  %v377_v14 = vmul.f32 %v5420_v8, %v319_v11  ;;  %v353_v15 = vld [vmem:[%s5425_s21 + $0x120] sm:$0xff]  ;;  %v354_v16 = vld [vmem:[%s5425_s21 + $0x128] sm:$0xff]  ;;  %v355_v17 = vld [vmem:[%s5425_s21 + $0x130] sm:$0x3] }
  0x13   : > { %v5437_v18 = vmul.f32 %v5420_v8, %v353_v15  ;;  %v5440_v19 = vmul.f32 %v5420_v8, %v354_v16  ;;  %v5443_v20 = vmul.f32 %v5420_v8, %v355_v17  ;;  %v320_v36 = vld [vmem:[%s5425_s21 + $0x18] sm:$0xff]  ;;  %v321_v37 = vld [vmem:[%s5425_s21 + $0x20] sm:$0xff]  ;;  %v322_v38 = vld [vmem:[%s5425_s21 + $0x28] sm:$0x3] }
  0x14   : > { %v495_v21 = vrot.slane %v375_v12, 1  ;;  %v496_v22 = vrot.slane %v376_v13, 1  ;;  %v498_v23 = vrot.slane %v377_v14, 1  ;;  %v429_v24 = vpack.c.bf16 %v376_v13, %v375_v12  ;;  %v356_v41 = vld [vmem:[%s5425_s21 + $0x138] sm:$0xff]  ;;  %v357_v42 = vld [vmem:[%s5425_s21 + $0x140] sm:$0xff]  ;;  %v323_v6 = vld [vmem:[%s5425_s21 + $0x30] sm:$0xff] }
  0x15   : > { %v555_v25 = vrot.slane %v5437_v18, 1  ;;  %v556_v26 = vrot.slane %v5440_v19, 1  ;;  %v558_v27 = vrot.slane %v5443_v20, 1  ;;  %v908_v30 = vrot.slane %v375_v12, 2  ;;  %v358_v43 = vld [vmem:[%s5425_s21 + $0x148] sm:$0x3] }
  0x16   : > { %v497_v28 = vsel %vm494_vm1, %v495_v21, %v496_v22  ;;  %v499_v29 = vsel %vm494_vm1, %v496_v22, %v498_v23  ;;  %4642 = vmatmul.msk.bf16.vlgmr.msra.gmra.mxu1 %vm625_vm2, %v429_v24  ;;  %v909_v31 = vrot.slane %v376_v13, 2  ;;  %v911_v35 = vrot.slane %v377_v14, 2  ;;  %v324_v7 = vld [vmem:[%s5425_s21 + $0x38] sm:$0xff]  ;;  %v325_v9 = vld [vmem:[%s5425_s21 + $0x40] sm:$0x3]  ;;  %v359_v11 = vld [vmem:[%s5425_s21 + $0x150] sm:$0xff] }
  0x17   : > { %v607_v32 = vpack.c.bf16 %v499_v29, %v497_v28  ;;  %v557_v33 = vsel %vm494_vm1, %v555_v25, %v556_v26  ;;  %v559_v34 = vsel %vm494_vm1, %v556_v26, %v558_v27  ;;  %v378_v46 = vmul.f32 %v5420_v8, %v320_v36  ;;  %v360_v12 = vld [vmem:[%s5425_s21 + $0x158] sm:$0xff]  ;;  %v361_v13 = vld [vmem:[%s5425_s21 + $0x160] sm:$0x3] }
  0x18   : > { %v5456_v39 = vpack.c.bf16 %v559_v34, %v557_v33  ;;  %v910_v40 = vsel %vm907_vm3, %v908_v30, %v909_v31  ;;  %v912_v44 = vsel %vm907_vm3, %v909_v31, %v911_v35  ;;  %v379_v47 = vmul.f32 %v5420_v8, %v321_v37 }
  0x19   : > { %4626 = vmatmul.msk.bf16.vlgmr.msra.gmra.mxu0 %vm625_vm2, %v607_v32  ;;  %v1020_v45 = vpack.c.bf16 %v912_v44, %v910_v40  ;;  %v380_v48 = vmul.f32 %v5420_v8, %v322_v38  ;;  %v5470_v49 = vmul.f32 %v5420_v8, %v356_v41  ;;  %v5473_v50 = vmul.f32 %v5420_v8, %v357_v42  ;;  %v326_v42 = vld [vmem:[%s5425_s21 + $0x48] sm:$0xff]  ;;  %v328_v44 = vld [vmem:[%s5425_s21 + $0x58] sm:$0x3] }
  0x1a   : > { %7396 = vst [vmem:[#allocation3_spill] sm:$0xff] %v5456_v39  ;;  %4638 = vmatmul.msk.bf16.vlgmr.msra.gmra.mxu3 %vm625_vm2, %v5456_v39  ;;  %v5476_v51 = vmul.f32 %v5420_v8, %v358_v43  ;;  %v500_v52 = vrot.slane %v378_v46, 1  ;;  %v501_v53 = vrot.slane %v379_v47, 1  ;;  %v913_v58 = vrot.slane %v378_v46, 2  ;;  %v327_v43 = vld [vmem:[%s5425_s21 + $0x50] sm:$0xff] }
  0x1b   : > { %5309 = vmatpush.bf16.msra.mxu3 %v1087_v5  ;;  %4659 = vmatmul.msk.bf16.vlgmr.msra.gmra.mxu2 %vm625_vm2, %v1020_v45  ;;  %v503_v54 = vrot.slane %v380_v48, 1  ;;  %v560_v55 = vrot.slane %v5470_v49, 1  ;;  %v561_v56 = vrot.slane %v5473_v50, 1  ;;  %v914_v59 = vrot.slane %v379_v47, 2 }
  0x1c   : > { %v563_v57 = vrot.slane %v5476_v51, 1  ;;  %v916_v60 = vrot.slane %v380_v48, 2  ;;  %v502_v61 = vsel %vm494_vm1, %v500_v52, %v501_v53  ;;  %v5484_v63 = vpack.c.bf16 %v379_v47, %v378_v46  ;;  %v362_v46 = vld [vmem:[%s5425_s21 + $0x168] sm:$0xff]  ;;  %v363_v47 = vld [vmem:[%s5425_s21 + $0x170] sm:$0xff]  ;;  %v364_v48 = vld [vmem:[%s5425_s21 + $0x178] sm:$0x3] }
  0x1d   : > { %v504_v62 = vsel %vm494_vm1, %v501_v53, %v503_v54  ;;  %v562_v0 = vsel %vm494_vm1, %v560_v55, %v561_v56  ;;  %v915_v3 = vsel %vm907_vm3, %v913_v58, %v914_v59  ;;  %v381_v14 = vmul.f32 %v5420_v8, %v323_v6 }
  0x1e   : > { %v564_v1 = vsel %vm494_vm1, %v561_v56, %v563_v57  ;;  %v5488_v2 = vpack.c.bf16 %v504_v62, %v502_v61  ;;  %v917_v4 = vsel %vm907_vm3, %v914_v59, %v916_v60  ;;  %v382_v15 = vmul.f32 %v5420_v8, %v324_v7 }
  0x1f   : > { %v5492_v5 = vpack.c.bf16 %v564_v1, %v562_v0  ;;  %v5499_v10 = vpack.c.bf16 %v917_v4, %v915_v3  ;;  %v383_v16 = vmul.f32 %v5420_v8, %v325_v9  ;;  %v5512_v17 = vmul.f32 %v5420_v8, %v359_v11 }
  0x20   : > { %v5515_v21 = vmul.f32 %v5420_v8, %v360_v12  ;;  %v5518_v22 = vmul.f32 %v5420_v8, %v361_v13  ;;  %v505_v23 = vrot.slane %v381_v14, 1  ;;  %v506_v24 = vrot.slane %v382_v15, 1 }
  0x21   : > { %7397 = vst [vmem:[#allocation4_spill] sm:$0xff] %v5492_v5  ;;  %v508_v25 = vrot.slane %v383_v16, 1  ;;  %v565_v26 = vrot.slane %v5512_v17, 1  ;;  %v918_v29 = vrot.slane %v381_v14, 2  ;;  %v919_v30 = vrot.slane %v382_v15, 2 }
  0x22   : > { %v566_v27 = vrot.slane %v5515_v21, 1  ;;  %v568_v28 = vrot.slane %v5518_v22, 1  ;;  %v921_v31 = vrot.slane %v383_v16, 2  ;;  %v507_v32 = vsel %vm494_vm1, %v505_v23, %v506_v24  ;;  %v329_v23 = vld [vmem:[%s5425_s21 + $0x60] sm:$0xff] }
  0x23   : > { %v509_v33 = vsel %vm494_vm1, %v506_v24, %v508_v25  ;;  %v5527_v34 = vpack.c.bf16 %v382_v15, %v381_v14  ;;  %v920_v38 = vsel %vm907_vm3, %v918_v29, %v919_v30  ;;  %v384_v52 = vmul.f32 %v5420_v8, %v326_v42  ;;  %v330_v24 = vld [vmem:[%s5425_s21 + $0x68] sm:$0xff]  ;;  %v331_v25 = vld [vmem:[%s5425_s21 + $0x70] sm:$0x3] }
  0x24   : > { %v567_v35 = vsel %vm494_vm1, %v565_v26, %v566_v27  ;;  %v569_v36 = vsel %vm494_vm1, %v566_v27, %v568_v28  ;;  %v5531_v37 = vpack.c.bf16 %v509_v33, %v507_v32  ;;  %v922_v40 = vsel %vm907_vm3, %v919_v30, %v921_v31 }
  0x25   : > { %v5535_v41 = vpack.c.bf16 %v569_v36, %v567_v35  ;;  %v5542_v45 = vpack.c.bf16 %v922_v40, %v920_v38  ;;  %v385_v53 = vmul.f32 %v5420_v8, %v327_v43  ;;  %v386_v54 = vmul.f32 %v5420_v8, %v328_v44 }
  0x26   : > { %4643 = vmatmul.msk.bf16.gmra.mxu1 %vm625_vm2, %v5484_v63  ;;  %v5555_v55 = vmul.f32 %v5420_v8, %v362_v46  ;;  %v5558_v56 = vmul.f32 %v5420_v8, %v363_v47  ;;  %v5561_v57 = vmul.f32 %v5420_v8, %v364_v48  ;;  %v510_v58 = vrot.slane %v384_v52, 1  ;;  %v332_v48 = vld [vmem:[%s5425_s21 + $0x78] sm:$0xff] }
  0x27   : > { %7398 = vst [vmem:[#allocation5_spill] sm:$0xff] %v5535_v41  ;;  %v511_v59 = vrot.slane %v385_v53, 1  ;;  %v513_v60 = vrot.slane %v386_v54, 1  ;;  %v923_v1 = vrot.slane %v384_v52, 2  ;;  %v924_v3 = vrot.slane %v385_v53, 2 }
  0x28   : > { %v570_v61 = vrot.slane %v5555_v55, 1  ;;  %v571_v62 = vrot.slane %v5558_v56, 1  ;;  %v573_v0 = vrot.slane %v5561_v57, 1  ;;  %v926_v4 = vrot.slane %v386_v54, 2 }
  0x29   : > { %4627 = vmatmul.msk.bf16.gmra.mxu0 %vm625_vm2, %v5488_v2  ;;  %v512_v6 = vsel %vm494_vm1, %v510_v58, %v511_v59  ;;  %v514_v7 = vsel %vm494_vm1, %v511_v59, %v513_v60  ;;  %v5570_v9 = vpack.c.bf16 %v385_v53, %v384_v52  ;;  %v925_v14 = vsel %vm907_vm3, %v923_v1, %v924_v3  ;;  %v333_v52 = vld [vmem:[%s5425_s21 + $0x80] sm:$0xff]  ;;  %v334_v53 = vld [vmem:[%s5425_s21 + $0x88] sm:$0x3] }
  0x2a   : > { %4639 = vmatmul.msk.bf16.gmra.mxu3 %vm625_vm2, %v5492_v5  ;;  %v572_v11 = vsel %vm494_vm1, %v570_v61, %v571_v62  ;;  %v574_v12 = vsel %vm494_vm1, %v571_v62, %v573_v0  ;;  %v5574_v13 = vpack.c.bf16 %v514_v7, %v512_v6  ;;  %v927_v15 = vsel %vm907_vm3, %v924_v3, %v926_v4 }
  0x2b   : > { %4660 = vmatmul.msk.bf16.gmra.mxu2 %vm625_vm2, %v5499_v10  ;;  %v5578_v16 = vpack.c.bf16 %v574_v12, %v572_v11  ;;  %v5585_v26 = vpack.c.bf16 %v927_v15, %v925_v14  ;;  %v387_v27 = vmul.f32 %v5420_v8, %v329_v23  ;;  %v388_v28 = vmul.f32 %v5420_v8, %v330_v24  ;;  %v335_v24 = vld [vmem:[%s5425_s21 + $0x90] sm:$0xff] }
  0x2c   : > { %v389_v29 = vmul.f32 %v5420_v8, %v331_v25  ;;  %v5608_v47 = vpack.c.bf16 %v5440_v19, %v5437_v18  ;;  %v390_v58 = vmul.f32 %v5420_v8, %v332_v48  ;;  %v391_v59 = vmul.f32 %v5420_v8, %v333_v52  ;;  %v336_v25 = vld [vmem:[%s5425_s21 + $0x98] sm:$0xff] }
  0x2d   : > { %7399 = vst [vmem:[#allocation6_spill] sm:$0xff] %v5578_v16  ;;  %v515_v30 = vrot.slane %v387_v27, 1  ;;  %v516_v31 = vrot.slane %v388_v28, 1  ;;  %v928_v33 = vrot.slane %v387_v27, 2  ;;  %v929_v35 = vrot.slane %v388_v28, 2 }
  0x2e   : > { %v518_v32 = vrot.slane %v389_v29, 1  ;;  %v931_v36 = vrot.slane %v389_v29, 2  ;;  %v5598_v42 = vpack.c.bf16 %v388_v28, %v387_v27  ;;  %v392_v60 = vmul.f32 %v5420_v8, %v334_v53  ;;  %v337_v27 = vld [vmem:[%s5425_s21 + $0xa0] sm:$0x3] }
  0x2f   : > { %v517_v38 = vsel %vm494_vm1, %v515_v30, %v516_v31  ;;  %v930_v44 = vsel %vm907_vm3, %v928_v33, %v929_v35  ;;  %v520_v61 = vrot.slane %v390_v58, 1  ;;  %v521_v62 = vrot.slane %v391_v59, 1 }
  0x30   : > { %v519_v40 = vsel %vm494_vm1, %v516_v31, %v518_v32  ;;  %v932_v46 = vsel %vm907_vm3, %v929_v35, %v931_v36  ;;  %v523_v0 = vrot.slane %v392_v60, 1  ;;  %v933_v1 = vrot.slane %v390_v58, 2 }
  0x31   : > { %v5600_v43 = vpack.c.bf16 %v519_v40, %v517_v38  ;;  %v5613_v54 = vpack.c.bf16 %v932_v46, %v930_v44  ;;  %v934_v3 = vrot.slane %v391_v59, 2  ;;  %v936_v4 = vrot.slane %v392_v60, 2  ;;  %v338_v60 = vld [vmem:[%s5425_s21 + $0xa8] sm:$0xff] }
  0x32   : > { %v522_v6 = vsel %vm494_vm1, %v520_v61, %v521_v62  ;;  %v524_v7 = vsel %vm494_vm1, %v521_v62, %v523_v0  ;;  %v5626_v11 = vpack.c.bf16 %v391_v59, %v390_v58  ;;  %v5636_v23 = vpack.c.bf16 %v5473_v50, %v5470_v49  ;;  %v339_v61 = vld [vmem:[%s5425_s21 + $0xb0] sm:$0xff]  ;;  %v340_v62 = vld [vmem:[%s5425_s21 + $0xb8] sm:$0x3] }
  0x33   : > { %7400 = vst [vmem:[#allocation7_spill] sm:$0xff] %v5600_v43  ;;  %v5628_v12 = vpack.c.bf16 %v524_v7, %v522_v6  ;;  %v935_v14 = vsel %vm907_vm3, %v933_v1, %v934_v3  ;;  %v937_v15 = vsel %vm907_vm3, %v934_v3, %v936_v4  ;;  %v393_v29 = vmul.f32 %v5420_v8, %v335_v24  ;;  %v4675_v6 = vld [vmem:[%s7365_s2 + $0xc] sm:$0xf] }
  0x34   : > { %7402 = vst [vmem:[#allocation9_spill] sm:$0xff] %v5636_v23  ;;  %v5641_v28 = vpack.c.bf16 %v937_v15, %v935_v14  ;;  %v394_v30 = vmul.f32 %v5420_v8, %v336_v25  ;;  %v395_v31 = vmul.f32 %v5420_v8, %v337_v27  ;;  %v5664_v59 = vpack.c.bf16 %v5515_v21, %v5512_v17 }
  0x35   : > { %7401 = vst [vmem:[#allocation8_spill] sm:$0xff] %v5628_v12  ;;  %v525_v32 = vrot.slane %v393_v29, 1  ;;  %v938_v36 = vrot.slane %v393_v29, 2  ;;  %v396_v1 = vmul.f32 %v5420_v8, %v338_v60  ;;  %v397_v3 = vmul.f32 %v5420_v8, %v339_v61 }
  0x36   : > { %4644 = vmatmul.msk.bf16.gmra.mxu1 %vm625_vm2, %v5527_v34  ;;  %v526_v33 = vrot.slane %v394_v30, 1  ;;  %v528_v35 = vrot.slane %v395_v31, 1  ;;  %v939_v38 = vrot.slane %v394_v30, 2  ;;  %v941_v40 = vrot.slane %v395_v31, 2  ;;  %7403 = vst [vmem:[#allocation10_spill] sm:$0xff] %v5664_v59 }
  0x37   : > { %v5654_v48 = vpack.c.bf16 %v394_v30, %v393_v29  ;;  %v398_v4 = vmul.f32 %v5420_v8, %v340_v62  ;;  %v1217_v7 = vsel %vm674_vm0, %v4675_v6, 0  ;;  %v530_v14 = vrot.slane %v396_v1, 1 }
  0x38   : > { %v527_v44 = vsel %vm494_vm1, %v525_v32, %v526_v33  ;;  %v529_v46 = vsel %vm494_vm1, %v526_v33, %v528_v35  ;;  %v940_v53 = vsel %vm907_vm3, %v938_v36, %v939_v38  ;;  %v942_v58 = vsel %vm907_vm3, %v939_v38, %v941_v40  ;;  %v341_v40 = vld [vmem:[%s5425_s21 + $0xc0] sm:$0xff] }
  0x39   : > { %4628 = vmatmul.msk.bf16.gmra.mxu0 %vm625_vm2, %v5531_v37  ;;  %v5656_v52 = vpack.c.bf16 %v529_v46, %v527_v44  ;;  %v5669_v0 = vpack.c.bf16 %v942_v58, %v940_v53  ;;  %v531_v15 = vrot.slane %v397_v3, 1  ;;  %v533_v24 = vrot.slane %v398_v4, 1  ;;  %v342_v44 = vld [vmem:[%s5425_s21 + $0xc8] sm:$0xff]  ;;  %v343_v46 = vld [vmem:[%s5425_s21 + $0xd0] sm:$0x3] }
  0x3a   : > { %4640 = vmatmul.msk.bf16.gmra.mxu3 %vm625_vm2, %v5535_v41  ;;  %v943_v25 = vrot.slane %v396_v1, 2  ;;  %v944_v27 = vrot.slane %v397_v3, 2  ;;  %v946_v29 = vrot.slane %v398_v4, 2  ;;  %v5686_v32 = vpack.c.bf16 %v397_v3, %v396_v1  ;;  %v4709_v58 = vld [vmem:[%s7365_s2 + $0x14] sm:$0xf] }
  0x3b   : > { %4661 = vmatmul.msk.bf16.gmra.mxu2 %vm625_vm2, %v5542_v45  ;;  %v532_v30 = vsel %vm494_vm1, %v530_v14, %v531_v15  ;;  %v534_v31 = vsel %vm494_vm1, %v531_v15, %v533_v24  ;;  %v5696_v38 = vpack.c.bf16 %v5558_v56, %v5555_v55  ;;  %v1494_v60 = vsel %vm674_vm0, %v4709_v58, 0 }
  0x3c   : > { %v5688_v33 = vpack.c.bf16 %v534_v31, %v532_v30  ;;  %v945_v35 = vsel %vm907_vm3, %v943_v25, %v944_v27  ;;  %v947_v36 = vsel %vm907_vm3, %v944_v27, %v946_v29  ;;  %v399_v61 = vmul.f32 %v5420_v8, %v341_v40  ;;  %1503 = vmatpush.bf16.msrb.mxu1 %v1494_v60  ;;  %v344_v60 = vld [vmem:[%s5425_s21 + $0xd8] sm:$0xff] }
  0x3d   : > { %7404 = vst [vmem:[#allocation11_spill] sm:$0xff] %v5696_v38  ;;  %v5701_v53 = vpack.c.bf16 %v947_v36, %v945_v35  ;;  %v400_v62 = vmul.f32 %v5420_v8, %v342_v44  ;;  %v401_v1 = vmul.f32 %v5420_v8, %v343_v46  ;;  %v968_v14 = vrot.slane %v5437_v18, 2 }
  0x3e   : > { %v535_v3 = vrot.slane %v399_v61, 1  ;;  %v969_v15 = vrot.slane %v5440_v19, 2  ;;  %v948_v24 = vrot.slane %v399_v61, 2 }
  0x3f   : > { %v536_v4 = vrot.slane %v400_v62, 1  ;;  %v538_v6 = vrot.slane %v401_v1, 1  ;;  %v949_v25 = vrot.slane %v400_v62, 2  ;;  %v951_v27 = vrot.slane %v401_v1, 2 }
  0x40   : > { %v5721_v31 = vpack.c.bf16 %v400_v62, %v399_v61  ;;  %v970_v36 = vsel %vm907_vm3, %v968_v14, %v969_v15  ;;  %v345_v61 = vld [vmem:[%s5425_s21 + $0xe0] sm:$0xff]  ;;  %v346_v62 = vld [vmem:[%s5425_s21 + $0xe8] sm:$0x3] }
  0x41   : > { %v537_v29 = vsel %vm494_vm1, %v535_v3, %v536_v4  ;;  %v539_v30 = vsel %vm494_vm1, %v536_v4, %v538_v6  ;;  %v950_v19 = vsel %vm907_vm3, %v948_v24, %v949_v25  ;;  %v952_v40 = vsel %vm907_vm3, %v949_v25, %v951_v27 }
  0x42   : > { %v5725_v18 = vpack.c.bf16 %v539_v30, %v537_v29  ;;  %v5736_v1 = vpack.c.bf16 %v952_v40, %v950_v19  ;;  %v402_v3 = vmul.f32 %v5420_v8, %v344_v60  ;;  %v403_v4 = vmul.f32 %v5420_v8, %v345_v61 }
  0x43   : > { %v404_v6 = vmul.f32 %v5420_v8, %v346_v62 }
  0x44   : > { %v540_v24 = vrot.slane %v402_v3, 1  ;;  %v541_v25 = vrot.slane %v403_v4, 1  ;;  %v953_v40 = vrot.slane %v402_v3, 2 }
  0x45   : > { %v543_v27 = vrot.slane %v404_v6, 1  ;;  %v956_v60 = vrot.slane %v404_v6, 2 }
  0x46   : > { %4645 = vmatmul.msk.bf16.gmra.mxu1 %vm625_vm2, %v5570_v9  ;;  %v542_v61 = vsel %vm494_vm1, %v540_v24, %v541_v25 }
  0x47   : > { %v544_v62 = vsel %vm494_vm1, %v541_v25, %v543_v27  ;;  %v347_v27 = vld [vmem:[%s5425_s21 + $0xf0] sm:$0xff] }
  0x49   : > { %4629 = vmatmul.msk.bf16.gmra.mxu0 %vm625_vm2, %v5574_v13 }
  0x4a   : > { %4641 = vmatmul.msk.bf16.gmra.mxu3 %vm625_vm2, %v5578_v16  ;;  %v5756_v16 = vpack.c.bf16 %v403_v4, %v402_v3 }
  0x4b   : > { %4662 = vmatmul.msk.bf16.gmra.mxu2 %vm625_vm2, %v5585_v26 }
  0x56   : > { %4646 = vmatmul.msk.bf16.gmra.mxu1 %vm625_vm2, %v5598_v42 }
  0x59   : > { %4630 = vmatmul.msk.bf16.gmra.mxu0 %vm625_vm2, %v5600_v43 }
  0x5a   : > { %4654 = vmatmul.msk.bf16.vlgmr.msrb.gmra.mxu3 %vm625_vm2, %v5608_v47 }
  0x5b   : > { %4663 = vmatmul.msk.bf16.gmra.mxu2 %vm625_vm2, %v5613_v54  ;;  %1226 = vmatpush.bf16.msrb.mxu3 %v1217_v7  ;;  %v971_v7 = vrot.slane %v5443_v20, 2 }
  0x5d   : > { %v972_v20 = vsel %vm907_vm3, %v969_v15, %v971_v7 }
  0x5e   : > { %v5731_v46 = vpack.c.bf16 %v972_v20, %v970_v36  ;;  %v974_v36 = vrot.slane %v5473_v50, 2  ;;  %v976_v20 = vrot.slane %v5476_v51, 2 }
  0x60   : > { %7405 = vst [vmem:[#allocation12_spill] sm:$0xff] %v5731_v46  ;;  %v977_v50 = vsel %vm907_vm3, %v974_v36, %v976_v20 }
  0x66   : > { %4647 = vmatmul.msk.bf16.gmra.mxu1 %vm625_vm2, %v5626_v11 }
  0x69   : > { %4631 = vmatmul.msk.bf16.gmra.mxu0 %vm625_vm2, %v5628_v12 }
  0x6a   : > { %4655 = vmatmul.msk.bf16.gmra.mxu3 %vm625_vm2, %v5636_v23 }
  0x6b   : > { %4664 = vmatmul.msk.bf16.gmra.mxu2 %vm625_vm2, %v5641_v28 }
  0x76   : > { %4648 = vmatmul.msk.bf16.gmra.mxu1 %vm625_vm2, %v5654_v48 }
  0x79   : > { %4632 = vmatmul.msk.bf16.gmra.mxu0 %vm625_vm2, %v5656_v52 }
  0x7a   : > { %4656 = vmatmul.msk.bf16.gmra.mxu3 %vm625_vm2, %v5664_v59 }
  0x7b   : > { %4665 = vmatmul.msk.bf16.gmra.mxu2 %vm625_vm2, %v5669_v0 }
  0x86   : > { %4649 = vmatmul.msk.bf16.gmra.mxu1 %vm625_vm2, %v5686_v32 }
  0x89   : > { %4633 = vmatmul.msk.bf16.gmra.mxu0 %vm625_vm2, %v5688_v33 }
  0x8a   : > { %4657 = vmatmul.msk.bf16.gmra.mxu3 %vm625_vm2, %v5696_v38 }
  0x8b   : > { %4666 = vmatmul.msk.bf16.gmra.mxu2 %vm625_vm2, %v5701_v53 }
  0x93   : > { %v827_v35 = vpop.f32.mrf.mxu1 }
  0x96   : > { %v687_v44 = vpop.f32.mrf.mxu0  ;;  %4650 = vmatmul.msk.bf16.gmra.mxu1 %vm625_vm2, %v5721_v31 }
  0x97   : > { %v828_v58 = vadd.f32 %v827_v35, %v687_v44  ;;  %v973_v35 = vrot.slane %v5470_v49, 2  ;;  %v954_v44 = vrot.slane %v403_v4, 2 }
  0x99   : > { %4634 = vmatmul.msk.bf16.gmra.mxu0 %vm625_vm2, %v5725_v18  ;;  %v975_v49 = vsel %vm907_vm3, %v973_v35, %v974_v36  ;;  %v955_v6 = vsel %vm907_vm3, %v953_v40, %v954_v44  ;;  %v349_v35 = vld [vmem:[%s5425_s21 + $0x100] sm:$0x3]  ;;  %v405_v40 = vmul.f32 %v5420_v8, %v347_v27  ;;  %v981_v27 = vrot.slane %v5518_v22, 2 }
  0x9a   : > { %4671 = vmatmul.msk.bf16.vlgmr.msra.gmra.mxu3 %vm625_vm2, %v5731_v46  ;;  %v5768_v25 = vpack.c.bf16 %v977_v50, %v975_v49 }
  0x9b   : > { %v829_v7 = vpop.f32.mrf.mxu1  ;;  %4667 = vmatmul.msk.bf16.gmra.mxu2 %vm625_vm2, %v5736_v1 }
  0x9c   : > { %7407 = vst [vmem:[#allocation14_spill] sm:$0xff] %v5768_v25 }
  0x9d   : > { %v5747_v14 = vpop.f32.mrf.mxu3 }
  0x9e   : > { %v689_v15 = vpop.f32.mrf.mxu0  ;;  %v1098_v29 = vpop.f32.mrf.mxu2 }
  0x9f   : > { %v830_v30 = vadd.f32 %v829_v7, %v689_v15  ;;  %v5752_v19 = vadd.f32 %v1098_v29, %v828_v58  ;;  %v5762_v58 = vpack.c.bf16 %v544_v62, %v542_v61  ;;  %v957_v15 = vsel %vm907_vm3, %v954_v44, %v956_v60  ;;  %v348_v29 = vld [vmem:[%s5425_s21 + $0xf8] sm:$0xff] }
  0xa0   : > { %v5775_v20 = vpack.c.bf16 %v957_v15, %v955_v6  ;;  %v406_v44 = vmul.f32 %v5420_v8, %v348_v29  ;;  %v407_v60 = vmul.f32 %v5420_v8, %v349_v35  ;;  %v958_v35 = vrot.slane %v405_v40, 2 }
  0xa1   : > { %7406 = vst [vmem:[#allocation13_spill] sm:$0xff] %v5762_v58 }
  0xa2   : > { %v546_v49 = vrot.slane %v406_v44, 1  ;;  %v548_v50 = vrot.slane %v407_v60, 1  ;;  %v959_v38 = vrot.slane %v406_v44, 2  ;;  %v961_v41 = vrot.slane %v407_v60, 2 }
  0xa3   : > { %v832_v7 = vpop.f32.mrf.mxu1 }
  0xa4   : > { %v549_v5 = vsel %vm494_vm1, %v546_v49, %v548_v50  ;;  %v960_v60 = vsel %vm907_vm3, %v958_v35, %v959_v38  ;;  %v350_v50 = vld [vmem:[%s5425_s21 + $0x108] sm:$0xff] }
  0xa5   : > { %v5760_v51 = vpop.f32.mrf.mxu3 }
  0xa6   : > { %v692_v24 = vpop.f32.mrf.mxu0  ;;  %4651 = vmatmul.msk.bf16.gmra.mxu1 %vm625_vm2, %v5756_v16  ;;  %v1100_v3 = vpop.f32.mrf.mxu2 }
  0xa7   : > { %v833_v4 = vadd.f32 %v832_v7, %v692_v24  ;;  %v5773_v36 = vadd.f32 %v1100_v3, %v830_v30  ;;  %v545_v7 = vrot.slane %v405_v40, 1  ;;  %v978_v24 = vrot.slane %v5512_v17, 2 }
  0xa8   : > { %v979_v3 = vrot.slane %v5515_v21, 2 }
  0xa9   : > { %4635 = vmatmul.msk.bf16.gmra.mxu0 %vm625_vm2, %v5762_v58  ;;  %v547_v59 = vsel %vm494_vm1, %v545_v7, %v546_v49 }
  0xaa   : > { %4672 = vmatmul.msk.bf16.gmra.mxu3 %vm625_vm2, %v5768_v25  ;;  %v5795_v25 = vpack.c.bf16 %v406_v44, %v405_v40  ;;  %v980_v17 = vsel %vm907_vm3, %v978_v24, %v979_v3  ;;  %v982_v21 = vsel %vm907_vm3, %v979_v3, %v981_v27  ;;  %v352_v24 = vld [vmem:[%s5425_s21 + $0x118] sm:$0x3] }
  0xab   : > { %v834_v61 = vpop.f32.mrf.mxu1  ;;  %4668 = vmatmul.msk.bf16.gmra.mxu2 %vm625_vm2, %v5775_v20  ;;  %v5807_v49 = vpack.c.bf16 %v982_v21, %v980_v17  ;;  %v4726_v17 = vld [vmem:[%s7365_s2 + $0x18] sm:$0xf] }
  0xad   : > { %v5786_v30 = vpop.f32.mrf.mxu3  ;;  %7408 = vst [vmem:[#allocation15_spill] sm:$0xff] %v5807_v49 }
  0xae   : > { %v694_v62 = vpop.f32.mrf.mxu0  ;;  %v1103_v6 = vpop.f32.mrf.mxu2 }
  0xaf   : > { %v835_v15 = vadd.f32 %v834_v61, %v694_v62  ;;  %v5791_v29 = vadd.f32 %v1103_v6, %v833_v4  ;;  %v5801_v4 = vpack.c.bf16 %v549_v5, %v547_v59  ;;  %v962_v62 = vsel %vm907_vm3, %v959_v38, %v961_v41  ;;  %v351_v6 = vld [vmem:[%s5425_s21 + $0x110] sm:$0xff]  ;;  %v4743_v38 = vld [vmem:[%s7365_s2 + $0x1c] sm:$0xf] }
  0xb0   : > { %v5814_v27 = vpack.c.bf16 %v962_v62, %v960_v60  ;;  %v408_v5 = vmul.f32 %v5420_v8, %v350_v50  ;;  %v409_v41 = vmul.f32 %v5420_v8, %v351_v6  ;;  %v410_v59 = vmul.f32 %v5420_v8, %v352_v24 }
  0xb1   : > { %v1764_v35 = vsel %vm674_vm0, %v4743_v38, 0  ;;  %v983_v6 = vrot.slane %v5555_v55, 2  ;;  %v984_v24 = vrot.slane %v5558_v56, 2  ;;  %v986_v38 = vrot.slane %v5561_v57, 2 }
  0xb2   : > { %1773 = vmatpush.bf16.msra.mxu3 %v1764_v35  ;;  %v550_v60 = vrot.slane %v408_v5, 1  ;;  %v551_v8 = vrot.slane %v409_v41, 1  ;;  %v553_v62 = vrot.slane %v410_v59, 1  ;;  %v963_v23 = vrot.slane %v408_v5, 2 }
  0xb3   : > { %v837_v61 = vpop.f32.mrf.mxu1  ;;  %v964_v39 = vrot.slane %v409_v41, 2  ;;  %v966_v46 = vrot.slane %v410_v59, 2  ;;  %v985_v57 = vsel %vm907_vm3, %v983_v6, %v984_v24 }
  0xb4   : > { %v554_v55 = vsel %vm494_vm1, %v551_v8, %v553_v62 }
  0xb5   : > { %v5799_v22 = vpop.f32.mrf.mxu3  ;;  %v965_v59 = vsel %vm907_vm3, %v963_v23, %v964_v39 }
  0xb6   : > { %v697_v7 = vpop.f32.mrf.mxu0  ;;  %4652 = vmatmul.msk.bf16.gmra.mxu1 %vm625_vm2, %v5795_v25  ;;  %v1105_v40 = vpop.f32.mrf.mxu2 }
  0xb7   : > { %v838_v44 = vadd.f32 %v837_v61, %v697_v7  ;;  %v5812_v3 = vadd.f32 %v1105_v40, %v835_v15  ;;  %v1624_v7 = vsel %vm674_vm0, %v4726_v17, 0 }
  0xb8   : > { %1633 = vmatpush.bf16.msrb.mxu2 %v1624_v7 }
  0xb9   : > { %4636 = vmatmul.msk.bf16.gmra.mxu0 %vm625_vm2, %v5801_v4 }
  0xba   : > { %4673 = vmatmul.msk.bf16.gmra.mxu3 %vm625_vm2, %v5807_v49  ;;  %v4760_v49 = vld [vmem:[%s7365_s2 + $0x20] sm:$0xf] }
  0xbb   : > { %v839_v15 = vpop.f32.mrf.mxu1  ;;  %4669 = vmatmul.msk.bf16.gmra.mxu2 %vm625_vm2, %v5814_v27  ;;  %v1901_v17 = vsel %vm674_vm0, %v4760_v49, 0  ;;  %v967_v49 = vsel %vm907_vm3, %v964_v39, %v966_v46 }
  0xbc   : > { %1910 = vmatpush.bf16.msra.mxu0 %v1901_v17  ;;  %v5862_v62 = vpack.c.bf16 %v967_v49, %v965_v59 }
  0xbd   : > { %v5829_v61 = vpop.f32.mrf.mxu3 }
  0xbe   : > { %v699_v21 = vpop.f32.mrf.mxu0  ;;  %v1108_v40 = vpop.f32.mrf.mxu2 }
  0xbf   : > { %v840_v50 = vadd.f32 %v839_v15, %v699_v21  ;;  %v5838_v35 = vadd.f32 %v1108_v40, %v838_v44  ;;  %v552_v15 = vsel %vm494_vm1, %v550_v60, %v551_v8  ;;  %v5846_v21 = vpack.c.bf16 %v409_v41, %v408_v5 }
  0xc0   : > { %v987_v44 = vsel %vm907_vm3, %v984_v24, %v986_v38  ;;  %v5852_v40 = vpack.c.bf16 %v554_v55, %v552_v15 }
  0xc1   : > { %7409 = vst [vmem:[#allocation16_spill] sm:$0xff] %v5838_v35  ;;  %v5858_v5 = vpack.c.bf16 %v987_v44, %v985_v57 }
  0xc3   : > { %v842_v56 = vpop.f32.mrf.mxu1  ;;  %7410 = vst [vmem:[#allocation17_spill] sm:$0xff] %v5858_v5 }
  0xc5   : > { %v5850_v7 = vpop.f32.mrf.mxu3 }
  0xc6   : > { %v702_v35 = vpop.f32.mrf.mxu0  ;;  %4653 = vmatmul.msk.bf16.gmra.mxu1 %vm625_vm2, %v5846_v21  ;;  %v1110_v41 = vpop.f32.mrf.mxu2 }
  0xc7   : > { %v843_v60 = vadd.f32 %v842_v56, %v702_v35  ;;  %v5860_v8 = vadd.f32 %v1110_v41, %v840_v50 }
  0xc9   : > { %4637 = vmatmul.msk.bf16.gmra.mxu0 %vm625_vm2, %v5852_v40 }
  0xca   : > { %4674 = vmatmul.msk.bf16.gmra.mxu3 %vm625_vm2, %v5858_v5 }
  0xcb   : > { %v844_v23 = vpop.f32.mrf.mxu1  ;;  %4670 = vmatmul.msk.bf16.gmra.mxu2 %vm625_vm2, %v5862_v62 }
  0xcd   : > { %v5870_v39 = vpop.f32.mrf.mxu3 }
  0xce   : > { %v704_v46 = vpop.f32.mrf.mxu0  ;;  %v1113_v6 = vpop.f32.mrf.mxu2 }
  0xcf   : > { %v845_v24 = vadd.f32 %v844_v23, %v704_v46  ;;  %v5872_v38 = vadd.f32 %v1113_v6, %v843_v60 }
  0xd3   : > { %v847_v50 = vpop.f32.mrf.mxu1 }
  0xd5   : > { %v5874_v35 = vpop.f32.mrf.mxu3 }
  0xd6   : > { %v707_v17 = vpop.f32.mrf.mxu0  ;;  %4710 = vmatmul.msk.bf16.vlgmr.msrb.gmra.mxu1 %vm625_vm2, %v5499_v10  ;;  %v1115_v15 = vpop.f32.mrf.mxu2 }
  0xd7   : > { %v848_v55 = vadd.f32 %v847_v50, %v707_v17  ;;  %v5878_v56 = vadd.f32 %v1115_v15, %v845_v24 }
  0xd9   : > { %4693 = vmatmul.msk.bf16.vlgmr.msrb.gmra.mxu0 %vm625_vm2, %v5488_v2 }
  0xda   : > { %4676 = vmatmul.msk.bf16.vlgmr.msrb.gmra.mxu3 %vm625_vm2, %v5484_v63 }
  0xdb   : > { %v849_v57 = vpop.f32.mrf.mxu1  ;;  %4727 = vmatmul.msk.bf16.vlgmr.msrb.gmra.mxu2 %vm625_vm2, %v5527_v34 }
  0xdd   : > { %v887_v44 = vpop.f32.mrf.mxu3 }
  0xde   : > { %v5887_v59 = vadd.f32 %v887_v44, %v5747_v14  ;;  %v709_v49 = vpop.f32.mrf.mxu0  ;;  %v1118_v10 = vpop.f32.mrf.mxu2 }
  0xdf   : > { %v850_v41 = vadd.f32 %v849_v57, %v709_v49  ;;  %v5889_v60 = vadd.f32 %v1118_v10, %v848_v55 }
  0xe3   : > { %v852_v23 = vpop.f32.mrf.mxu1 }
  0xe5   : > { %v889_v46 = vpop.f32.mrf.mxu3 }
  0xe6   : > { %v5892_v2 = vadd.f32 %v889_v46, %v5760_v51  ;;  %v712_v6 = vpop.f32.mrf.mxu0  ;;  %4711 = vmatmul.msk.bf16.gmra.mxu1 %vm625_vm2, %v5542_v45  ;;  %v1120_v63 = vpop.f32.mrf.mxu2 }
  0xe7   : > { %v853_v24 = vadd.f32 %v852_v23, %v712_v6  ;;  %v5896_v50 = vadd.f32 %v1120_v63, %v850_v41 }
  0xe9   : > { %4694 = vmatmul.msk.bf16.gmra.mxu0 %vm625_vm2, %v5531_v37 }
  0xea   : > { %4677 = vmatmul.msk.bf16.gmra.mxu3 %vm625_vm2, %v5527_v34 }
  0xeb   : > { %v854_v14 = vpop.f32.mrf.mxu1  ;;  %4728 = vmatmul.msk.bf16.gmra.mxu2 %vm625_vm2, %v5570_v9 }
  0xed   : > { %v892_v51 = vpop.f32.mrf.mxu3 }
  0xee   : > { %v5905_v17 = vadd.f32 %v892_v51, %v5786_v30  ;;  %v714_v15 = vpop.f32.mrf.mxu0  ;;  %v1123_v55 = vpop.f32.mrf.mxu2 }
  0xef   : > { %v855_v57 = vadd.f32 %v854_v14, %v714_v15  ;;  %v5907_v44 = vadd.f32 %v1123_v55, %v853_v24 }
  0xf3   : > { %v857_v49 = vpop.f32.mrf.mxu1 }
  0xf5   : > { %v894_v10 = vpop.f32.mrf.mxu3 }
  0xf6   : > { %v5910_v41 = vadd.f32 %v894_v10, %v5799_v22  ;;  %v717_v23 = vpop.f32.mrf.mxu0  ;;  %4712 = vmatmul.msk.bf16.gmra.mxu1 %vm625_vm2, %v5585_v26  ;;  %v1125_v34 = vpop.f32.mrf.mxu2 }
  0xf7   : > { %v858_v46 = vadd.f32 %v857_v49, %v717_v23  ;;  %v5914_v6 = vadd.f32 %v1125_v34, %v855_v57 }
  0xf9   : > { %4695 = vmatmul.msk.bf16.gmra.mxu0 %vm625_vm2, %v5574_v13 }
  0xfa   : > { %4678 = vmatmul.msk.bf16.gmra.mxu3 %vm625_vm2, %v5570_v9 }
  0xfb   : > { %v859_v30 = vpop.f32.mrf.mxu1  ;;  %4729 = vmatmul.msk.bf16.gmra.mxu2 %vm625_vm2, %v5598_v42 }
  0xfd   : > { %v897_v22 = vpop.f32.mrf.mxu3 }
  0xfe   : > { %v5923_v63 = vadd.f32 %v897_v22, %v5829_v61  ;;  %v719_v24 = vpop.f32.mrf.mxu0  ;;  %v1128_v14 = vpop.f32.mrf.mxu2 }
  0xff   : > { %v860_v51 = vadd.f32 %v859_v30, %v719_v24  ;;  %v5925_v15 = vadd.f32 %v1128_v14, %v858_v46 }
 0x103   : > { %v862_v55 = vpop.f32.mrf.mxu1 }
 0x105   : > { %v899_v57 = vpop.f32.mrf.mxu3 }
 0x106   : > { %v5928_v49 = vadd.f32 %v899_v57, %v5850_v7  ;;  %v722_v10 = vpop.f32.mrf.mxu0  ;;  %4713 = vmatmul.msk.bf16.gmra.mxu1 %vm625_vm2, %v5613_v54  ;;  %v1130_v9 = vpop.f32.mrf.mxu2 }
 0x107   : > { %v863_v23 = vadd.f32 %v862_v55, %v722_v10  ;;  %v5932_v34 = vadd.f32 %v1130_v9, %v860_v51 }
 0x109   : > { %4696 = vmatmul.msk.bf16.gmra.mxu0 %vm625_vm2, %v5600_v43 }
 0x10a   : > { %4679 = vmatmul.msk.bf16.gmra.mxu3 %vm625_vm2, %v5598_v42 }
 0x10b   : > { %v864_v61 = vpop.f32.mrf.mxu1  ;;  %4730 = vmatmul.msk.bf16.gmra.mxu2 %vm625_vm2, %v5626_v11 }
 0x10d   : > { %v902_v7 = vpop.f32.mrf.mxu3 }
 0x10e   : > { %v5941_v46 = vadd.f32 %v902_v7, %v5870_v39  ;;  %v724_v30 = vpop.f32.mrf.mxu0  ;;  %v1133_v22 = vpop.f32.mrf.mxu2 }
 0x10f   : > { %v865_v24 = vadd.f32 %v864_v61, %v724_v30  ;;  %v5943_v14 = vadd.f32 %v1133_v22, %v863_v23 }
 0x113   : > { %v867_v51 = vpop.f32.mrf.mxu1 }
 0x115   : > { %v904_v55 = vpop.f32.mrf.mxu3 }
 0x116   : > { %v5946_v57 = vadd.f32 %v904_v55, %v5874_v35  ;;  %v727_v10 = vpop.f32.mrf.mxu0  ;;  %4714 = vmatmul.msk.bf16.gmra.mxu1 %vm625_vm2, %v5641_v28  ;;  %v1135_v42 = vpop.f32.mrf.mxu2 }
 0x117   : > { %v868_v9 = vadd.f32 %v867_v51, %v727_v10  ;;  %v5950_v43 = vadd.f32 %v1135_v42, %v865_v24 }
 0x119   : > { %4697 = vmatmul.msk.bf16.gmra.mxu0 %vm625_vm2, %v5628_v12 }
 0x11a   : > { %4680 = vmatmul.msk.bf16.gmra.mxu3 %vm625_vm2, %v5626_v11 }
 0x11b   : > { %v869_v39 = vpop.f32.mrf.mxu1  ;;  %4731 = vmatmul.msk.bf16.gmra.mxu2 %vm625_vm2, %v5654_v48 }
 0x11d   : > { %v1158_v35 = vpop.f32.mrf.mxu3 }
 0x11e   : > { %v5959_v23 = vadd.f32 %v1158_v35, %v5887_v59  ;;  %v729_v61 = vpop.f32.mrf.mxu0  ;;  %v1138_v7 = vpop.f32.mrf.mxu2 }
 0x11f   : > { %v870_v30 = vadd.f32 %v869_v39, %v729_v61  ;;  %v5961_v22 = vadd.f32 %v1138_v7, %v868_v9 }
 0x123   : > { %v872_v24 = vpop.f32.mrf.mxu1 }
 0x125   : > { %v1160_v51 = vpop.f32.mrf.mxu3 }
 0x126   : > { %v5964_v55 = vadd.f32 %v1160_v51, %v5892_v2  ;;  %v732_v10 = vpop.f32.mrf.mxu0  ;;  %4715 = vmatmul.msk.bf16.gmra.mxu1 %vm625_vm2, %v5669_v0  ;;  %v1140_v11 = vpop.f32.mrf.mxu2 }
 0x127   : > { %v873_v42 = vadd.f32 %v872_v24, %v732_v10  ;;  %v5968_v12 = vadd.f32 %v1140_v11, %v870_v30 }
 0x128   : > { %7411 = vst [vmem:[#allocation18_spill] sm:$0xff] %v5964_v55 }
 0x129   : > { %4698 = vmatmul.msk.bf16.gmra.mxu0 %vm625_vm2, %v5656_v52 }
 0x12a   : > { %4681 = vmatmul.msk.bf16.gmra.mxu3 %vm625_vm2, %v5654_v48 }
 0x12b   : > { %v874_v59 = vpop.f32.mrf.mxu1  ;;  %4732 = vmatmul.msk.bf16.gmra.mxu2 %vm625_vm2, %v5686_v32 }
 0x12d   : > { %v1163_v2 = vpop.f32.mrf.mxu3 }
 0x12e   : > { %v5977_v9 = vadd.f32 %v1163_v2, %v5905_v17  ;;  %v734_v39 = vpop.f32.mrf.mxu0  ;;  %v1143_v35 = vpop.f32.mrf.mxu2 }
 0x12f   : > { %v875_v61 = vadd.f32 %v874_v59, %v734_v39  ;;  %v5979_v7 = vadd.f32 %v1143_v35, %v873_v42 }
 0x133   : > { %v877_v30 = vpop.f32.mrf.mxu1 }
 0x135   : > { %v1165_v24 = vpop.f32.mrf.mxu3 }
 0x136   : > { %v5982_v51 = vadd.f32 %v1165_v24, %v5910_v41  ;;  %v737_v10 = vpop.f32.mrf.mxu0  ;;  %4716 = vmatmul.msk.bf16.gmra.mxu1 %vm625_vm2, %v5701_v53  ;;  %v1145_v48 = vpop.f32.mrf.mxu2 }
 0x137   : > { %v878_v11 = vadd.f32 %v877_v30, %v737_v10  ;;  %v5986_v55 = vadd.f32 %v1145_v48, %v875_v61 }
 0x139   : > { %4699 = vmatmul.msk.bf16.gmra.mxu0 %vm625_vm2, %v5688_v33 }
 0x13a   : > { %4682 = vmatmul.msk.bf16.gmra.mxu3 %vm625_vm2, %v5686_v32  ;;  %v5242_v32 = vld [vmem:[%s7367_s4 + $0x78] sm:$0xff] }
 0x13b   : > { %v879_v17 = vpop.f32.mrf.mxu1  ;;  %4733 = vmatmul.msk.bf16.gmra.mxu2 %vm625_vm2, %v5721_v31  ;;  %2356 = vmatpush.bf16.msra.mxu1 %v5242_v32 }
 0x13d   : > { %v1168_v41 = vpop.f32.mrf.mxu3 }
 0x13e   : > { %v5995_v42 = vadd.f32 %v1168_v41, %v5923_v63  ;;  %v739_v59 = vpop.f32.mrf.mxu0  ;;  %v1148_v2 = vpop.f32.mrf.mxu2 }
 0x13f   : > { %v880_v39 = vadd.f32 %v879_v17, %v739_v59  ;;  %v5997_v35 = vadd.f32 %v1148_v2, %v878_v11 }
 0x143   : > { %v882_v61 = vpop.f32.mrf.mxu1 }
 0x145   : > { %v1170_v30 = vpop.f32.mrf.mxu3 }
 0x146   : > { %v6000_v24 = vadd.f32 %v1170_v30, %v5928_v49  ;;  %v742_v10 = vpop.f32.mrf.mxu0  ;;  %4717 = vmatmul.msk.bf16.gmra.mxu1 %vm625_vm2, %v5736_v1  ;;  %v1150_v63 = vpop.f32.mrf.mxu2 }
 0x147   : > { %v883_v48 = vadd.f32 %v882_v61, %v742_v10  ;;  %v6007_v41 = vadd.f32 %v1150_v63, %v880_v39 }
 0x148   : > { %7412 = vst [vmem:[#allocation19_spill] sm:$0xff] %v6000_v24 }
 0x149   : > { %4700 = vmatmul.msk.bf16.gmra.mxu0 %vm625_vm2, %v5725_v18 }
 0x14a   : > { %4683 = vmatmul.msk.bf16.gmra.mxu3 %vm625_vm2, %v5721_v31 }
 0x14b   : > { %v884_v49 = vpop.f32.mrf.mxu1  ;;  %4734 = vmatmul.msk.bf16.gmra.mxu2 %vm625_vm2, %v5756_v16 }
 0x14d   : > { %v1173_v11 = vpop.f32.mrf.mxu3 }
 0x14e   : > { %v6016_v17 = vadd.f32 %v1173_v11, %v5941_v46  ;;  %v744_v59 = vpop.f32.mrf.mxu0  ;;  %v1153_v2 = vpop.f32.mrf.mxu2 }
 0x14f   : > { %v885_v61 = vadd.f32 %v884_v49, %v744_v59  ;;  %v6018_v39 = vadd.f32 %v1153_v2, %v883_v48 }
 0x150   : > { %7413 = vst [vmem:[#allocation20_spill] sm:$0xff] %v6016_v17 }
 0x153   : > { %v1505_v30 = vpop.f32.mrf.mxu1 }
 0x155   : > { %v1175_v10 = vpop.f32.mrf.mxu3 }
 0x156   : > { %v6021_v32 = vadd.f32 %v1175_v10, %v5946_v57  ;;  %v1368_v63 = vpop.f32.mrf.mxu0  ;;  %4718 = vmatmul.msk.bf16.gmra.mxu1 %vm625_vm2, %v5775_v20  ;;  %v1155_v31 = vpop.f32.mrf.mxu2 }
 0x157   : > { %v6025_v24 = vadd.f32 %v1155_v31, %v885_v61 }
 0x158   : > { %7414 = vst [vmem:[#allocation21_spill] sm:$0xff] %v6021_v32 }
 0x159   : > { %4701 = vmatmul.msk.bf16.gmra.mxu0 %vm625_vm2, %v5762_v58 }
 0x15a   : > { %4684 = vmatmul.msk.bf16.gmra.mxu3 %vm625_vm2, %v5756_v16  ;;  %v5241_v16 = vld [vmem:[%s7367_s4 + $0x70] sm:$0xff] }
 0x15b   : > { %v1507_v46 = vpop.f32.mrf.mxu1  ;;  %4735 = vmatmul.msk.bf16.gmra.mxu2 %vm625_vm2, %v5795_v25  ;;  %2357 = vmatpush.bf16.msra.mxu1 %v5241_v16 }
 0x15d   : > { %v1228_v48 = vpop.f32.mrf.mxu3 }
 0x15e   : > { %v1308_v57 = vadd.f32 %v1228_v48, %v5752_v19  ;;  %v1370_v49 = vpop.f32.mrf.mxu0  ;;  %v1635_v11 = vpop.f32.mrf.mxu2 }
 0x160   : > { %v1448_v59 = vadd.f32 %v1368_v63, %v1308_v57 }
 0x162   : > { %v1585_v2 = vadd.f32 %v1505_v30, %v1448_v59 }
 0x163   : > { %v1510_v10 = vpop.f32.mrf.mxu1 }
 0x164   : > { %v6034_v61 = vadd.f32 %v1635_v11, %v1585_v2 }
 0x165   : > { %v1230_v31 = vpop.f32.mrf.mxu3 }
 0x166   : > { %v1309_v32 = vadd.f32 %v1230_v31, %v5773_v36  ;;  %v1373_v17 = vpop.f32.mrf.mxu0  ;;  %4719 = vmatmul.msk.bf16.gmra.mxu1 %vm625_vm2, %v5814_v27  ;;  %v1637_v58 = vpop.f32.mrf.mxu2 }
 0x168   : > { %v1449_v19 = vadd.f32 %v1370_v49, %v1309_v32 }
 0x169   : > { %4702 = vmatmul.msk.bf16.gmra.mxu0 %vm625_vm2, %v5801_v4 }
 0x16a   : > { %v1586_v30 = vadd.f32 %v1507_v46, %v1449_v19  ;;  %4685 = vmatmul.msk.bf16.gmra.mxu3 %vm625_vm2, %v5795_v25 }
 0x16b   : > { %v1512_v63 = vpop.f32.mrf.mxu1  ;;  %4736 = vmatmul.msk.bf16.gmra.mxu2 %vm625_vm2, %v5846_v21 }
 0x16c   : > { %v6046_v36 = vadd.f32 %v1637_v58, %v1586_v30  ;;  %v7415_v30 = vld [vmem:[#allocation16_spill] sm:$0xff] }
 0x16d   : > { %v1233_v48 = vpop.f32.mrf.mxu3 }
 0x16e   : > { %v1310_v57 = vadd.f32 %v1233_v48, %v5791_v29  ;;  %v1375_v11 = vpop.f32.mrf.mxu0  ;;  %v1640_v59 = vpop.f32.mrf.mxu2 }
 0x170   : > { %v1450_v32 = vadd.f32 %v1373_v17, %v1310_v57 }
 0x172   : > { %v1587_v49 = vadd.f32 %v1510_v10, %v1450_v32 }
 0x173   : > { %v1515_v2 = vpop.f32.mrf.mxu1 }
 0x174   : > { %v6051_v31 = vadd.f32 %v1640_v59, %v1587_v49 }
 0x175   : > { %v1235_v46 = vpop.f32.mrf.mxu3 }
 0x176   : > { %v1311_v16 = vadd.f32 %v1235_v46, %v5812_v3  ;;  %v1378_v25 = vpop.f32.mrf.mxu0  ;;  %4720 = vmatmul.msk.bf16.gmra.mxu1 %vm625_vm2, %v5862_v62  ;;  %v1642_v58 = vpop.f32.mrf.mxu2 }
 0x178   : > { %v1451_v19 = vadd.f32 %v1375_v11, %v1311_v16 }
 0x179   : > { %4703 = vmatmul.msk.bf16.gmra.mxu0 %vm625_vm2, %v5852_v40 }
 0x17a   : > { %v1588_v29 = vadd.f32 %v1512_v63, %v1451_v19  ;;  %4686 = vmatmul.msk.bf16.gmra.mxu3 %vm625_vm2, %v5846_v21  ;;  %v7417_v19 = vld [vmem:[#allocation12_spill] sm:$0xff] }
 0x17b   : > { %v1517_v17 = vpop.f32.mrf.mxu1  ;;  %4737 = vmatmul.msk.bf16.gmra.mxu2 %vm625_vm2, %v5608_v47 }
 0x17c   : > { %v6060_v10 = vadd.f32 %v1642_v58, %v1588_v29  ;;  %v5240_v58 = vld [vmem:[%s7367_s4 + $0x68] sm:$0xff] }
 0x17d   : > { %v1238_v3 = vpop.f32.mrf.mxu3  ;;  %2358 = vmatpush.bf16.msra.mxu1 %v5240_v58 }
 0x17e   : > { %v1312_v48 = vadd.f32 %v1238_v3, %v7415_v30  ;;  %v1380_v57 = vpop.f32.mrf.mxu0  ;;  %v1645_v59 = vpop.f32.mrf.mxu2  ;;  %v7418_v30 = vld [vmem:[#allocation3_spill] sm:$0xff] }
 0x180   : > { %v1452_v32 = vadd.f32 %v1378_v25, %v1312_v48  ;;  %v7420_v48 = vld [vmem:[#allocation9_spill] sm:$0xff] }
 0x182   : > { %v1589_v11 = vadd.f32 %v1515_v2, %v1452_v32 }
 0x183   : > { %v1520_v49 = vpop.f32.mrf.mxu1 }
 0x184   : > { %v6065_v46 = vadd.f32 %v1645_v59, %v1589_v11 }
 0x185   : > { %v1240_v63 = vpop.f32.mrf.mxu3 }
 0x186   : > { %7416 = vst [vmem:[#allocation16_spill] sm:$0xff] %v6065_v46  ;;  %v1313_v16 = vadd.f32 %v1240_v63, %v5860_v8  ;;  %v1383_v21 = vpop.f32.mrf.mxu0  ;;  %4721 = vmatmul.msk.bf16.gmra.mxu1 %vm625_vm2, %v7417_v19  ;;  %v1647_v29 = vpop.f32.mrf.mxu2 }
 0x188   : > { %v1453_v3 = vadd.f32 %v1380_v57, %v1313_v16 }
 0x189   : > { %4704 = vmatmul.msk.bf16.gmra.mxu0 %vm625_vm2, %v7418_v30  ;;  %v7422_v30 = vld [vmem:[#allocation14_spill] sm:$0xff] }
 0x18a   : > { %v1590_v2 = vadd.f32 %v1517_v17, %v1453_v3  ;;  %4687 = vmatmul.msk.bf16.gmra.mxu3 %vm625_vm2, %v5608_v47 }
 0x18b   : > { %v1522_v25 = vpop.f32.mrf.mxu1  ;;  %4738 = vmatmul.msk.bf16.gmra.mxu2 %vm625_vm2, %v7420_v48 }
 0x18c   : > { %v6077_v8 = vadd.f32 %v1647_v29, %v1590_v2 }
 0x18d   : > { %v1243_v59 = vpop.f32.mrf.mxu3 }
 0x18e   : > { %7419 = vst [vmem:[#allocation12_spill] sm:$0xff] %v6077_v8  ;;  %v1314_v32 = vadd.f32 %v1243_v59, %v5872_v38  ;;  %v1385_v11 = vpop.f32.mrf.mxu0  ;;  %v1650_v63 = vpop.f32.mrf.mxu2  ;;  %v7423_v8 = vld [vmem:[#allocation4_spill] sm:$0xff]  ;;  %v7426_v59 = vld [vmem:[#allocation10_spill] sm:$0xff] }
 0x190   : > { %v1454_v57 = vadd.f32 %v1383_v21, %v1314_v32 }
 0x192   : > { %v1591_v16 = vadd.f32 %v1520_v49, %v1454_v57 }
 0x193   : > { %v1525_v58 = vpop.f32.mrf.mxu1 }
 0x194   : > { %v6082_v46 = vadd.f32 %v1650_v63, %v1591_v16 }
 0x195   : > { %v1245_v17 = vpop.f32.mrf.mxu3 }
 0x196   : > { %7421 = vst [vmem:[#allocation9_spill] sm:$0xff] %v6082_v46  ;;  %v1315_v3 = vadd.f32 %v1245_v17, %v5878_v56  ;;  %v1388_v47 = vpop.f32.mrf.mxu0  ;;  %4722 = vmatmul.msk.bf16.gmra.mxu1 %vm625_vm2, %v7422_v30  ;;  %v1652_v29 = vpop.f32.mrf.mxu2 }
 0x198   : > { %v1455_v2 = vadd.f32 %v1385_v11, %v1315_v3 }
 0x199   : > { %4705 = vmatmul.msk.bf16.gmra.mxu0 %vm625_vm2, %v7423_v8 }
 0x19a   : > { %v1592_v38 = vadd.f32 %v1522_v25, %v1455_v2  ;;  %4688 = vmatmul.msk.bf16.gmra.mxu3 %vm625_vm2, %v7420_v48  ;;  %v7428_v2 = vld [vmem:[#allocation15_spill] sm:$0xff] }
 0x19b   : > { %v6091_v49 = vpop.f32.mrf.mxu1  ;;  %4739 = vmatmul.msk.bf16.gmra.mxu2 %vm625_vm2, %v7426_v59 }
 0x19c   : > { %7424 = vst [vmem:[#allocation14_spill] sm:$0xff] %v6091_v49  ;;  %v6093_v21 = vadd.f32 %v1652_v29, %v1592_v38 }
 0x19d   : > { %v1248_v56 = vpop.f32.mrf.mxu3 }
 0x19e   : > { %7425 = vst [vmem:[#allocation22_spill] sm:$0xff] %v6093_v21  ;;  %v1316_v32 = vadd.f32 %v1248_v56, %v5889_v60  ;;  %v1390_v63 = vpop.f32.mrf.mxu0  ;;  %v1655_v11 = vpop.f32.mrf.mxu2  ;;  %v5239_v60 = vld [vmem:[%s7367_s4 + $0x60] sm:$0xff] }
 0x19f   : > { %2359 = vmatpush.bf16.msra.mxu1 %v5239_v60  ;;  %v6122_v60 = vld [vmem:[%s5417_s18] ss:$0 sm:$0xff] }
 0x1a0   : > { %v1456_v57 = vadd.f32 %v1388_v47, %v1316_v32 }
 0x1a2   : > { %v1593_v16 = vadd.f32 %v1525_v58, %v1456_v57  ;;  %v7430_v58 = vld [vmem:[#allocation5_spill] sm:$0xff] }
 0x1a3   : > { %v1530_v17 = vpop.f32.mrf.mxu1 }
 0x1a4   : > { %v6098_v3 = vadd.f32 %v1655_v11, %v1593_v16  ;;  %v366_v16 = vld [vmem:[%s5425_s21 + $0x188] sm:$0xff] }
 0x1a5   : > { %v1250_v25 = vpop.f32.mrf.mxu3 }
 0x1a6   : > { %7427 = vst [vmem:[#allocation10_spill] sm:$0xff] %v6098_v3  ;;  %v1317_v48 = vadd.f32 %v1250_v25, %v5896_v50  ;;  %v1393_v29 = vpop.f32.mrf.mxu0  ;;  %4723 = vmatmul.msk.bf16.gmra.mxu1 %vm625_vm2, %v7428_v2  ;;  %v7432_v50 = vld [vmem:[#allocation11_spill] sm:$0xff]  ;;  %v369_v2 = vld [vmem:[%s5425_s21 + $0x1a0] sm:$0xff] }
 0x1a8   : > { %v6106_v47 = vadd.f32 %v1390_v63, %v1317_v48  ;;  %v365_v63 = vld [vmem:[%s5425_s21 + $0x180] sm:$0xff] }
 0x1a9   : > { %4706 = vmatmul.msk.bf16.gmra.mxu0 %vm625_vm2, %v7430_v58  ;;  %v368_v58 = vld [vmem:[%s5425_s21 + $0x198] sm:$0xff] }
 0x1aa   : > { %7429 = vst [vmem:[#allocation23_spill] sm:$0xff] %v6106_v47  ;;  %4689 = vmatmul.msk.bf16.gmra.mxu3 %vm625_vm2, %v7426_v59  ;;  %v423_v59 = vmul.f32 %v6122_v60, %v365_v63 }
 0x1ab   : > { %v6112_v38 = vpop.f32.mrf.mxu1  ;;  %4740 = vmatmul.msk.bf16.gmra.mxu2 %vm625_vm2, %v7432_v50 }
 0x1ac   : > { %7431 = vst [vmem:[#allocation24_spill] sm:$0xff] %v6112_v38  ;;  %v424_v38 = vmul.f32 %v6122_v60, %v366_v16 }
 0x1ad   : > { %v1253_v56 = vpop.f32.mrf.mxu3 }
 0x1ae   : > { %v1318_v32 = vadd.f32 %v1253_v56, %v5907_v44  ;;  %v1395_v57 = vpop.f32.mrf.mxu0  ;;  %v367_v44 = vld [vmem:[%s5425_s21 + $0x190] sm:$0x3]  ;;  %v1210_v56 = vpack.c.bf16 %v424_v38, %v423_v59 }
 0x1b0   : > { %v1458_v11 = vadd.f32 %v1393_v29, %v1318_v32  ;;  %v425_v32 = vmul.f32 %v6122_v60, %v367_v44 }
 0x1b2   : > { %v6119_v25 = vadd.f32 %v1530_v17, %v1458_v11  ;;  %v7435_v17 = vld [vmem:[#allocation6_spill] sm:$0xff]  ;;  %v1483_v63 = vrot.slane %v425_v32, 2 }
 0x1b3   : > { %v1535_v48 = vpop.f32.mrf.mxu1 }
 0x1b4   : > { %7433 = vst [vmem:[#allocation11_spill] sm:$0xff] %v6119_v25  ;;  %v1344_v25 = vrot.slane %v424_v38, 1 }
 0x1b5   : > { %v1255_v49 = vpop.f32.mrf.mxu3 }
 0x1b6   : > { %v1319_v47 = vadd.f32 %v1255_v49, %v5914_v6  ;;  %v1398_v3 = vpop.f32.mrf.mxu0  ;;  %4724 = vmatmul.msk.bf16.gmra.mxu1 %vm625_vm2, %v5858_v5  ;;  %v1480_v6 = vrot.slane %v423_v59, 2  ;;  %v1481_v49 = vrot.slane %v424_v38, 2  ;;  %v6155_v38 = vmul.f32 %v6122_v60, %v369_v2 }
 0x1b8   : > { %v6130_v29 = vadd.f32 %v1395_v57, %v1319_v47  ;;  %v1482_v44 = vsel %vm907_vm3, %v1480_v6, %v1481_v49  ;;  %v1484_v5 = vsel %vm907_vm3, %v1481_v49, %v1483_v63 }
 0x1b9   : > { %4707 = vmatmul.msk.bf16.gmra.mxu0 %vm625_vm2, %v7435_v17  ;;  %v1346_v17 = vrot.slane %v425_v32, 1  ;;  %v6149_v8 = vpack.c.bf16 %v1484_v5, %v1482_v44  ;;  %v5238_v5 = vld [vmem:[%s7367_s4 + $0x58] sm:$0xff] }
 0x1ba   : > { %7434 = vst [vmem:[#allocation25_spill] sm:$0xff] %v6130_v29  ;;  %4690 = vmatmul.msk.bf16.gmra.mxu3 %vm625_vm2, %v7432_v50  ;;  %v1343_v29 = vrot.slane %v423_v59, 1  ;;  %v6152_v59 = vmul.f32 %v6122_v60, %v368_v58  ;;  %2360 = vmatpush.bf16.msra.mxu1 %v5238_v5 }
 0x1bb   : > { %v6137_v11 = vpop.f32.mrf.mxu1  ;;  %4741 = vmatmul.msk.bf16.gmra.mxu2 %vm625_vm2, %v1210_v56  ;;  %v1347_v46 = vsel %vm494_vm1, %v1344_v25, %v1346_v17 }
 0x1bc   : > { %7436 = vst [vmem:[#allocation26_spill] sm:$0xff] %v6137_v11  ;;  %v1345_v21 = vsel %vm494_vm1, %v1343_v29, %v1344_v25  ;;  %v1617_v58 = vpack.c.bf16 %v6155_v38, %v6152_v59 }
 0x1bd   : > { %v1258_v47 = vpop.f32.mrf.mxu3  ;;  %v6157_v6 = vpack.c.bf16 %v1347_v46, %v1345_v21 }
 0x1be   : > { %v1320_v57 = vadd.f32 %v1258_v47, %v5925_v15  ;;  %v1400_v16 = vpop.f32.mrf.mxu0 }
 0x1c0   : > { %v1460_v50 = vadd.f32 %v1398_v3, %v1320_v57 }
 0x1c2   : > { %v6145_v11 = vadd.f32 %v1535_v48, %v1460_v50 }
 0x1c3   : > { %v1540_v15 = vpop.f32.mrf.mxu1 }
 0x1c5   : > { %v1260_v32 = vpop.f32.mrf.mxu3 }
 0x1c6   : > { %v1321_v3 = vadd.f32 %v1260_v32, %v5932_v34  ;;  %v1403_v48 = vpop.f32.mrf.mxu0  ;;  %4725 = vmatmul.msk.bf16.gmra.mxu1 %vm625_vm2, %v6149_v8 }
 0x1c8   : > { %v6165_v25 = vadd.f32 %v1400_v16, %v1321_v3 }
 0x1c9   : > { %4708 = vmatmul.msk.bf16.gmra.mxu0 %vm625_vm2, %v6157_v6 }
 0x1ca   : > { %4691 = vmatmul.msk.bf16.gmra.mxu3 %vm625_vm2, %v1210_v56  ;;  %v5234_v56 = vld [vmem:[%s7367_s4 + $0x38] sm:$0xff] }
 0x1cb   : > { %v6172_v34 = vpop.f32.mrf.mxu1  ;;  %4742 = vmatmul.msk.bf16.gmra.mxu2 %vm625_vm2, %v1617_v58 }
 0x1cc   : > { %2493 = vmatpush.bf16.msra.mxu2 %v5234_v56 }
 0x1cd   : > { %v1263_v46 = vpop.f32.mrf.mxu3 }
 0x1ce   : > { %v1322_v21 = vadd.f32 %v1263_v46, %v5943_v14  ;;  %v1405_v2 = vpop.f32.mrf.mxu0  ;;  %v6188_v14 = vpop.f32.mrf.mxu2 }
 0x1d0   : > { %v1462_v29 = vadd.f32 %v1403_v48, %v1322_v21 }
 0x1d2   : > { %v6176_v17 = vadd.f32 %v1540_v15, %v1462_v29 }
 0x1d3   : > { %v1545_v49 = vpop.f32.mrf.mxu1 }
 0x1d5   : > { %v1265_v63 = vpop.f32.mrf.mxu3 }
 0x1d6   : > { %v1323_v47 = vadd.f32 %v1265_v63, %v5950_v43  ;;  %v1408_v57 = vpop.f32.mrf.mxu0  ;;  %v6195_v5 = vpop.f32.mrf.mxu2 }
 0x1d8   : > { %v6182_v16 = vadd.f32 %v1405_v2, %v1323_v47 }
 0x1d9   : > { %4761 = vmatmul.msk.bf16.vlgmr.msra.gmra.mxu0 %vm625_vm2, %v5542_v45 }
 0x1da   : > { %4744 = vmatmul.msk.bf16.vlgmr.msra.gmra.mxu3 %vm625_vm2, %v5531_v37  ;;  %v5237_v37 = vld [vmem:[%s7367_s4 + $0x50] sm:$0xff] }
 0x1db   : > { %v6190_v44 = vpop.f32.mrf.mxu1  ;;  %2361 = vmatpush.bf16.msra.mxu1 %v5237_v37 }
 0x1dd   : > { %v1268_v50 = vpop.f32.mrf.mxu3 }
 0x1de   : > { %v1324_v43 = vadd.f32 %v1268_v50, %v5961_v22  ;;  %v1410_v15 = vpop.f32.mrf.mxu0 }
 0x1e0   : > { %v1464_v32 = vadd.f32 %v1408_v57, %v1324_v43 }
 0x1e2   : > { %v6193_v3 = vadd.f32 %v1545_v49, %v1464_v32  ;;  %v6210_v49 = vpop.f32.mrf.mxu2 }
 0x1e3   : > { %v1550_v48 = vpop.f32.mrf.mxu1 }
 0x1e5   : > { %v1270_v58 = vpop.f32.mrf.mxu3 }
 0x1e6   : > { %v1325_v45 = vadd.f32 %v1270_v58, %v5968_v12  ;;  %v1413_v46 = vpop.f32.mrf.mxu0 }
 0x1e8   : > { %v6201_v21 = vadd.f32 %v1410_v15, %v1325_v45 }
 0x1e9   : > { %4762 = vmatmul.msk.bf16.gmra.mxu0 %vm625_vm2, %v5585_v26 }
 0x1ea   : > { %4745 = vmatmul.msk.bf16.gmra.mxu3 %vm625_vm2, %v5574_v13  ;;  %v5233_v13 = vld [vmem:[%s7367_s4 + $0x30] sm:$0xff]  ;;  %v6220_v15 = vpop.f32.mrf.mxu2 }
 0x1eb   : > { %v6207_v22 = vpop.f32.mrf.mxu1  ;;  %2494 = vmatpush.bf16.msra.mxu2 %v5233_v13 }
 0x1ed   : > { %v1273_v2 = vpop.f32.mrf.mxu3 }
 0x1ee   : > { %v1326_v29 = vadd.f32 %v1273_v2, %v5979_v7  ;;  %v1415_v12 = vpop.f32.mrf.mxu0  ;;  %v7437_v7 = vld [vmem:[#allocation7_spill] sm:$0xff] }
 0x1f0   : > { %v1466_v63 = vadd.f32 %v1413_v46, %v1326_v29 }
 0x1f2   : > { %v6212_v47 = vadd.f32 %v1550_v48, %v1466_v63  ;;  %v6231_v37 = vpop.f32.mrf.mxu2 }
 0x1f3   : > { %v1555_v57 = vpop.f32.mrf.mxu1 }
 0x1f5   : > { %v1275_v56 = vpop.f32.mrf.mxu3 }
 0x1f6   : > { %v1327_v50 = vadd.f32 %v1275_v56, %v5986_v55  ;;  %v1418_v43 = vpop.f32.mrf.mxu0 }
 0x1f8   : > { %v6218_v26 = vadd.f32 %v1415_v12, %v1327_v50 }
 0x1f9   : > { %4763 = vmatmul.msk.bf16.gmra.mxu0 %vm625_vm2, %v5613_v54  ;;  %v5236_v54 = vld [vmem:[%s7367_s4 + $0x48] sm:$0xff] }
 0x1fa   : > { %4746 = vmatmul.msk.bf16.gmra.mxu3 %vm625_vm2, %v7437_v7  ;;  %2362 = vmatpush.bf16.msra.mxu1 %v5236_v54  ;;  %v6245_v50 = vpop.f32.mrf.mxu2 }
 0x1fb   : > { %v6226_v32 = vpop.f32.mrf.mxu1 }
 0x1fd   : > { %v1278_v48 = vpop.f32.mrf.mxu3 }
 0x1fe   : > { %v1328_v55 = vadd.f32 %v1278_v48, %v5997_v35  ;;  %v1420_v58 = vpop.f32.mrf.mxu0  ;;  %v7438_v35 = vld [vmem:[#allocation8_spill] sm:$0xff] }
 0x200   : > { %v1468_v45 = vadd.f32 %v1418_v43, %v1328_v55 }
 0x202   : > { %v6229_v46 = vadd.f32 %v1555_v57, %v1468_v45 }
 0x203   : > { %v1560_v2 = vpop.f32.mrf.mxu1 }
 0x205   : > { %v1280_v29 = vpop.f32.mrf.mxu3 }
 0x206   : > { %v1329_v12 = vadd.f32 %v1280_v29, %v6007_v41  ;;  %v1423_v63 = vpop.f32.mrf.mxu0 }
 0x208   : > { %v6237_v56 = vadd.f32 %v1420_v58, %v1329_v12  ;;  %v6254_v12 = vpop.f32.mrf.mxu2 }
 0x209   : > { %4764 = vmatmul.msk.bf16.gmra.mxu0 %vm625_vm2, %v5641_v28  ;;  %v5232_v28 = vld [vmem:[%s7367_s4 + $0x28] sm:$0xff] }
 0x20a   : > { %4747 = vmatmul.msk.bf16.gmra.mxu3 %vm625_vm2, %v7438_v35  ;;  %2495 = vmatpush.bf16.msra.mxu2 %v5232_v28  ;;  %v5231_v35 = vld [vmem:[%s7367_s4 + $0x20] sm:$0xff] }
 0x20b   : > { %v6243_v57 = vpop.f32.mrf.mxu1 }
 0x20d   : > { %v1283_v43 = vpop.f32.mrf.mxu3 }
 0x20e   : > { %v1330_v41 = vadd.f32 %v1283_v43, %v6018_v39  ;;  %v1425_v13 = vpop.f32.mrf.mxu0  ;;  %2496 = vmatpush.bf16.msra.mxu2 %v5231_v35 }
 0x210   : > { %v1470_v7 = vadd.f32 %v1423_v63, %v1330_v41  ;;  %v6268_v41 = vpop.f32.mrf.mxu2 }
 0x212   : > { %v6248_v48 = vadd.f32 %v1560_v2, %v1470_v7  ;;  %v7440_v7 = vld [vmem:[#allocation18_spill] sm:$0xff] }
 0x213   : > { %v1565_v55 = vpop.f32.mrf.mxu1 }
 0x215   : > { %v1285_v58 = vpop.f32.mrf.mxu3 }
 0x216   : > { %v1331_v45 = vadd.f32 %v1285_v58, %v6025_v24  ;;  %v1428_v29 = vpop.f32.mrf.mxu0 }
 0x218   : > { %v6256_v54 = vadd.f32 %v1425_v13, %v1331_v45  ;;  %v5235_v45 = vld [vmem:[%s7367_s4 + $0x40] sm:$0xff] }
 0x219   : > { %4765 = vmatmul.msk.bf16.gmra.mxu0 %vm625_vm2, %v5669_v0  ;;  %2363 = vmatpush.bf16.msra.mxu1 %v5235_v45 }
 0x21a   : > { %4748 = vmatmul.msk.bf16.gmra.mxu3 %vm625_vm2, %v5656_v52  ;;  %v5230_v52 = vld [vmem:[%s7367_s4 + $0x18] sm:$0xff] }
 0x21b   : > { %v6262_v2 = vpop.f32.mrf.mxu1  ;;  %2497 = vmatpush.bf16.msra.mxu2 %v5230_v52  ;;  %v5227_v52 = vld [vmem:[%s7367_s4] sm:$0xff] }
 0x21c   : > { %7439 = vst [vmem:[#allocation7_spill] sm:$0xff] %v6262_v2 }
 0x21d   : > { %v1288_v39 = vpop.f32.mrf.mxu3 }
 0x21e   : > { %v1332_v24 = vadd.f32 %v1288_v39, %v5959_v23  ;;  %v1430_v63 = vpop.f32.mrf.mxu0  ;;  %v6288_v39 = vpop.f32.mrf.mxu2 }
 0x220   : > { %v1472_v43 = vadd.f32 %v1428_v29, %v1332_v24  ;;  %v5229_v29 = vld [vmem:[%s7367_s4 + $0x10] sm:$0xff]  ;;  %v5228_v24 = vld [vmem:[%s7367_s4 + $0x8] sm:$0xff] }
 0x221   : > { %2498 = vmatpush.bf16.msra.mxu2 %v5229_v29 }
 0x222   : > { %v6270_v13 = vadd.f32 %v1565_v55, %v1472_v43 }
 0x223   : > { %v1570_v28 = vpop.f32.mrf.mxu1 }
 0x225   : > { %v1290_v0 = vpop.f32.mrf.mxu3  ;;  %2499 = vmatpush.bf16.msra.mxu2 %v5228_v24 }
 0x226   : > { %v1333_v58 = vadd.f32 %v1290_v0, %v7440_v7  ;;  %v1433_v23 = vpop.f32.mrf.mxu0  ;;  %v5339_v0 = vmov 0.0  }
 0x227   : > { %2092 = vst [vmem:[#allocation2] sm:$0xff] %v5339_v0 }
 0x228   : > { %v6282_v55 = vadd.f32 %v1430_v63, %v1333_v58  ;;  %2093 = vst [vmem:[#allocation2 + $0x8] sm:$0xff] %v5339_v0  ;;  %v6306_v58 = vpop.f32.mrf.mxu2 }
 0x229   : > { %4766 = vmatmul.msk.bf16.gmra.mxu0 %vm625_vm2, %v5701_v53  ;;  %2500 = vmatpush.bf16.msra.mxu2 %v5227_v52  ;;  %2094 = vst [vmem:[#allocation2 + $0x10] sm:$0x3] %v5339_v0 }
 0x22a   : > { %4749 = vmatmul.msk.bf16.gmra.mxu3 %vm625_vm2, %v5688_v33  ;;  %2095 = vst [vmem:[#allocation2 + $0x18] sm:$0xff] %v5339_v0 }
 0x22b   : > { %v6298_v33 = vpop.f32.mrf.mxu1  ;;  %2096 = vst [vmem:[#allocation2 + $0x20] sm:$0xff] %v5339_v0 }
 0x22c   : > { %7441 = vst [vmem:[#allocation8_spill] sm:$0xff] %v6298_v33 }
 0x22d   : > { %v1293_v35 = vpop.f32.mrf.mxu3  ;;  %2097 = vst [vmem:[#allocation2 + $0x28] sm:$0x3] %v5339_v0 }
 0x22e   : > { %v1334_v43 = vadd.f32 %v1293_v35, %v5977_v9  ;;  %v1435_v63 = vpop.f32.mrf.mxu0  ;;  %v5340_v9 = vmov 0.0|0.0   ;;  %2098 = vst [vmem:[#allocation2 + $0x30] sm:$0xff] %v5339_v0 }
 0x22f   : > { %2501 = vmatmul.bf16.vlgmr.msra.gmra.mxu2 %v5340_v9  ;;  %2099 = vst [vmem:[#allocation2 + $0x38] sm:$0xff] %v5339_v0  ;;  %v2243_v24 = vld [vmem:[#allocation2 + $0x1] sm:$0xff] }
 0x230   : > { %v1474_v53 = vadd.f32 %v1433_v23, %v1334_v43  ;;  %2100 = vst [vmem:[#allocation2 + $0x40] sm:$0x3] %v5339_v0  ;;  %v2244_v35 = vld [vmem:[#allocation2 + $0x9] sm:$0xff] }
 0x231   : > { %2101 = vst [vmem:[#allocation2 + $0x48] sm:$0xff] %v5339_v0 }
 0x232   : > { %v6301_v7 = vadd.f32 %v1570_v28, %v1474_v53  ;;  %2102 = vst [vmem:[#allocation2 + $0x50] sm:$0xff] %v5339_v0  ;;  %v6326_v53 = vpop.f32.mrf.mxu2 }
 0x233   : > { %v1575_v43 = vpop.f32.mrf.mxu1  ;;  %2103 = vst [vmem:[#allocation2 + $0x58] sm:$0x3] %v5339_v0 }
 0x234   : > { %7442 = vst [vmem:[#allocation18_spill] sm:$0xff] %v6301_v7 }
 0x235   : > { %v1295_v23 = vpop.f32.mrf.mxu3  ;;  %2104 = vst [vmem:[#allocation2 + $0x60] sm:$0xff] %v5339_v0 }
 0x236   : > { %v1335_v45 = vadd.f32 %v1295_v23, %v5982_v51  ;;  %v1438_v29 = vpop.f32.mrf.mxu0  ;;  %v2275_v51 = vpack.c.bf16 %v2244_v35, %v2243_v24  ;;  %2105 = vst [vmem:[#allocation2 + $0x68] sm:$0xff] %v5339_v0  ;;  %v5250_v35 = vld [vmem:[%s7367_s4 + $0xb8] sm:$0xff] }
 0x237   : > { %2106 = vst [vmem:[#allocation2 + $0x70] sm:$0x3] %v5339_v0  ;;  %2695 = vmatpush.bf16.msrb.mxu3 %v5250_v35 }
 0x238   : > { %v6312_v28 = vadd.f32 %v1435_v63, %v1335_v45  ;;  %2364 = vmatmul.bf16.vlgmr.msra.gmra.mxu1 %v2275_v51  ;;  %2107 = vst [vmem:[#allocation2 + $0x78] sm:$0xff] %v5339_v0  ;;  %v7446_v45 = vld [vmem:[#allocation19_spill] sm:$0xff] }
 0x239   : > { %4767 = vmatmul.msk.bf16.gmra.mxu0 %vm625_vm2, %v5736_v1  ;;  %2108 = vst [vmem:[#allocation2 + $0x80] sm:$0xff] %v5339_v0 }
 0x23a   : > { %7443 = vst [vmem:[#allocation27_spill] sm:$0xff] %v6312_v28  ;;  %4750 = vmatmul.msk.bf16.gmra.mxu3 %vm625_vm2, %v5725_v18 }
 0x23b   : > { %2109 = vst [vmem:[#allocation2 + $0x88] sm:$0x3] %v5339_v0  ;;  %v6336_v23 = vpop.f32.mrf.mxu1 }
 0x23c   : > { %2110 = vst [vmem:[#allocation2 + $0x90] sm:$0xff] %v5339_v0 }
 0x23d   : > { %v1298_v63 = vpop.f32.mrf.mxu3  ;;  %2111 = vst [vmem:[#allocation2 + $0x98] sm:$0xff] %v5339_v0 }
 0x23e   : > { %v1336_v1 = vadd.f32 %v1298_v63, %v5995_v42  ;;  %v1440_v52 = vpop.f32.mrf.mxu0  ;;  %2112 = vst [vmem:[#allocation2 + $0xa0] sm:$0x3] %v5339_v0  ;;  %v7448_v63 = vld [vmem:[#allocation13_spill] sm:$0xff] }
 0x23f   : > { %7445 = vst [vmem:[#allocation29_spill] sm:$0xff] %v6336_v23 }
 0x240   : > { %v1476_v18 = vadd.f32 %v1438_v29, %v1336_v1  ;;  %2113 = vst [vmem:[#allocation2 + $0xa8] sm:$0xff] %v5339_v0 }
 0x241   : > { %2114 = vst [vmem:[#allocation2 + $0xb0] sm:$0xff] %v5339_v0 }
 0x242   : > { %v6331_v9 = vadd.f32 %v1575_v43, %v1476_v18  ;;  %2115 = vst [vmem:[#allocation2 + $0xb8] sm:$0x3] %v5339_v0  ;;  %v6348_v43 = vpop.f32.mrf.mxu2 }
 0x243   : > { %2116 = vst [vmem:[#allocation2 + $0xc0] sm:$0xff] %v5339_v0 }
 0x244   : > { %7444 = vst [vmem:[#allocation28_spill] sm:$0xff] %v6331_v9 }
 0x245   : > { %v1300_v42 = vpop.f32.mrf.mxu3  ;;  %2117 = vst [vmem:[#allocation2 + $0xc8] sm:$0xff] %v5339_v0 }
 0x246   : > { %v1337_v24 = vadd.f32 %v1300_v42, %v7446_v45  ;;  %v1443_v29 = vpop.f32.mrf.mxu0  ;;  %2118 = vst [vmem:[#allocation2 + $0xd0] sm:$0x3] %v5339_v0  ;;  %v5266_v45 = vld [vmem:[%s7367_s4 + $0x138] sm:$0xff] }
 0x247   : > { %2119 = vst [vmem:[#allocation2 + $0xd8] sm:$0xff] %v5339_v0  ;;  %3163 = vmatpush.bf16.msrb.mxu1 %v5266_v45 }
 0x248   : > { %v6345_v51 = vadd.f32 %v1440_v52, %v1337_v24  ;;  %2120 = vst [vmem:[#allocation2 + $0xe0] sm:$0xff] %v5339_v0  ;;  %v7449_v52 = vld [vmem:[#allocation20_spill] sm:$0xff]  ;;  %v1580_v24 = vpop.f32.mrf.mxu1 }
 0x249   : > { %4768 = vmatmul.msk.bf16.gmra.mxu0 %vm625_vm2, %v5775_v20  ;;  %2121 = vst [vmem:[#allocation2 + $0xe8] sm:$0x3] %v5339_v0  ;;  %v5258_v20 = vld [vmem:[%s7367_s4 + $0xf8] sm:$0xff] }
 0x24a   : > { %7447 = vst [vmem:[#allocation19_spill] sm:$0xff] %v6345_v51  ;;  %4751 = vmatmul.msk.bf16.gmra.mxu3 %vm625_vm2, %v7448_v63  ;;  %2929 = vmatpush.bf16.msrb.mxu0 %v5258_v20 }
 0x24b   : > { %2122 = vst [vmem:[#allocation2 + $0xf0] sm:$0xff] %v5339_v0 }
 0x24c   : > { %2123 = vst [vmem:[#allocation2 + $0xf8] sm:$0xff] %v5339_v0 }
 0x24d   : > { %v1303_v1 = vpop.f32.mrf.mxu3  ;;  %2124 = vst [vmem:[#allocation2 + $0x100] sm:$0x3] %v5339_v0 }
 0x24e   : > { %v1338_v18 = vadd.f32 %v1303_v1, %v7449_v52  ;;  %v1445_v42 = vpop.f32.mrf.mxu0  ;;  %2125 = vst [vmem:[#allocation2 + $0x108] sm:$0xff] %v5339_v0  ;;  %v6373_v1 = vpop.f32.mrf.mxu2 }
 0x24f   : > { %2126 = vst [vmem:[#allocation2 + $0x110] sm:$0xff] %v5339_v0 }
 0x250   : > { %v1478_v35 = vadd.f32 %v1443_v29, %v1338_v18  ;;  %2127 = vst [vmem:[#allocation2 + $0x118] sm:$0x3] %v5339_v0  ;;  %v7451_v29 = vld [vmem:[#allocation21_spill] sm:$0xff] }
 0x251   : > { %2128 = vst [vmem:[#allocation2 + $0x120] sm:$0xff] %v5339_v0 }
 0x252   : > { %v6370_v63 = vadd.f32 %v1580_v24, %v1478_v35  ;;  %2129 = vst [vmem:[#allocation2 + $0x128] sm:$0xff] %v5339_v0  ;;  %v6400_v24 = vld [vmem:[%s7366_s3] ss:$0 sm:$0xff] }
 0x253   : > { %2130 = vst [vmem:[#allocation2 + $0x130] sm:$0x3] %v5339_v0 }
 0x254   : > { %7450 = vst [vmem:[#allocation13_spill] sm:$0xff] %v6370_v63 }
 0x255   : > { %v1305_v52 = vpop.f32.mrf.mxu3  ;;  %2131 = vst [vmem:[#allocation2 + $0x138] sm:$0xff] %v5339_v0 }
 0x256   : > { %v1339_v18 = vadd.f32 %v1305_v52, %v7451_v29  ;;  %v1912_v23 = vpop.f32.mrf.mxu0  ;;  %2132 = vst [vmem:[#allocation2 + $0x140] sm:$0xff] %v5339_v0  ;;  %v6392_v45 = vpop.f32.mrf.mxu2 }
 0x257   : > { %2133 = vst [vmem:[#allocation2 + $0x148] sm:$0x3] %v5339_v0 }
 0x258   : > { %v6381_v20 = vadd.f32 %v1445_v42, %v1339_v18  ;;  %2134 = vst [vmem:[#allocation2 + $0x150] sm:$0xff] %v5339_v0 }
 0x259   : > { %4769 = vmatmul.msk.bf16.gmra.mxu0 %vm625_vm2, %v5814_v27  ;;  %2135 = vst [vmem:[#allocation2 + $0x158] sm:$0xff] %v5339_v0 }
 0x25a   : > { %7452 = vst [vmem:[#allocation20_spill] sm:$0xff] %v6381_v20  ;;  %4752 = vmatmul.msk.bf16.gmra.mxu3 %vm625_vm2, %v5801_v4 }
 0x25b   : > { %2136 = vst [vmem:[#allocation2 + $0x160] sm:$0x3] %v5339_v0 }
 0x25c   : > { %2137 = vst [vmem:[#allocation2 + $0x168] sm:$0xff] %v5339_v0 }
 0x25d   : > { %v1775_v42 = vpop.f32.mrf.mxu3  ;;  %2138 = vst [vmem:[#allocation2 + $0x170] sm:$0xff] %v5339_v0 }
 0x25e   : > { %v1855_v27 = vadd.f32 %v1775_v42, %v6034_v61  ;;  %v1914_v4 = vpop.f32.mrf.mxu0  ;;  %2139 = vst [vmem:[#allocation2 + $0x178] sm:$0x3] %v5339_v0 }
 0x25f   : > { %2140 = vst [vmem:[#allocation2 + $0x180] sm:$0xff] %v5339_v0 }
 0x260   : > { %v1992_v35 = vadd.f32 %v1912_v23, %v1855_v27  ;;  %2141 = vst [vmem:[#allocation2 + $0x188] sm:$0xff] %v5339_v0  ;;  %v5249_v23 = vld [vmem:[%s7367_s4 + $0xb0] sm:$0xff]  ;;  %v6414_v27 = vpop.f32.mrf.mxu2 }
 0x261   : > { %2142 = vst [vmem:[#allocation2 + $0x190] sm:$0x3] %v5339_v0  ;;  %2696 = vmatpush.bf16.msrb.mxu3 %v5249_v23 }
 0x262   : > { %v2028_v52 = vadd.f32 %v6400_v24, %v1992_v35  ;;  %2143 = vst [vmem:[#allocation2 + $0x198] sm:$0xff] %v5339_v0 }
 0x263   : > { %2144 = vst [vmem:[#allocation2 + $0x1a0] sm:$0xff] %v5339_v0 }
 0x264   : > { %v2060_v61 = vmax.f32 %v2028_v52, 0.0  ;;  %2145 = vst [vmem:[#allocation2 + $0x1a8] sm:$0x3] %v5339_v0 }
 0x265   : > { %v1777_v29 = vpop.f32.mrf.mxu3 }
 0x266   : > { %2147 = vst [vmem:[#allocation2 + $0x19] sm:$0xff] %v2060_v61  ;;  %v1856_v18 = vadd.f32 %v1777_v29, %v6046_v36  ;;  %v1917_v42 = vpop.f32.mrf.mxu0 }
 0x268   : > { %v1993_v20 = vadd.f32 %v1914_v4, %v1856_v18  ;;  %v5257_v4 = vld [vmem:[%s7367_s4 + $0xf0] sm:$0xff] }
 0x269   : > { %4770 = vmatmul.msk.bf16.gmra.mxu0 %vm625_vm2, %v5862_v62  ;;  %v5265_v62 = vld [vmem:[%s7367_s4 + $0x130] sm:$0xff] }
 0x26a   : > { %v2029_v35 = vadd.f32 %v6400_v24, %v1993_v20  ;;  %4753 = vmatmul.msk.bf16.gmra.mxu3 %vm625_vm2, %v5852_v40  ;;  %2930 = vmatpush.bf16.msrb.mxu0 %v5257_v4  ;;  %v6428_v20 = vpop.f32.mrf.mxu2 }
 0x26b   : > { %3164 = vmatpush.bf16.msrb.mxu1 %v5265_v62 }
 0x26c   : > { %v2061_v0 = vmax.f32 %v2029_v35, 0.0 }
 0x26d   : > { %v1780_v52 = vpop.f32.mrf.mxu3  ;;  %v2181_v35 = vld [vmem:[#allocation2 + $0x18] sm:$0xff] }
 0x26e   : > { %2148 = vst [vmem:[#allocation2 + $0x21] sm:$0xff] %v2061_v0  ;;  %v1857_v36 = vadd.f32 %v1780_v52, %v6051_v31  ;;  %v1919_v29 = vpop.f32.mrf.mxu0  ;;  %v2276_v63 = vpack.c.bf16 %v2061_v0, %v2060_v61 }
 0x270   : > { %v1994_v18 = vadd.f32 %v1917_v42, %v1857_v36  ;;  %2369 = vmatmul.bf16.gmra.mxu1 %v2276_v63  ;;  %v7453_v42 = vld [vmem:[#allocation3_spill] sm:$0xff] }
 0x272   : > { %v2030_v40 = vadd.f32 %v6400_v24, %v1994_v18  ;;  %v6440_v36 = vpop.f32.mrf.mxu2 }
 0x273   : > { %7454 = vst [vmem:[#allocation21_spill] sm:$0xff] %v6440_v36 }
 0x274   : > { %v2062_v23 = vmax.f32 %v2030_v40, 0.0 }
 0x275   : > { %v1782_v31 = vpop.f32.mrf.mxu3  ;;  %v2182_v61 = vld [vmem:[#allocation2 + $0x20] sm:$0xff] }
 0x276   : > { %2149 = vst [vmem:[#allocation2 + $0x31] sm:$0xff] %v2062_v23  ;;  %v1858_v0 = vadd.f32 %v1782_v31, %v6060_v10  ;;  %v1922_v52 = vpop.f32.mrf.mxu0  ;;  %v6432_v51 = vpack.c.bf16 %v2182_v61, %v2181_v35  ;;  %v7455_v10 = vld [vmem:[#allocation16_spill] sm:$0xff] }
 0x278   : > { %v1995_v9 = vadd.f32 %v1919_v29, %v1858_v0  ;;  %2506 = vmatmul.bf16.gmra.mxu2 %v6432_v51 }
 0x279   : > { %4771 = vmatmul.msk.bf16.gmra.mxu0 %vm625_vm2, %v7417_v19 }
 0x27a   : > { %v2031_v63 = vadd.f32 %v6400_v24, %v1995_v9  ;;  %4754 = vmatmul.msk.bf16.gmra.mxu3 %vm625_vm2, %v7453_v42  ;;  %v6444_v19 = vpop.f32.mrf.mxu2  ;;  %v7457_v42 = vld [vmem:[#allocation12_spill] sm:$0xff] }
 0x27b   : > { %7456 = vst [vmem:[#allocation3_spill] sm:$0xff] %v6444_v19 }
 0x27c   : > { %v2063_v4 = vmax.f32 %v2031_v63, 0.0 }
 0x27d   : > { %v1785_v62 = vpop.f32.mrf.mxu3  ;;  %v2183_v0 = vld [vmem:[#allocation2 + $0x30] sm:$0xff] }
 0x27e   : > { %2150 = vst [vmem:[#allocation2 + $0x39] sm:$0xff] %v2063_v4  ;;  %v1859_v18 = vadd.f32 %v1785_v62, %v7455_v10  ;;  %v1924_v40 = vpop.f32.mrf.mxu0  ;;  %v2277_v31 = vpack.c.bf16 %v2063_v4, %v2062_v23  ;;  %v5248_v23 = vld [vmem:[%s7367_s4 + $0xa8] sm:$0xff]  ;;  %v7458_v62 = vld [vmem:[#allocation4_spill] sm:$0xff] }
 0x27f   : > { %2697 = vmatpush.bf16.msrb.mxu3 %v5248_v23 }
 0x280   : > { %v1996_v29 = vadd.f32 %v1922_v52, %v1859_v18  ;;  %2374 = vmatmul.bf16.gmra.mxu1 %v2277_v31 }
 0x282   : > { %v2032_v35 = vadd.f32 %v6400_v24, %v1996_v29 }
 0x284   : > { %v2064_v61 = vmax.f32 %v2032_v35, 0.0 }
 0x285   : > { %v1787_v9 = vpop.f32.mrf.mxu3  ;;  %v2184_v33 = vld [vmem:[#allocation2 + $0x38] sm:$0xff] }
 0x286   : > { %2151 = vst [vmem:[#allocation2 + $0x49] sm:$0xff] %v2064_v61  ;;  %v1860_v28 = vadd.f32 %v1787_v9, %v7457_v42  ;;  %v1927_v63 = vpop.f32.mrf.mxu0  ;;  %v6447_v7 = vpack.c.bf16 %v2184_v33, %v2183_v0  ;;  %v7459_v33 = vld [vmem:[#allocation9_spill] sm:$0xff] }
 0x288   : > { %v1997_v52 = vadd.f32 %v1924_v40, %v1860_v28  ;;  %2511 = vmatmul.bf16.gmra.mxu2 %v6447_v7  ;;  %v5256_v28 = vld [vmem:[%s7367_s4 + $0xe8] sm:$0xff]  ;;  %v6465_v40 = vpop.f32.mrf.mxu2 }
 0x289   : > { %4772 = vmatmul.msk.bf16.gmra.mxu0 %vm625_vm2, %v7422_v30  ;;  %v5264_v30 = vld [vmem:[%s7367_s4 + $0x128] sm:$0xff]  ;;  %7460 = vst [vmem:[#allocation16_spill] sm:$0xff] %v6465_v40 }
 0x28a   : > { %v2033_v4 = vadd.f32 %v6400_v24, %v1997_v52  ;;  %4755 = vmatmul.msk.bf16.gmra.mxu3 %vm625_vm2, %v7458_v62  ;;  %2931 = vmatpush.bf16.msrb.mxu0 %v5256_v28 }
 0x28b   : > { %3165 = vmatpush.bf16.msrb.mxu1 %v5264_v30 }
 0x28c   : > { %v2065_v10 = vmax.f32 %v2033_v4, 0.0  ;;  %v7461_v4 = vld [vmem:[#allocation22_spill] sm:$0xff] }
 0x28d   : > { %v1790_v18 = vpop.f32.mrf.mxu3  ;;  %v2185_v52 = vld [vmem:[#allocation2 + $0x48] sm:$0xff] }
 0x28e   : > { %2152 = vst [vmem:[#allocation2 + $0x51] sm:$0xff] %v2065_v10  ;;  %v1861_v31 = vadd.f32 %v1790_v18, %v7459_v33  ;;  %v1929_v29 = vpop.f32.mrf.mxu0  ;;  %v2278_v35 = vpack.c.bf16 %v2065_v10, %v2064_v61 }
 0x290   : > { %v1998_v9 = vadd.f32 %v1927_v63, %v1861_v31  ;;  %2379 = vmatmul.bf16.gmra.mxu1 %v2278_v35  ;;  %v6472_v40 = vpop.f32.mrf.mxu2  ;;  %v7463_v63 = vld [vmem:[#allocation15_spill] sm:$0xff]  ;;  %v7464_v35 = vld [vmem:[#allocation5_spill] sm:$0xff] }
 0x291   : > { %7462 = vst [vmem:[#allocation12_spill] sm:$0xff] %v6472_v40 }
 0x292   : > { %v2034_v0 = vadd.f32 %v6400_v24, %v1998_v9  ;;  %v7465_v9 = vld [vmem:[#allocation10_spill] sm:$0xff] }
 0x294   : > { %v2066_v42 = vmax.f32 %v2034_v0, 0.0 }
 0x295   : > { %v1792_v23 = vpop.f32.mrf.mxu3  ;;  %v2186_v61 = vld [vmem:[#allocation2 + $0x50] sm:$0xff] }
 0x296   : > { %2153 = vst [vmem:[#allocation2 + $0x61] sm:$0xff] %v2066_v42  ;;  %v1862_v62 = vadd.f32 %v1792_v23, %v7461_v4  ;;  %v1932_v10 = vpop.f32.mrf.mxu0  ;;  %v6469_v18 = vpack.c.bf16 %v2186_v61, %v2185_v52  ;;  %v7467_v61 = vld [vmem:[#allocation14_spill] sm:$0xff] }
 0x298   : > { %v1999_v33 = vadd.f32 %v1929_v29, %v1862_v62  ;;  %2516 = vmatmul.bf16.gmra.mxu2 %v6469_v18  ;;  %v7466_v29 = vld [vmem:[#allocation23_spill] sm:$0xff] }
 0x299   : > { %4773 = vmatmul.msk.bf16.gmra.mxu0 %vm625_vm2, %v7463_v63  ;;  %v1594_v4 = vadd.f32 %v7467_v61, %v7466_v29  ;;  %v6483_v63 = vpop.f32.mrf.mxu2 }
 0x29a   : > { %v2035_v31 = vadd.f32 %v6400_v24, %v1999_v33  ;;  %4756 = vmatmul.msk.bf16.gmra.mxu3 %vm625_vm2, %v7464_v35 }
 0x29b   : > { %v1724_v33 = vadd.f32 %v6188_v14, %v1594_v4  ;;  %v7468_v14 = vld [vmem:[#allocation17_spill] sm:$0xff] }
 0x29c   : > { %v2067_v28 = vmax.f32 %v2035_v31, 0.0 }
 0x29d   : > { %v1795_v30 = vpop.f32.mrf.mxu3  ;;  %v2187_v31 = vld [vmem:[#allocation2 + $0x60] sm:$0xff] }
 0x29e   : > { %2154 = vst [vmem:[#allocation2 + $0x69] sm:$0xff] %v2067_v28  ;;  %v1863_v0 = vadd.f32 %v1795_v30, %v7465_v9  ;;  %v1934_v23 = vpop.f32.mrf.mxu0  ;;  %v2279_v52 = vpack.c.bf16 %v2067_v28, %v2066_v42  ;;  %v5247_v42 = vld [vmem:[%s7367_s4 + $0xa0] sm:$0xff] }
 0x29f   : > { %2698 = vmatpush.bf16.msrb.mxu3 %v5247_v42  ;;  %v5245_v42 = vld [vmem:[%s7367_s4 + $0x90] sm:$0xff] }
 0x2a0   : > { %v2000_v62 = vadd.f32 %v1932_v10, %v1863_v0  ;;  %2384 = vmatmul.bf16.gmra.mxu1 %v2279_v52  ;;  %v5255_v10 = vld [vmem:[%s7367_s4 + $0xe0] sm:$0xff]  ;;  %v7469_v0 = vld [vmem:[#allocation6_spill] sm:$0xff] }
 0x2a1   : > { %2932 = vmatpush.bf16.msrb.mxu0 %v5255_v10  ;;  %v6508_v61 = vpop.f32.mrf.mxu2  ;;  %v7471_v10 = vld [vmem:[#allocation25_spill] sm:$0xff] }
 0x2a2   : > { %v2036_v40 = vadd.f32 %v6400_v24, %v2000_v62 }
 0x2a4   : > { %v2068_v19 = vmax.f32 %v2036_v40, 0.0 }
 0x2a5   : > { %v1797_v35 = vpop.f32.mrf.mxu3  ;;  %v2188_v36 = vld [vmem:[#allocation2 + $0x68] sm:$0xff] }
 0x2a6   : > { %2155 = vst [vmem:[#allocation2 + $0x79] sm:$0xff] %v2068_v19  ;;  %v1864_v2 = vadd.f32 %v1797_v35, %v1724_v33  ;;  %v1937_v30 = vpop.f32.mrf.mxu0  ;;  %v6486_v9 = vpack.c.bf16 %v2188_v36, %v2187_v31  ;;  %v5246_v36 = vld [vmem:[%s7367_s4 + $0x98] sm:$0xff]  ;;  %v5263_v31 = vld [vmem:[%s7367_s4 + $0x120] sm:$0xff] }
 0x2a7   : > { %2699 = vmatpush.bf16.msrb.mxu3 %v5246_v36  ;;  %3166 = vmatpush.bf16.msrb.mxu1 %v5263_v31  ;;  %v5252_v36 = vld [vmem:[%s7367_s4 + $0xc8] sm:$0xff]  ;;  %v6531_v31 = vpop.f32.mrf.mxu1 }
 0x2a8   : > { %v2001_v28 = vadd.f32 %v1934_v23, %v1864_v2  ;;  %2521 = vmatmul.bf16.gmra.mxu2 %v6486_v9  ;;  %v5254_v2 = vld [vmem:[%s7367_s4 + $0xd8] sm:$0xff]  ;;  %v7470_v23 = vld [vmem:[#allocation11_spill] sm:$0xff] }
 0x2a9   : > { %4774 = vmatmul.msk.bf16.gmra.mxu0 %vm625_vm2, %v7468_v14  ;;  %v1725_v52 = vadd.f32 %v6195_v5, %v7470_v23  ;;  %v5253_v5 = vld [vmem:[%s7367_s4 + $0xd0] sm:$0xff] }
 0x2aa   : > { %v2037_v40 = vadd.f32 %v6400_v24, %v2001_v28  ;;  %4757 = vmatmul.msk.bf16.gmra.mxu3 %vm625_vm2, %v7469_v0  ;;  %2933 = vmatpush.bf16.msrb.mxu0 %v5254_v2  ;;  %v7472_v28 = vld [vmem:[#allocation24_spill] sm:$0xff]  ;;  %v5244_v0 = vld [vmem:[%s7367_s4 + $0x88] sm:$0xff] }
 0x2ab   : > { %v1596_v14 = vadd.f32 %v7472_v28, %v7471_v10  ;;  %2700 = vmatpush.bf16.msrb.mxu3 %v5245_v42  ;;  %v6533_v42 = vpop.f32.mrf.mxu2  ;;  %v5251_v10 = vld [vmem:[%s7367_s4 + $0xc0] sm:$0xff] }
 0x2ac   : > { %v2069_v29 = vmax.f32 %v2037_v40, 0.0  ;;  %7473 = vst [vmem:[#allocation4_spill] sm:$0xff] %v6533_v42 }
 0x2ad   : > { %v1800_v4 = vpop.f32.mrf.mxu3  ;;  %v1726_v2 = vadd.f32 %v6210_v49, %v1596_v14  ;;  %v5243_v49 = vld [vmem:[%s7367_s4 + $0x80] sm:$0xff] }
 0x2ae   : > { %2156 = vst [vmem:[#allocation2 + $0x81] sm:$0xff] %v2069_v29  ;;  %v1865_v62 = vadd.f32 %v1800_v4, %v1725_v52  ;;  %v1939_v33 = vpop.f32.mrf.mxu0  ;;  %v2280_v35 = vpack.c.bf16 %v2069_v29, %v2068_v19  ;;  %2934 = vmatpush.bf16.msrb.mxu0 %v5253_v5  ;;  %v370_v5 = vld [vmem:[%s5425_s21 + $0x1a8] sm:$0x3] }
 0x2af   : > { %2701 = vmatpush.bf16.msrb.mxu3 %v5244_v0 }
 0x2b0   : > { %v2002_v40 = vadd.f32 %v1937_v30, %v1865_v62  ;;  %2389 = vmatmul.bf16.gmra.mxu1 %v2280_v35  ;;  %v2189_v30 = vld [vmem:[#allocation2 + $0x78] sm:$0xff] }
 0x2b2   : > { %v2038_v19 = vadd.f32 %v6400_v24, %v2002_v40  ;;  %2935 = vmatpush.bf16.msrb.mxu0 %v5252_v36  ;;  %v428_v40 = vmul.f32 %v6122_v60, %v370_v5 }
 0x2b3   : > { %2702 = vmatpush.bf16.msrb.mxu3 %v5243_v49  ;;  %v2502_v49 = vpop.f32.mrf.mxu2 }
 0x2b4   : > { %v2070_v23 = vmax.f32 %v2038_v19, 0.0  ;;  %v1727_v19 = vadd.f32 %v6220_v15, %v6145_v11  ;;  %v1753_v60 = vrot.slane %v428_v40, 1  ;;  %v7474_v11 = vld [vmem:[#allocation26_spill] sm:$0xff] }
 0x2b5   : > { %v1802_v52 = vpop.f32.mrf.mxu3  ;;  %v2190_v29 = vld [vmem:[#allocation2 + $0x80] sm:$0xff]  ;;  %v2365_v5 = vpop.f32.mrf.mxu1  ;;  %v1598_v15 = vadd.f32 %v7474_v11, %v6165_v25  ;;  %v1600_v11 = vadd.f32 %v6172_v34, %v6182_v16 }
 0x2b6   : > { %2157 = vst [vmem:[#allocation2 + $0x91] sm:$0xff] %v2070_v23  ;;  %v1866_v4 = vadd.f32 %v1802_v52, %v1726_v2  ;;  %v1942_v62 = vpop.f32.mrf.mxu0  ;;  %v6529_v35 = vpack.c.bf16 %v2190_v29, %v2189_v30  ;;  %2936 = vmatpush.bf16.msrb.mxu0 %v5251_v10  ;;  %v1888_v30 = vrot.slane %v6155_v38, 2  ;;  %v1890_v29 = vrot.slane %v428_v40, 2 }
 0x2b7   : > { %v1728_v40 = vadd.f32 %v6231_v37, %v1598_v15  ;;  %v1729_v37 = vadd.f32 %v6245_v50, %v6176_v17  ;;  %v2583_v17 = vld [vmem:[#allocation2 + $0xa] sm:$0xff]  ;;  %v1730_v50 = vadd.f32 %v6254_v12, %v1600_v11  ;;  %v1731_v12 = vadd.f32 %v6268_v41, %v6193_v3  ;;  %v2585_v11 = vld [vmem:[#allocation2 + $0x22] sm:$0xff] }
 0x2b8   : > { %v2003_v28 = vadd.f32 %v1939_v33, %v1866_v4  ;;  %2526 = vmatmul.bf16.gmra.mxu2 %v6529_v35  ;;  %v1887_v33 = vrot.slane %v6152_v59, 2  ;;  %v1750_v4 = vrot.slane %v6152_v59, 1 }
 0x2b9   : > { %4775 = vmatmul.msk.bf16.gmra.mxu0 %vm625_vm2, %v6149_v8 }
 0x2ba   : > { %v2039_v14 = vadd.f32 %v6400_v24, %v2003_v28  ;;  %4758 = vmatmul.msk.bf16.gmra.mxu3 %vm625_vm2, %v6157_v6  ;;  %v1751_v6 = vrot.slane %v6155_v38, 1  ;;  %v6557_v28 = vadd.f32 %v2502_v49, %v2365_v5 }
 0x2bc   : > { %v2071_v0 = vmax.f32 %v2039_v14, 0.0  ;;  %v1752_v59 = vsel %vm494_vm1, %v1750_v4, %v1751_v6  ;;  %v1754_v38 = vsel %vm494_vm1, %v1751_v6, %v1753_v60 }
 0x2bd   : > { %v1805_v36 = vpop.f32.mrf.mxu3  ;;  %v2191_v42 = vld [vmem:[#allocation2 + $0x90] sm:$0xff]  ;;  %v1757_v49 = vpack.c.bf16 %v1754_v38, %v1752_v59 }
 0x2be   : > { %2158 = vst [vmem:[#allocation2 + $0x99] sm:$0xff] %v2071_v0  ;;  %v1867_v2 = vadd.f32 %v1805_v36, %v1727_v19  ;;  %v1944_v52 = vpop.f32.mrf.mxu0  ;;  %v2281_v8 = vpack.c.bf16 %v2071_v0, %v2070_v23  ;;  %v1889_v23 = vsel %vm907_vm3, %v1887_v33, %v1888_v30  ;;  %v1891_v19 = vsel %vm907_vm3, %v1888_v30, %v1890_v29 }
 0x2c0   : > { %v2004_v10 = vadd.f32 %v1942_v62, %v1867_v2  ;;  %2394 = vmatmul.bf16.gmra.mxu1 %v2281_v8  ;;  %v1894_v62 = vpack.c.bf16 %v1891_v19, %v1889_v23 }
 0x2c2   : > { %v2040_v14 = vadd.f32 %v6400_v24, %v2004_v10 }
 0x2c4   : > { %v2072_v0 = vmax.f32 %v2040_v14, 0.0  ;;  %v2582_v14 = vld [vmem:[#allocation2 + $0x2] sm:$0xff] }
 0x2c5   : > { %v1807_v36 = vpop.f32.mrf.mxu3  ;;  %v2192_v25 = vld [vmem:[#allocation2 + $0x98] sm:$0xff] }
 0x2c6   : > { %2159 = vst [vmem:[#allocation2 + $0xa9] sm:$0xff] %v2072_v0  ;;  %v1868_v2 = vadd.f32 %v1807_v36, %v1728_v40  ;;  %v1947_v8 = vpop.f32.mrf.mxu0  ;;  %v6565_v5 = vpack.c.bf16 %v2192_v25, %v2191_v42  ;;  %v2614_v25 = vpack.c.bf16 %v2583_v17, %v2582_v14  ;;  %v1733_v17 = vadd.f32 %v6306_v58, %v6212_v47  ;;  %v6612_v47 = vpop.f32.mrf.mxu2 }
 0x2c8   : > { %v2005_v33 = vadd.f32 %v1944_v52, %v1868_v2  ;;  %2531 = vmatmul.bf16.gmra.mxu2 %v6565_v5  ;;  %v5262_v52 = vld [vmem:[%s7367_s4 + $0x118] sm:$0xff] }
 0x2c9   : > { %4776 = vmatmul.msk.bf16.gmra.mxu0 %vm625_vm2, %v1894_v62  ;;  %3167 = vmatpush.bf16.msrb.mxu1 %v5262_v52 }
 0x2ca   : > { %v2041_v30 = vadd.f32 %v6400_v24, %v2005_v33  ;;  %4759 = vmatmul.msk.bf16.gmra.mxu3 %vm625_vm2, %v1757_v49 }
 0x2cc   : > { %v2073_v29 = vmax.f32 %v2041_v30, 0.0  ;;  %v5274_v30 = vld [vmem:[%s7367_s4 + $0x178] sm:$0xff] }
 0x2cd   : > { %v1810_v4 = vpop.f32.mrf.mxu3  ;;  %v2193_v59 = vld [vmem:[#allocation2 + $0xa8] sm:$0xff]  ;;  %3397 = vmatpush.bf16.msrb.mxu2 %v5274_v30 }
 0x2ce   : > { %2160 = vst [vmem:[#allocation2 + $0xb1] sm:$0xff] %v2073_v29  ;;  %v1869_v6 = vadd.f32 %v1810_v4, %v1729_v37  ;;  %v1949_v60 = vpop.f32.mrf.mxu0  ;;  %v2282_v42 = vpack.c.bf16 %v2073_v29, %v2072_v0  ;;  %v1602_v37 = vadd.f32 %v6190_v44, %v6201_v21  ;;  %v2584_v4 = vld [vmem:[#allocation2 + $0x1a] sm:$0xff] }
 0x2cf   : > { %v6599_v21 = vpack.c.bf16 %v2585_v11, %v2584_v4 }
 0x2d0   : > { %v2006_v15 = vadd.f32 %v1947_v8, %v1869_v6  ;;  %2399 = vmatmul.bf16.gmra.mxu1 %v2282_v42  ;;  %v1732_v3 = vadd.f32 %v6288_v39, %v1602_v37 }
 0x2d2   : > { %v2042_v10 = vadd.f32 %v6400_v24, %v2006_v15 }
 0x2d4   : > { %v2074_v23 = vmax.f32 %v2042_v10, 0.0 }
 0x2d5   : > { %v1812_v19 = vpop.f32.mrf.mxu3  ;;  %v2194_v38 = vld [vmem:[#allocation2 + $0xb0] sm:$0xff] }
 0x2d6   : > { %2161 = vst [vmem:[#allocation2 + $0xc1] sm:$0xff] %v2074_v23  ;;  %v1870_v40 = vadd.f32 %v1812_v19, %v1730_v50  ;;  %v1952_v0 = vpop.f32.mrf.mxu0  ;;  %v6580_v36 = vpack.c.bf16 %v2194_v38, %v2193_v59 }
 0x2d8   : > { %v2007_v34 = vadd.f32 %v1949_v60, %v1870_v40  ;;  %2536 = vmatmul.bf16.gmra.mxu2 %v6580_v36  ;;  %v6594_v60 = vpop.f32.mrf.mxu1 }
 0x2d9   : > { %2937 = vmatmul.bf16.vlgmr.msrb.gmra.mxu0 %v6432_v51 }
 0x2da   : > { %v2043_v16 = vadd.f32 %v6400_v24, %v2007_v34  ;;  %2703 = vmatmul.bf16.vlgmr.msrb.gmra.mxu3 %v2614_v25 }
 0x2dc   : > { %v2075_v62 = vmax.f32 %v2043_v16, 0.0 }
 0x2dd   : > { %v1815_v2 = vpop.f32.mrf.mxu3  ;;  %v2195_v42 = vld [vmem:[#allocation2 + $0xc0] sm:$0xff] }
 0x2de   : > { %2162 = vst [vmem:[#allocation2 + $0xc9] sm:$0xff] %v2075_v62  ;;  %v1871_v8 = vadd.f32 %v1815_v2, %v1731_v12  ;;  %v1954_v49 = vpop.f32.mrf.mxu0  ;;  %v2283_v33 = vpack.c.bf16 %v2075_v62, %v2074_v23  ;;  %v2586_v12 = vld [vmem:[#allocation2 + $0x32] sm:$0xff] }
 0x2e0   : > { %v2008_v51 = vadd.f32 %v1952_v0, %v1871_v8  ;;  %2404 = vmatmul.bf16.gmra.mxu1 %v2283_v33  ;;  %v5261_v0 = vld [vmem:[%s7367_s4 + $0x110] sm:$0xff] }
 0x2e1   : > { %3168 = vmatpush.bf16.msrb.mxu1 %v5261_v0 }
 0x2e2   : > { %v2044_v29 = vadd.f32 %v6400_v24, %v2008_v51 }
 0x2e4   : > { %v2076_v41 = vmax.f32 %v2044_v29, 0.0 }
 0x2e5   : > { %v1817_v6 = vpop.f32.mrf.mxu3  ;;  %v2196_v52 = vld [vmem:[#allocation2 + $0xc8] sm:$0xff] }
 0x2e6   : > { %2163 = vst [vmem:[#allocation2 + $0xd9] sm:$0xff] %v2076_v41  ;;  %v1872_v15 = vadd.f32 %v1817_v6, %v1732_v3  ;;  %v1957_v10 = vpop.f32.mrf.mxu0  ;;  %v6596_v14 = vpack.c.bf16 %v2196_v52, %v2195_v42  ;;  %v1735_v3 = vadd.f32 %v6348_v43, %v6229_v46 }
 0x2e8   : > { %v2009_v44 = vadd.f32 %v1954_v49, %v1872_v15  ;;  %2541 = vmatmul.bf16.gmra.mxu2 %v6596_v14  ;;  %v2587_v49 = vld [vmem:[#allocation2 + $0x3a] sm:$0xff] }
 0x2e9   : > { %2942 = vmatmul.bf16.gmra.mxu0 %v6447_v7  ;;  %v1604_v7 = vadd.f32 %v6207_v22, %v6218_v26  ;;  %v6618_v51 = vpack.c.bf16 %v2587_v49, %v2586_v12 }
 0x2ea   : > { %v2045_v39 = vadd.f32 %v6400_v24, %v2009_v44  ;;  %2708 = vmatmul.bf16.gmra.mxu3 %v6599_v21 }
 0x2eb   : > { %v1734_v58 = vadd.f32 %v6326_v53, %v1604_v7 }
 0x2ec   : > { %v2077_v50 = vmax.f32 %v2045_v39, 0.0 }
 0x2ed   : > { %v1820_v23 = vpop.f32.mrf.mxu3  ;;  %v2370_v19 = vpop.f32.mrf.mxu1  ;;  %v2197_v2 = vld [vmem:[#allocation2 + $0xd8] sm:$0xff] }
 0x2ee   : > { %2164 = vst [vmem:[#allocation2 + $0xe1] sm:$0xff] %v2077_v50  ;;  %v1873_v59 = vadd.f32 %v1820_v23, %v1733_v17  ;;  %v1959_v38 = vpop.f32.mrf.mxu0  ;;  %v2284_v40 = vpack.c.bf16 %v2077_v50, %v2076_v41  ;;  %v2588_v23 = vld [vmem:[#allocation2 + $0x4a] sm:$0xff] }
 0x2f0   : > { %v2010_v25 = vadd.f32 %v1957_v10, %v1873_v59  ;;  %2409 = vmatmul.bf16.gmra.mxu1 %v2284_v40  ;;  %v1606_v10 = vadd.f32 %v6226_v32, %v6237_v56  ;;  %v2589_v40 = vld [vmem:[#allocation2 + $0x52] sm:$0xff] }
 0x2f2   : > { %v2046_v34 = vadd.f32 %v6400_v24, %v2010_v25  ;;  %v1736_v39 = vadd.f32 %v6373_v1, %v1606_v10 }
 0x2f4   : > { %v2078_v16 = vmax.f32 %v2046_v34, 0.0  ;;  %v6639_v34 = vpack.c.bf16 %v2589_v40, %v2588_v23 }
 0x2f5   : > { %v1822_v62 = vpop.f32.mrf.mxu3  ;;  %v2198_v8 = vld [vmem:[#allocation2 + $0xe0] sm:$0xff]  ;;  %v2372_v33 = vpop.f32.mrf.mxu1 }
 0x2f6   : > { %2165 = vst [vmem:[#allocation2 + $0xf1] sm:$0xff] %v2078_v16  ;;  %v1874_v30 = vadd.f32 %v1822_v62, %v1734_v58  ;;  %v1962_v37 = vpop.f32.mrf.mxu0  ;;  %v6615_v22 = vpack.c.bf16 %v2198_v8, %v2197_v2 }
 0x2f8   : > { %v2011_v26 = vadd.f32 %v1959_v38, %v1874_v30  ;;  %2546 = vmatmul.bf16.gmra.mxu2 %v6615_v22 }
 0x2f9   : > { %2947 = vmatmul.bf16.gmra.mxu0 %v6469_v18  ;;  %v5273_v18 = vld [vmem:[%s7367_s4 + $0x170] sm:$0xff] }
 0x2fa   : > { %v2047_v53 = vadd.f32 %v6400_v24, %v2011_v26  ;;  %2713 = vmatmul.bf16.gmra.mxu3 %v6618_v51  ;;  %3398 = vmatpush.bf16.msrb.mxu2 %v5273_v18 }
 0x2fb   : > { %v2507_v29 = vpop.f32.mrf.mxu2 }
 0x2fc   : > { %v2079_v41 = vmax.f32 %v2047_v53, 0.0  ;;  %v6625_v4 = vadd.f32 %v2507_v29, %v2370_v19 }
 0x2fd   : > { %v1825_v6 = vpop.f32.mrf.mxu3  ;;  %v2375_v42 = vpop.f32.mrf.mxu1  ;;  %v2199_v59 = vld [vmem:[#allocation2 + $0xf0] sm:$0xff] }
 0x2fe   : > { %2166 = vst [vmem:[#allocation2 + $0xf9] sm:$0xff] %v2079_v41  ;;  %v1875_v52 = vadd.f32 %v1825_v6, %v1735_v3  ;;  %v1964_v11 = vpop.f32.mrf.mxu0  ;;  %v2285_v15 = vpack.c.bf16 %v2079_v41, %v2078_v16  ;;  %v1737_v16 = vadd.f32 %v6392_v45, %v6248_v48  ;;  %v2590_v41 = vld [vmem:[#allocation2 + $0x62] sm:$0xff] }
 0x300   : > { %v2012_v44 = vadd.f32 %v1962_v37, %v1875_v52  ;;  %2414 = vmatmul.bf16.gmra.mxu1 %v2285_v15  ;;  %v1608_v37 = vadd.f32 %v6243_v57, %v6256_v54 }
 0x302   : > { %v2048_v46 = vadd.f32 %v6400_v24, %v2012_v44  ;;  %v1738_v53 = vadd.f32 %v6414_v27, %v1608_v37 }
 0x303   : > { %v2509_v43 = vpop.f32.mrf.mxu2 }
 0x304   : > { %v2080_v17 = vmax.f32 %v2048_v46, 0.0  ;;  %v6634_v50 = vadd.f32 %v2509_v43, %v2372_v33  ;;  %v1739_v43 = vadd.f32 %v6428_v20, %v6270_v13 }
 0x305   : > { %v1827_v19 = vpop.f32.mrf.mxu3  ;;  %v2200_v38 = vld [vmem:[#allocation2 + $0xf8] sm:$0xff]  ;;  %v2377_v0 = vpop.f32.mrf.mxu1 }
 0x306   : > { %2167 = vst [vmem:[#allocation2 + $0x109] sm:$0xff] %v2080_v17  ;;  %v1876_v7 = vadd.f32 %v1827_v19, %v1736_v39  ;;  %v1967_v32 = vpop.f32.mrf.mxu0  ;;  %v6636_v56 = vpack.c.bf16 %v2200_v38, %v2199_v59 }
 0x308   : > { %v2013_v25 = vadd.f32 %v1964_v11, %v1876_v7  ;;  %2551 = vmatmul.bf16.gmra.mxu2 %v6636_v56  ;;  %v2591_v11 = vld [vmem:[#allocation2 + $0x6a] sm:$0xff] }
 0x309   : > { %2952 = vmatmul.bf16.gmra.mxu0 %v6486_v9  ;;  %v5260_v9 = vld [vmem:[%s7367_s4 + $0x108] sm:$0xff]  ;;  %v6660_v44 = vpack.c.bf16 %v2591_v11, %v2590_v41  ;;  %v7478_v41 = vld [vmem:[#allocation3_spill] sm:$0xff] }
 0x30a   : > { %v2049_v1 = vadd.f32 %v6400_v24, %v2013_v25  ;;  %2718 = vmatmul.bf16.gmra.mxu3 %v6639_v34  ;;  %3169 = vmatpush.bf16.msrb.mxu1 %v5260_v9  ;;  %v7476_v25 = vld [vmem:[#allocation21_spill] sm:$0xff] }
 0x30b   : > { %v2512_v58 = vpop.f32.mrf.mxu2 }
 0x30c   : > { %v2081_v12 = vmax.f32 %v2049_v1, 0.0  ;;  %v6646_v62 = vadd.f32 %v2512_v58, %v2375_v42 }
 0x30d   : > { %v1830_v2 = vpop.f32.mrf.mxu3  ;;  %v2380_v8 = vpop.f32.mrf.mxu1  ;;  %v2201_v42 = vld [vmem:[#allocation2 + $0x108] sm:$0xff] }
 0x30e   : > { %2168 = vst [vmem:[#allocation2 + $0x111] sm:$0xff] %v2081_v12  ;;  %v1877_v49 = vadd.f32 %v1830_v2, %v1737_v16  ;;  %v1969_v33 = vpop.f32.mrf.mxu0  ;;  %v2286_v30 = vpack.c.bf16 %v2081_v12, %v2080_v17  ;;  %v2592_v12 = vld [vmem:[#allocation2 + $0x7a] sm:$0xff] }
 0x310   : > { %v2014_v26 = vadd.f32 %v1967_v32, %v1877_v49  ;;  %2419 = vmatmul.bf16.gmra.mxu1 %v2286_v30 }
 0x312   : > { %v2050_v48 = vadd.f32 %v6400_v24, %v2014_v26 }
 0x313   : > { %v2514_v45 = vpop.f32.mrf.mxu2 }
 0x314   : > { %v2082_v29 = vmax.f32 %v2050_v48, 0.0  ;;  %v6655_v3 = vadd.f32 %v2514_v45, %v2377_v0  ;;  %v7475_v0 = vld [vmem:[#allocation7_spill] sm:$0xff] }
 0x315   : > { %v1832_v6 = vpop.f32.mrf.mxu3  ;;  %v2202_v52 = vld [vmem:[#allocation2 + $0x110] sm:$0xff]  ;;  %v2382_v15 = vpop.f32.mrf.mxu1  ;;  %v1610_v7 = vadd.f32 %v7475_v0, %v6282_v55 }
 0x316   : > { %2169 = vst [vmem:[#allocation2 + $0x121] sm:$0xff] %v2082_v29  ;;  %v1878_v18 = vadd.f32 %v1832_v6, %v1738_v53  ;;  %v1972_v57 = vpop.f32.mrf.mxu0  ;;  %v6657_v54 = vpack.c.bf16 %v2202_v52, %v2201_v42  ;;  %v2594_v0 = vld [vmem:[#allocation2 + $0x92] sm:$0xff] }
 0x317   : > { %v1740_v1 = vadd.f32 %v7476_v25, %v1610_v7  ;;  %v2595_v7 = vld [vmem:[#allocation2 + $0x9a] sm:$0xff] }
 0x318   : > { %v2015_v10 = vadd.f32 %v1969_v33, %v1878_v18  ;;  %2556 = vmatmul.bf16.gmra.mxu2 %v6657_v54  ;;  %v2593_v33 = vld [vmem:[#allocation2 + $0x82] sm:$0xff] }
 0x319   : > { %2957 = vmatmul.bf16.gmra.mxu0 %v6529_v35  ;;  %v5272_v35 = vld [vmem:[%s7367_s4 + $0x168] sm:$0xff]  ;;  %v6681_v48 = vpack.c.bf16 %v2593_v33, %v2592_v12  ;;  %v5270_v33 = vld [vmem:[%s7367_s4 + $0x158] sm:$0xff] }
 0x31a   : > { %v2051_v27 = vadd.f32 %v6400_v24, %v2015_v10  ;;  %2723 = vmatmul.bf16.gmra.mxu3 %v6660_v44  ;;  %3399 = vmatpush.bf16.msrb.mxu2 %v5272_v35 }
 0x31b   : > { %v2517_v46 = vpop.f32.mrf.mxu2 }
 0x31c   : > { %v2083_v39 = vmax.f32 %v2051_v27, 0.0  ;;  %v6667_v17 = vadd.f32 %v2517_v46, %v2380_v8  ;;  %v7479_v27 = vld [vmem:[#allocation27_spill] sm:$0xff]  ;;  %v7480_v46 = vld [vmem:[#allocation8_spill] sm:$0xff] }
 0x31d   : > { %v1835_v23 = vpop.f32.mrf.mxu3  ;;  %v2385_v19 = vpop.f32.mrf.mxu1  ;;  %v2203_v8 = vld [vmem:[#allocation2 + $0x120] sm:$0xff] }
 0x31e   : > { %2170 = vst [vmem:[#allocation2 + $0x129] sm:$0xff] %v2083_v39  ;;  %v1879_v59 = vadd.f32 %v1835_v23, %v1739_v43  ;;  %v1974_v38 = vpop.f32.mrf.mxu0  ;;  %v2287_v40 = vpack.c.bf16 %v2083_v39, %v2082_v29  ;;  %v7477_v29 = vld [vmem:[#allocation18_spill] sm:$0xff]  ;;  %v1612_v43 = vadd.f32 %v7480_v46, %v7479_v27 }
 0x31f   : > { %v1741_v6 = vadd.f32 %v7478_v41, %v7477_v29 }
 0x320   : > { %v2016_v32 = vadd.f32 %v1972_v57, %v1879_v59  ;;  %2424 = vmatmul.bf16.gmra.mxu1 %v2287_v40  ;;  %v7481_v59 = vld [vmem:[#allocation16_spill] sm:$0xff] }
 0x322   : > { %v2052_v13 = vadd.f32 %v6400_v24, %v2016_v32 }
 0x323   : > { %v2519_v20 = vpop.f32.mrf.mxu2 }
 0x324   : > { %v2084_v58 = vmax.f32 %v2052_v13, 0.0  ;;  %v6676_v16 = vadd.f32 %v2519_v20, %v2382_v15 }
 0x325   : > { %v1837_v2 = vpop.f32.mrf.mxu3  ;;  %v2204_v49 = vld [vmem:[#allocation2 + $0x128] sm:$0xff]  ;;  %v2387_v30 = vpop.f32.mrf.mxu1 }
 0x326   : > { %2171 = vst [vmem:[#allocation2 + $0x139] sm:$0xff] %v2084_v58  ;;  %v1880_v9 = vadd.f32 %v1837_v2, %v1740_v1  ;;  %v1977_v55 = vpop.f32.mrf.mxu0  ;;  %v6678_v37 = vpack.c.bf16 %v2204_v49, %v2203_v8  ;;  %v5271_v1 = vld [vmem:[%s7367_s4 + $0x160] sm:$0xff]  ;;  %v6705_v49 = vpack.c.bf16 %v2595_v7, %v2594_v0 }
 0x327   : > { %3400 = vmatpush.bf16.msrb.mxu2 %v5271_v1 }
 0x328   : > { %v2017_v26 = vadd.f32 %v1974_v38, %v1880_v9  ;;  %2561 = vmatmul.bf16.gmra.mxu2 %v6678_v37  ;;  %v1742_v38 = vadd.f32 %v7481_v59, %v1612_v43 }
 0x329   : > { %2962 = vmatmul.bf16.gmra.mxu0 %v6565_v5  ;;  %v5259_v5 = vld [vmem:[%s7367_s4 + $0x100] sm:$0xff] }
 0x32a   : > { %v2053_v45 = vadd.f32 %v6400_v24, %v2017_v26  ;;  %2728 = vmatmul.bf16.gmra.mxu3 %v6681_v48  ;;  %3170 = vmatpush.bf16.msrb.mxu1 %v5259_v5  ;;  %v7483_v26 = vld [vmem:[#allocation12_spill] sm:$0xff]  ;;  %v7485_v5 = vld [vmem:[#allocation29_spill] sm:$0xff] }
 0x32b   : > { %v2522_v53 = vpop.f32.mrf.mxu2  ;;  %3401 = vmatpush.bf16.msrb.mxu2 %v5270_v33  ;;  %v5298_v33 = vld [vmem:[%s7367_s4 + $0x238] sm:$0xff] }
 0x32c   : > { %v2085_v42 = vmax.f32 %v2053_v45, 0.0  ;;  %v6688_v52 = vadd.f32 %v2522_v53, %v2385_v19 }
 0x32d   : > { %v1840_v11 = vpop.f32.mrf.mxu3  ;;  %v2390_v15 = vpop.f32.mrf.mxu1  ;;  %v2205_v13 = vld [vmem:[#allocation2 + $0x138] sm:$0xff] }
 0x32e   : > { %2172 = vst [vmem:[#allocation2 + $0x141] sm:$0xff] %v2085_v42  ;;  %v1881_v18 = vadd.f32 %v1840_v11, %v1741_v6  ;;  %v1979_v57 = vpop.f32.mrf.mxu0  ;;  %v2288_v10 = vpack.c.bf16 %v2085_v42, %v2084_v58  ;;  %4100 = vmatpush.bf16.msra.mxu1 %v5298_v33 }
 0x330   : > { %v2018_v39 = vadd.f32 %v1977_v55, %v1881_v18  ;;  %2429 = vmatmul.bf16.gmra.mxu1 %v2288_v10  ;;  %v7482_v55 = vld [vmem:[#allocation28_spill] sm:$0xff]  ;;  %v7484_v10 = vld [vmem:[#allocation19_spill] sm:$0xff] }
 0x331   : > { %v1743_v45 = vadd.f32 %v7483_v26, %v7482_v55  ;;  %v1614_v27 = vadd.f32 %v7485_v5, %v7484_v10  ;;  %v7486_v55 = vld [vmem:[#allocation13_spill] sm:$0xff]  ;;  %v7488_v5 = vld [vmem:[#allocation4_spill] sm:$0xff] }
 0x332   : > { %v2054_v23 = vadd.f32 %v6400_v24, %v2018_v39  ;;  %v1745_v26 = vadd.f32 %v6508_v61, %v7486_v55 }
 0x333   : > { %v2524_v19 = vpop.f32.mrf.mxu2 }
 0x334   : > { %v2086_v40 = vmax.f32 %v2054_v23, 0.0  ;;  %v6697_v35 = vadd.f32 %v2524_v19, %v2387_v30  ;;  %v1744_v23 = vadd.f32 %v6483_v63, %v1614_v27  ;;  %v5290_v63 = vld [vmem:[%s7367_s4 + $0x1f8] sm:$0xff] }
 0x335   : > { %v1842_v32 = vpop.f32.mrf.mxu3  ;;  %v2206_v20 = vld [vmem:[#allocation2 + $0x140] sm:$0xff]  ;;  %v2392_v25 = vpop.f32.mrf.mxu1  ;;  %3866 = vmatpush.bf16.msra.mxu0 %v5290_v63 }
 0x336   : > { %2173 = vst [vmem:[#allocation2 + $0x151] sm:$0xff] %v2086_v40  ;;  %v1882_v58 = vadd.f32 %v1842_v32, %v1742_v38  ;;  %v1982_v12 = vpop.f32.mrf.mxu0  ;;  %v6702_v2 = vpack.c.bf16 %v2206_v20, %v2205_v13  ;;  %v2596_v38 = vld [vmem:[#allocation2 + $0xaa] sm:$0xff]  ;;  %v5267_v20 = vld [vmem:[%s7367_s4 + $0x140] sm:$0xff] }
 0x338   : > { %v2019_v8 = vadd.f32 %v1979_v57, %v1882_v58  ;;  %2566 = vmatmul.bf16.gmra.mxu2 %v6702_v2  ;;  %v5282_v57 = vld [vmem:[%s7367_s4 + $0x1b8] sm:$0xff] }
 0x339   : > { %2967 = vmatmul.bf16.gmra.mxu0 %v6580_v36  ;;  %v5269_v36 = vld [vmem:[%s7367_s4 + $0x150] sm:$0xff]  ;;  %3632 = vmatpush.bf16.msra.mxu3 %v5282_v57  ;;  %v7487_v57 = vld [vmem:[#allocation20_spill] sm:$0xff] }
 0x33a   : > { %v2055_v30 = vadd.f32 %v6400_v24, %v2019_v8  ;;  %2733 = vmatmul.bf16.gmra.mxu3 %v6705_v49  ;;  %3402 = vmatpush.bf16.msrb.mxu2 %v5269_v36 }
 0x33b   : > { %v2527_v9 = vpop.f32.mrf.mxu2 }
 0x33c   : > { %v2087_v53 = vmax.f32 %v2055_v30, 0.0  ;;  %v6715_v29 = vadd.f32 %v2527_v9, %v2390_v15  ;;  %v5268_v15 = vld [vmem:[%s7367_s4 + $0x148] sm:$0xff] }
 0x33d   : > { %v1845_v41 = vpop.f32.mrf.mxu3  ;;  %v2395_v6 = vpop.f32.mrf.mxu1  ;;  %v2207_v7 = vld [vmem:[#allocation2 + $0x150] sm:$0xff] }
 0x33e   : > { %2174 = vst [vmem:[#allocation2 + $0x159] sm:$0xff] %v2087_v53  ;;  %v1883_v42 = vadd.f32 %v1845_v41, %v1743_v45  ;;  %v1984_v11 = vpop.f32.mrf.mxu0  ;;  %v2289_v18 = vpack.c.bf16 %v2087_v53, %v2086_v40  ;;  %3403 = vmatpush.bf16.msrb.mxu2 %v5268_v15  ;;  %v2597_v40 = vld [vmem:[#allocation2 + $0xb2] sm:$0xff]  ;;  %v5329_v15 = vld [vmem:[%s7366_s3] ss:$0 sm:$0xff] }
 0x33f   : > { %v6741_v8 = vpack.c.bf16 %v2597_v40, %v2596_v38  ;;  %v2599_v38 = vld [vmem:[#allocation2 + $0xca] sm:$0xff] }
 0x340   : > { %v2020_v46 = vadd.f32 %v1982_v12, %v1883_v42  ;;  %2434 = vmatmul.bf16.gmra.mxu1 %v2289_v18 }
 0x342   : > { %v2056_v43 = vadd.f32 %v6400_v24, %v2020_v46  ;;  %3404 = vmatpush.bf16.msrb.mxu2 %v5267_v20 }
 0x343   : > { %v2529_v39 = vpop.f32.mrf.mxu2 }
 0x344   : > { %v2088_v19 = vmax.f32 %v2056_v43, 0.0  ;;  %v6730_v59 = vadd.f32 %v2529_v39, %v2392_v25  ;;  %v2598_v43 = vld [vmem:[#allocation2 + $0xc2] sm:$0xff] }
 0x345   : > { %v1847_v0 = vpop.f32.mrf.mxu3  ;;  %v2208_v32 = vld [vmem:[#allocation2 + $0x158] sm:$0xff]  ;;  %v2397_v13 = vpop.f32.mrf.mxu1  ;;  %v6764_v20 = vpack.c.bf16 %v2599_v38, %v2598_v43 }
 0x346   : > { %2175 = vst [vmem:[#allocation2 + $0x169] sm:$0xff] %v2088_v19  ;;  %v1884_v1 = vadd.f32 %v1847_v0, %v1744_v23  ;;  %v1987_v58 = vpop.f32.mrf.mxu0  ;;  %v6735_v12 = vpack.c.bf16 %v2208_v32, %v2207_v7 }
 0x348   : > { %v2021_v25 = vadd.f32 %v1984_v11, %v1884_v1  ;;  %2571 = vmatmul.bf16.gmra.mxu2 %v6735_v12 }
 0x349   : > { %2972 = vmatmul.bf16.gmra.mxu0 %v6596_v14  ;;  %v1616_v14 = vadd.f32 %v6531_v31, %v7487_v57  ;;  %v2600_v57 = vld [vmem:[#allocation2 + $0xda] sm:$0xff] }
 0x34a   : > { %v2057_v30 = vadd.f32 %v6400_v24, %v2021_v25  ;;  %2738 = vmatmul.bf16.gmra.mxu3 %v6741_v8 }
 0x34b   : > { %v2532_v9 = vpop.f32.mrf.mxu2 }
 0x34c   : > { %v2089_v45 = vmax.f32 %v2057_v30, 0.0  ;;  %v6751_v53 = vadd.f32 %v2532_v9, %v2395_v6  ;;  %v1746_v6 = vadd.f32 %v7488_v5, %v1616_v14  ;;  %v3050_v9 = vld [vmem:[#allocation2 + $0x19] sm:$0xff]  ;;  %v2601_v14 = vld [vmem:[#allocation2 + $0xe2] sm:$0xff] }
 0x34d   : > { %v1850_v41 = vpop.f32.mrf.mxu3  ;;  %v2400_v36 = vpop.f32.mrf.mxu1  ;;  %v2209_v23 = vld [vmem:[#allocation2 + $0x168] sm:$0xff] }
 0x34e   : > { %2176 = vst [vmem:[#allocation2 + $0x171] sm:$0xff] %v2089_v45  ;;  %v1885_v42 = vadd.f32 %v1850_v41, %v1745_v26  ;;  %v1989_v11 = vpop.f32.mrf.mxu0  ;;  %v2290_v18 = vpack.c.bf16 %v2089_v45, %v2088_v19 }
 0x350   : > { %v2022_v24 = vadd.f32 %v1987_v58, %v1885_v42  ;;  %2439 = vmatmul.bf16.gmra.mxu1 %v2290_v18  ;;  %v3051_v58 = vld [vmem:[#allocation2 + $0x21] sm:$0xff] }
 0x351   : > { %v3082_v45 = vpack.c.bf16 %v3051_v58, %v3050_v9  ;;  %v3055_v9 = vld [vmem:[#allocation2 + $0x51] sm:$0xff] }
 0x352   : > { %v2058_v10 = vadd.f32 %v5329_v15, %v2022_v24 }
 0x353   : > { %v2534_v61 = vpop.f32.mrf.mxu2 }
 0x354   : > { %v2090_v27 = vmax.f32 %v2058_v10, 0.0  ;;  %v6759_v46 = vadd.f32 %v2534_v61, %v2397_v13  ;;  %v5289_v10 = vld [vmem:[%s7367_s4 + $0x1f0] sm:$0xff]  ;;  %v6784_v61 = vpack.c.bf16 %v2601_v14, %v2600_v57 }
 0x355   : > { %v1852_v39 = vpop.f32.mrf.mxu3  ;;  %v2210_v19 = vld [vmem:[#allocation2 + $0x170] sm:$0xff]  ;;  %v2402_v40 = vpop.f32.mrf.mxu1  ;;  %3867 = vmatpush.bf16.msra.mxu0 %v5289_v10 }
 0x356   : > { %2177 = vst [vmem:[#allocation2 + $0x181] sm:$0xff] %v2090_v27  ;;  %v1886_v31 = vadd.f32 %v1852_v39, %v1746_v6  ;;  %v2938_v0 = vpop.f32.mrf.mxu0  ;;  %v6761_v7 = vpack.c.bf16 %v2210_v19, %v2209_v23  ;;  %v3053_v6 = vld [vmem:[#allocation2 + $0x39] sm:$0xff]  ;;  %v3052_v39 = vld [vmem:[#allocation2 + $0x31] sm:$0xff] }
 0x357   : > { %v6796_v38 = vpack.c.bf16 %v3053_v6, %v3052_v39  ;;  %v5296_v6 = vld [vmem:[%s7367_s4 + $0x228] sm:$0xff] }
 0x358   : > { %v2023_v32 = vadd.f32 %v1989_v11, %v1886_v31  ;;  %2576 = vmatmul.bf16.gmra.mxu2 %v6761_v7 }
 0x359   : > { %2977 = vmatmul.bf16.gmra.mxu0 %v6615_v22  ;;  %v5281_v22 = vld [vmem:[%s7367_s4 + $0x1b0] sm:$0xff] }
 0x35a   : > { %v2059_v13 = vadd.f32 %v5329_v15, %v2023_v32  ;;  %2743 = vmatmul.bf16.gmra.mxu3 %v6764_v20  ;;  %v2602_v32 = vld [vmem:[#allocation2 + $0xf2] sm:$0xff] }
 0x35b   : > { %v2537_v1 = vpop.f32.mrf.mxu2  ;;  %3633 = vmatpush.bf16.msra.mxu3 %v5281_v22  ;;  %v3054_v22 = vld [vmem:[#allocation2 + $0x49] sm:$0xff] }
 0x35c   : > { %v2091_v63 = vmax.f32 %v2059_v13, 0.0  ;;  %v6768_v25 = vadd.f32 %v2537_v1, %v2400_v36  ;;  %v2505_v36 = vadd.f32 %v6612_v47, %v6594_v60  ;;  %v5297_v60 = vld [vmem:[%s7367_s4 + $0x230] sm:$0xff]  ;;  %v2603_v13 = vld [vmem:[#allocation2 + $0xfa] sm:$0xff] }
 0x35d   : > { %v2704_v33 = vpop.f32.mrf.mxu3  ;;  %v2405_v30 = vpop.f32.mrf.mxu1  ;;  %4101 = vmatpush.bf16.msra.mxu1 %v5297_v60  ;;  %v5288_v60 = vld [vmem:[%s7367_s4 + $0x1e8] sm:$0xff] }
 0x35e   : > { %2178 = vst [vmem:[#allocation2 + $0x189] sm:$0xff] %v2091_v63  ;;  %v2784_v55 = vadd.f32 %v2704_v33, %v6557_v28  ;;  %v2940_v26 = vpop.f32.mrf.mxu0  ;;  %3868 = vmatpush.bf16.msra.mxu0 %v5288_v60 }
 0x360   : > { %3171 = vmatmul.bf16.vlgmr.msrb.gmra.mxu1 %v3082_v45  ;;  %v6774_v41 = vadd.f32 %v2938_v0, %v2784_v55 }
 0x361   : > { %4102 = vmatpush.bf16.msra.mxu1 %v5296_v6  ;;  %v2608_v6 = vld [vmem:[#allocation2 + $0x13a] sm:$0xff] }
 0x363   : > { %v2539_v42 = vpop.f32.mrf.mxu2 }
 0x364   : > { %v6778_v11 = vadd.f32 %v2539_v42, %v2402_v40 }
 0x365   : > { %v2706_v18 = vpop.f32.mrf.mxu3  ;;  %v2407_v28 = vpop.f32.mrf.mxu1 }
 0x366   : > { %v2785_v24 = vadd.f32 %v2706_v18, %v2505_v36  ;;  %v2943_v15 = vpop.f32.mrf.mxu0  ;;  %v6814_v36 = vpack.c.bf16 %v3055_v9, %v3054_v22 }
 0x368   : > { %3405 = vmatmul.bf16.vlgmr.msrb.gmra.mxu2 %v6599_v21  ;;  %v6789_v47 = vadd.f32 %v2940_v26, %v2785_v24  ;;  %v2605_v24 = vld [vmem:[#allocation2 + $0x112] sm:$0xff] }
 0x369   : > { %2982 = vmatmul.bf16.gmra.mxu0 %v6636_v56 }
 0x36a   : > { %2748 = vmatmul.bf16.gmra.mxu3 %v6784_v61 }
 0x36b   : > { %v2542_v5 = vpop.f32.mrf.mxu2 }
 0x36c   : > { %v6793_v27 = vadd.f32 %v2542_v5, %v2405_v30 }
 0x36d   : > { %v2709_v43 = vpop.f32.mrf.mxu3  ;;  %v2410_v21 = vpop.f32.mrf.mxu1 }
 0x36e   : > { %v2786_v23 = vadd.f32 %v2709_v43, %v6625_v4  ;;  %v2945_v19 = vpop.f32.mrf.mxu0  ;;  %v6805_v4 = vpack.c.bf16 %v2603_v13, %v2602_v32 }
 0x370   : > { %3176 = vmatmul.bf16.gmra.mxu1 %v6796_v38  ;;  %v6799_v40 = vadd.f32 %v2943_v15, %v2786_v23 }
 0x373   : > { %v2544_v56 = vpop.f32.mrf.mxu2 }
 0x374   : > { %v6801_v31 = vadd.f32 %v2544_v56, %v2407_v28  ;;  %v2604_v28 = vld [vmem:[#allocation2 + $0x10a] sm:$0xff] }
 0x375   : > { %v2711_v0 = vpop.f32.mrf.mxu3  ;;  %v2412_v1 = vpop.f32.mrf.mxu1  ;;  %v6829_v5 = vpack.c.bf16 %v2605_v24, %v2604_v28  ;;  %v3058_v28 = vld [vmem:[#allocation2 + $0x79] sm:$0xff] }
 0x376   : > { %v2787_v58 = vadd.f32 %v2711_v0, %v6634_v50  ;;  %v2948_v63 = vpop.f32.mrf.mxu0 }
 0x378   : > { %3410 = vmatmul.bf16.gmra.mxu2 %v6618_v51  ;;  %v6807_v33 = vadd.f32 %v2945_v19, %v2787_v58  ;;  %v5280_v51 = vld [vmem:[%s7367_s4 + $0x1a8] sm:$0xff] }
 0x379   : > { %2987 = vmatmul.bf16.gmra.mxu0 %v6657_v54  ;;  %3634 = vmatpush.bf16.msra.mxu3 %v5280_v51  ;;  %v3056_v19 = vld [vmem:[#allocation2 + $0x61] sm:$0xff] }
 0x37a   : > { %2753 = vmatmul.bf16.gmra.mxu3 %v6805_v4 }
 0x37b   : > { %v2547_v30 = vpop.f32.mrf.mxu2 }
 0x37c   : > { %v6811_v55 = vadd.f32 %v2547_v30, %v2410_v21  ;;  %v3057_v21 = vld [vmem:[#allocation2 + $0x69] sm:$0xff] }
 0x37d   : > { %v2714_v26 = vpop.f32.mrf.mxu3  ;;  %v2415_v45 = vpop.f32.mrf.mxu1  ;;  %v6841_v32 = vpack.c.bf16 %v3057_v21, %v3056_v19  ;;  %v2607_v30 = vld [vmem:[#allocation2 + $0x12a] sm:$0xff] }
 0x37e   : > { %v2788_v50 = vadd.f32 %v2714_v26, %v6646_v62  ;;  %v2950_v42 = vpop.f32.mrf.mxu0 }
 0x380   : > { %3181 = vmatmul.bf16.gmra.mxu1 %v6814_v36  ;;  %v6820_v54 = vadd.f32 %v2948_v63, %v2788_v50  ;;  %v2606_v63 = vld [vmem:[#allocation2 + $0x122] sm:$0xff] }
 0x383   : > { %v2549_v18 = vpop.f32.mrf.mxu2 }
 0x384   : > { %v6822_v57 = vadd.f32 %v2549_v18, %v2412_v1 }
 0x385   : > { %v2716_v14 = vpop.f32.mrf.mxu3  ;;  %v2417_v15 = vpop.f32.mrf.mxu1 }
 0x386   : > { %v2789_v62 = vadd.f32 %v2716_v14, %v6655_v3  ;;  %v2953_v10 = vpop.f32.mrf.mxu0 }
 0x388   : > { %3415 = vmatmul.bf16.gmra.mxu2 %v6639_v34  ;;  %v6834_v43 = vadd.f32 %v2950_v42, %v2789_v62  ;;  %v3059_v42 = vld [vmem:[#allocation2 + $0x81] sm:$0xff] }
 0x389   : > { %2992 = vmatmul.bf16.gmra.mxu0 %v6678_v37 }
 0x38a   : > { %2758 = vmatmul.bf16.gmra.mxu3 %v6829_v5 }
 0x38b   : > { %v2552_v3 = vpop.f32.mrf.mxu2 }
 0x38c   : > { %v6838_v39 = vadd.f32 %v2552_v3, %v2415_v45  ;;  %v2609_v3 = vld [vmem:[#allocation2 + $0x142] sm:$0xff] }
 0x38d   : > { %v2719_v23 = vpop.f32.mrf.mxu3  ;;  %v2420_v34 = vpop.f32.mrf.mxu1  ;;  %v6874_v19 = vpack.c.bf16 %v2609_v3, %v2608_v6 }
 0x38e   : > { %v2790_v56 = vadd.f32 %v2719_v23, %v6667_v17  ;;  %v2955_v0 = vpop.f32.mrf.mxu0  ;;  %v6850_v17 = vpack.c.bf16 %v2607_v30, %v2606_v63 }
 0x390   : > { %3186 = vmatmul.bf16.gmra.mxu1 %v6841_v32  ;;  %v6844_v13 = vadd.f32 %v2953_v10, %v2790_v56  ;;  %v5295_v56 = vld [vmem:[%s7367_s4 + $0x220] sm:$0xff] }
 0x391   : > { %4103 = vmatpush.bf16.msra.mxu1 %v5295_v56 }
 0x393   : > { %v2554_v37 = vpop.f32.mrf.mxu2 }
 0x394   : > { %v6846_v1 = vadd.f32 %v2554_v37, %v2417_v15  ;;  %v6859_v15 = vpack.c.bf16 %v3059_v42, %v3058_v28  ;;  %v3061_v37 = vld [vmem:[#allocation2 + $0x99] sm:$0xff]  ;;  %v5277_v42 = vld [vmem:[%s7367_s4 + $0x190] sm:$0xff] }
 0x395   : > { %v2721_v58 = vpop.f32.mrf.mxu3  ;;  %v2422_v9 = vpop.f32.mrf.mxu1 }
 0x396   : > { %v2791_v26 = vadd.f32 %v2721_v58, %v6676_v16  ;;  %v2958_v45 = vpop.f32.mrf.mxu0  ;;  %v5286_v58 = vld [vmem:[%s7367_s4 + $0x1d8] sm:$0xff] }
 0x398   : > { %3420 = vmatmul.bf16.gmra.mxu2 %v6660_v44  ;;  %v6852_v22 = vadd.f32 %v2955_v0, %v2791_v26  ;;  %v5279_v44 = vld [vmem:[%s7367_s4 + $0x1a0] sm:$0xff]  ;;  %v3060_v26 = vld [vmem:[#allocation2 + $0x91] sm:$0xff] }
 0x399   : > { %2997 = vmatmul.bf16.gmra.mxu0 %v6702_v2  ;;  %3635 = vmatpush.bf16.msra.mxu3 %v5279_v44 }
 0x39a   : > { %2763 = vmatmul.bf16.gmra.mxu3 %v6850_v17 }
 0x39b   : > { %v2557_v50 = vpop.f32.mrf.mxu2 }
 0x39c   : > { %v6856_v51 = vadd.f32 %v2557_v50, %v2420_v34  ;;  %v5287_v34 = vld [vmem:[%s7367_s4 + $0x1e0] sm:$0xff]  ;;  %v6892_v50 = vpack.c.bf16 %v3061_v37, %v3060_v26 }
 0x39d   : > { %v2724_v18 = vpop.f32.mrf.mxu3  ;;  %v2425_v14 = vpop.f32.mrf.mxu1  ;;  %3869 = vmatpush.bf16.msra.mxu0 %v5287_v34  ;;  %v5283_v34 = vld [vmem:[%s7367_s4 + $0x1c0] sm:$0xff] }
 0x39e   : > { %v2792_v16 = vadd.f32 %v2724_v18, %v6688_v52  ;;  %v2960_v24 = vpop.f32.mrf.mxu0  ;;  %v5285_v18 = vld [vmem:[%s7367_s4 + $0x1d0] sm:$0xff] }
 0x3a0   : > { %3191 = vmatmul.bf16.gmra.mxu1 %v6859_v15  ;;  %v6865_v2 = vadd.f32 %v2958_v45, %v2792_v16  ;;  %v5284_v16 = vld [vmem:[%s7367_s4 + $0x1c8] sm:$0xff] }
 0x3a1   : > { %3870 = vmatpush.bf16.msra.mxu0 %v5286_v58 }
 0x3a3   : > { %v2559_v62 = vpop.f32.mrf.mxu2 }
 0x3a4   : > { %v6867_v10 = vadd.f32 %v2559_v62, %v2422_v9  ;;  %v2610_v62 = vld [vmem:[#allocation2 + $0x152] sm:$0xff] }
 0x3a5   : > { %v2726_v60 = vpop.f32.mrf.mxu3  ;;  %v2427_v21 = vpop.f32.mrf.mxu1  ;;  %3871 = vmatpush.bf16.msra.mxu0 %v5285_v18  ;;  %v2847_v18 = vld [vmem:[#allocation2 + $0x188] sm:$0xff] }
 0x3a6   : > { %v2793_v52 = vadd.f32 %v2726_v60, %v6697_v35  ;;  %v2963_v23 = vpop.f32.mrf.mxu0  ;;  %v2611_v60 = vld [vmem:[#allocation2 + $0x15a] sm:$0xff] }
 0x3a8   : > { %3425 = vmatmul.bf16.gmra.mxu2 %v6681_v48  ;;  %v6879_v0 = vadd.f32 %v2960_v24, %v2793_v52  ;;  %v5278_v48 = vld [vmem:[%s7367_s4 + $0x198] sm:$0xff] }
 0x3a9   : > { %3002 = vmatmul.bf16.gmra.mxu0 %v6735_v12  ;;  %3636 = vmatpush.bf16.msra.mxu3 %v5278_v48 }
 0x3aa   : > { %2768 = vmatmul.bf16.gmra.mxu3 %v6874_v19  ;;  %3872 = vmatpush.bf16.msra.mxu0 %v5284_v16 }
 0x3ab   : > { %v2562_v35 = vpop.f32.mrf.mxu2 }
 0x3ac   : > { %v6889_v63 = vadd.f32 %v2562_v35, %v2425_v14  ;;  %v3063_v35 = vld [vmem:[#allocation2 + $0xb1] sm:$0xff] }
 0x3ad   : > { %v2729_v30 = vpop.f32.mrf.mxu3  ;;  %v2430_v9 = vpop.f32.mrf.mxu1  ;;  %3637 = vmatpush.bf16.msra.mxu3 %v5277_v42 }
 0x3ae   : > { %v2794_v12 = vadd.f32 %v2729_v30, %v6715_v29  ;;  %v2965_v45 = vpop.f32.mrf.mxu0  ;;  %v5276_v29 = vld [vmem:[%s7367_s4 + $0x188] sm:$0xff]  ;;  %3873 = vmatpush.bf16.msra.mxu0 %v5283_v34 }
 0x3af   : > { %v3062_v30 = vld [vmem:[#allocation2 + $0xa9] sm:$0xff] }
 0x3b0   : > { %3196 = vmatmul.bf16.gmra.mxu1 %v6892_v50  ;;  %v6901_v14 = vadd.f32 %v2963_v23, %v2794_v12  ;;  %v5275_v23 = vld [vmem:[%s7367_s4 + $0x180] sm:$0xff]  ;;  %v6928_v12 = vpack.c.bf16 %v3063_v35, %v3062_v30  ;;  %v3065_v34 = vld [vmem:[#allocation2 + $0xc9] sm:$0xff] }
 0x3b1   : > { %3638 = vmatpush.bf16.msra.mxu3 %v5276_v29  ;;  %v2612_v29 = vld [vmem:[#allocation2 + $0x16a] sm:$0xff] }
 0x3b3   : > { %v2564_v28 = vpop.f32.mrf.mxu2 }
 0x3b4   : > { %v6909_v24 = vadd.f32 %v2564_v28, %v2427_v21  ;;  %v6919_v21 = vpack.c.bf16 %v2611_v60, %v2610_v62  ;;  %v2846_v60 = vld [vmem:[#allocation2 + $0x180] sm:$0xff] }
 0x3b5   : > { %v2731_v44 = vpop.f32.mrf.mxu3  ;;  %v2432_v6 = vpop.f32.mrf.mxu1  ;;  %3639 = vmatpush.bf16.msra.mxu3 %v5275_v23 }
 0x3b6   : > { %v2795_v3 = vadd.f32 %v2731_v44, %v6730_v59  ;;  %v2968_v52 = vpop.f32.mrf.mxu0 }
 0x3b8   : > { %3430 = vmatmul.bf16.gmra.mxu2 %v6705_v49  ;;  %v6921_v56 = vadd.f32 %v2965_v45, %v2795_v3 }
 0x3b9   : > { %3007 = vmatmul.bf16.gmra.mxu0 %v6761_v7 }
 0x3ba   : > { %2773 = vmatmul.bf16.gmra.mxu3 %v6919_v21 }
 0x3bb   : > { %v2567_v59 = vpop.f32.mrf.mxu2 }
 0x3bc   : > { %v6925_v37 = vadd.f32 %v2567_v59, %v2430_v9  ;;  %v2613_v9 = vld [vmem:[#allocation2 + $0x172] sm:$0xff] }
 0x3bd   : > { %v2734_v48 = vpop.f32.mrf.mxu3  ;;  %v2435_v58 = vpop.f32.mrf.mxu1  ;;  %v6937_v3 = vpack.c.bf16 %v2613_v9, %v2612_v29  ;;  %v3520_v29 = vld [vmem:[#allocation2 + $0x38] sm:$0xff] }
 0x3be   : > { %v2796_v26 = vadd.f32 %v2734_v48, %v6751_v53  ;;  %v2970_v49 = vpop.f32.mrf.mxu0  ;;  %v2863_v53 = vpack.c.bf16 %v2847_v18, %v2846_v60  ;;  %v3064_v48 = vld [vmem:[#allocation2 + $0xc1] sm:$0xff]  ;;  %v3519_v60 = vld [vmem:[#allocation2 + $0x30] sm:$0xff] }
 0x3c0   : > { %3201 = vmatmul.bf16.gmra.mxu1 %v6928_v12  ;;  %v6931_v45 = vadd.f32 %v2968_v52, %v2796_v26  ;;  %v5294_v52 = vld [vmem:[%s7367_s4 + $0x218] sm:$0xff]  ;;  %v6948_v26 = vpack.c.bf16 %v3065_v34, %v3064_v48 }
 0x3c1   : > { %4104 = vmatpush.bf16.msra.mxu1 %v5294_v52 }
 0x3c3   : > { %v2569_v7 = vpop.f32.mrf.mxu2 }
 0x3c4   : > { %v6933_v42 = vadd.f32 %v2569_v7, %v2432_v6 }
 0x3c5   : > { %v2736_v28 = vpop.f32.mrf.mxu3  ;;  %v2437_v16 = vpop.f32.mrf.mxu1 }
 0x3c6   : > { %v2797_v44 = vadd.f32 %v2736_v28, %v6759_v46  ;;  %v2973_v62 = vpop.f32.mrf.mxu0 }
 0x3c8   : > { %3435 = vmatmul.bf16.gmra.mxu2 %v6741_v8  ;;  %v6942_v6 = vadd.f32 %v2970_v49, %v2797_v44 }
 0x3c9   : > { %3012 = vmatmul.bf16.gmra.mxu0 %v2863_v53  ;;  %v3551_v53 = vpack.c.bf16 %v3520_v29, %v3519_v60 }
 0x3ca   : > { %2778 = vmatmul.bf16.gmra.mxu3 %v6937_v3 }
 0x3cb   : > { %v2572_v23 = vpop.f32.mrf.mxu2 }
 0x3cc   : > { %v6945_v46 = vadd.f32 %v2572_v23, %v2435_v58 }
 0x3cd   : > { %v2739_v59 = vpop.f32.mrf.mxu3  ;;  %v2440_v35 = vpop.f32.mrf.mxu1 }
 0x3ce   : > { %v2798_v8 = vadd.f32 %v2739_v59, %v6768_v25  ;;  %v2975_v30 = vpop.f32.mrf.mxu0  ;;  %v5306_v25 = vld [vmem:[%s7369_s6 + $0x38] sm:$0xff] }
 0x3cf   : > { %4373 = vmatpush.bf16.msra.mxu2 %v5306_v25  ;;  %v3066_v59 = vld [vmem:[#allocation2 + $0xd9] sm:$0xff] }
 0x3d0   : > { %3206 = vmatmul.bf16.gmra.mxu1 %v6948_v26  ;;  %v6951_v49 = vadd.f32 %v2973_v62, %v2798_v8  ;;  %v3067_v62 = vld [vmem:[#allocation2 + $0xe1] sm:$0xff] }
 0x3d3   : > { %v2574_v7 = vpop.f32.mrf.mxu2 }
 0x3d4   : > { %v6953_v18 = vadd.f32 %v2574_v7, %v2437_v16 }
 0x3d5   : > { %v2741_v28 = vpop.f32.mrf.mxu3  ;;  %v2442_v9 = vpop.f32.mrf.mxu1 }
 0x3d6   : > { %v2799_v58 = vadd.f32 %v2741_v28, %v6778_v11  ;;  %v2978_v44 = vpop.f32.mrf.mxu0 }
 0x3d8   : > { %3440 = vmatmul.bf16.gmra.mxu2 %v6764_v20  ;;  %v6960_v52 = vadd.f32 %v2975_v30, %v2799_v58  ;;  %v6967_v20 = vpack.c.bf16 %v3067_v62, %v3066_v59  ;;  %v3069_v62 = vld [vmem:[#allocation2 + $0xf9] sm:$0xff] }
 0x3d9   : > { %3874 = vmatmul.bf16.vlgmr.msra.gmra.mxu0 %v6796_v38 }
 0x3da   : > { %3640 = vmatmul.bf16.vlgmr.msra.gmra.mxu3 %v3551_v53  ;;  %v3521_v53 = vld [vmem:[#allocation2 + $0x48] sm:$0xff] }
 0x3db   : > { %v2577_v16 = vpop.f32.mrf.mxu2 }
 0x3dc   : > { %v6963_v23 = vadd.f32 %v2577_v16, %v2440_v35  ;;  %v3522_v35 = vld [vmem:[#allocation2 + $0x50] sm:$0xff] }
 0x3dd   : > { %v2744_v11 = vpop.f32.mrf.mxu3  ;;  %v3172_v34 = vpop.f32.mrf.mxu1 }
 0x3de   : > { %v2800_v48 = vadd.f32 %v2744_v11, %v6793_v27  ;;  %v2980_v8 = vpop.f32.mrf.mxu0  ;;  %v3252_v7 = vadd.f32 %v3172_v34, %v6774_v41  ;;  %v3552_v41 = vpack.c.bf16 %v3522_v35, %v3521_v53  ;;  %v3068_v34 = vld [vmem:[#allocation2 + $0xf1] sm:$0xff] }
 0x3e0   : > { %3211 = vmatmul.bf16.gmra.mxu1 %v6967_v20  ;;  %v6970_v30 = vadd.f32 %v2978_v44, %v2800_v48  ;;  %v5293_v44 = vld [vmem:[%s7367_s4 + $0x210] sm:$0xff] }
 0x3e1   : > { %4105 = vmatpush.bf16.msra.mxu1 %v5293_v44 }
 0x3e3   : > { %v2579_v38 = vpop.f32.mrf.mxu2 }
 0x3e4   : > { %v6972_v28 = vadd.f32 %v2579_v38, %v2442_v9  ;;  %v6987_v38 = vpack.c.bf16 %v3069_v62, %v3068_v34 }
 0x3e5   : > { %v2746_v29 = vpop.f32.mrf.mxu3  ;;  %v3174_v58 = vpop.f32.mrf.mxu1 }
 0x3e6   : > { %v2801_v25 = vadd.f32 %v2746_v29, %v6801_v31  ;;  %v2983_v60 = vpop.f32.mrf.mxu0  ;;  %v3253_v27 = vadd.f32 %v3174_v58, %v6789_v47 }
 0x3e8   : > { %3445 = vmatmul.bf16.gmra.mxu2 %v6784_v61  ;;  %v6980_v16 = vadd.f32 %v2980_v8, %v2801_v25 }
 0x3e9   : > { %3879 = vmatmul.bf16.gmra.mxu0 %v6814_v36 }
 0x3ea   : > { %3645 = vmatmul.bf16.gmra.mxu3 %v3552_v41  ;;  %v3523_v41 = vld [vmem:[#allocation2 + $0x60] sm:$0xff] }
 0x3eb   : > { %v3406_v9 = vpop.f32.mrf.mxu2 }
 0x3ec   : > { %v6983_v31 = vadd.f32 %v3406_v9, %v3252_v7  ;;  %v3524_v7 = vld [vmem:[#allocation2 + $0x68] sm:$0xff]  ;;  %v3071_v9 = vld [vmem:[#allocation2 + $0x111] sm:$0xff] }
 0x3ed   : > { %v2749_v11 = vpop.f32.mrf.mxu3  ;;  %v3177_v47 = vpop.f32.mrf.mxu1 }
 0x3ee   : > { %v2802_v61 = vadd.f32 %v2749_v11, %v6811_v55  ;;  %v2985_v59 = vpop.f32.mrf.mxu0  ;;  %v3254_v48 = vadd.f32 %v3177_v47, %v6799_v40  ;;  %v5305_v40 = vld [vmem:[%s7369_s6 + $0x30] sm:$0xff] }
 0x3ef   : > { %4374 = vmatpush.bf16.msra.mxu2 %v5305_v40  ;;  %v3070_v11 = vld [vmem:[#allocation2 + $0x109] sm:$0xff]  ;;  %v3525_v40 = vld [vmem:[#allocation2 + $0x78] sm:$0xff] }
 0x3f0   : > { %3216 = vmatmul.bf16.gmra.mxu1 %v6987_v38  ;;  %v6990_v8 = vadd.f32 %v2983_v60, %v2802_v61  ;;  %v3553_v60 = vpack.c.bf16 %v3524_v7, %v3523_v41 }
 0x3f3   : > { %v3408_v36 = vpop.f32.mrf.mxu2 }
 0x3f4   : > { %v6992_v29 = vadd.f32 %v3408_v36, %v3253_v27 }
 0x3f5   : > { %v2751_v35 = vpop.f32.mrf.mxu3  ;;  %v3179_v58 = vpop.f32.mrf.mxu1 }
 0x3f6   : > { %v2803_v25 = vadd.f32 %v2751_v35, %v6822_v57  ;;  %v2988_v53 = vpop.f32.mrf.mxu0  ;;  %v3255_v55 = vadd.f32 %v3179_v58, %v6807_v33 }
 0x3f8   : > { %3450 = vmatmul.bf16.gmra.mxu2 %v6805_v4  ;;  %v7000_v44 = vadd.f32 %v2985_v59, %v2803_v25  ;;  %v7007_v4 = vpack.c.bf16 %v3071_v9, %v3070_v11  ;;  %v3072_v9 = vld [vmem:[#allocation2 + $0x121] sm:$0xff] }
 0x3f9   : > { %3884 = vmatmul.bf16.gmra.mxu0 %v6841_v32 }
 0x3fa   : > { %3650 = vmatmul.bf16.gmra.mxu3 %v3553_v60  ;;  %v3073_v60 = vld [vmem:[#allocation2 + $0x129] sm:$0xff] }
 0x3fb   : > { %v3411_v27 = vpop.f32.mrf.mxu2  ;;  %v7027_v11 = vpack.c.bf16 %v3073_v60, %v3072_v9 }
 0x3fc   : > { %v7003_v57 = vadd.f32 %v3411_v27, %v3254_v48  ;;  %v3526_v48 = vld [vmem:[#allocation2 + $0x80] sm:$0xff] }
 0x3fd   : > { %v2754_v62 = vpop.f32.mrf.mxu3  ;;  %v3182_v33 = vpop.f32.mrf.mxu1 }
 0x3fe   : > { %v2804_v47 = vadd.f32 %v2754_v62, %v6838_v39  ;;  %v2990_v34 = vpop.f32.mrf.mxu0  ;;  %v3256_v61 = vadd.f32 %v3182_v33, %v6820_v54  ;;  %v3554_v54 = vpack.c.bf16 %v3526_v48, %v3525_v40 }
 0x400   : > { %3221 = vmatmul.bf16.gmra.mxu1 %v7007_v4  ;;  %v7010_v59 = vadd.f32 %v2988_v53, %v2804_v47  ;;  %v5292_v53 = vld [vmem:[%s7367_s4 + $0x208] sm:$0xff] }
 0x401   : > { %4106 = vmatpush.bf16.msra.mxu1 %v5292_v53 }
 0x403   : > { %v3413_v32 = vpop.f32.mrf.mxu2 }
 0x404   : > { %v7012_v36 = vadd.f32 %v3413_v32, %v3255_v55 }
 0x405   : > { %v2756_v35 = vpop.f32.mrf.mxu3  ;;  %v3184_v7 = vpop.f32.mrf.mxu1 }
 0x406   : > { %v2805_v58 = vadd.f32 %v2756_v35, %v6846_v1  ;;  %v2993_v25 = vpop.f32.mrf.mxu0  ;;  %v3257_v39 = vadd.f32 %v3184_v7, %v6834_v43 }
 0x408   : > { %3455 = vmatmul.bf16.gmra.mxu2 %v6829_v5  ;;  %v7020_v41 = vadd.f32 %v2990_v34, %v2805_v58  ;;  %v3527_v58 = vld [vmem:[#allocation2 + $0x90] sm:$0xff] }
 0x409   : > { %3889 = vmatmul.bf16.gmra.mxu0 %v6859_v15 }
 0x40a   : > { %3655 = vmatmul.bf16.gmra.mxu3 %v3554_v54  ;;  %v3075_v54 = vld [vmem:[#allocation2 + $0x141] sm:$0xff] }
 0x40b   : > { %v3416_v55 = vpop.f32.mrf.mxu2 }
 0x40c   : > { %v7023_v1 = vadd.f32 %v3416_v55, %v3256_v61  ;;  %v3528_v61 = vld [vmem:[#allocation2 + $0x98] sm:$0xff] }
 0x40d   : > { %v2759_v27 = vpop.f32.mrf.mxu3  ;;  %v3187_v43 = vpop.f32.mrf.mxu1  ;;  %v3074_v55 = vld [vmem:[#allocation2 + $0x139] sm:$0xff] }
 0x40e   : > { %v2806_v5 = vadd.f32 %v2759_v27, %v6856_v51  ;;  %v2995_v62 = vpop.f32.mrf.mxu0  ;;  %v3258_v33 = vadd.f32 %v3187_v43, %v6844_v13  ;;  %v5304_v13 = vld [vmem:[%s7369_s6 + $0x28] sm:$0xff] }
 0x40f   : > { %4375 = vmatpush.bf16.msra.mxu2 %v5304_v13 }
 0x410   : > { %3226 = vmatmul.bf16.gmra.mxu1 %v7027_v11  ;;  %v7030_v47 = vadd.f32 %v2993_v25, %v2806_v5  ;;  %v3555_v25 = vpack.c.bf16 %v3528_v61, %v3527_v58 }
 0x413   : > { %v3418_v15 = vpop.f32.mrf.mxu2 }
 0x414   : > { %v7032_v34 = vadd.f32 %v3418_v15, %v3257_v39 }
 0x415   : > { %v2761_v32 = vpop.f32.mrf.mxu3  ;;  %v3189_v35 = vpop.f32.mrf.mxu1 }
 0x416   : > { %v2807_v48 = vadd.f32 %v2761_v32, %v6867_v10  ;;  %v2998_v7 = vpop.f32.mrf.mxu0  ;;  %v3259_v51 = vadd.f32 %v3189_v35, %v6852_v22  ;;  %v3529_v35 = vld [vmem:[#allocation2 + $0xa8] sm:$0xff] }
 0x418   : > { %3460 = vmatmul.bf16.gmra.mxu2 %v6850_v17  ;;  %v7040_v40 = vadd.f32 %v2995_v62, %v2807_v48  ;;  %v7047_v17 = vpack.c.bf16 %v3075_v54, %v3074_v55  ;;  %v5291_v48 = vld [vmem:[%s7367_s4 + $0x200] sm:$0xff] }
 0x419   : > { %3894 = vmatmul.bf16.gmra.mxu0 %v6892_v50  ;;  %4107 = vmatpush.bf16.msra.mxu1 %v5291_v48 }
 0x41a   : > { %3660 = vmatmul.bf16.gmra.mxu3 %v3555_v25  ;;  %v3076_v25 = vld [vmem:[#allocation2 + $0x151] sm:$0xff] }
 0x41b   : > { %v3421_v39 = vpop.f32.mrf.mxu2 }
 0x41c   : > { %v7043_v10 = vadd.f32 %v3421_v39, %v3258_v33  ;;  %v3530_v33 = vld [vmem:[#allocation2 + $0xb0] sm:$0xff] }
 0x41d   : > { %v2764_v53 = vpop.f32.mrf.mxu3  ;;  %v3192_v22 = vpop.f32.mrf.mxu1 }
 0x41e   : > { %v2808_v60 = vadd.f32 %v2764_v53, %v6889_v63  ;;  %v3000_v27 = vpop.f32.mrf.mxu0  ;;  %v3260_v43 = vadd.f32 %v3192_v22, %v6865_v2  ;;  %v3556_v2 = vpack.c.bf16 %v3530_v33, %v3529_v35 }
 0x420   : > { %3231 = vmatmul.bf16.gmra.mxu1 %v7047_v17  ;;  %v7050_v9 = vadd.f32 %v2998_v7, %v2808_v60  ;;  %v3532_v60 = vld [vmem:[#allocation2 + $0xc8] sm:$0xff] }
 0x423   : > { %v3423_v50 = vpop.f32.mrf.mxu2 }
 0x424   : > { %v7052_v5 = vadd.f32 %v3423_v50, %v3259_v51 }
 0x425   : > { %v2766_v62 = vpop.f32.mrf.mxu3  ;;  %v3194_v15 = vpop.f32.mrf.mxu1 }
 0x426   : > { %v2809_v32 = vadd.f32 %v2766_v62, %v6909_v24  ;;  %v3003_v61 = vpop.f32.mrf.mxu0  ;;  %v7056_v63 = vadd.f32 %v3194_v15, %v6879_v0  ;;  %v3077_v24 = vld [vmem:[#allocation2 + $0x159] sm:$0xff] }
 0x427   : > { %v7069_v53 = vpack.c.bf16 %v3077_v24, %v3076_v25  ;;  %v3534_v25 = vld [vmem:[#allocation2 + $0xe0] sm:$0xff] }
 0x428   : > { %3465 = vmatmul.bf16.gmra.mxu2 %v6874_v19  ;;  %v7062_v7 = vadd.f32 %v3000_v27, %v2809_v32 }
 0x429   : > { %3899 = vmatmul.bf16.gmra.mxu0 %v6928_v12 }
 0x42a   : > { %3665 = vmatmul.bf16.gmra.mxu3 %v3556_v2  ;;  %v3078_v2 = vld [vmem:[#allocation2 + $0x169] sm:$0xff] }
 0x42b   : > { %v3426_v51 = vpop.f32.mrf.mxu2 }
 0x42c   : > { %v7065_v13 = vadd.f32 %v3426_v51, %v3260_v43 }
 0x42d   : > { %v2769_v0 = vpop.f32.mrf.mxu3  ;;  %v3197_v58 = vpop.f32.mrf.mxu1 }
 0x42e   : > { %v2810_v19 = vadd.f32 %v2769_v0, %v6925_v37  ;;  %v3005_v39 = vpop.f32.mrf.mxu0  ;;  %v3262_v54 = vadd.f32 %v3197_v58, %v6901_v14  ;;  %v5303_v14 = vld [vmem:[%s7369_s6 + $0x20] sm:$0xff] }
 0x42f   : > { %v3531_v37 = vld [vmem:[#allocation2 + $0xc0] sm:$0xff]  ;;  %4376 = vmatpush.bf16.msra.mxu2 %v5303_v14 }
 0x430   : > { %3236 = vmatmul.bf16.gmra.mxu1 %v7069_v53  ;;  %v7072_v22 = vadd.f32 %v3003_v61, %v2810_v19  ;;  %v3557_v33 = vpack.c.bf16 %v3532_v60, %v3531_v37 }
 0x433   : > { %v7074_v12 = vpop.f32.mrf.mxu2 }
 0x435   : > { %v2771_v55 = vpop.f32.mrf.mxu3  ;;  %v3199_v27 = vpop.f32.mrf.mxu1 }
 0x436   : > { %v2811_v43 = vadd.f32 %v2771_v55, %v6933_v42  ;;  %v3008_v50 = vpop.f32.mrf.mxu0  ;;  %v7078_v62 = vadd.f32 %v3199_v27, %v6921_v56  ;;  %v3079_v42 = vld [vmem:[#allocation2 + $0x171] sm:$0xff] }
 0x438   : > { %3470 = vmatmul.bf16.gmra.mxu2 %v6919_v21  ;;  %v7084_v15 = vadd.f32 %v3005_v39, %v2811_v43  ;;  %v7091_v21 = vpack.c.bf16 %v3079_v42, %v3078_v2  ;;  %v3081_v43 = vld [vmem:[#allocation2 + $0x189] sm:$0xff] }
 0x439   : > { %3904 = vmatmul.bf16.gmra.mxu0 %v6948_v26 }
 0x43a   : > { %3670 = vmatmul.bf16.gmra.mxu3 %v3557_v33 }
 0x43b   : > { %v3431_v32 = vpop.f32.mrf.mxu2 }
 0x43c   : > { %v7087_v61 = vadd.f32 %v3431_v32, %v3262_v54 }
 0x43d   : > { %v2774_v56 = vpop.f32.mrf.mxu3  ;;  %v3202_v35 = vpop.f32.mrf.mxu1 }
 0x43e   : > { %v2812_v48 = vadd.f32 %v2774_v56, %v6945_v46  ;;  %v3010_v51 = vpop.f32.mrf.mxu0  ;;  %v3264_v24 = vadd.f32 %v3202_v35, %v6931_v45  ;;  %v3533_v46 = vld [vmem:[#allocation2 + $0xd8] sm:$0xff]  ;;  %v3314_v56 = vld [vmem:[#allocation2 + $0x182] sm:$0xff]  ;;  %v3315_v35 = vld [vmem:[#allocation2 + $0x18a] sm:$0xff] }
 0x43f   : > { %v3558_v45 = vpack.c.bf16 %v3534_v25, %v3533_v46  ;;  %v5302_v25 = vld [vmem:[%s7369_s6 + $0x18] sm:$0xff] }
 0x440   : > { %3241 = vmatmul.bf16.gmra.mxu1 %v7091_v21  ;;  %v7094_v0 = vadd.f32 %v3008_v50, %v2812_v48  ;;  %v3536_v48 = vld [vmem:[#allocation2 + $0xf8] sm:$0xff]  ;;  %4377 = vmatpush.bf16.msra.mxu2 %v5302_v25 }
 0x441   : > { %v3987_v46 = vld [vmem:[#allocation2 + $0x32] sm:$0xff] }
 0x443   : > { %v7096_v26 = vpop.f32.mrf.mxu2 }
 0x445   : > { %v2776_v58 = vpop.f32.mrf.mxu3  ;;  %v3204_v19 = vpop.f32.mrf.mxu1 }
 0x446   : > { %v2813_v39 = vadd.f32 %v2776_v58, %v6953_v18  ;;  %v3013_v54 = vpop.f32.mrf.mxu0  ;;  %v7100_v55 = vadd.f32 %v3204_v19, %v6942_v6  ;;  %v3080_v18 = vld [vmem:[#allocation2 + $0x181] sm:$0xff]  ;;  %v3535_v19 = vld [vmem:[#allocation2 + $0xf0] sm:$0xff] }
 0x447   : > { %v7110_v42 = vpack.c.bf16 %v3081_v43, %v3080_v18 }
 0x448   : > { %3475 = vmatmul.bf16.gmra.mxu2 %v6937_v3  ;;  %v7103_v60 = vadd.f32 %v3010_v51, %v2813_v39  ;;  %v3559_v39 = vpack.c.bf16 %v3536_v48, %v3535_v19  ;;  %v3990_v19 = vld [vmem:[#allocation2 + $0x52] sm:$0xff] }
 0x449   : > { %3909 = vmatmul.bf16.gmra.mxu0 %v6967_v20 }
 0x44a   : > { %3675 = vmatmul.bf16.gmra.mxu3 %v3558_v45  ;;  %v3988_v45 = vld [vmem:[#allocation2 + $0x3a] sm:$0xff] }
 0x44b   : > { %v3436_v27 = vpop.f32.mrf.mxu2 }
 0x44c   : > { %v7106_v50 = vadd.f32 %v3436_v27, %v3264_v24 }
 0x44d   : > { %v2779_v14 = vpop.f32.mrf.mxu3  ;;  %v3207_v37 = vpop.f32.mrf.mxu1 }
 0x44e   : > { %v2814_v33 = vadd.f32 %v2779_v14, %v6963_v23  ;;  %v3015_v6 = vpop.f32.mrf.mxu0  ;;  %v3266_v32 = vadd.f32 %v3207_v37, %v6951_v49  ;;  %v7118_v23 = vpack.c.bf16 %v3315_v35, %v3314_v56  ;;  %v3538_v35 = vld [vmem:[#allocation2 + $0x110] sm:$0xff] }
 0x450   : > { %3246 = vmatmul.bf16.gmra.mxu1 %v7110_v42  ;;  %v7113_v3 = vadd.f32 %v3013_v54, %v2814_v33  ;;  %v4019_v33 = vpack.c.bf16 %v3988_v45, %v3987_v46 }
 0x453   : > { %v7115_v20 = vpop.f32.mrf.mxu2 }
 0x455   : > { %v2781_v2 = vpop.f32.mrf.mxu3  ;;  %v3209_v51 = vpop.f32.mrf.mxu1 }
 0x456   : > { %v2815_v24 = vadd.f32 %v2781_v2, %v6972_v28  ;;  %v3875_v58 = vpop.f32.mrf.mxu0  ;;  %v7121_v49 = vadd.f32 %v3209_v51, %v6960_v52 }
 0x458   : > { %3480 = vmatmul.bf16.gmra.mxu2 %v7118_v23  ;;  %v7127_v54 = vadd.f32 %v3015_v6, %v2815_v24  ;;  %v3537_v24 = vld [vmem:[#allocation2 + $0x108] sm:$0xff] }
 0x459   : > { %3914 = vmatmul.bf16.gmra.mxu0 %v6987_v38 }
 0x45a   : > { %3680 = vmatmul.bf16.gmra.mxu3 %v3559_v39 }
 0x45b   : > { %v3441_v28 = vpop.f32.mrf.mxu2 }
 0x45c   : > { %v7130_v27 = vadd.f32 %v3441_v28, %v3266_v32 }
 0x45d   : > { %v3641_v52 = vpop.f32.mrf.mxu3  ;;  %v3212_v43 = vpop.f32.mrf.mxu1 }
 0x45e   : > { %v3721_v14 = vadd.f32 %v3641_v52, %v6983_v31  ;;  %v3877_v37 = vpop.f32.mrf.mxu0  ;;  %v3268_v18 = vadd.f32 %v3212_v43, %v6970_v30  ;;  %v3560_v31 = vpack.c.bf16 %v3538_v35, %v3537_v24  ;;  %v3539_v35 = vld [vmem:[#allocation2 + $0x120] sm:$0xff] }
 0x45f   : > { %v3991_v24 = vld [vmem:[#allocation2 + $0x62] sm:$0xff] }
 0x460   : > { %4108 = vmatmul.bf16.vlgmr.msra.gmra.mxu1 %v4019_v33  ;;  %v7134_v6 = vadd.f32 %v3875_v58, %v3721_v14  ;;  %v3989_v58 = vld [vmem:[#allocation2 + $0x4a] sm:$0xff] }
 0x461   : > { %v4020_v52 = vpack.c.bf16 %v3990_v19, %v3989_v58 }
 0x463   : > { %v7136_v56 = vpop.f32.mrf.mxu2 }
 0x465   : > { %v3643_v38 = vpop.f32.mrf.mxu3  ;;  %v3214_v2 = vpop.f32.mrf.mxu1 }
 0x466   : > { %v3722_v48 = vadd.f32 %v3643_v38, %v6992_v29  ;;  %v3880_v32 = vpop.f32.mrf.mxu0  ;;  %v7140_v51 = vadd.f32 %v3214_v2, %v6980_v16 }
 0x468   : > { %v7142_v25 = vadd.f32 %v3877_v37, %v3722_v48  ;;  %v3540_v37 = vld [vmem:[#allocation2 + $0x128] sm:$0xff] }
 0x469   : > { %3919 = vmatmul.bf16.gmra.mxu0 %v7007_v4  ;;  %v3561_v2 = vpack.c.bf16 %v3540_v37, %v3539_v35  ;;  %v3994_v35 = vld [vmem:[#allocation2 + $0x82] sm:$0xff] }
 0x46a   : > { %3685 = vmatmul.bf16.gmra.mxu3 %v3560_v31  ;;  %v3992_v31 = vld [vmem:[#allocation2 + $0x6a] sm:$0xff] }
 0x46b   : > { %v3446_v30 = vpop.f32.mrf.mxu2 }
 0x46c   : > { %v7145_v39 = vadd.f32 %v3446_v30, %v3268_v18 }
 0x46d   : > { %v3646_v28 = vpop.f32.mrf.mxu3  ;;  %v3217_v46 = vpop.f32.mrf.mxu1 }
 0x46e   : > { %v3723_v29 = vadd.f32 %v3646_v28, %v7003_v57  ;;  %v3882_v45 = vpop.f32.mrf.mxu0  ;;  %v3270_v16 = vadd.f32 %v3217_v46, %v6990_v8  ;;  %v5301_v57 = vld [vmem:[%s7369_s6 + $0x10] sm:$0xff]  ;;  %v4021_v28 = vpack.c.bf16 %v3992_v31, %v3991_v24 }
 0x46f   : > { %4378 = vmatpush.bf16.msra.mxu2 %v5301_v57  ;;  %v3993_v57 = vld [vmem:[#allocation2 + $0x7a] sm:$0xff] }
 0x470   : > { %4113 = vmatmul.bf16.gmra.mxu1 %v4020_v52  ;;  %v7149_v43 = vadd.f32 %v3880_v32, %v3723_v29  ;;  %v3542_v52 = vld [vmem:[#allocation2 + $0x140] sm:$0xff]  ;;  %v4022_v31 = vpack.c.bf16 %v3994_v35, %v3993_v57 }
 0x473   : > { %v7151_v14 = vpop.f32.mrf.mxu2 }
 0x475   : > { %v3648_v4 = vpop.f32.mrf.mxu3  ;;  %v3219_v33 = vpop.f32.mrf.mxu1 }
 0x476   : > { %v3724_v38 = vadd.f32 %v3648_v4, %v7012_v36  ;;  %v7155_v18 = vadd.f32 %v3219_v33, %v7000_v44  ;;  %v3885_v8 = vpop.f32.mrf.mxu0  ;;  %v3541_v33 = vld [vmem:[#allocation2 + $0x138] sm:$0xff] }
 0x478   : > { %v7160_v48 = vadd.f32 %v3882_v45, %v3724_v38  ;;  %v3562_v38 = vpack.c.bf16 %v3542_v52, %v3541_v33  ;;  %v3995_v33 = vld [vmem:[#allocation2 + $0x92] sm:$0xff] }
 0x479   : > { %3924 = vmatmul.bf16.gmra.mxu0 %v7027_v11 }
 0x47a   : > { %3690 = vmatmul.bf16.gmra.mxu3 %v3561_v2 }
 0x47b   : > { %v3451_v32 = vpop.f32.mrf.mxu2 }
 0x47c   : > { %v7163_v36 = vadd.f32 %v3451_v32, %v3270_v16 }
 0x47d   : > { %v3651_v44 = vpop.f32.mrf.mxu3  ;;  %v3222_v30 = vpop.f32.mrf.mxu1 }
 0x47e   : > { %v3725_v58 = vadd.f32 %v3651_v44, %v7023_v1  ;;  %v3272_v19 = vadd.f32 %v3222_v30, %v7010_v59  ;;  %v3887_v29 = vpop.f32.mrf.mxu0 }
 0x480   : > { %4118 = vmatmul.bf16.gmra.mxu1 %v4021_v28  ;;  %v7167_v46 = vadd.f32 %v3885_v8, %v3725_v58  ;;  %v3544_v58 = vld [vmem:[#allocation2 + $0x158] sm:$0xff] }
 0x483   : > { %v7169_v45 = vpop.f32.mrf.mxu2 }
 0x485   : > { %v3653_v11 = vpop.f32.mrf.mxu3  ;;  %v3224_v4 = vpop.f32.mrf.mxu1 }
 0x486   : > { %v3726_v37 = vadd.f32 %v3653_v11, %v7032_v34  ;;  %v7173_v16 = vadd.f32 %v3224_v4, %v7020_v41  ;;  %v3890_v8 = vpop.f32.mrf.mxu0 }
 0x488   : > { %v7175_v1 = vadd.f32 %v3887_v29, %v3726_v37 }
 0x489   : > { %3929 = vmatmul.bf16.gmra.mxu0 %v7047_v17 }
 0x48a   : > { %3695 = vmatmul.bf16.gmra.mxu3 %v3562_v38  ;;  %v3996_v38 = vld [vmem:[#allocation2 + $0x9a] sm:$0xff] }
 0x48b   : > { %v3456_v59 = vpop.f32.mrf.mxu2  ;;  %v4023_v57 = vpack.c.bf16 %v3996_v38, %v3995_v33  ;;  %v3999_v33 = vld [vmem:[#allocation2 + $0xc2] sm:$0xff]  ;;  %v4000_v38 = vld [vmem:[#allocation2 + $0xca] sm:$0xff] }
 0x48c   : > { %v7178_v2 = vadd.f32 %v3456_v59, %v3272_v19 }
 0x48d   : > { %v3656_v32 = vpop.f32.mrf.mxu3  ;;  %v3227_v24 = vpop.f32.mrf.mxu1 }
 0x48e   : > { %v3727_v34 = vadd.f32 %v3656_v32, %v7043_v10  ;;  %v3274_v41 = vadd.f32 %v3227_v24, %v7030_v47  ;;  %v5300_v10 = vld [vmem:[%s7369_s6 + $0x8] sm:$0xff]  ;;  %v3892_v11 = vpop.f32.mrf.mxu0  ;;  %v3543_v47 = vld [vmem:[#allocation2 + $0x150] sm:$0xff] }
 0x48f   : > { %v3563_v52 = vpack.c.bf16 %v3544_v58, %v3543_v47  ;;  %4379 = vmatpush.bf16.msra.mxu2 %v5300_v10 }
 0x490   : > { %4123 = vmatmul.bf16.gmra.mxu1 %v4022_v31  ;;  %v7182_v44 = vadd.f32 %v3890_v8, %v3727_v34  ;;  %v3546_v8 = vld [vmem:[#allocation2 + $0x170] sm:$0xff]  ;;  %v3545_v34 = vld [vmem:[#allocation2 + $0x168] sm:$0xff] }
 0x493   : > { %v7184_v30 = vpop.f32.mrf.mxu2 }
 0x495   : > { %v3658_v17 = vpop.f32.mrf.mxu3  ;;  %v3229_v28 = vpop.f32.mrf.mxu1 }
 0x496   : > { %v3728_v29 = vadd.f32 %v3658_v17, %v7052_v5  ;;  %v7188_v19 = vadd.f32 %v3229_v28, %v7040_v40  ;;  %v3998_v17 = vld [vmem:[#allocation2 + $0xb2] sm:$0xff] }
 0x498   : > { %v7193_v4 = vadd.f32 %v3892_v11, %v3728_v29  ;;  %v3548_v11 = vld [vmem:[#allocation2 + $0x188] sm:$0xff] }
 0x499   : > { %3934 = vmatmul.bf16.gmra.mxu0 %v7069_v53  ;;  %v3564_v53 = vpack.c.bf16 %v3546_v8, %v3545_v34  ;;  %v3783_v8 = vld [vmem:[#allocation2 + $0x199] sm:$0xff] }
 0x49a   : > { %3700 = vmatmul.bf16.gmra.mxu3 %v3563_v52  ;;  %v3547_v52 = vld [vmem:[#allocation2 + $0x180] sm:$0xff] }
 0x49b   : > { %v3461_v37 = vpop.f32.mrf.mxu2 }
 0x49c   : > { %v7196_v5 = vadd.f32 %v3461_v37, %v3274_v41  ;;  %v3997_v41 = vld [vmem:[#allocation2 + $0xaa] sm:$0xff]  ;;  %v3565_v37 = vpack.c.bf16 %v3548_v11, %v3547_v52 }
 0x49d   : > { %v3232_v40 = vpop.f32.mrf.mxu1  ;;  %v4024_v29 = vpack.c.bf16 %v3998_v17, %v3997_v41  ;;  %v5330_v41 = vld [vmem:[#allocation2] sm:$0xff] }
 0x49e   : > { %v3276_v59 = vadd.f32 %v3232_v40, %v7050_v9  ;;  %v3566_v17 = vpack.c.bf16 %v5330_v41, %v5330_v41 }
 0x4a0   : > { %4128 = vmatmul.bf16.gmra.mxu1 %v4023_v57 }
 0x4a3   : > { %v7199_v35 = vpop.f32.mrf.mxu2 }
 0x4a5   : > { %v3234_v32 = vpop.f32.mrf.mxu1 }
 0x4a6   : > { %v7202_v24 = vadd.f32 %v3234_v32, %v7062_v7  ;;  %v3784_v32 = vld [vmem:[#allocation2 + $0x1a1] sm:$0xff] }
 0x4a9   : > { %3939 = vmatmul.bf16.gmra.mxu0 %v7091_v21  ;;  %v5299_v21 = vld [vmem:[%s7369_s6] sm:$0xff] }
 0x4aa   : > { %3705 = vmatmul.bf16.gmra.mxu3 %v3564_v53  ;;  %4380 = vmatpush.bf16.msra.mxu2 %v5299_v21 }
 0x4ab   : > { %v3466_v31 = vpop.f32.mrf.mxu2 }
 0x4ac   : > { %v7205_v58 = vadd.f32 %v3466_v31, %v3276_v59  ;;  %v3800_v31 = vpack.c.bf16 %v3784_v32, %v3783_v8 }
 0x4ad   : > { %v3237_v9 = vpop.f32.mrf.mxu1 }
 0x4ae   : > { %v3278_v28 = vadd.f32 %v3237_v9, %v7072_v22 }
 0x4b0   : > { %4133 = vmatmul.bf16.gmra.mxu1 %v4024_v29  ;;  %v4002_v29 = vld [vmem:[#allocation2 + $0xe2] sm:$0xff] }
 0x4b3   : > { %v7208_v10 = vpop.f32.mrf.mxu2 }
 0x4b5   : > { %v3239_v7 = vpop.f32.mrf.mxu1 }
 0x4b6   : > { %v7211_v47 = vadd.f32 %v3239_v7, %v7084_v15  ;;  %v4025_v15 = vpack.c.bf16 %v4000_v38, %v3999_v33  ;;  %v4003_v33 = vld [vmem:[#allocation2 + $0xf2] sm:$0xff]  ;;  %v4004_v38 = vld [vmem:[#allocation2 + $0xfa] sm:$0xff] }
 0x4b7   : > { %v4027_v8 = vpack.c.bf16 %v4004_v38, %v4003_v33 }
 0x4b9   : > { %3944 = vmatmul.bf16.gmra.mxu0 %v7110_v42 }
 0x4ba   : > { %3710 = vmatmul.bf16.gmra.mxu3 %v3565_v37 }
 0x4bb   : > { %v3471_v22 = vpop.f32.mrf.mxu2 }
 0x4bc   : > { %v7217_v40 = vadd.f32 %v3471_v22, %v3278_v28  ;;  %v4001_v28 = vld [vmem:[#allocation2 + $0xda] sm:$0xff] }
 0x4bd   : > { %v3242_v59 = vpop.f32.mrf.mxu1  ;;  %v4026_v21 = vpack.c.bf16 %v4002_v29, %v4001_v28  ;;  %v4005_v28 = vld [vmem:[#allocation2 + $0x10a] sm:$0xff]  ;;  %v4006_v29 = vld [vmem:[#allocation2 + $0x112] sm:$0xff] }
 0x4be   : > { %v3280_v57 = vadd.f32 %v3242_v59, %v7094_v0 }
 0x4c0   : > { %4138 = vmatmul.bf16.gmra.mxu1 %v4025_v15 }
 0x4c3   : > { %v7220_v34 = vpop.f32.mrf.mxu2 }
 0x4c5   : > { %v3244_v53 = vpop.f32.mrf.mxu1 }
 0x4c6   : > { %v7223_v42 = vadd.f32 %v3244_v53, %v7103_v60 }
 0x4c9   : > { %3949 = vmatmul.bf16.gmra.mxu0 %v3800_v31  ;;  %v3661_v31 = vpop.f32.mrf.mxu3 }
 0x4ca   : > { %3715 = vmatmul.bf16.gmra.mxu3 %v3566_v17 }
 0x4cb   : > { %v3476_v9 = vpop.f32.mrf.mxu2 }
 0x4cc   : > { %v7225_v11 = vadd.f32 %v3476_v9, %v3280_v57 }
 0x4cd   : > { %v3247_v0 = vpop.f32.mrf.mxu1 }
 0x4ce   : > { %v3282_v7 = vadd.f32 %v3247_v0, %v7113_v3  ;;  %v7239_v3 = vld [vmem:[%s7368_s5] ss:$0 sm:$0xff] }
 0x4d0   : > { %4143 = vmatmul.bf16.gmra.mxu1 %v4026_v21  ;;  %v4028_v21 = vpack.c.bf16 %v4006_v29, %v4005_v28 }
 0x4d3   : > { %v7228_v52 = vpop.f32.mrf.mxu2 }
 0x4d4   : > { %7489 = vst [vmem:[#allocation9_spill] sm:$0xff] %v7228_v52  ;;  %v4013_v52 = vld [vmem:[#allocation2 + $0x16a] sm:$0xff] }
 0x4d5   : > { %v3249_v37 = vpop.f32.mrf.mxu1 }
 0x4d6   : > { %v7231_v22 = vadd.f32 %v3249_v37, %v7127_v54  ;;  %v3663_v37 = vpop.f32.mrf.mxu3 }
 0x4d8   : > { %7490 = vst [vmem:[#allocation22_spill] sm:$0xff] %v7231_v22  ;;  %v4011_v22 = vld [vmem:[#allocation2 + $0x152] sm:$0xff] }
 0x4db   : > { %v3481_v60 = vpop.f32.mrf.mxu2 }
 0x4dc   : > { %v7233_v59 = vadd.f32 %v3481_v60, %v3282_v7  ;;  %v3895_v7 = vpop.f32.mrf.mxu0 }
 0x4dd   : > { %v4109_v15 = vpop.f32.mrf.mxu1 }
 0x4de   : > { %7491 = vst [vmem:[#allocation15_spill] sm:$0xff] %v7233_v59  ;;  %v4189_v57 = vadd.f32 %v4109_v15, %v7134_v6 }
 0x4e0   : > { %4148 = vmatmul.bf16.gmra.mxu1 %v4027_v8  ;;  %v4225_v53 = vadd.f32 %v7239_v3, %v4189_v57 }
 0x4e2   : > { %v4257_v17 = vmax.f32 %v4225_v53, 0.0  ;;  %v3666_v53 = vpop.f32.mrf.mxu3 }
 0x4e4   : > { %v3897_v15 = vpop.f32.mrf.mxu0 }
 0x4e5   : > { %v4111_v32 = vpop.f32.mrf.mxu1 }
 0x4e6   : > { %v4190_v54 = vadd.f32 %v4111_v32, %v7142_v25 }
 0x4e8   : > { %v4226_v41 = vadd.f32 %v7239_v3, %v4190_v54  ;;  %v4007_v54 = vld [vmem:[#allocation2 + $0x122] sm:$0xff] }
 0x4ea   : > { %v4258_v9 = vmax.f32 %v4226_v41, 0.0  ;;  %v4008_v41 = vld [vmem:[#allocation2 + $0x12a] sm:$0xff] }
 0x4eb   : > { %v4029_v28 = vpack.c.bf16 %v4008_v41, %v4007_v54 }
 0x4ec   : > { %v4289_v0 = vpack.c.bf16 %v4258_v9, %v4257_v17  ;;  %v3900_v29 = vpop.f32.mrf.mxu0 }
 0x4ed   : > { %v4114_v6 = vpop.f32.mrf.mxu1 }
 0x4ee   : > { %4381 = vmatmul.bf16.vlgmr.msra.gmra.mxu2 %v4289_v0  ;;  %v4191_v60 = vadd.f32 %v4114_v6, %v7149_v43  ;;  %v3668_v0 = vpop.f32.mrf.mxu3 }
 0x4f0   : > { %4153 = vmatmul.bf16.gmra.mxu1 %v4028_v21  ;;  %v4227_v38 = vadd.f32 %v7239_v3, %v4191_v60 }
 0x4f2   : > { %v4259_v57 = vmax.f32 %v4227_v38, 0.0 }
 0x4f5   : > { %v4116_v33 = vpop.f32.mrf.mxu1 }
 0x4f6   : > { %v4192_v25 = vadd.f32 %v4116_v33, %v7160_v48  ;;  %v3671_v41 = vpop.f32.mrf.mxu3 }
 0x4f8   : > { %v4228_v8 = vadd.f32 %v7239_v3, %v4192_v25  ;;  %v3902_v25 = vpop.f32.mrf.mxu0 }
 0x4fa   : > { %v4260_v32 = vmax.f32 %v4228_v8, 0.0  ;;  %v4009_v8 = vld [vmem:[#allocation2 + $0x13a] sm:$0xff] }
 0x4fc   : > { %v4290_v17 = vpack.c.bf16 %v4260_v32, %v4259_v57  ;;  %v4010_v57 = vld [vmem:[#allocation2 + $0x142] sm:$0xff] }
 0x4fd   : > { %v4119_v9 = vpop.f32.mrf.mxu1  ;;  %v4030_v54 = vpack.c.bf16 %v4010_v57, %v4009_v8 }
 0x4fe   : > { %4386 = vmatmul.bf16.gmra.mxu2 %v4290_v17  ;;  %v4193_v43 = vadd.f32 %v4119_v9, %v7167_v46 }
 0x500   : > { %4158 = vmatmul.bf16.gmra.mxu1 %v4029_v28  ;;  %v4229_v48 = vadd.f32 %v7239_v3, %v4193_v43  ;;  %v3905_v9 = vpop.f32.mrf.mxu0 }
 0x502   : > { %v4261_v33 = vmax.f32 %v4229_v48, 0.0  ;;  %v3673_v48 = vpop.f32.mrf.mxu3 }
 0x505   : > { %v4121_v6 = vpop.f32.mrf.mxu1 }
 0x506   : > { %v4194_v21 = vadd.f32 %v4121_v6, %v7175_v1 }
 0x508   : > { %v4230_v60 = vadd.f32 %v7239_v3, %v4194_v21 }
 0x50a   : > { %v4262_v38 = vmax.f32 %v4230_v60, 0.0 }
 0x50c   : > { %v4291_v32 = vpack.c.bf16 %v4262_v38, %v4261_v33  ;;  %v4012_v33 = vld [vmem:[#allocation2 + $0x15a] sm:$0xff]  ;;  %v3729_v38 = vadd.f32 %v3661_v31, %v7065_v13 }
 0x50d   : > { %v4124_v17 = vpop.f32.mrf.mxu1 }
 0x50e   : > { %4391 = vmatmul.bf16.gmra.mxu2 %v4291_v32  ;;  %v4195_v46 = vadd.f32 %v4124_v17, %v7182_v44  ;;  %v3495_v44 = vadd.f32 %v7074_v12, %v7056_v63  ;;  %v4031_v32 = vpack.c.bf16 %v4012_v33, %v4011_v22  ;;  %v3907_v17 = vpop.f32.mrf.mxu0  ;;  %v4014_v63 = vld [vmem:[#allocation2 + $0x172] sm:$0xff]  ;;  %v3731_v12 = vadd.f32 %v3666_v53, %v7087_v61 }
 0x50f   : > { %v3497_v33 = vadd.f32 %v7096_v26, %v7078_v62 }
 0x510   : > { %4163 = vmatmul.bf16.gmra.mxu1 %v4030_v54  ;;  %v4231_v43 = vadd.f32 %v7239_v3, %v4195_v46  ;;  %v3730_v54 = vadd.f32 %v3663_v37, %v3495_v44  ;;  %v3963_v46 = vadd.f32 %v3895_v7, %v3729_v38 }
 0x511   : > { %v3732_v38 = vadd.f32 %v3668_v0, %v3497_v33 }
 0x512   : > { %v4263_v21 = vmax.f32 %v4231_v43, 0.0 }
 0x513   : > { %v3966_v44 = vadd.f32 %v3902_v25, %v3732_v38 }
 0x515   : > { %v4126_v28 = vpop.f32.mrf.mxu1 }
 0x516   : > { %v4196_v1 = vadd.f32 %v4126_v28, %v7193_v4  ;;  %v3676_v28 = vpop.f32.mrf.mxu3  ;;  %v3910_v31 = vpop.f32.mrf.mxu0 }
 0x518   : > { %v4232_v6 = vadd.f32 %v7239_v3, %v4196_v1  ;;  %v3964_v1 = vadd.f32 %v3897_v15, %v3730_v54  ;;  %v4032_v15 = vpack.c.bf16 %v4014_v63, %v4013_v52 }
 0x51a   : > { %v4264_v60 = vmax.f32 %v4232_v6, 0.0 }
 0x51c   : > { %v4292_v8 = vpack.c.bf16 %v4264_v60, %v4263_v21 }
 0x51d   : > { %v4129_v57 = vpop.f32.mrf.mxu1 }
 0x51e   : > { %4396 = vmatmul.bf16.gmra.mxu2 %v4292_v8  ;;  %v4197_v4 = vadd.f32 %v4129_v57, %v3963_v46  ;;  %v3678_v37 = vpop.f32.mrf.mxu3  ;;  %v3965_v8 = vadd.f32 %v3900_v29, %v3731_v12  ;;  %v3499_v29 = vadd.f32 %v7115_v20, %v7100_v55  ;;  %v3735_v20 = vadd.f32 %v3676_v28, %v7130_v27 }
 0x520   : > { %4168 = vmatmul.bf16.gmra.mxu1 %v4031_v32  ;;  %v4233_v6 = vadd.f32 %v7239_v3, %v4197_v4  ;;  %v3734_v0 = vadd.f32 %v3673_v48, %v3499_v29 }
 0x522   : > { %v4265_v21 = vmax.f32 %v4233_v6, 0.0 }
 0x525   : > { %v4131_v43 = vpop.f32.mrf.mxu1 }
 0x526   : > { %v4198_v59 = vadd.f32 %v4131_v43, %v3964_v1  ;;  %v3681_v4 = vpop.f32.mrf.mxu3  ;;  %v3733_v43 = vadd.f32 %v3671_v41, %v7106_v50  ;;  %v4017_v41 = vld [vmem:[#allocation2 + $0x19a] sm:$0xff] }
 0x528   : > { %v4234_v13 = vadd.f32 %v7239_v3, %v4198_v59  ;;  %v3912_v59 = vpop.f32.mrf.mxu0  ;;  %v3967_v25 = vadd.f32 %v3905_v9, %v3733_v43 }
 0x52a   : > { %v4266_v60 = vmax.f32 %v4234_v13, 0.0 }
 0x52c   : > { %v4293_v22 = vpack.c.bf16 %v4266_v60, %v4265_v21  ;;  %v3968_v21 = vadd.f32 %v3907_v17, %v3734_v0  ;;  %v3501_v17 = vadd.f32 %v7136_v56, %v7121_v49 }
 0x52d   : > { %v4134_v7 = vpop.f32.mrf.mxu1 }
 0x52e   : > { %4401 = vmatmul.bf16.gmra.mxu2 %v4293_v22  ;;  %v4199_v57 = vadd.f32 %v4134_v7, %v3965_v8  ;;  %v3683_v6 = vpop.f32.mrf.mxu3  ;;  %v4018_v7 = vld [vmem:[#allocation2 + $0x1a2] sm:$0xff]  ;;  %v3736_v38 = vadd.f32 %v3678_v37, %v3501_v17  ;;  %v3969_v8 = vadd.f32 %v3910_v31, %v3735_v20  ;;  %v3503_v31 = vadd.f32 %v7151_v14, %v7140_v51 }
 0x52f   : > { %v4034_v48 = vpack.c.bf16 %v4018_v7, %v4017_v41 }
 0x530   : > { %4173 = vmatmul.bf16.gmra.mxu1 %v4032_v15  ;;  %v4235_v54 = vadd.f32 %v7239_v3, %v4199_v57  ;;  %v3915_v26 = vpop.f32.mrf.mxu0 }
 0x532   : > { %v4267_v53 = vmax.f32 %v4235_v54, 0.0 }
 0x535   : > { %v4136_v32 = vpop.f32.mrf.mxu1 }
 0x536   : > { %v4200_v46 = vadd.f32 %v4136_v32, %v3966_v44  ;;  %v3686_v55 = vpop.f32.mrf.mxu3  ;;  %v3970_v32 = vadd.f32 %v3912_v59, %v3736_v38  ;;  %v3738_v59 = vadd.f32 %v3683_v6, %v3503_v31 }
 0x537   : > { %v3739_v51 = vadd.f32 %v3686_v55, %v7163_v36 }
 0x538   : > { %v4236_v61 = vadd.f32 %v7239_v3, %v4200_v46  ;;  %v3917_v22 = vpop.f32.mrf.mxu0 }
 0x539   : > { %v3972_v0 = vadd.f32 %v3917_v22, %v3738_v59 }
 0x53a   : > { %v4268_v1 = vmax.f32 %v4236_v61, 0.0 }
 0x53c   : > { %v4294_v62 = vpack.c.bf16 %v4268_v1, %v4267_v53 }
 0x53d   : > { %v4139_v52 = vpop.f32.mrf.mxu1 }
 0x53e   : > { %4406 = vmatmul.bf16.gmra.mxu2 %v4294_v62  ;;  %v4201_v13 = vadd.f32 %v4139_v52, %v3967_v25  ;;  %v3688_v54 = vpop.f32.mrf.mxu3  ;;  %v3737_v62 = vadd.f32 %v3681_v4, %v7145_v39 }
 0x540   : > { %4178 = vmatmul.bf16.gmra.mxu1 %v7118_v23  ;;  %v4237_v63 = vadd.f32 %v7239_v3, %v4201_v13  ;;  %v3920_v57 = vpop.f32.mrf.mxu0  ;;  %v3971_v52 = vadd.f32 %v3915_v26, %v3737_v62  ;;  %v3505_v26 = vadd.f32 %v7169_v45, %v7155_v18 }
 0x541   : > { %v3973_v7 = vadd.f32 %v3920_v57, %v3739_v51 }
 0x542   : > { %v4269_v33 = vmax.f32 %v4237_v63, 0.0  ;;  %v3740_v22 = vadd.f32 %v3688_v54, %v3505_v26 }
 0x545   : > { %v4141_v60 = vpop.f32.mrf.mxu1 }
 0x546   : > { %v4202_v12 = vadd.f32 %v4141_v60, %v3968_v21  ;;  %v3691_v37 = vpop.f32.mrf.mxu3 }
 0x548   : > { %v4238_v50 = vadd.f32 %v7239_v3, %v4202_v12  ;;  %v3922_v43 = vpop.f32.mrf.mxu0  ;;  %v7282_v12 = vpop.f32.mrf.mxu2 }
 0x54a   : > { %v4270_v15 = vmax.f32 %v4238_v50, 0.0 }
 0x54c   : > { %v4295_v9 = vpack.c.bf16 %v4270_v15, %v4269_v33 }
 0x54d   : > { %v4144_v23 = vpop.f32.mrf.mxu1 }
 0x54e   : > { %4411 = vmatmul.bf16.gmra.mxu2 %v4295_v9  ;;  %v4203_v44 = vadd.f32 %v4144_v23, %v3969_v8  ;;  %v3693_v39 = vpop.f32.mrf.mxu3  ;;  %v7290_v9 = vld [vmem:[%s7370_s7] ss:$0 sm:$0xff] }
 0x550   : > { %4183 = vmatmul.bf16.gmra.mxu1 %v4034_v48  ;;  %v4239_v61 = vadd.f32 %v7239_v3, %v4203_v44  ;;  %v3925_v25 = vpop.f32.mrf.mxu0  ;;  %v3974_v48 = vadd.f32 %v3922_v43, %v3740_v22 }
 0x552   : > { %v4271_v28 = vmax.f32 %v4239_v61, 0.0 }
 0x555   : > { %v4146_v46 = vpop.f32.mrf.mxu1 }
 0x556   : > { %v4204_v53 = vadd.f32 %v4146_v46, %v3970_v32  ;;  %v3696_v20 = vpop.f32.mrf.mxu3  ;;  %v3741_v32 = vadd.f32 %v3691_v37, %v7178_v2 }
 0x558   : > { %v4240_v27 = vadd.f32 %v7239_v3, %v4204_v53  ;;  %v3927_v6 = vpop.f32.mrf.mxu0  ;;  %v3975_v62 = vadd.f32 %v3925_v25, %v3741_v32 }
 0x55a   : > { %v4272_v1 = vmax.f32 %v4240_v27, 0.0 }
 0x55c   : > { %v4296_v49 = vpack.c.bf16 %v4272_v1, %v4271_v28  ;;  %v3507_v28 = vadd.f32 %v7184_v30, %v7173_v16 }
 0x55d   : > { %v4149_v56 = vpop.f32.mrf.mxu1 }
 0x55e   : > { %4416 = vmatmul.bf16.gmra.mxu2 %v4296_v49  ;;  %v4205_v29 = vadd.f32 %v4149_v56, %v3971_v52  ;;  %v3698_v53 = vpop.f32.mrf.mxu3  ;;  %v3742_v43 = vadd.f32 %v3693_v39, %v3507_v28  ;;  %v3743_v39 = vadd.f32 %v3696_v20, %v7196_v5 }
 0x560   : > { %v4241_v21 = vadd.f32 %v7239_v3, %v4205_v29  ;;  %v3930_v45 = vpop.f32.mrf.mxu0  ;;  %v3976_v29 = vadd.f32 %v3927_v6, %v3742_v43 }
 0x561   : > { %v3977_v22 = vadd.f32 %v3930_v45, %v3743_v39 }
 0x562   : > { %v4273_v4 = vmax.f32 %v4241_v21, 0.0 }
 0x565   : > { %v4151_v13 = vpop.f32.mrf.mxu1 }
 0x566   : > { %v4206_v60 = vadd.f32 %v4151_v13, %v3972_v0  ;;  %v3701_v21 = vpop.f32.mrf.mxu3 }
 0x568   : > { %v4242_v63 = vadd.f32 %v7239_v3, %v4206_v60  ;;  %v3932_v59 = vpop.f32.mrf.mxu0 }
 0x56a   : > { %v4274_v50 = vmax.f32 %v4242_v63, 0.0 }
 0x56c   : > { %v4297_v14 = vpack.c.bf16 %v4274_v50, %v4273_v4 }
 0x56d   : > { %v4154_v41 = vpop.f32.mrf.mxu1 }
 0x56e   : > { %4421 = vmatmul.bf16.gmra.mxu2 %v4297_v14  ;;  %v4207_v15 = vadd.f32 %v4154_v41, %v3973_v7  ;;  %v3509_v41 = vadd.f32 %v7199_v35, %v7188_v19  ;;  %v3703_v7 = vpop.f32.mrf.mxu3 }
 0x570   : > { %v4243_v36 = vadd.f32 %v7239_v3, %v4207_v15  ;;  %v3935_v51 = vpop.f32.mrf.mxu0  ;;  %v3744_v6 = vadd.f32 %v3698_v53, %v3509_v41 }
 0x571   : > { %v4382_v33 = vpop.f32.mrf.mxu2 }
 0x572   : > { %v4383_v17 = vadd.f32 %v7290_v9, %v4382_v33  ;;  %v4275_v8 = vmax.f32 %v4243_v36, 0.0  ;;  %v3978_v36 = vadd.f32 %v3932_v59, %v3744_v6 }
 0x574   : > { %v4462_v54 = vmax.f32 %v4383_v17, 0.0 }
 0x575   : > { %v4156_v23 = vpop.f32.mrf.mxu1 }
 0x576   : > { %v4208_v55 = vadd.f32 %v4156_v23, %v3974_v48 }
 0x578   : > { %v4244_v18 = vadd.f32 %v7239_v3, %v4208_v55 }
 0x579   : > { %v4384_v38 = vpop.f32.mrf.mxu2 }
 0x57a   : > { %v4276_v57 = vmax.f32 %v4244_v18, 0.0  ;;  %v4385_v44 = vadd.f32 %v7290_v9, %v4384_v38  ;;  %v3937_v18 = vpop.f32.mrf.mxu0 }
 0x57c   : > { %v4463_v46 = vmax.f32 %v4385_v44, 0.0  ;;  %v4298_v61 = vpack.c.bf16 %v4276_v57, %v4275_v8  ;;  %v3706_v57 = vpop.f32.mrf.mxu3  ;;  %v3745_v44 = vadd.f32 %v3701_v21, %v7205_v58 }
 0x57d   : > { %v4159_v27 = vpop.f32.mrf.mxu1 }
 0x57e   : > { %v4494_v1 = vadd.f32 %v4463_v46, %v4462_v54  ;;  %4426 = vmatmul.bf16.gmra.mxu2 %v4298_v61  ;;  %v4209_v56 = vadd.f32 %v4159_v27, %v3975_v62  ;;  %v3511_v61 = vadd.f32 %v7208_v10, %v7202_v24  ;;  %v3979_v28 = vadd.f32 %v3935_v51, %v3745_v44 }
 0x580   : > { %v4245_v37 = vadd.f32 %v7239_v3, %v4209_v56  ;;  %v3746_v27 = vadd.f32 %v3703_v7, %v3511_v61 }
 0x581   : > { %v4387_v49 = vpop.f32.mrf.mxu2 }
 0x582   : > { %v4388_v31 = vadd.f32 %v7290_v9, %v4387_v49  ;;  %v4277_v30 = vmax.f32 %v4245_v37, 0.0 }
 0x584   : > { %v4464_v52 = vmax.f32 %v4388_v31, 0.0  ;;  %v3980_v31 = vadd.f32 %v3937_v18, %v3746_v27  ;;  %v3708_v59 = vpop.f32.mrf.mxu3 }
 0x585   : > { %v4161_v2 = vpop.f32.mrf.mxu1 }
 0x586   : > { %v4495_v0 = vadd.f32 %v4494_v1, %v4464_v52  ;;  %v4210_v13 = vadd.f32 %v4161_v2, %v3976_v29  ;;  %v3940_v1 = vpop.f32.mrf.mxu0 }
 0x588   : > { %v4246_v60 = vadd.f32 %v7239_v3, %v4210_v13 }
 0x589   : > { %v4389_v16 = vpop.f32.mrf.mxu2 }
 0x58a   : > { %v4278_v63 = vmax.f32 %v4246_v60, 0.0  ;;  %v4390_v25 = vadd.f32 %v7290_v9, %v4389_v16  ;;  %v3747_v60 = vadd.f32 %v3706_v57, %v7217_v40 }
 0x58c   : > { %v4465_v4 = vmax.f32 %v4390_v25, 0.0  ;;  %v4299_v50 = vpack.c.bf16 %v4278_v63, %v4277_v30  ;;  %v3513_v25 = vadd.f32 %v7220_v34, %v7211_v47  ;;  %v3981_v51 = vadd.f32 %v3940_v1, %v3747_v60 }
 0x58d   : > { %v4164_v14 = vpop.f32.mrf.mxu1 }
 0x58e   : > { %v4496_v26 = vadd.f32 %v4495_v0, %v4465_v4  ;;  %4431 = vmatmul.bf16.gmra.mxu2 %v4299_v50  ;;  %v4211_v15 = vadd.f32 %v4164_v14, %v3977_v22  ;;  %v3942_v21 = vpop.f32.mrf.mxu0  ;;  %v3711_v4 = vpop.f32.mrf.mxu3  ;;  %v3748_v50 = vadd.f32 %v3708_v59, %v3513_v25 }
 0x590   : > { %v4247_v5 = vadd.f32 %v7239_v3, %v4211_v15  ;;  %v3982_v22 = vadd.f32 %v3942_v21, %v3748_v50 }
 0x591   : > { %v4392_v33 = vpop.f32.mrf.mxu2 }
 0x592   : > { %v4393_v48 = vadd.f32 %v7290_v9, %v4392_v33  ;;  %v4279_v35 = vmax.f32 %v4247_v5, 0.0 }
 0x594   : > { %v4466_v23 = vmax.f32 %v4393_v48, 0.0 }
 0x595   : > { %v4166_v55 = vpop.f32.mrf.mxu1 }
 0x596   : > { %v4497_v20 = vadd.f32 %v4496_v26, %v4466_v23  ;;  %v4212_v17 = vadd.f32 %v4166_v55, %v3978_v36  ;;  %v3945_v7 = vpop.f32.mrf.mxu0  ;;  %v3713_v47 = vpop.f32.mrf.mxu3 }
 0x598   : > { %v4248_v38 = vadd.f32 %v7239_v3, %v4212_v17 }
 0x599   : > { %v4394_v19 = vpop.f32.mrf.mxu2 }
 0x59a   : > { %v4280_v8 = vmax.f32 %v4248_v38, 0.0  ;;  %v4395_v45 = vadd.f32 %v7290_v9, %v4394_v19  ;;  %v7492_v19 = vld [vmem:[#allocation9_spill] sm:$0xff] }
 0x59c   : > { %v4467_v32 = vmax.f32 %v4395_v45, 0.0  ;;  %v4300_v54 = vpack.c.bf16 %v4280_v8, %v4279_v35  ;;  %v3515_v35 = vadd.f32 %v7492_v19, %v7223_v42 }
 0x59d   : > { %v4169_v46 = vpop.f32.mrf.mxu1 }
 0x59e   : > { %v4498_v53 = vadd.f32 %v4497_v20, %v4467_v32  ;;  %4436 = vmatmul.bf16.gmra.mxu2 %v4300_v54  ;;  %v4213_v62 = vadd.f32 %v4169_v46, %v3979_v28  ;;  %v3749_v20 = vadd.f32 %v3711_v4, %v7225_v11  ;;  %v3947_v45 = vpop.f32.mrf.mxu0  ;;  %v3750_v57 = vadd.f32 %v3713_v47, %v3515_v35  ;;  %v3716_v61 = vpop.f32.mrf.mxu3 }
 0x5a0   : > { %v4249_v58 = vadd.f32 %v7239_v3, %v4213_v62  ;;  %v3983_v44 = vadd.f32 %v3945_v7, %v3749_v20  ;;  %v3984_v27 = vadd.f32 %v3947_v45, %v3750_v57 }
 0x5a1   : > { %v4397_v43 = vpop.f32.mrf.mxu2 }
 0x5a2   : > { %v4398_v49 = vadd.f32 %v7290_v9, %v4397_v43  ;;  %v4281_v10 = vmax.f32 %v4249_v58, 0.0 }
 0x5a4   : > { %v4468_v56 = vmax.f32 %v4398_v49, 0.0 }
 0x5a5   : > { %v4171_v52 = vpop.f32.mrf.mxu1 }
 0x5a6   : > { %v4499_v29 = vadd.f32 %v4498_v53, %v4468_v56  ;;  %v4214_v2 = vadd.f32 %v4171_v52, %v3980_v31  ;;  %v3950_v62 = vpop.f32.mrf.mxu0  ;;  %v7493_v52 = vld [vmem:[#allocation15_spill] sm:$0xff] }
 0x5a7   : > { %v3751_v58 = vadd.f32 %v3716_v61, %v7493_v52 }
 0x5a8   : > { %v4250_v37 = vadd.f32 %v7239_v3, %v4214_v2 }
 0x5a9   : > { %v4399_v24 = vpop.f32.mrf.mxu2  ;;  %v3985_v21 = vadd.f32 %v3950_v62, %v3751_v58 }
 0x5aa   : > { %v4282_v0 = vmax.f32 %v4250_v37, 0.0  ;;  %v4400_v13 = vadd.f32 %v7290_v9, %v4399_v24  ;;  %v3718_v37 = vpop.f32.mrf.mxu3 }
 0x5ac   : > { %v4469_v16 = vmax.f32 %v4400_v13, 0.0  ;;  %v4301_v30 = vpack.c.bf16 %v4282_v0, %v4281_v10  ;;  %v7494_v10 = vld [vmem:[#allocation22_spill] sm:$0xff] }
 0x5ad   : > { %v4174_v63 = vpop.f32.mrf.mxu1  ;;  %v3517_v0 = vadd.f32 %v7282_v12, %v7494_v10 }
 0x5ae   : > { %v4500_v39 = vadd.f32 %v4499_v29, %v4469_v16  ;;  %4441 = vmatmul.bf16.gmra.mxu2 %v4301_v30  ;;  %v4215_v41 = vadd.f32 %v4174_v63, %v3981_v51  ;;  %v3952_v16 = vpop.f32.mrf.mxu0 }
 0x5af   : > { %v3752_v60 = vadd.f32 %v3718_v37, %v3517_v0 }
 0x5b0   : > { %v4251_v40 = vadd.f32 %v7239_v3, %v4215_v41 }
 0x5b1   : > { %v4402_v14 = vpop.f32.mrf.mxu2 }
 0x5b2   : > { %v4403_v26 = vadd.f32 %v7290_v9, %v4402_v14  ;;  %v4283_v36 = vmax.f32 %v4251_v40, 0.0 }
 0x5b4   : > { %v4470_v6 = vmax.f32 %v4403_v26, 0.0 }
 0x5b5   : > { %v4176_v33 = vpop.f32.mrf.mxu1 }
 0x5b6   : > { %v4501_v15 = vadd.f32 %v4500_v39, %v4470_v6  ;;  %v4216_v48 = vadd.f32 %v4176_v33, %v3982_v22  ;;  %v3986_v39 = vadd.f32 %v3952_v16, %v3752_v60 }
 0x5b8   : > { %v4252_v23 = vadd.f32 %v7239_v3, %v4216_v48 }
 0x5b9   : > { %v4404_v34 = vpop.f32.mrf.mxu2 }
 0x5ba   : > { %v4284_v55 = vmax.f32 %v4252_v23, 0.0  ;;  %v4405_v5 = vadd.f32 %v7290_v9, %v4404_v34 }
 0x5bc   : > { %v4471_v17 = vmax.f32 %v4405_v5, 0.0  ;;  %v4302_v18 = vpack.c.bf16 %v4284_v55, %v4283_v36 }
 0x5bd   : > { %v4179_v38 = vpop.f32.mrf.mxu1 }
 0x5be   : > { %v4502_v8 = vadd.f32 %v4501_v15, %v4471_v17  ;;  %4446 = vmatmul.bf16.gmra.mxu2 %v4302_v18  ;;  %v4217_v54 = vadd.f32 %v4179_v38, %v3983_v44 }
 0x5c0   : > { %v4253_v11 = vadd.f32 %v7239_v3, %v4217_v54 }
 0x5c1   : > { %v4407_v32 = vpop.f32.mrf.mxu2 }
 0x5c2   : > { %v4408_v46 = vadd.f32 %v7290_v9, %v4407_v32  ;;  %v4285_v56 = vmax.f32 %v4253_v11, 0.0 }
 0x5c4   : > { %v4472_v53 = vmax.f32 %v4408_v46, 0.0 }
 0x5c5   : > { %v4181_v28 = vpop.f32.mrf.mxu1 }
 0x5c6   : > { %v4503_v1 = vadd.f32 %v4502_v8, %v4472_v53  ;;  %v4218_v43 = vadd.f32 %v4181_v28, %v3984_v27 }
 0x5c8   : > { %v4254_v42 = vadd.f32 %v7239_v3, %v4218_v43 }
 0x5c9   : > { %v4409_v49 = vpop.f32.mrf.mxu2 }
 0x5ca   : > { %v4286_v31 = vmax.f32 %v4254_v42, 0.0  ;;  %v4410_v59 = vadd.f32 %v7290_v9, %v4409_v49 }
 0x5cc   : > { %v4473_v29 = vmax.f32 %v4410_v59, 0.0  ;;  %v4303_v2 = vpack.c.bf16 %v4286_v31, %v4285_v56 }
 0x5cd   : > { %v4184_v24 = vpop.f32.mrf.mxu1 }
 0x5ce   : > { %v4504_v13 = vadd.f32 %v4503_v1, %v4473_v29  ;;  %4451 = vmatmul.bf16.gmra.mxu2 %v4303_v2  ;;  %v4219_v63 = vadd.f32 %v4184_v24, %v3985_v21 }
 0x5d0   : > { %v4255_v51 = vadd.f32 %v7239_v3, %v4219_v63 }
 0x5d1   : > { %v4412_v30 = vpop.f32.mrf.mxu2 }
 0x5d2   : > { %v4413_v25 = vadd.f32 %v7290_v9, %v4412_v30  ;;  %v4287_v12 = vmax.f32 %v4255_v51, 0.0 }
 0x5d4   : > { %v4474_v4 = vmax.f32 %v4413_v25, 0.0 }
 0x5d5   : > { %v4186_v50 = vpop.f32.mrf.mxu1 }
 0x5d6   : > { %v4505_v14 = vadd.f32 %v4504_v13, %v4474_v4  ;;  %v4220_v41 = vadd.f32 %v4186_v50, %v3986_v39 }
 0x5d8   : > { %v4256_v26 = vadd.f32 %v7239_v3, %v4220_v41 }
 0x5d9   : > { %v4414_v6 = vpop.f32.mrf.mxu2 }
 0x5da   : > { %v4288_v22 = vmax.f32 %v4256_v26, 0.0  ;;  %v4415_v7 = vadd.f32 %v7290_v9, %v4414_v6 }
 0x5dc   : > { %v4475_v33 = vmax.f32 %v4415_v7, 0.0  ;;  %v4304_v40 = vpack.c.bf16 %v4288_v22, %v4287_v12 }
 0x5de   : > { %v4506_v15 = vadd.f32 %v4505_v14, %v4475_v33  ;;  %4456 = vmatmul.bf16.gmra.mxu2 %v4304_v40 }
 0x5e1   : > { %v4417_v48 = vpop.f32.mrf.mxu2 }
 0x5e2   : > { %v4418_v23 = vadd.f32 %v7290_v9, %v4417_v48 }
 0x5e4   : > { %v4476_v47 = vmax.f32 %v4418_v23, 0.0 }
 0x5e6   : > { %v4507_v34 = vadd.f32 %v4506_v15, %v4476_v47 }
 0x5e9   : > { %v4419_v36 = vpop.f32.mrf.mxu2 }
 0x5ea   : > { %v4420_v55 = vadd.f32 %v7290_v9, %v4419_v36 }
 0x5ec   : > { %v4477_v5 = vmax.f32 %v4420_v55, 0.0 }
 0x5ee   : > { %v4508_v20 = vadd.f32 %v4507_v34, %v4477_v5 }
 0x5f1   : > { %v4422_v3 = vpop.f32.mrf.mxu2 }
 0x5f2   : > { %v4423_v17 = vadd.f32 %v7290_v9, %v4422_v3 }
 0x5f4   : > { %v4478_v18 = vmax.f32 %v4423_v17, 0.0 }
 0x5f6   : > { %v4509_v38 = vadd.f32 %v4508_v20, %v4478_v18 }
 0x5f9   : > { %v4424_v19 = vpop.f32.mrf.mxu2 }
 0x5fa   : > { %v4425_v35 = vadd.f32 %v7290_v9, %v4424_v19 }
 0x5fc   : > { %v4479_v8 = vmax.f32 %v4425_v35, 0.0 }
 0x5fe   : > { %v4510_v45 = vadd.f32 %v4509_v38, %v4479_v8 }
 0x601   : > { %v4427_v57 = vpop.f32.mrf.mxu2 }
 0x602   : > { %v4428_v44 = vadd.f32 %v7290_v9, %v4427_v57 }
 0x604   : > { %v4480_v32 = vmax.f32 %v4428_v44, 0.0 }
 0x606   : > { %v4511_v54 = vadd.f32 %v4510_v45, %v4480_v32 }
 0x609   : > { %v4429_v46 = vpop.f32.mrf.mxu2 }
 0x60a   : > { %v4430_v61 = vadd.f32 %v7290_v9, %v4429_v46 }
 0x60c   : > { %v4481_v53 = vmax.f32 %v4430_v61, 0.0 }
 0x60e   : > { %v4512_v27 = vadd.f32 %v4511_v54, %v4481_v53 }
 0x611   : > { %v4432_v28 = vpop.f32.mrf.mxu2 }
 0x612   : > { %v4433_v11 = vadd.f32 %v7290_v9, %v4432_v28 }
 0x614   : > { %v4482_v1 = vmax.f32 %v4433_v11, 0.0 }
 0x616   : > { %v4513_v43 = vadd.f32 %v4512_v27, %v4482_v1 }
 0x619   : > { %v4434_v62 = vpop.f32.mrf.mxu2 }
 0x61a   : > { %v4435_v29 = vadd.f32 %v7290_v9, %v4434_v62 }
 0x61c   : > { %v4483_v37 = vmax.f32 %v4435_v29, 0.0 }
 0x61e   : > { %v4514_v21 = vadd.f32 %v4513_v43, %v4483_v37 }
 0x621   : > { %v4437_v42 = vpop.f32.mrf.mxu2 }
 0x622   : > { %v4438_v2 = vadd.f32 %v7290_v9, %v4437_v42 }
 0x624   : > { %v4484_v10 = vmax.f32 %v4438_v2, 0.0 }
 0x626   : > { %v4515_v30 = vadd.f32 %v4514_v21, %v4484_v10 }
 0x629   : > { %v4439_v49 = vpop.f32.mrf.mxu2 }
 0x62a   : > { %v4440_v24 = vadd.f32 %v7290_v9, %v4439_v49 }
 0x62c   : > { %v4485_v60 = vmax.f32 %v4440_v24, 0.0 }
 0x62e   : > { %v4516_v39 = vadd.f32 %v4515_v30, %v4485_v60 }
 0x631   : > { %v4442_v56 = vpop.f32.mrf.mxu2 }
 0x632   : > { %v4443_v0 = vadd.f32 %v7290_v9, %v4442_v56 }
 0x634   : > { %v4486_v63 = vmax.f32 %v4443_v0, 0.0 }
 0x636   : > { %v4517_v51 = vadd.f32 %v4516_v39, %v4486_v63 }
 0x639   : > { %v4444_v31 = vpop.f32.mrf.mxu2 }
 0x63a   : > { %v4445_v16 = vadd.f32 %v7290_v9, %v4444_v31 }
 0x63c   : > { %v4487_v4 = vmax.f32 %v4445_v16, 0.0 }
 0x63e   : > { %v4518_v6 = vadd.f32 %v4517_v51, %v4487_v4 }
 0x641   : > { %v4447_v59 = vpop.f32.mrf.mxu2 }
 0x642   : > { %v4448_v25 = vadd.f32 %v7290_v9, %v4447_v59 }
 0x644   : > { %v4488_v14 = vmax.f32 %v4448_v25, 0.0 }
 0x646   : > { %v4519_v7 = vadd.f32 %v4518_v6, %v4488_v14 }
 0x649   : > { %v4449_v52 = vpop.f32.mrf.mxu2 }
 0x64a   : > { %v4450_v50 = vadd.f32 %v7290_v9, %v4449_v52 }
 0x64c   : > { %v4489_v12 = vmax.f32 %v4450_v50, 0.0 }
 0x64e   : > { %v4520_v15 = vadd.f32 %v4519_v7, %v4489_v12 }
 0x651   : > { %v4452_v58 = vpop.f32.mrf.mxu2 }
 0x652   : > { %v4453_v41 = vadd.f32 %v7290_v9, %v4452_v58 }
 0x654   : > { %v4490_v33 = vmax.f32 %v4453_v41, 0.0 }
 0x656   : > { %v4521_v23 = vadd.f32 %v4520_v15, %v4490_v33 }
 0x659   : > { %v4454_v13 = vpop.f32.mrf.mxu2 }
 0x65a   : > { %v4455_v22 = vadd.f32 %v7290_v9, %v4454_v13 }
 0x65c   : > { %v4491_v48 = vmax.f32 %v4455_v22, 0.0 }
 0x65e   : > { %v4522_v36 = vadd.f32 %v4521_v23, %v4491_v48 }
 0x661   : > { %v4457_v26 = vpop.f32.mrf.mxu2 }
 0x662   : > { %v4458_v40 = vadd.f32 %v7290_v9, %v4457_v26 }
 0x664   : > { %v4492_v47 = vmax.f32 %v4458_v40, 0.0 }
 0x666   : > { %v4523_v5 = vadd.f32 %v4522_v36, %v4492_v47 }
 0x669   : > { %v4459_v34 = vpop.f32.mrf.mxu2 }
 0x66a   : > { %v4460_v55 = vadd.f32 %v7290_v9, %v4459_v34 }
 0x66c   : > { %v4493_v20 = vmax.f32 %v4460_v55, 0.0 }
 0x66e   : > { %v4524_v3 = vadd.f32 %v4523_v5, %v4493_v20 }
 0x670   : > { %v4525_v17 = vrot.slane %v4524_v3, 4 }
 0x672   : > { %v4526_v18 = vadd.f32 %v4525_v17, %v4524_v3 }
 0x674   : > { %v4527_v38 = vrot.slane %v4526_v18, 2 }
 0x676   : > { %v4528_v19 = vadd.f32 %v4527_v38, %v4526_v18 }
 0x678   : > { %v4529_v35 = vrot.slane %v4528_v19, 1 }
 0x67a   : > { %v4530_v8 = vadd.f32 %v4529_v35, %v4528_v19 }
 0x67c   : > { %v4531_v45 = vmul.f32 %v4530_v8, %v4530_v8 }
 0x67e   : > { %4532 = vadd.xlane.f32.xlu0 %v4531_v45 }
 0x6f1   : > { %v4533_v57 = vpop.xlane.xlu0 %4532 }
 0x6f2   : > { %5324 = vrsqrt.f32 %v4533_v57  ;;  %vm4541_vm4 = vcmp.eq.f32.partialorder %v4533_v57, inf  ;;  %v4544_v27 = vand.u32 2147483648, %v4533_v57  ;;  %vm4543_vm5 = vcmp.eq.f32.partialorder %v4533_v57, 0.0 }
 0x6f8   : > { %v5325_v44 = vpop.eup %5324 }
 0x6f9   : > { %v4535_v32 = vmul.f32 %v5325_v44, %v4533_v57 }
 0x6fb   : > { %v4536_v54 = vmul.f32 %v5325_v44, %v4535_v32 }
 0x6fd   : > { %v4537_v46 = vmul.f32 0.5, %v4536_v54 }
 0x6ff   : > { %v4538_v61 = vsub.f32 1.5, %v4537_v46 }
 0x701   : > { %v4539_v53 = vmul.f32 %v5325_v44, %v4538_v61 }
 0x703   : > { %v4540_v9 = vmul.f32 %v4539_v53, %v4533_v57 }
 0x705   : > { %v4542_v28 = vsel %vm4541_vm4, %v4533_v57, %v4540_v9 }
 0x706   : > { %v4545_v11 = vsel %vm4543_vm5, %v4544_v27, %v4542_v28 }
 0x707   : > { %v4546_v1 = vadd.f32 1e-08, %v4545_v11 }
 0x709   : > { %5326 = vrcp.f32 %v4546_v1  ;;  %v4558_v49 = vand.u32 2147483648, %v4546_v1  ;;  %v4556_v31 = vand.u32 2147483647, %v4546_v1  ;;  %vm4552_vm7 = vweird.f32 %v4546_v1 }
 0x70b   : > { %v4559_v52 = vor.u32 1.1754944e-38, %v4558_v49  ;;  %vm4557_vm9 = vcmp.eq.f32.partialorder %v4556_v31, 8.507059e+37 }
 0x70f   : > { %v5327_v43 = vpop.eup %5326 }
 0x710   : > { %v4548_v62 = vmul.f32 %v5327_v43, %v4546_v1  ;;  %vm4553_vm6 = vweird.f32 %v5327_v43 }
 0x711   : > { %vm4554_vm8 = vmor %vm4552_vm7, %vm4553_vm6 }
 0x712   : > { %v4549_v42 = vsub.f32 1.0, %v4548_v62 }
 0x714   : > { %v4550_v56 = vmul.f32 %v5327_v43, %v4549_v42 }
 0x716   : > { %v4551_v59 = vadd.f32 %v5327_v43, %v4550_v56 }
 0x718   : > { %v4555_v58 = vsel %vm4554_vm8, %v5327_v43, %v4551_v59 }
 0x719   : > { %v4560_v29 = vsel %vm4557_vm9, %v4559_v52, %v4555_v58 }
 0x71a   : > { %v4561_v2 = vmul.f32 %v4560_v29, %v4530_v8 }
 0x71c   : > { %4562 = vst [vmem:[%s315_s26] sm:$0x1] %v4561_v2 }
 0x71d PF: > { %s18_s27 = sadd.s32 1, %s5337_s27  }
 0x71e   : > { %p15_p4 = scmp.ge.s32.totalorder %s18_s27, 4  }
 0x720   :  { %17 = sbr.rel (!%p15_p4) target bundleno = 1 (0x1), region = 103 }

</bundles_post_ra>
